<compile_context>
chip_gen: v5e
topology: v5e:2x2
jax: 0.10.0
libtpu: 0.0.40
codegen_flags: <defaults>
</compile_context>

<pallas_src>
import functools

import jax
import jax.numpy as jnp
from jax import lax
from jax.experimental import pallas as pl
from jax.experimental.pallas import tpu as pltpu


def basic_block_kernel(x_ref, w1_ref, w2_ref,
                       s0_ref, b0_ref, s1_ref, b1_ref,
                       out_ref, pad_ref, col_ref):
    """Fused bn0 -> relu -> conv3x3 -> bn1 -> relu -> conv3x3 -> +identity.

    x_ref   : (1, H, W, C)  f32   one batch element per grid step (NHWC)
    w*_ref  : (9*C, C)      bf16  packed conv weights, row = (kh*3+kw)*C + ci
    s*/b*   : (1, C)        f32   folded batchnorm scale / bias
    out_ref : (1, H, W, C)
    pad_ref : (H+2, W+2, C) bf16  zero-padded activation scratch
    col_ref : (H, W, 9*C)   bf16  im2col scratch
    """
    _, H, W, C = x_ref.shape
    HW = H * W

    x = x_ref[...].reshape(HW, C).astype(jnp.float32)

    # ---- bn0 + relu (folded, inference mode) ----
    h = jnp.maximum(x * s0_ref[...] + b0_ref[...], 0.0)

    # ---- zero only the 1-pixel border of the padded scratch ----
    # (interior is fully overwritten below; whole-buffer zeroing wastes the
    #  single vector-store slot)
    pad_ref[0:1, :, :] = jnp.zeros((1, W + 2, C), pad_ref.dtype)
    pad_ref[H + 1:H + 2, :, :] = jnp.zeros((1, W + 2, C), pad_ref.dtype)
    pad_ref[:, 0:1, :] = jnp.zeros((H + 2, 1, C), pad_ref.dtype)
    pad_ref[:, W + 1:W + 2, :] = jnp.zeros((H + 2, 1, C), pad_ref.dtype)

    def conv3x3(act_flat, w_ref):
        # act_flat: (HW, C) f32 -> padded interior as bf16
        pad_ref[1:1 + H, 1:1 + W, :] = (
            act_flat.reshape(H, W, C).astype(pad_ref.dtype))
        # im2col: 9 shifted taps laid out along the lane (channel) axis.
        for kh in range(3):
            for kw in range(3):
                tap = kh * 3 + kw
                col_ref[:, :, tap * C:(tap + 1) * C] = \
                    pad_ref[kh:kh + H, kw:kw + W, :]
        col = col_ref[...].reshape(HW, 9 * C)
        # One MXU matmul per conv, bf16 operands, f32 accumulation.
        return jnp.dot(col, w_ref[...], preferred_element_type=jnp.float32)

    # ---- conv1 ----
    y1 = conv3x3(h, w1_ref)                                   # (HW, C) f32
    # ---- bn1 + relu ----
    h2 = jnp.maximum(y1 * s1_ref[...] + b1_ref[...], 0.0)
    # ---- conv2 ----
    y2 = conv3x3(h2, w2_ref)                                  # (HW, C) f32

    # ---- residual add ----
    out_ref[...] = (y2 + x).reshape(1, H, W, C).astype(out_ref.dtype)


def pack_weights(w_oihw):
    """OIHW (C,C,3,3) -> packed (9*C, C) bf16, row index = (kh*3+kw)*C + ci."""
    C = w_oihw.shape[0]
    w_hwio = jnp.transpose(w_oihw, (2, 3, 1, 0))        # (3, 3, Cin, Cout)
    return w_hwio.reshape(9 * C, C).astype(jnp.bfloat16)


@jax.jit
def basic_block_nhwc(x_nhwc, w1_packed, w2_packed,
                     bn0_scale, bn0_bias, bn1_scale, bn1_bias):
    """NHWC activations in/out; weights already packed by pack_weights()."""
    N, H, W, C = x_nhwc.shape

    s0 = bn0_scale.reshape(1, C).astype(jnp.float32)
    b0 = bn0_bias.reshape(1, C).astype(jnp.float32)
    s1 = bn1_scale.reshape(1, C).astype(jnp.float32)
    b1 = bn1_bias.reshape(1, C).astype(jnp.float32)

    full2 = lambda n: (0, 0)
    per_batch = lambda n: (n, 0, 0, 0)

    return pl.pallas_call(
        basic_block_kernel,
        out_shape=jax.ShapeDtypeStruct((N, H, W, C), x_nhwc.dtype),
        grid_spec=pltpu.PrefetchScalarGridSpec(
            num_scalar_prefetch=0,
            grid=(N,),
            in_specs=[
                pl.BlockSpec((1, H, W, C), per_batch),    # x
                pl.BlockSpec((9 * C, C), full2),          # conv1 weight (packed)
                pl.BlockSpec((9 * C, C), full2),          # conv2 weight (packed)
                pl.BlockSpec((1, C), full2),              # bn0 scale
                pl.BlockSpec((1, C), full2),              # bn0 bias
                pl.BlockSpec((1, C), full2),              # bn1 scale
                pl.BlockSpec((1, C), full2),              # bn1 bias
            ],
            out_specs=pl.BlockSpec((1, H, W, C), per_batch),
            scratch_shapes=[
                pltpu.VMEM((H + 2, W + 2, C), jnp.bfloat16),   # padded acts
                pltpu.VMEM((H, W, 9 * C), jnp.bfloat16),       # im2col buffer
            ],
        ),
        compiler_params=pltpu.CompilerParams(
            dimension_semantics=("parallel",),
            vmem_limit_bytes=32 * 1024 * 1024),
    )(x_nhwc, w1_packed, w2_packed, s0, b0, s1, b1)


# ---------------------------------------------------------------------------
# Pure-JAX reference (lax conv, NCHW) for correctness checking.
# ---------------------------------------------------------------------------
def _bn_ref(x, gamma, beta, mean, var, eps=1e-5):
    inv = gamma / jnp.sqrt(var + eps)
    return (x - mean[None, :, None, None]) * inv[None, :, None, None] \
        + beta[None, :, None, None]


def basic_block_ref(x, w1, w2, bn0, bn1):
    conv = lambda a, w: lax.conv_general_dilated(
        a, w, window_strides=(1, 1), padding="SAME",
        dimension_numbers=("NCHW", "OIHW", "NCHW"))
    out = _bn_ref(x, *bn0)
    out = jnp.maximum(out, 0.0)
    out = conv(out, w1)
    out = _bn_ref(out, *bn1)
    out = jnp.maximum(out, 0.0)
    out = conv(out, w2)
    return out + x


if __name__ == "__main__":
    key = jax.random.PRNGKey(0)
    N, C, H, W = 2, 4, 16, 16          # inplanes == planes, stride=1
    ks = jax.random.split(key, 11)

    x = jax.random.normal(ks[0], (N, C, H, W), jnp.float32)
    w1 = jax.random.normal(ks[1], (C, C, 3, 3), jnp.float32) * 0.1   # conv1 (OIHW)
    w2 = jax.random.normal(ks[2], (C, C, 3, 3), jnp.float32) * 0.1   # conv2 (OIHW)

    # BatchNorm params (inference mode): gamma, beta, running_mean, running_var
    g0 = 1.0 + 0.1 * jax.random.normal(ks[3], (C,), jnp.float32)
    b0 = 0.1 * jax.random.normal(ks[4], (C,), jnp.float32)
    m0 = 0.1 * jax.random.normal(ks[5], (C,), jnp.float32)
    v0 = 1.0 + 0.1 * jnp.abs(jax.random.normal(ks[6], (C,), jnp.float32))
    g1 = 1.0 + 0.1 * jax.random.normal(ks[7], (C,), jnp.float32)
    b1 = 0.1 * jax.random.normal(ks[8], (C,), jnp.float32)
    m1 = 0.1 * jax.random.normal(ks[9], (C,), jnp.float32)
    v1 = 1.0 + 0.1 * jnp.abs(jax.random.normal(ks[10], (C,), jnp.float32))

    eps = 1e-5
    bn0_scale = g0 / jnp.sqrt(v0 + eps)
    bn0_bias = b0 - m0 * bn0_scale
    bn1_scale = g1 / jnp.sqrt(v1 + eps)
    bn1_bias = b1 - m1 * bn1_scale

    # One-time weight packing (would be done at model init when stacking blocks).
    w1p = pack_weights(w1)
    w2p = pack_weights(w2)

    # Test-harness layout conversion only; the kernel wrapper is NHWC in/out.
    x_nhwc = jnp.transpose(x, (0, 2, 3, 1))
    out_nhwc = basic_block_nhwc(x_nhwc, w1p, w2p,
                                bn0_scale, bn0_bias, bn1_scale, bn1_bias)
    out_nhwc = jax.block_until_ready(out_nhwc)
    out = jnp.transpose(out_nhwc, (0, 3, 1, 2))

    ref = basic_block_ref(x, w1, w2, (g0, b0, m0, v0), (g1, b1, m1, v1))
    ref = jax.block_until_ready(ref)

    assert out.shape == (N, C, H, W)
    # bf16 MXU operands -> tolerance relaxed vs. pure-f32.
    max_err = float(jnp.max(jnp.abs(out - ref)))
    assert jnp.allclose(out, ref, atol=3e-2, rtol=3e-2), \
        f"max abs err = {max_err}"

    print("KERNEL_OK")
</pallas_src>

<mosaic_0001>
module attributes {stable_mosaic.version = 11 : i64} {
  func.func @basic_block_kernel(%arg0: i32, %arg1: memref<1x16x16x4xf32, #tpu.memory_space<vmem>>, %arg2: memref<36x4xbf16, #tpu.memory_space<vmem>>, %arg3: memref<36x4xbf16, #tpu.memory_space<vmem>>, %arg4: memref<1x4xf32, #tpu.memory_space<vmem>>, %arg5: memref<1x4xf32, #tpu.memory_space<vmem>>, %arg6: memref<1x4xf32, #tpu.memory_space<vmem>>, %arg7: memref<1x4xf32, #tpu.memory_space<vmem>>, %arg8: memref<1x16x16x4xf32, #tpu.memory_space<vmem>>, %arg9: memref<18x18x4xbf16, #tpu.memory_space<vmem>>, %arg10: memref<16x16x36xbf16, #tpu.memory_space<vmem>>) attributes {dimension_semantics = [#tpu.dimension_semantics<parallel>], iteration_bounds = array<i64: 2>, scalar_prefetch = 0 : i64, scratch_operands = 2 : i64, tpu.core_type = #tpu.core_type<tc>, window_params = [{transform_indices = @transform_0, window_bounds = array<i64: 1, 16, 16, 4>}, {pipeline_mode = #tpu.pipeline_mode<synchronous>, transform_indices = @transform_1, window_bounds = array<i64: 36, 4>}, {pipeline_mode = #tpu.pipeline_mode<synchronous>, transform_indices = @transform_2, window_bounds = array<i64: 36, 4>}, {pipeline_mode = #tpu.pipeline_mode<synchronous>, transform_indices = @transform_3, window_bounds = array<i64: 1, 4>}, {pipeline_mode = #tpu.pipeline_mode<synchronous>, transform_indices = @transform_4, window_bounds = array<i64: 1, 4>}, {pipeline_mode = #tpu.pipeline_mode<synchronous>, transform_indices = @transform_5, window_bounds = array<i64: 1, 4>}, {pipeline_mode = #tpu.pipeline_mode<synchronous>, transform_indices = @transform_6, window_bounds = array<i64: 1, 4>}, {transform_indices = @transform_7, window_bounds = array<i64: 1, 16, 16, 4>}]} {
    %c0 = arith.constant 0 : index
    %c0_0 = arith.constant 0 : index
    %c0_1 = arith.constant 0 : index
    %c0_2 = arith.constant 0 : index
    %0 = vector.load %arg1[%c0, %c0_0, %c0_1, %c0_2] : memref<1x16x16x4xf32, #tpu.memory_space<vmem>>, vector<1x16x16x4xf32>
    %1 = vector.shape_cast %0 : vector<1x16x16x4xf32> to vector<256x4xf32>
    %c0_3 = arith.constant 0 : index
    %c0_4 = arith.constant 0 : index
    %2 = vector.load %arg4[%c0_3, %c0_4] : memref<1x4xf32, #tpu.memory_space<vmem>>, vector<1x4xf32>
    %3 = vector.broadcast %2 : vector<1x4xf32> to vector<256x4xf32>
    %4 = arith.mulf %1, %3 : vector<256x4xf32>
    %c0_5 = arith.constant 0 : index
    %c0_6 = arith.constant 0 : index
    %5 = vector.load %arg5[%c0_5, %c0_6] : memref<1x4xf32, #tpu.memory_space<vmem>>, vector<1x4xf32>
    %6 = vector.broadcast %5 : vector<1x4xf32> to vector<256x4xf32>
    %7 = arith.addf %4, %6 : vector<256x4xf32>
    %cst = arith.constant 0.000000e+00 : f32
    %8 = vector.broadcast %cst : f32 to vector<256x4xf32>
    %9 = arith.maximumf %7, %8 : vector<256x4xf32>
    %cst_7 = arith.constant 0.000000e+00 : bf16
    %10 = vector.broadcast %cst_7 : bf16 to vector<1x18x4xbf16>
    %c0_8 = arith.constant 0 : index
    %c0_9 = arith.constant 0 : index
    %c0_10 = arith.constant 0 : index
    %11 = vector.load %arg9[%c0_8, %c0_9, %c0_10] : memref<18x18x4xbf16, #tpu.memory_space<vmem>>, vector<1x18x4xbf16>
    tpu.vector_store %arg9[%c0_8, %c0_9, %c0_10], %10 {strides = array<i32>} : memref<18x18x4xbf16, #tpu.memory_space<vmem>>, vector<1x18x4xbf16>,
    %cst_11 = arith.constant 0.000000e+00 : bf16
    %12 = vector.broadcast %cst_11 : bf16 to vector<1x18x4xbf16>
    %c17 = arith.constant 17 : index
    %c0_12 = arith.constant 0 : index
    %c0_13 = arith.constant 0 : index
    %13 = vector.load %arg9[%c17, %c0_12, %c0_13] : memref<18x18x4xbf16, #tpu.memory_space<vmem>>, vector<1x18x4xbf16>
    tpu.vector_store %arg9[%c17, %c0_12, %c0_13], %12 {strides = array<i32>} : memref<18x18x4xbf16, #tpu.memory_space<vmem>>, vector<1x18x4xbf16>,
    %cst_14 = arith.constant 0.000000e+00 : bf16
    %14 = vector.broadcast %cst_14 : bf16 to vector<18x1x4xbf16>
    %c0_15 = arith.constant 0 : index
    %c0_16 = arith.constant 0 : index
    %c0_17 = arith.constant 0 : index
    %15 = vector.load %arg9[%c0_15, %c0_16, %c0_17] : memref<18x18x4xbf16, #tpu.memory_space<vmem>>, vector<18x1x4xbf16>
    tpu.vector_store %arg9[%c0_15, %c0_16, %c0_17], %14 {strides = array<i32>} : memref<18x18x4xbf16, #tpu.memory_space<vmem>>, vector<18x1x4xbf16>,
    %cst_18 = arith.constant 0.000000e+00 : bf16
    %16 = vector.broadcast %cst_18 : bf16 to vector<18x1x4xbf16>
    %c0_19 = arith.constant 0 : index
    %c17_20 = arith.constant 17 : index
    %c0_21 = arith.constant 0 : index
    %17 = vector.load %arg9[%c0_19, %c17_20, %c0_21] : memref<18x18x4xbf16, #tpu.memory_space<vmem>>, vector<18x1x4xbf16>
    tpu.vector_store %arg9[%c0_19, %c17_20, %c0_21], %16 {strides = array<i32>} : memref<18x18x4xbf16, #tpu.memory_space<vmem>>, vector<18x1x4xbf16>,
    %18 = vector.shape_cast %9 : vector<256x4xf32> to vector<16x16x4xf32>
    %19 = arith.truncf %18 : vector<16x16x4xf32> to vector<16x16x4xbf16>
    %c1 = arith.constant 1 : index
    %c1_22 = arith.constant 1 : index
    %c0_23 = arith.constant 0 : index
    %20 = vector.load %arg9[%c1, %c1_22, %c0_23] : memref<18x18x4xbf16, #tpu.memory_space<vmem>>, vector<16x16x4xbf16>
    tpu.vector_store %arg9[%c1, %c1_22, %c0_23], %19 {strides = array<i32>} : memref<18x18x4xbf16, #tpu.memory_space<vmem>>, vector<16x16x4xbf16>,
    %c0_24 = arith.constant 0 : index
    %c0_25 = arith.constant 0 : index
    %c0_26 = arith.constant 0 : index
    %21 = vector.load %arg9[%c0_24, %c0_25, %c0_26] : memref<18x18x4xbf16, #tpu.memory_space<vmem>>, vector<16x16x4xbf16>
    %c0_27 = arith.constant 0 : index
    %c0_28 = arith.constant 0 : index
    %c0_29 = arith.constant 0 : index
    %22 = vector.load %arg10[%c0_27, %c0_28, %c0_29] : memref<16x16x36xbf16, #tpu.memory_space<vmem>>, vector<16x16x4xbf16>
    tpu.vector_store %arg10[%c0_27, %c0_28, %c0_29], %21 {strides = array<i32>} : memref<16x16x36xbf16, #tpu.memory_space<vmem>>, vector<16x16x4xbf16>,
    %c0_30 = arith.constant 0 : index
    %c1_31 = arith.constant 1 : index
    %c0_32 = arith.constant 0 : index
    %23 = vector.load %arg9[%c0_30, %c1_31, %c0_32] : memref<18x18x4xbf16, #tpu.memory_space<vmem>>, vector<16x16x4xbf16>
    %c0_33 = arith.constant 0 : index
    %c0_34 = arith.constant 0 : index
    %c4 = arith.constant 4 : index
    %24 = vector.load %arg10[%c0_33, %c0_34, %c4] : memref<16x16x36xbf16, #tpu.memory_space<vmem>>, vector<16x16x4xbf16>
    tpu.vector_store %arg10[%c0_33, %c0_34, %c4], %23 {strides = array<i32>} : memref<16x16x36xbf16, #tpu.memory_space<vmem>>, vector<16x16x4xbf16>,
    %c0_35 = arith.constant 0 : index
    %c2 = arith.constant 2 : index
    %c0_36 = arith.constant 0 : index
    %25 = vector.load %arg9[%c0_35, %c2, %c0_36] : memref<18x18x4xbf16, #tpu.memory_space<vmem>>, vector<16x16x4xbf16>
    %c0_37 = arith.constant 0 : index
    %c0_38 = arith.constant 0 : index
    %c8 = arith.constant 8 : index
    %26 = vector.load %arg10[%c0_37, %c0_38, %c8] : memref<16x16x36xbf16, #tpu.memory_space<vmem>>, vector<16x16x4xbf16>
    tpu.vector_store %arg10[%c0_37, %c0_38, %c8], %25 {strides = array<i32>} : memref<16x16x36xbf16, #tpu.memory_space<vmem>>, vector<16x16x4xbf16>,
    %c1_39 = arith.constant 1 : index
    %c0_40 = arith.constant 0 : index
    %c0_41 = arith.constant 0 : index
    %27 = vector.load %arg9[%c1_39, %c0_40, %c0_41] : memref<18x18x4xbf16, #tpu.memory_space<vmem>>, vector<16x16x4xbf16>
    %c0_42 = arith.constant 0 : index
    %c0_43 = arith.constant 0 : index
    %c12 = arith.constant 12 : index
    %28 = vector.load %arg10[%c0_42, %c0_43, %c12] : memref<16x16x36xbf16, #tpu.memory_space<vmem>>, vector<16x16x4xbf16>
    tpu.vector_store %arg10[%c0_42, %c0_43, %c12], %27 {strides = array<i32>} : memref<16x16x36xbf16, #tpu.memory_space<vmem>>, vector<16x16x4xbf16>,
    %c1_44 = arith.constant 1 : index
    %c1_45 = arith.constant 1 : index
    %c0_46 = arith.constant 0 : index
    %29 = vector.load %arg9[%c1_44, %c1_45, %c0_46] : memref<18x18x4xbf16, #tpu.memory_space<vmem>>, vector<16x16x4xbf16>
    %c0_47 = arith.constant 0 : index
    %c0_48 = arith.constant 0 : index
    %c16 = arith.constant 16 : index
    %30 = vector.load %arg10[%c0_47, %c0_48, %c16] : memref<16x16x36xbf16, #tpu.memory_space<vmem>>, vector<16x16x4xbf16>
    tpu.vector_store %arg10[%c0_47, %c0_48, %c16], %29 {strides = array<i32>} : memref<16x16x36xbf16, #tpu.memory_space<vmem>>, vector<16x16x4xbf16>,
    %c1_49 = arith.constant 1 : index
    %c2_50 = arith.constant 2 : index
    %c0_51 = arith.constant 0 : index
    %31 = vector.load %arg9[%c1_49, %c2_50, %c0_51] : memref<18x18x4xbf16, #tpu.memory_space<vmem>>, vector<16x16x4xbf16>
    %c0_52 = arith.constant 0 : index
    %c0_53 = arith.constant 0 : index
    %c20 = arith.constant 20 : index
    %32 = vector.load %arg10[%c0_52, %c0_53, %c20] : memref<16x16x36xbf16, #tpu.memory_space<vmem>>, vector<16x16x4xbf16>
    tpu.vector_store %arg10[%c0_52, %c0_53, %c20], %31 {strides = array<i32>} : memref<16x16x36xbf16, #tpu.memory_space<vmem>>, vector<16x16x4xbf16>,
    %c2_54 = arith.constant 2 : index
    %c0_55 = arith.constant 0 : index
    %c0_56 = arith.constant 0 : index
    %33 = vector.load %arg9[%c2_54, %c0_55, %c0_56] : memref<18x18x4xbf16, #tpu.memory_space<vmem>>, vector<16x16x4xbf16>
    %c0_57 = arith.constant 0 : index
    %c0_58 = arith.constant 0 : index
    %c24 = arith.constant 24 : index
    %34 = vector.load %arg10[%c0_57, %c0_58, %c24] : memref<16x16x36xbf16, #tpu.memory_space<vmem>>, vector<16x16x4xbf16>
    tpu.vector_store %arg10[%c0_57, %c0_58, %c24], %33 {strides = array<i32>} : memref<16x16x36xbf16, #tpu.memory_space<vmem>>, vector<16x16x4xbf16>,
    %c2_59 = arith.constant 2 : index
    %c1_60 = arith.constant 1 : index
    %c0_61 = arith.constant 0 : index
    %35 = vector.load %arg9[%c2_59, %c1_60, %c0_61] : memref<18x18x4xbf16, #tpu.memory_space<vmem>>, vector<16x16x4xbf16>
    %c0_62 = arith.constant 0 : index
    %c0_63 = arith.constant 0 : index
    %c28 = arith.constant 28 : index
    %36 = vector.load %arg10[%c0_62, %c0_63, %c28] : memref<16x16x36xbf16, #tpu.memory_space<vmem>>, vector<16x16x4xbf16>
    tpu.vector_store %arg10[%c0_62, %c0_63, %c28], %35 {strides = array<i32>} : memref<16x16x36xbf16, #tpu.memory_space<vmem>>, vector<16x16x4xbf16>,
    %c2_64 = arith.constant 2 : index
    %c2_65 = arith.constant 2 : index
    %c0_66 = arith.constant 0 : index
    %37 = vector.load %arg9[%c2_64, %c2_65, %c0_66] : memref<18x18x4xbf16, #tpu.memory_space<vmem>>, vector<16x16x4xbf16>
    %c0_67 = arith.constant 0 : index
    %c0_68 = arith.constant 0 : index
    %c32 = arith.constant 32 : index
    %38 = vector.load %arg10[%c0_67, %c0_68, %c32] : memref<16x16x36xbf16, #tpu.memory_space<vmem>>, vector<16x16x4xbf16>
    tpu.vector_store %arg10[%c0_67, %c0_68, %c32], %37 {strides = array<i32>} : memref<16x16x36xbf16, #tpu.memory_space<vmem>>, vector<16x16x4xbf16>,
    %c0_69 = arith.constant 0 : index
    %c0_70 = arith.constant 0 : index
    %c0_71 = arith.constant 0 : index
    %39 = vector.load %arg10[%c0_69, %c0_70, %c0_71] : memref<16x16x36xbf16, #tpu.memory_space<vmem>>, vector<16x16x36xbf16>
    %40 = vector.shape_cast %39 : vector<16x16x36xbf16> to vector<256x36xbf16>
    %c0_72 = arith.constant 0 : index
    %c0_73 = arith.constant 0 : index
    %41 = vector.load %arg2[%c0_72, %c0_73] : memref<36x4xbf16, #tpu.memory_space<vmem>>, vector<36x4xbf16>
    %cst_74 = arith.constant dense<0.000000e+00> : vector<256x4xf32>
    %42 = tpu.matmul %40, %41, %cst_74 {dimension_numbers = #tpu.dot_dimension_numbers<[1], [0], [0], [1], [0, 0, 1, 1], [], []>} : vector<256x36xbf16>, vector<36x4xbf16>, vector<256x4xf32> -> vector<256x4xf32>
    %c0_75 = arith.constant 0 : index
    %c0_76 = arith.constant 0 : index
    %43 = vector.load %arg6[%c0_75, %c0_76] : memref<1x4xf32, #tpu.memory_space<vmem>>, vector<1x4xf32>
    %44 = vector.broadcast %43 : vector<1x4xf32> to vector<256x4xf32>
    %45 = arith.mulf %42, %44 : vector<256x4xf32>
    %c0_77 = arith.constant 0 : index
    %c0_78 = arith.constant 0 : index
    %46 = vector.load %arg7[%c0_77, %c0_78] : memref<1x4xf32, #tpu.memory_space<vmem>>, vector<1x4xf32>
    %47 = vector.broadcast %46 : vector<1x4xf32> to vector<256x4xf32>
    %48 = arith.addf %45, %47 : vector<256x4xf32>
    %cst_79 = arith.constant 0.000000e+00 : f32
    %49 = vector.broadcast %cst_79 : f32 to vector<256x4xf32>
    %50 = arith.maximumf %48, %49 : vector<256x4xf32>
    %51 = vector.shape_cast %50 : vector<256x4xf32> to vector<16x16x4xf32>
    %52 = arith.truncf %51 : vector<16x16x4xf32> to vector<16x16x4xbf16>
    %c1_80 = arith.constant 1 : index
    %c1_81 = arith.constant 1 : index
    %c0_82 = arith.constant 0 : index
    %53 = vector.load %arg9[%c1_80, %c1_81, %c0_82] : memref<18x18x4xbf16, #tpu.memory_space<vmem>>, vector<16x16x4xbf16>
    tpu.vector_store %arg9[%c1_80, %c1_81, %c0_82], %52 {strides = array<i32>} : memref<18x18x4xbf16, #tpu.memory_space<vmem>>, vector<16x16x4xbf16>,
    %c0_83 = arith.constant 0 : index
    %c0_84 = arith.constant 0 : index
    %c0_85 = arith.constant 0 : index
    %54 = vector.load %arg9[%c0_83, %c0_84, %c0_85] : memref<18x18x4xbf16, #tpu.memory_space<vmem>>, vector<16x16x4xbf16>
    %c0_86 = arith.constant 0 : index
    %c0_87 = arith.constant 0 : index
    %c0_88 = arith.constant 0 : index
    %55 = vector.load %arg10[%c0_86, %c0_87, %c0_88] : memref<16x16x36xbf16, #tpu.memory_space<vmem>>, vector<16x16x4xbf16>
    tpu.vector_store %arg10[%c0_86, %c0_87, %c0_88], %54 {strides = array<i32>} : memref<16x16x36xbf16, #tpu.memory_space<vmem>>, vector<16x16x4xbf16>,
    %c0_89 = arith.constant 0 : index
    %c1_90 = arith.constant 1 : index
    %c0_91 = arith.constant 0 : index
    %56 = vector.load %arg9[%c0_89, %c1_90, %c0_91] : memref<18x18x4xbf16, #tpu.memory_space<vmem>>, vector<16x16x4xbf16>
    %c0_92 = arith.constant 0 : index
    %c0_93 = arith.constant 0 : index
    %c4_94 = arith.constant 4 : index
    %57 = vector.load %arg10[%c0_92, %c0_93, %c4_94] : memref<16x16x36xbf16, #tpu.memory_space<vmem>>, vector<16x16x4xbf16>
    tpu.vector_store %arg10[%c0_92, %c0_93, %c4_94], %56 {strides = array<i32>} : memref<16x16x36xbf16, #tpu.memory_space<vmem>>, vector<16x16x4xbf16>,
    %c0_95 = arith.constant 0 : index
    %c2_96 = arith.constant 2 : index
    %c0_97 = arith.constant 0 : index
    %58 = vector.load %arg9[%c0_95, %c2_96, %c0_97] : memref<18x18x4xbf16, #tpu.memory_space<vmem>>, vector<16x16x4xbf16>
    %c0_98 = arith.constant 0 : index
    %c0_99 = arith.constant 0 : index
    %c8_100 = arith.constant 8 : index
    %59 = vector.load %arg10[%c0_98, %c0_99, %c8_100] : memref<16x16x36xbf16, #tpu.memory_space<vmem>>, vector<16x16x4xbf16>
    tpu.vector_store %arg10[%c0_98, %c0_99, %c8_100], %58 {strides = array<i32>} : memref<16x16x36xbf16, #tpu.memory_space<vmem>>, vector<16x16x4xbf16>,
    %c1_101 = arith.constant 1 : index
    %c0_102 = arith.constant 0 : index
    %c0_103 = arith.constant 0 : index
    %60 = vector.load %arg9[%c1_101, %c0_102, %c0_103] : memref<18x18x4xbf16, #tpu.memory_space<vmem>>, vector<16x16x4xbf16>
    %c0_104 = arith.constant 0 : index
    %c0_105 = arith.constant 0 : index
    %c12_106 = arith.constant 12 : index
    %61 = vector.load %arg10[%c0_104, %c0_105, %c12_106] : memref<16x16x36xbf16, #tpu.memory_space<vmem>>, vector<16x16x4xbf16>
    tpu.vector_store %arg10[%c0_104, %c0_105, %c12_106], %60 {strides = array<i32>} : memref<16x16x36xbf16, #tpu.memory_space<vmem>>, vector<16x16x4xbf16>,
    %c1_107 = arith.constant 1 : index
    %c1_108 = arith.constant 1 : index
    %c0_109 = arith.constant 0 : index
    %62 = vector.load %arg9[%c1_107, %c1_108, %c0_109] : memref<18x18x4xbf16, #tpu.memory_space<vmem>>, vector<16x16x4xbf16>
    %c0_110 = arith.constant 0 : index
    %c0_111 = arith.constant 0 : index
    %c16_112 = arith.constant 16 : index
    %63 = vector.load %arg10[%c0_110, %c0_111, %c16_112] : memref<16x16x36xbf16, #tpu.memory_space<vmem>>, vector<16x16x4xbf16>
    tpu.vector_store %arg10[%c0_110, %c0_111, %c16_112], %62 {strides = array<i32>} : memref<16x16x36xbf16, #tpu.memory_space<vmem>>, vector<16x16x4xbf16>,
    %c1_113 = arith.constant 1 : index
    %c2_114 = arith.constant 2 : index
    %c0_115 = arith.constant 0 : index
    %64 = vector.load %arg9[%c1_113, %c2_114, %c0_115] : memref<18x18x4xbf16, #tpu.memory_space<vmem>>, vector<16x16x4xbf16>
    %c0_116 = arith.constant 0 : index
    %c0_117 = arith.constant 0 : index
    %c20_118 = arith.constant 20 : index
    %65 = vector.load %arg10[%c0_116, %c0_117, %c20_118] : memref<16x16x36xbf16, #tpu.memory_space<vmem>>, vector<16x16x4xbf16>
    tpu.vector_store %arg10[%c0_116, %c0_117, %c20_118], %64 {strides = array<i32>} : memref<16x16x36xbf16, #tpu.memory_space<vmem>>, vector<16x16x4xbf16>,
    %c2_119 = arith.constant 2 : index
    %c0_120 = arith.constant 0 : index
    %c0_121 = arith.constant 0 : index
    %66 = vector.load %arg9[%c2_119, %c0_120, %c0_121] : memref<18x18x4xbf16, #tpu.memory_space<vmem>>, vector<16x16x4xbf16>
    %c0_122 = arith.constant 0 : index
    %c0_123 = arith.constant 0 : index
    %c24_124 = arith.constant 24 : index
    %67 = vector.load %arg10[%c0_122, %c0_123, %c24_124] : memref<16x16x36xbf16, #tpu.memory_space<vmem>>, vector<16x16x4xbf16>
    tpu.vector_store %arg10[%c0_122, %c0_123, %c24_124], %66 {strides = array<i32>} : memref<16x16x36xbf16, #tpu.memory_space<vmem>>, vector<16x16x4xbf16>,
    %c2_125 = arith.constant 2 : index
    %c1_126 = arith.constant 1 : index
    %c0_127 = arith.constant 0 : index
    %68 = vector.load %arg9[%c2_125, %c1_126, %c0_127] : memref<18x18x4xbf16, #tpu.memory_space<vmem>>, vector<16x16x4xbf16>
    %c0_128 = arith.constant 0 : index
    %c0_129 = arith.constant 0 : index
    %c28_130 = arith.constant 28 : index
    %69 = vector.load %arg10[%c0_128, %c0_129, %c28_130] : memref<16x16x36xbf16, #tpu.memory_space<vmem>>, vector<16x16x4xbf16>
    tpu.vector_store %arg10[%c0_128, %c0_129, %c28_130], %68 {strides = array<i32>} : memref<16x16x36xbf16, #tpu.memory_space<vmem>>, vector<16x16x4xbf16>,
    %c2_131 = arith.constant 2 : index
    %c2_132 = arith.constant 2 : index
    %c0_133 = arith.constant 0 : index
    %70 = vector.load %arg9[%c2_131, %c2_132, %c0_133] : memref<18x18x4xbf16, #tpu.memory_space<vmem>>, vector<16x16x4xbf16>
    %c0_134 = arith.constant 0 : index
    %c0_135 = arith.constant 0 : index
    %c32_136 = arith.constant 32 : index
    %71 = vector.load %arg10[%c0_134, %c0_135, %c32_136] : memref<16x16x36xbf16, #tpu.memory_space<vmem>>, vector<16x16x4xbf16>
    tpu.vector_store %arg10[%c0_134, %c0_135, %c32_136], %70 {strides = array<i32>} : memref<16x16x36xbf16, #tpu.memory_space<vmem>>, vector<16x16x4xbf16>,
    %c0_137 = arith.constant 0 : index
    %c0_138 = arith.constant 0 : index
    %c0_139 = arith.constant 0 : index
    %72 = vector.load %arg10[%c0_137, %c0_138, %c0_139] : memref<16x16x36xbf16, #tpu.memory_space<vmem>>, vector<16x16x36xbf16>
    %73 = vector.shape_cast %72 : vector<16x16x36xbf16> to vector<256x36xbf16>
    %c0_140 = arith.constant 0 : index
    %c0_141 = arith.constant 0 : index
    %74 = vector.load %arg3[%c0_140, %c0_141] : memref<36x4xbf16, #tpu.memory_space<vmem>>, vector<36x4xbf16>
    %cst_142 = arith.constant dense<0.000000e+00> : vector<256x4xf32>
    %75 = tpu.matmul %73, %74, %cst_142 {dimension_numbers = #tpu.dot_dimension_numbers<[1], [0], [0], [1], [0, 0, 1, 1], [], []>} : vector<256x36xbf16>, vector<36x4xbf16>, vector<256x4xf32> -> vector<256x4xf32>
    %76 = arith.addf %75, %1 : vector<256x4xf32>
    %77 = vector.shape_cast %76 : vector<256x4xf32> to vector<1x16x16x4xf32>
    %c0_143 = arith.constant 0 : index
    %c0_144 = arith.constant 0 : index
    %c0_145 = arith.constant 0 : index
    %c0_146 = arith.constant 0 : index
    %78 = vector.load %arg8[%c0_143, %c0_144, %c0_145, %c0_146] : memref<1x16x16x4xf32, #tpu.memory_space<vmem>>, vector<1x16x16x4xf32>
    tpu.vector_store %arg8[%c0_143, %c0_144, %c0_145, %c0_146], %77 {strides = array<i32>} : memref<1x16x16x4xf32, #tpu.memory_space<vmem>>, vector<1x16x16x4xf32>,
    return
  }
  func.func @transform_0(%arg0: i32) -> (i32, i32, i32, i32) {
    %c0_i32 = arith.constant 0 : i32
    %c0_i32_0 = arith.constant 0 : i32
    %c0_i32_1 = arith.constant 0 : i32
    %c0_i32_2 = arith.constant 0 : i32
    return %arg0, %c0_i32, %c0_i32_0, %c0_i32_1 : i32, i32, i32, i32
  }
  func.func @transform_1(%arg0: i32) -> (i32, i32) {
    %c0_i32 = arith.constant 0 : i32
    %c0_i32_0 = arith.constant 0 : i32
    %c0_i32_1 = arith.constant 0 : i32
    return %c0_i32, %c0_i32_0 : i32, i32
  }
  func.func @transform_2(%arg0: i32) -> (i32, i32) {
    %c0_i32 = arith.constant 0 : i32
    %c0_i32_0 = arith.constant 0 : i32
    %c0_i32_1 = arith.constant 0 : i32
    return %c0_i32, %c0_i32_0 : i32, i32
  }
  func.func @transform_3(%arg0: i32) -> (i32, i32) {
    %c0_i32 = arith.constant 0 : i32
    %c0_i32_0 = arith.constant 0 : i32
    %c0_i32_1 = arith.constant 0 : i32
    return %c0_i32, %c0_i32_0 : i32, i32
  }
  func.func @transform_4(%arg0: i32) -> (i32, i32) {
    %c0_i32 = arith.constant 0 : i32
    %c0_i32_0 = arith.constant 0 : i32
    %c0_i32_1 = arith.constant 0 : i32
    return %c0_i32, %c0_i32_0 : i32, i32
  }
  func.func @transform_5(%arg0: i32) -> (i32, i32) {
    %c0_i32 = arith.constant 0 : i32
    %c0_i32_0 = arith.constant 0 : i32
    %c0_i32_1 = arith.constant 0 : i32
    return %c0_i32, %c0_i32_0 : i32, i32
  }
  func.func @transform_6(%arg0: i32) -> (i32, i32) {
    %c0_i32 = arith.constant 0 : i32
    %c0_i32_0 = arith.constant 0 : i32
    %c0_i32_1 = arith.constant 0 : i32
    return %c0_i32, %c0_i32_0 : i32, i32
  }
  func.func @transform_7(%arg0: i32) -> (i32, i32, i32, i32) {
    %c0_i32 = arith.constant 0 : i32
    %c0_i32_0 = arith.constant 0 : i32
    %c0_i32_1 = arith.constant 0 : i32
    %c0_i32_2 = arith.constant 0 : i32
    return %arg0, %c0_i32, %c0_i32_0, %c0_i32_1 : i32, i32, i32, i32
  }
}

</mosaic_0001>

<bundles_post_ra>
// kernel: basic_block_nhwc.1
= control target key start
LH: loop header
LB: loop body
LE: loop exit
PB: predicated region body
PF: predicated region fallthrough
CT: control target
= control target key end

     0   :  { %s8941_s24 = smov 0   ;;  %s12096_s0 = inlined_call_operand.vmem [shape: f32[2,16,16,4], index: 0, kind: input, shape index: {}]   ;;  %s12097_s1 = inlined_call_operand.vmem [shape: bf16[36,4], index: 1, kind: input, shape index: {}]   ;;  %s12098_s2 = inlined_call_operand.vmem [shape: bf16[36,4], index: 2, kind: input, shape index: {}]   ;;  %s12099_s3 = inlined_call_operand.vmem [shape: f32[1,4], index: 3, kind: input, shape index: {}]   ;;  %s12100_s4 = inlined_call_operand.vmem [shape: f32[1,4], index: 4, kind: input, shape index: {}]   ;;  %s12101_s5 = inlined_call_operand.vmem [shape: f32[1,4], index: 5, kind: input, shape index: {}]   ;;  %s12102_s6 = inlined_call_operand.vmem [shape: f32[1,4], index: 6, kind: input, shape index: {}]   ;;  %s12103_s7 = inlined_call_operand.vmem [shape: f32[2,16,16,4], index: 7, kind: output, shape index: {}]  }
   0x1 LB: > { %s8496_s25 = sadd.s32 4294967295, %s8890_s24   ;;  %p8500_p0 = scmp.ge.s32.totalorder %s8890_s24, 1  ;;  %s8890_s24 = sphi %s8941_s24, %s17_s24  }
   0x2   : > { %p237_p1 = scmp.lt.s32.totalorder %s8890_s24, 3 }
   0x4   : > { %p238_p2 = pnand %p8500_p0, %p237_p1 }
   0x5   : > { %p269_p3 = scmp.lt.s32.totalorder (!%p238_p2), %s8496_s25, 1  ;;  %s8893_s11 = smov (!%p238_p2), 4  }
   0x6   : > { %241 = sbr.rel (%p238_p2) target bundleno = 1991 (0x7c7), region = 48  ;;  %s8894_s16 = smov (!%p238_p2), 8  }
   0x7   : > { %s8895_s17 = smov (!%p238_p2), 12   ;;  %s8896_s22 = smov (!%p238_p2), 16  }
   0x8   : > { %s8897_s23 = smov (!%p238_p2), 20   ;;  %s8898_s26 = smov (!%p238_p2), 24  }
   0x9   : > { %s8899_s27 = smov (!%p238_p2), 28   ;;  %s8900_s29 = smov (!%p238_p2), 32  }
   0xb   : > { %vm416_vm0 = vcmask 27648   ;;  %vm419_vm1 = vcmask 24576   ;;  %vm426_vm2 = vsmask.f32 256  ;;  %v8892_v0 = vmov 0   ;;  %s12117_s25 = smov (!%p269_p3, %s8496_s25), 1 }
   0xc   : > { %418 = vst.msk [vmem:[#allocation2 + $0x4] sm:$0xf] %vm416_vm0, %v8892_v0  ;;  %vm8953_vm3 = vmand %vm419_vm1, %vm426_vm2  ;;  %vm482_vm4 = vsmask.f32 7938  ;;  %v8965_v2 = vld [vmem:[%s12099_s3] ss:$0 sm:$0xff] }
   0xd   : > { %420 = vst.msk [vmem:[#allocation2 + $0x8] sm:$0x1] %vm419_vm1, %v8892_v0  ;;  %v437_v3 = vld [vmem:[#allocation2 + $0x24] sm:$0x1]  ;;  %s8779_s28 = sshll.u32 %s12117_s25, 8  ;;  %vm8978_vm5 = vmand %vm419_vm1, %vm482_vm4  ;;  %vm1731_vm12 = vcmask 1042432  }
   0xe   : > { %417 = vst.msk [vmem:[#allocation2] sm:$0xf] %vm416_vm0, %v8892_v0  ;;  %v8972_v4 = vld [vmem:[%s12100_s4] ss:$0 sm:$0xff]  ;;  %v438_v5 = vsel %vm8953_vm3, 0, %v437_v3  ;;  %s8987_s10 = scalar_lea.vmem %s12096_s0, %s8779_s28  ;;  %vm9026_vm9 = vmand %vm416_vm0, %vm482_vm4  ;;  %vm1732_vm13 = vcmask 1046532   ;;  %s11946_s20 = scalar_lea.vmem %s12103_s7, %s8779_s28 }
   0xf   : > { %422 = vst.msk [vmem:[#allocation2 + $0xcc] sm:$0xf] %vm416_vm0, %v8892_v0  ;;  %v431_v7 = vld [vmem:[#allocation2 + $0xc] sm:$0x1]  ;;  %v496_v8 = vld [vmem:[#allocation2 + $0x38] sm:$0x1]  ;;  %vm9505_vm14 = vmor %vm1731_vm12, %vm1732_vm13 }
  0x10   : > { %423 = vst.msk [vmem:[#allocation2 + $0xd0] sm:$0xf] %vm416_vm0, %v8892_v0  ;;  %v284_v10 = vld [vmem:[%s8987_s10 + $0x20] sm:$0xff]  ;;  %v285_v11 = vld [vmem:[%s8987_s10 + $0x28] sm:$0xff]  ;;  %v432_v12 = vsel %vm8953_vm3, 0, %v431_v7  ;;  %v497_v13 = vsel %vm8978_vm5, 0, %v496_v8 }
  0x11   : > { %424 = vst.msk [vmem:[#allocation2 + $0xd4] sm:$0x1] %vm419_vm1, %v8892_v0  ;;  %vm1119_vm6 = vsmask.f32 3328  ;;  %vm1120_vm7 = vsmask.f32 7440  ;;  %v320_v17 = vmul.f32 %v8965_v2, %v284_v10  ;;  %v321_v18 = vmul.f32 %v8965_v2, %v285_v11 }
  0x12   : > { %439 = vst [vmem:[#allocation2 + $0x24] sm:$0x1] %v438_v5  ;;  %v280_v19 = vld [vmem:[%s8987_s10] sm:$0xff]  ;;  %v281_v20 = vld [vmem:[%s8987_s10 + $0x8] sm:$0xff]  ;;  %vm570_vm8 = vsmask.f32 4368  ;;  %vm9032_vm10 = vmor %vm1119_vm6, %vm1120_vm7 }
  0x13   : > { %v1072_v9 = vld [vmem:[#allocation2 + $0x4] sm:$0xf]  ;;  %v316_v23 = vmul.f32 %v8965_v2, %v280_v19  ;;  %v317_v24 = vmul.f32 %v8965_v2, %v281_v20  ;;  %433 = vst [vmem:[#allocation2 + $0xc] sm:$0x1] %v432_v12  ;;  %v286_v25 = vld [vmem:[%s8987_s10 + $0x30] sm:$0xff]  ;;  %v356_v29 = vadd.f32 %v8972_v4, %v320_v17  ;;  %v287_v30 = vld [vmem:[%s8987_s10 + $0x38] sm:$0xff]  ;;  %v357_v31 = vadd.f32 %v8972_v4, %v321_v18 }
  0x14   : > { %v484_v14 = vld [vmem:[#allocation2 + $0x8] sm:$0x1]  ;;  %v1132_v15 = vshll.u32 %v1072_v9, 16  ;;  %v1136_v16 = vshrl.u32 %v1072_v9, 16  ;;  %v322_v34 = vmul.f32 %v8965_v2, %v286_v25  ;;  %v487_v35 = vld [vmem:[#allocation2 + $0x14] sm:$0x1]  ;;  %v323_v39 = vmul.f32 %v8965_v2, %v287_v30  ;;  %vm9040_vm11 = vmor %vm426_vm2, %vm570_vm8 }
  0x15   : > { %v485_v21 = vsel %vm8978_vm5, 0, %v484_v14  ;;  %v428_v22 = vld [vmem:[#allocation2] sm:$0x1]  ;;  %v352_v32 = vadd.f32 %v8972_v4, %v316_v23  ;;  %v353_v33 = vadd.f32 %v8972_v4, %v317_v24  ;;  %v290_v36 = vld [vmem:[%s8987_s10 + $0x50] sm:$0xff]  ;;  %v388_v38 = vmax.f32 %v356_v29, 0.0  ;;  %v291_v45 = vld [vmem:[%s8987_s10 + $0x58] sm:$0xff] }
  0x16   : > { %486 = vst [vmem:[#allocation2 + $0x8] sm:$0x1] %v485_v21  ;;  %v9004_v26 = vrot.slane %v1132_v15, 5  ;;  %v1138_v27 = vrot.slane %v1136_v16, 4  ;;  %v429_v28 = vsel %vm8953_vm3, 0, %v428_v22  ;;  %v488_v40 = vsel %vm8978_vm5, 0, %v487_v35 }
  0x17   : > { %430 = vst [vmem:[#allocation2] sm:$0x1] %v429_v28  ;;  %v389_v41 = vmax.f32 %v357_v31, 0.0  ;;  %v384_v42 = vmax.f32 %v352_v32, 0.0  ;;  %v385_v43 = vmax.f32 %v353_v33, 0.0  ;;  %v358_v44 = vadd.f32 %v8972_v4, %v322_v34 }
  0x18   : > { %v1139_v37 = vor.u32 %v1138_v27, %v9004_v26  ;;  %498 = vst [vmem:[#allocation2 + $0x38] sm:$0x1] %v497_v13  ;;  %v542_v47 = vpack.c.bf16 %v388_v38, %v388_v38  ;;  %v359_v48 = vadd.f32 %v8972_v4, %v323_v39  ;;  %v326_v49 = vmul.f32 %v8965_v2, %v290_v36  ;;  %v446_v27 = vld [vmem:[#allocation2 + $0x48] sm:$0x1] }
  0x19   : > { %489 = vst [vmem:[#allocation2 + $0x14] sm:$0x1] %v488_v40  ;;  %v543_v50 = vpack.c.bf16 %v389_v41, %v389_v41  ;;  %v538_v51 = vpack.c.bf16 %v384_v42, %v384_v42  ;;  %v539_v52 = vpack.c.bf16 %v385_v43, %v385_v43  ;;  %v390_v53 = vmax.f32 %v358_v44, 0.0  ;;  %v909_v13 = vld [vmem:[#allocation2 + $0x24] sm:$0xf]  ;;  %v282_v40 = vld [vmem:[%s8987_s10 + $0x10] sm:$0xff] }
  0x1a   : > { %v1140_v46 = vrot.slane %v1139_v37, 4  ;;  %v607_v54 = vshrl.u32 %v542_v47, 16  ;;  %v610_v55 = vshll.u32 %v542_v47, 16  ;;  %v391_v56 = vmax.f32 %v359_v48, 0.0  ;;  %v895_v20 = vld [vmem:[#allocation2 + $0xc] sm:$0xf] }
  0x1b   : > { %v327_v57 = vmul.f32 %v8965_v2, %v291_v45  ;;  %v615_v59 = vshrl.u32 %v543_v50, 16  ;;  %v618_v60 = vshll.u32 %v543_v50, 16  ;;  %v573_v61 = vshrl.u32 %v538_v51, 16  ;;  %v283_v41 = vld [vmem:[%s8987_s10 + $0x18] sm:$0xff]  ;;  %v493_v47 = vld [vmem:[#allocation2 + $0x2c] sm:$0x1] }
  0x1c   : > { %v576_v62 = vshll.u32 %v538_v51, 16  ;;  %v609_v5 = vrot.slane %v607_v54, 7  ;;  %v581_v7 = vshrl.u32 %v539_v52, 16  ;;  %v584_v8 = vshll.u32 %v539_v52, 16  ;;  %v434_v42 = vld [vmem:[#allocation2 + $0x18] sm:$0x1] }
  0x1d   : > { %v1073_v58 = vld [vmem:[#allocation2 + $0x8] sm:$0x1]  ;;  %v9036_v12 = vrot.slane %v615_v59, 7  ;;  %v575_v14 = vrot.slane %v573_v61, 7  ;;  %v9057_v37 = vpack.c.bf16 %v390_v53, %v390_v53  ;;  %v545_v38 = vpack.c.bf16 %v391_v56, %v391_v56 }
  0x1e   : > { %v1142_v0 = vshll.u32 %v1073_v58, 16  ;;  %v1071_v3 = vld [vmem:[#allocation2] sm:$0xf]  ;;  %v612_v17 = vor.u32 %v610_v55, %v609_v5  ;;  %v613_v18 = vrot.slane %v609_v5, 4  ;;  %v583_v19 = vrot.slane %v581_v7, 7 }
  0x1f   : > { %v1123_v10 = vshrl.u32 %v1071_v3, 16  ;;  %v1126_v11 = vshll.u32 %v1071_v3, 16  ;;  %v620_v23 = vor.u32 %v618_v60, %v9036_v12  ;;  %v578_v24 = vor.u32 %v576_v62, %v575_v14  ;;  %v920_v60 = vld [vmem:[#allocation2 + $0x38] sm:$0x1] }
  0x20   : > { %v1144_v15 = vrot.slane %v1142_v0, 5  ;;  %v899_v25 = vld [vmem:[#allocation2 + $0x14] sm:$0x1]  ;;  %v910_v29 = vsel %vm9026_vm9, %v612_v17, %v909_v13  ;;  %v579_v30 = vrot.slane %v575_v14, 4  ;;  %v586_v31 = vor.u32 %v584_v8, %v583_v19 }
  0x21   : > { %v1125_v21 = vrot.slane %v1123_v10, 4  ;;  %v1128_v22 = vrot.slane %v1126_v11, 5  ;;  %v621_v33 = vsel %vm9040_vm11, %v613_v18, %v620_v23  ;;  %911 = vst [vmem:[#allocation2 + $0x24] sm:$0xf] %v910_v29  ;;  %v896_v34 = vsel %vm9026_vm9, %v578_v24, %v895_v20  ;;  %v292_v11 = vld [vmem:[%s8987_s10 + $0x60] sm:$0xff] }
  0x22   : > { %v1145_v28 = vsel %vm9032_vm10, %v1140_v46, %v1144_v15  ;;  %v588_v35 = vrot.slane %v583_v19, 4  ;;  %912 = vst.msk [vmem:[#allocation2 + $0x28] sm:$0xf] %vm416_vm0, %v621_v33  ;;  %v587_v36 = vsel %vm9040_vm11, %v579_v30, %v586_v31  ;;  %v362_v39 = vadd.f32 %v8972_v4, %v326_v49 }
  0x23   : > { %1508 = vrot.lane.b32.xlu0 %v1145_v28, %s8893_s11  ;;  %v1129_v32 = vor.u32 %v1128_v22, %v1125_v21  ;;  %897 = vst [vmem:[#allocation2 + $0xc] sm:$0xf] %v896_v34  ;;  %v363_v45 = vadd.f32 %v8972_v4, %v327_v57  ;;  %v447_v46 = vsel %vm8953_vm3, 0, %v446_v27  ;;  %v624_v48 = vshrl.u32 %v9057_v37, 16 }
  0x24   : > { %v900_v44 = vsel %vm8953_vm3, %v588_v35, %v899_v25  ;;  %898 = vst.msk [vmem:[#allocation2 + $0x10] sm:$0xf] %vm416_vm0, %v587_v36  ;;  %v632_v50 = vshrl.u32 %v545_v38, 16  ;;  %v635_v49 = vshll.u32 %v545_v38, 16  ;;  %v394_v51 = vmax.f32 %v362_v39, 0.0 }
  0x25   : > { %v1130_v43 = vrot.slane %v1129_v32, 4  ;;  %901 = vst [vmem:[#allocation2 + $0x14] sm:$0x1] %v900_v44  ;;  %v395_v53 = vmax.f32 %v363_v45, 0.0  ;;  %v318_v54 = vmul.f32 %v8965_v2, %v282_v40  ;;  %v319_v55 = vmul.f32 %v8965_v2, %v283_v41 }
  0x26   : > { %v9074_v56 = vrot.slane %v624_v48, 7  ;;  %v634_v57 = vrot.slane %v632_v50, 7  ;;  %448 = vst [vmem:[#allocation2 + $0x48] sm:$0x1] %v447_v46  ;;  %v548_v58 = vpack.c.bf16 %v394_v51, %v394_v51  ;;  %v435_v59 = vsel %vm8953_vm3, 0, %v434_v42 }
  0x27   : > { %v1135_v52 = vsel %vm9032_vm10, %v1130_v43, %v9004_v26  ;;  %v549_v61 = vpack.c.bf16 %v395_v53, %v395_v53  ;;  %v354_v62 = vadd.f32 %v8972_v4, %v318_v54  ;;  %v355_v26 = vadd.f32 %v8972_v4, %v319_v55  ;;  %436 = vst [vmem:[#allocation2 + $0x18] sm:$0x1] %v435_v59  ;;  %v293_v53 = vld [vmem:[%s8987_s10 + $0x68] sm:$0xff] }
  0x28   : > { %v494_v0 = vsel %vm8978_vm5, 0, %v493_v47  ;;  %v1080_v3 = vld [vmem:[#allocation2 + $0x24] sm:$0xf]  ;;  %v630_v5 = vrot.slane %v9074_v56, 4  ;;  %v637_v7 = vor.u32 %v635_v49, %v634_v57  ;;  %v639_v8 = vrot.slane %v634_v57, 4 }
  0x29   : > { %v658_v10 = vshrl.u32 %v548_v58, 16  ;;  %v9085_v13 = vld [vmem:[#allocation2 + $0x28] sm:$0xf]  ;;  %v1195_v14 = vshrl.u32 %v1080_v3, 16  ;;  %v1198_v15 = vshll.u32 %v1080_v3, 16  ;;  %v661_v17 = vshll.u32 %v548_v58, 16 }
  0x2a   : > { %v666_v18 = vshrl.u32 %v549_v61, 16  ;;  %v1204_v19 = vshll.u32 %v9085_v13, 16  ;;  %v1074_v20 = vld [vmem:[#allocation2 + $0xc] sm:$0xf]  ;;  %v638_v21 = vsel %vm9040_vm11, %v630_v5, %v637_v7  ;;  %v921_v22 = vsel %vm8953_vm3, %v639_v8, %v920_v60  ;;  %495 = vst [vmem:[#allocation2 + $0x2c] sm:$0x1] %v494_v0 }
  0x2b   : > { %1506 = vrot.lane.b32.xlu0 %v1135_v52, %s8893_s11  ;;  %v660_v23 = vrot.slane %v658_v10, 7  ;;  %v1197_v24 = vrot.slane %v1195_v14, 4  ;;  %v1200_v25 = vrot.slane %v1198_v15, 5  ;;  %v1075_v27 = vld [vmem:[#allocation2 + $0x10] sm:$0xf]  ;;  %v1147_v28 = vshrl.u32 %v1074_v20, 16 }
  0x2c   : > { %v1150_v29 = vshll.u32 %v1074_v20, 16  ;;  %v9092_v30 = vrot.slane %v1204_v19, 5  ;;  %v1156_v31 = vshll.u32 %v1075_v27, 16  ;;  %919 = vst.msk [vmem:[#allocation2 + $0x34] sm:$0xf] %vm416_vm0, %v638_v21  ;;  %v328_v34 = vmul.f32 %v8965_v2, %v292_v11 }
  0x2d   : > { %v1076_v32 = vld [vmem:[#allocation2 + $0x14] sm:$0x1]  ;;  %v663_v33 = vor.u32 %v661_v17, %v660_v23  ;;  %v1201_v35 = vor.u32 %v1200_v25, %v1197_v24  ;;  %v1149_v36 = vrot.slane %v1147_v28, 4  ;;  %922 = vst [vmem:[#allocation2 + $0x38] sm:$0x1] %v921_v22  ;;  %v1160_v39 = vshrl.u32 %v1075_v27, 16 }
  0x2e   : > { %v1152_v38 = vrot.slane %v1150_v29, 5  ;;  %v1158_v40 = vrot.slane %v1156_v31, 5  ;;  %v1166_v41 = vshll.u32 %v1076_v32, 16  ;;  %v664_v42 = vrot.slane %v660_v23, 4  ;;  %v930_v44 = vld [vmem:[#allocation2 + $0x48] sm:$0xf] }
  0x2f   : > { %v9096_v43 = vrot.slane %v666_v18, 7  ;;  %v1202_v45 = vrot.slane %v1201_v35, 4  ;;  %v1162_v47 = vrot.slane %v1160_v39, 4  ;;  %v669_v48 = vshll.u32 %v549_v61, 16  ;;  %v505_v10 = vld [vmem:[#allocation2 + $0x5c] sm:$0x1] }
  0x30   : > { %v1153_v46 = vor.u32 %v1152_v38, %v1149_v36  ;;  %v9098_v50 = vrot.slane %v1166_v41, 5  ;;  %v931_v49 = vsel %vm9026_vm9, %v663_v33, %v930_v44  ;;  %v386_v51 = vmax.f32 %v354_v62, 0.0  ;;  %v902_v28 = vld [vmem:[#allocation2 + $0x18] sm:$0xf] }
  0x31   : > { %v387_v52 = vmax.f32 %v355_v26, 0.0  ;;  %v1207_v54 = vsel %vm9032_vm10, %v1202_v45, %v9092_v30  ;;  %v1163_v57 = vor.u32 %v1162_v47, %v1158_v40  ;;  %v671_v58 = vor.u32 %v669_v48, %v9096_v43  ;;  %932 = vst [vmem:[#allocation2 + $0x48] sm:$0xf] %v931_v49  ;;  %v913_v59 = vld [vmem:[#allocation2 + $0x2c] sm:$0x1]  ;;  %v288_v47 = vld [vmem:[%s8987_s10 + $0x40] sm:$0xff] }
  0x32   : > { %v1154_v55 = vrot.slane %v1153_v46, 4  ;;  %v540_v60 = vpack.c.bf16 %v386_v51, %v386_v51  ;;  %v622_v0 = vrot.slane %v9036_v12, 4  ;;  %v1208_v62 = vshrl.u32 %v9085_v13, 16 }
  0x33   : > { %1518 = vrot.lane.b32.xlu0 %v1207_v54, %s8893_s11  ;;  %v541_v61 = vpack.c.bf16 %v387_v52, %v387_v52  ;;  %v1084_v3 = vld [vmem:[#allocation2 + $0x34] sm:$0xf]  ;;  %v1164_v5 = vrot.slane %v1163_v57, 4  ;;  %v672_v7 = vsel %vm9040_vm11, %v664_v42, %v671_v58  ;;  %v329_v8 = vmul.f32 %v8965_v2, %v293_v53  ;;  %v490_v53 = vld [vmem:[#allocation2 + $0x20] sm:$0x1]  ;;  %v289_v54 = vld [vmem:[%s8987_s10 + $0x48] sm:$0xff] }
  0x34   : > { %v1159_v26 = vsel %vm9032_vm10, %v1154_v55, %v1158_v40  ;;  %v1085_v11 = vld [vmem:[#allocation2 + $0x38] sm:$0x1]  ;;  %v1228_v14 = vshll.u32 %v1084_v3, 16  ;;  %v1232_v15 = vshrl.u32 %v1084_v3, 16  ;;  %933 = vst.msk [vmem:[#allocation2 + $0x4c] sm:$0xf] %vm416_vm0, %v672_v7  ;;  %v914_v12 = vsel %vm8953_vm3, %v622_v0, %v913_v59 }
  0x35   : > { %1510 = vrot.lane.b32.xlu1 %v1159_v26, %s8893_s11  ;;  %v364_v13 = vadd.f32 %v8972_v4, %v328_v34  ;;  %v1238_v17 = vshll.u32 %v1085_v11, 16  ;;  %v1169_v18 = vsel %vm9032_vm10, %v1164_v5, %v9098_v50  ;;  %v590_v19 = vshrl.u32 %v540_v60, 16  ;;  %915 = vst [vmem:[#allocation2 + $0x2c] sm:$0x1] %v914_v12  ;;  %v443_v26 = vld [vmem:[#allocation2 + $0x3c] sm:$0x1] }
  0x36   : > { %v593_v20 = vshll.u32 %v540_v60, 16  ;;  %v9123_v21 = vrot.slane %v1228_v14, 5  ;;  %v1234_v22 = vrot.slane %v1232_v15, 4  ;;  %v598_v23 = vshrl.u32 %v541_v61, 16  ;;  %v297_v11 = vld [vmem:[%s8987_s10 + $0x88] sm:$0xff] }
  0x37   : > { %v601_v24 = vshll.u32 %v541_v61, 16  ;;  %v1240_v25 = vrot.slane %v1238_v17, 5  ;;  %v592_v27 = vrot.slane %v590_v19, 7  ;;  %v1210_v29 = vrot.slane %v1208_v62, 4 }
  0x38   : > { %v365_v31 = vadd.f32 %v8972_v4, %v329_v8  ;;  %v1235_v32 = vor.u32 %v1234_v22, %v9123_v21  ;;  %v1089_v33 = vld [vmem:[#allocation2 + $0x48] sm:$0xf]  ;;  %v9127_v34 = vrot.slane %v598_v23, 7  ;;  %v396_v35 = vmax.f32 %v364_v13, 0.0  ;;  %v455_v22 = vld [vmem:[#allocation2 + $0x6c] sm:$0x1] }
  0x39   : > { %v506_v36 = vsel %vm8978_vm5, 0, %v505_v10  ;;  %v1267_v38 = vshrl.u32 %v1089_v33, 16  ;;  %v1270_v39 = vshll.u32 %v1089_v33, 16  ;;  %v595_v40 = vor.u32 %v593_v20, %v592_v27  ;;  %v296_v10 = vld [vmem:[%s8987_s10 + $0x80] sm:$0xff]  ;;  %v440_v23 = vld [vmem:[#allocation2 + $0x30] sm:$0x1] }
  0x3a   : > { %v596_v41 = vrot.slane %v592_v27, 4  ;;  %507 = vst [vmem:[#allocation2 + $0x5c] sm:$0x1] %v506_v36  ;;  %v1236_v42 = vrot.slane %v1235_v32, 4  ;;  %v603_v44 = vor.u32 %v601_v24, %v9127_v34  ;;  %v1211_v45 = vor.u32 %v1210_v29, %v9092_v30 }
  0x3b   : > { %v397_v46 = vmax.f32 %v365_v31, 0.0  ;;  %v9134_v48 = vld [vmem:[#allocation2 + $0x4c] sm:$0xf]  ;;  %v1269_v50 = vrot.slane %v1267_v38, 4  ;;  %v1272_v49 = vrot.slane %v1270_v39, 5  ;;  %v903_v51 = vsel %vm9026_vm9, %v595_v40, %v902_v28 }
  0x3c   : > { %v9138_v52 = vpack.c.bf16 %v396_v35, %v396_v35  ;;  %v1241_v55 = vsel %vm9032_vm10, %v1236_v42, %v1240_v25  ;;  %v1276_v30 = vshll.u32 %v9134_v48, 16  ;;  %v604_v57 = vsel %vm9040_vm11, %v596_v41, %v603_v44  ;;  %904 = vst [vmem:[#allocation2 + $0x18] sm:$0xf] %v903_v51  ;;  %v1082_v58 = vld [vmem:[#allocation2 + $0x2c] sm:$0x1] }
  0x3d   : > { %1512 = vrot.lane.b32.xlu1 %v1169_v18, %s8893_s11  ;;  %v1212_v59 = vrot.slane %v1211_v45, 4  ;;  %1524 = vrot.lane.b32.xlu0 %v1241_v55, %s8893_s11  ;;  %v1273_v60 = vor.u32 %v1272_v49, %v1269_v50  ;;  %905 = vst.msk [vmem:[#allocation2 + $0x1c] sm:$0xf] %vm416_vm0, %v604_v57  ;;  %v1214_v61 = vshll.u32 %v1082_v58, 16  ;;  %v551_v0 = vpack.c.bf16 %v397_v46, %v397_v46 }
  0x3e   : > { %v675_v62 = vshrl.u32 %v9138_v52, 16  ;;  %v9150_v3 = vrot.slane %v1276_v30, 5  ;;  %v491_v5 = vsel %vm8978_vm5, 0, %v490_v53  ;;  %v605_v7 = vrot.slane %v9127_v34, 4  ;;  %v502_v53 = vld [vmem:[#allocation2 + $0x50] sm:$0x1] }
  0x3f   : > { %v324_v8 = vmul.f32 %v8965_v2, %v288_v47  ;;  %v1274_v14 = vrot.slane %v1273_v60, 4  ;;  %v1216_v15 = vrot.slane %v1214_v61, 5  ;;  %v683_v13 = vshrl.u32 %v551_v0, 16  ;;  %492 = vst [vmem:[#allocation2 + $0x20] sm:$0x1] %v491_v5 }
  0x40   : > { %v9158_v12 = vrot.slane %v675_v62, 7  ;;  %v686_v17 = vshll.u32 %v551_v0, 16  ;;  %v325_v18 = vmul.f32 %v8965_v2, %v289_v54  ;;  %v444_v20 = vsel %vm8953_vm3, 0, %v443_v26 }
  0x41   : > { %v360_v19 = vadd.f32 %v8972_v4, %v324_v8  ;;  %v1279_v24 = vsel %vm9032_vm10, %v1274_v14, %v9150_v3  ;;  %v1217_v25 = vsel %vm9032_vm10, %v1212_v59, %v1216_v15  ;;  %v685_v28 = vrot.slane %v683_v13, 7  ;;  %445 = vst [vmem:[#allocation2 + $0x3c] sm:$0x1] %v444_v20  ;;  %v941_v29 = vld [vmem:[#allocation2 + $0x5c] sm:$0x1] }
  0x42   : > { %v681_v27 = vrot.slane %v9158_v12, 4  ;;  %v361_v31 = vadd.f32 %v8972_v4, %v325_v18  ;;  %v332_v33 = vmul.f32 %v8965_v2, %v296_v10  ;;  %v333_v34 = vmul.f32 %v8965_v2, %v297_v11 }
  0x43   : > { %v392_v32 = vmax.f32 %v360_v19, 0.0  ;;  %v1077_v35 = vld [vmem:[#allocation2 + $0x18] sm:$0xf]  ;;  %v688_v36 = vor.u32 %v686_v17, %v685_v28  ;;  %v690_v38 = vrot.slane %v685_v28, 4  ;;  %v456_v39 = vsel %vm8953_vm3, 0, %v455_v22 }
  0x44   : > { %v441_v40 = vsel %vm8953_vm3, 0, %v440_v23  ;;  %v1078_v41 = vld [vmem:[#allocation2 + $0x1c] sm:$0xf]  ;;  %v1171_v42 = vshrl.u32 %v1077_v35, 16  ;;  %v1174_v44 = vshll.u32 %v1077_v35, 16  ;;  %v393_v45 = vmax.f32 %v361_v31, 0.0 }
  0x45   : > { %1520 = vrot.lane.b32.xlu1 %v1217_v25, %s8893_s11  ;;  %v546_v46 = vpack.c.bf16 %v392_v32, %v392_v32  ;;  %1530 = vrot.lane.b32.xlu0 %v1279_v24, %s8893_s11  ;;  %v1180_v47 = vshll.u32 %v1078_v41, 16  ;;  %v689_v50 = vsel %vm9040_vm11, %v681_v27, %v688_v36  ;;  %v942_v49 = vsel %vm8953_vm3, %v690_v38, %v941_v29  ;;  %v298_v25 = vld [vmem:[%s8987_s10 + $0x90] sm:$0xff]  ;;  %v299_v32 = vld [vmem:[%s8987_s10 + $0x98] sm:$0xff] }
  0x46   : > { %v1184_v51 = vshrl.u32 %v1078_v41, 16  ;;  %457 = vst [vmem:[#allocation2 + $0x6c] sm:$0x1] %v456_v39  ;;  %v1173_v54 = vrot.slane %v1171_v42, 4  ;;  %v1176_v55 = vrot.slane %v1174_v44, 5  ;;  %v547_v57 = vpack.c.bf16 %v393_v45, %v393_v45 }
  0x47   : > { %940 = vst.msk [vmem:[#allocation2 + $0x58] sm:$0xf] %vm416_vm0, %v689_v50  ;;  %v906_v30 = vld [vmem:[#allocation2 + $0x20] sm:$0x1]  ;;  %v368_v58 = vadd.f32 %v8972_v4, %v332_v33  ;;  %v1182_v59 = vrot.slane %v1180_v47, 5  ;;  %v641_v0 = vshrl.u32 %v546_v46, 16  ;;  %v369_v14 = vadd.f32 %v8972_v4, %v333_v34 }
  0x48   : > { %943 = vst [vmem:[#allocation2 + $0x5c] sm:$0x1] %v942_v49  ;;  %v907_v60 = vsel %vm8953_vm3, %v605_v7, %v906_v30  ;;  %v1186_v61 = vrot.slane %v1184_v51, 4  ;;  %v1177_v62 = vor.u32 %v1176_v55, %v1173_v54  ;;  %v644_v26 = vshll.u32 %v546_v46, 16  ;;  %v923_v7 = vld [vmem:[#allocation2 + $0x3c] sm:$0xf] }
  0x49   : > { %908 = vst [vmem:[#allocation2 + $0x20] sm:$0x1] %v907_v60  ;;  %v649_v5 = vshrl.u32 %v547_v57, 16  ;;  %v652_v8 = vshll.u32 %v547_v57, 16  ;;  %v643_v11 = vrot.slane %v641_v0, 7  ;;  %v400_v15 = vmax.f32 %v368_v58, 0.0 }
  0x4a   : > { %v1187_v10 = vor.u32 %v1186_v61, %v1182_v59  ;;  %442 = vst [vmem:[#allocation2 + $0x30] sm:$0x1] %v441_v40  ;;  %v1178_v13 = vrot.slane %v1177_v62, 4  ;;  %v627_v18 = vshll.u32 %v9057_v37, 16  ;;  %v503_v19 = vsel %vm8978_vm5, 0, %v502_v53  ;;  %v294_v33 = vld [vmem:[%s8987_s10 + $0x70] sm:$0xff] }
  0x4b   : > { %v9188_v17 = vrot.slane %v649_v5, 7  ;;  %v646_v22 = vor.u32 %v644_v26, %v643_v11  ;;  %v647_v23 = vrot.slane %v643_v11, 4  ;;  %v401_v24 = vmax.f32 %v369_v14, 0.0  ;;  %504 = vst [vmem:[#allocation2 + $0x50] sm:$0x1] %v503_v19  ;;  %v295_v14 = vld [vmem:[%s8987_s10 + $0x78] sm:$0xff] }
  0x4c   : > { %v1188_v20 = vrot.slane %v1187_v10, 4  ;;  %v1183_v27 = vsel %vm9032_vm10, %v1178_v13, %v1182_v59  ;;  %v554_v29 = vpack.c.bf16 %v400_v15, %v400_v15  ;;  %v629_v31 = vor.u32 %v627_v18, %v9074_v56  ;;  %v514_v58 = vld [vmem:[#allocation2 + $0x80] sm:$0x1] }
  0x4d   : > { %v654_v28 = vor.u32 %v652_v8, %v9188_v17  ;;  %1514 = vrot.lane.b32.xlu2 %v1183_v27, %s8893_s11  ;;  %v924_v34 = vsel %vm9026_vm9, %v646_v22, %v923_v7  ;;  %v555_v35 = vpack.c.bf16 %v401_v24, %v401_v24  ;;  %v673_v36 = vrot.slane %v9096_v43, 4  ;;  %v951_v61 = vld [vmem:[#allocation2 + $0x6c] sm:$0xf]  ;;  %v499_v27 = vld [vmem:[#allocation2 + $0x44] sm:$0x1] }
  0x4e   : > { %v1093_v37 = vld [vmem:[#allocation2 + $0x58] sm:$0xf]  ;;  %v1280_v38 = vshrl.u32 %v9134_v48, 16  ;;  %925 = vst [vmem:[#allocation2 + $0x3c] sm:$0xf] %v924_v34  ;;  %v334_v56 = vmul.f32 %v8965_v2, %v298_v25  ;;  %v709_v46 = vshrl.u32 %v554_v29, 16  ;;  %v335_v47 = vmul.f32 %v8965_v2, %v299_v32 }
  0x4f   : > { %v1094_v39 = vld [vmem:[#allocation2 + $0x5c] sm:$0x1]  ;;  %v1300_v40 = vshll.u32 %v1093_v37, 16  ;;  %v1304_v41 = vshrl.u32 %v1093_v37, 16  ;;  %v655_v42 = vsel %vm9040_vm11, %v647_v23, %v654_v28  ;;  %v330_v43 = vmul.f32 %v8965_v2, %v294_v33 }
  0x50   : > { %v1310_v44 = vshll.u32 %v1094_v39, 16  ;;  %v1079_v45 = vld [vmem:[#allocation2 + $0x20] sm:$0x1]  ;;  %926 = vst.msk [vmem:[#allocation2 + $0x40] sm:$0xf] %vm416_vm0, %v655_v42  ;;  %v712_v51 = vshll.u32 %v554_v29, 16  ;;  %v370_v18 = vadd.f32 %v8972_v4, %v334_v56  ;;  %v371_v24 = vadd.f32 %v8972_v4, %v335_v47 }
  0x51   : > { %v9211_v50 = vrot.slane %v1300_v40, 5  ;;  %v1306_v48 = vrot.slane %v1304_v41, 4  ;;  %v1190_v49 = vshll.u32 %v1079_v45, 16  ;;  %v916_v53 = vld [vmem:[#allocation2 + $0x30] sm:$0xf]  ;;  %v711_v55 = vrot.slane %v709_v46, 7 }
  0x52   : > { %v1312_v54 = vrot.slane %v1310_v44, 5  ;;  %v717_v30 = vshrl.u32 %v555_v35, 16  ;;  %v720_v57 = vshll.u32 %v555_v35, 16  ;;  %v917_v0 = vsel %vm9026_vm9, %v629_v31, %v916_v53  ;;  %v934_v62 = vld [vmem:[#allocation2 + $0x50] sm:$0x1] }
  0x53   : > { %v1307_v59 = vor.u32 %v1306_v48, %v9211_v50  ;;  %v1192_v60 = vrot.slane %v1190_v49, 5  ;;  %v1282_v26 = vrot.slane %v1280_v38, 4  ;;  %v714_v5 = vor.u32 %v712_v51, %v711_v55  ;;  %918 = vst [vmem:[#allocation2 + $0x30] sm:$0xf] %v917_v0 }
  0x54   : > { %v715_v8 = vrot.slane %v711_v55, 4  ;;  %v9216_v10 = vrot.slane %v717_v30, 7  ;;  %v935_v11 = vsel %vm8953_vm3, %v673_v36, %v934_v62  ;;  %v515_v25 = vsel %vm8978_vm5, 0, %v514_v58 }
  0x55   : > { %v1308_v15 = vrot.slane %v1307_v59, 4  ;;  %v1193_v13 = vsel %vm9032_vm10, %v1188_v20, %v1192_v60  ;;  %936 = vst [vmem:[#allocation2 + $0x50] sm:$0x1] %v935_v11  ;;  %v1283_v7 = vor.u32 %v1282_v26, %v9150_v3  ;;  %v1086_v19 = vld [vmem:[#allocation2 + $0x3c] sm:$0xf]  ;;  %v952_v23 = vsel %vm9026_vm9, %v714_v5, %v951_v61 }
  0x56   : > { %1516 = vrot.lane.b32.xlu2 %v1193_v13, %s8893_s11  ;;  %v722_v22 = vor.u32 %v720_v57, %v9216_v10  ;;  %v1243_v28 = vshrl.u32 %v1086_v19, 16  ;;  %v1246_v29 = vshll.u32 %v1086_v19, 16  ;;  %953 = vst [vmem:[#allocation2 + $0x6c] sm:$0xf] %v952_v23  ;;  %v331_v31 = vmul.f32 %v8965_v2, %v295_v14  ;;  %v452_v14 = vld [vmem:[#allocation2 + $0x60] sm:$0x1] }
  0x57   : > { %v1313_v20 = vsel %vm9032_vm10, %v1308_v15, %v1312_v54  ;;  %v1087_v3 = vld [vmem:[#allocation2 + $0x40] sm:$0xf]  ;;  %v9238_v37 = vrot.slane %v1283_v7, 4  ;;  %v402_v34 = vmax.f32 %v370_v18, 0.0  ;;  %516 = vst [vmem:[#allocation2 + $0x80] sm:$0x1] %v515_v25  ;;  %v366_v47 = vadd.f32 %v8972_v4, %v330_v43 }
  0x58   : > { %1536 = vrot.lane.b32.xlu0 %v1313_v20, %s8893_s11  ;;  %v1252_v32 = vshll.u32 %v1087_v3, 16  ;;  %v723_v33 = vsel %vm9040_vm11, %v715_v8, %v722_v22  ;;  %v1245_v35 = vrot.slane %v1243_v28, 4  ;;  %v1248_v36 = vrot.slane %v1246_v29, 5  ;;  %v302_v20 = vld [vmem:[%s8987_s10 + $0xb0] sm:$0xff] }
  0x59   : > { %954 = vst.msk [vmem:[#allocation2 + $0x70] sm:$0xf] %vm416_vm0, %v723_v33  ;;  %v403_v38 = vmax.f32 %v371_v24, 0.0  ;;  %v500_v39 = vsel %vm8978_vm5, 0, %v499_v27  ;;  %v9243_v41 = vpack.c.bf16 %v402_v34, %v402_v34  ;;  %v656_v42 = vrot.slane %v9188_v17, 4 }
  0x5a   : > { %v1254_v40 = vrot.slane %v1252_v32, 5  ;;  %501 = vst [vmem:[#allocation2 + $0x44] sm:$0x1] %v500_v39  ;;  %v1256_v56 = vshrl.u32 %v1087_v3, 16  ;;  %v1249_v44 = vor.u32 %v1248_v36, %v1245_v35  ;;  %v1083_v45 = vld [vmem:[#allocation2 + $0x30] sm:$0xf]  ;;  %v367_v48 = vadd.f32 %v8972_v4, %v331_v31 }
  0x5b   : > { %v557_v46 = vpack.c.bf16 %v403_v38, %v403_v38  ;;  %v1219_v49 = vshrl.u32 %v1083_v45, 16  ;;  %v1222_v51 = vshll.u32 %v1083_v45, 16  ;;  %v726_v54 = vshrl.u32 %v9243_v41, 16  ;;  %v464_v32 = vld [vmem:[#allocation2 + $0x90] sm:$0x1]  ;;  %v303_v39 = vld [vmem:[%s8987_s10 + $0xb8] sm:$0xff] }
  0x5c   : > { %v1091_v53 = vld [vmem:[#allocation2 + $0x50] sm:$0x1]  ;;  %v1258_v55 = vrot.slane %v1256_v56, 4  ;;  %v1250_v30 = vrot.slane %v1249_v44, 4  ;;  %v449_v33 = vld [vmem:[#allocation2 + $0x54] sm:$0x1] }
  0x5d   : > { %v1286_v57 = vshll.u32 %v1091_v53, 16  ;;  %v734_v58 = vshrl.u32 %v557_v46, 16  ;;  %v737_v59 = vshll.u32 %v557_v46, 16  ;;  %v1098_v60 = vld [vmem:[#allocation2 + $0x6c] sm:$0xf]  ;;  %v1221_v17 = vrot.slane %v1219_v49, 4 }
  0x5e   : > { %v1224_v61 = vrot.slane %v1222_v51, 5  ;;  %v9249_v0 = vrot.slane %v726_v54, 7  ;;  %v1259_v62 = vor.u32 %v1258_v55, %v1254_v40  ;;  %v1255_v43 = vsel %vm9032_vm10, %v1250_v30, %v1254_v40  ;;  %v962_v11 = vld [vmem:[#allocation2 + $0x80] sm:$0x1] }
  0x5f   : > { %v1339_v26 = vshrl.u32 %v1098_v60, 16  ;;  %v1342_v5 = vshll.u32 %v1098_v60, 16  ;;  %v1288_v8 = vrot.slane %v1286_v57, 5  ;;  %1526 = vrot.lane.b32.xlu1 %v1255_v43, %s8893_s11  ;;  %v736_v18 = vrot.slane %v734_v58, 7  ;;  %v304_v54 = vld [vmem:[%s8987_s10 + $0xc0] sm:$0xff] }
  0x60   : > { %v9254_v15 = vld [vmem:[#allocation2 + $0x70] sm:$0xf]  ;;  %v1225_v13 = vor.u32 %v1224_v61, %v1221_v17  ;;  %v732_v7 = vrot.slane %v9249_v0, 4  ;;  %v9257_v19 = vrot.slane %v1259_v62, 4  ;;  %v398_v36 = vmax.f32 %v366_v47, 0.0 }
  0x61   : > { %v1341_v22 = vrot.slane %v1339_v26, 4  ;;  %v1344_v23 = vrot.slane %v1342_v5, 5  ;;  %v1348_v24 = vshll.u32 %v9254_v15, 16  ;;  %v1289_v25 = vsel %vm9032_vm10, %v9238_v37, %v1288_v8  ;;  %v927_v27 = vld [vmem:[#allocation2 + $0x44] sm:$0x1] }
  0x62   : > { %v1226_v3 = vrot.slane %v1225_v13, 4  ;;  %v739_v28 = vor.u32 %v737_v59, %v736_v18  ;;  %v741_v29 = vrot.slane %v736_v18, 4  ;;  %v928_v31 = vsel %vm8953_vm3, %v656_v42, %v927_v27  ;;  %v511_v47 = vld [vmem:[#allocation2 + $0x74] sm:$0x1]  ;;  %v305_v59 = vld [vmem:[%s8987_s10 + $0xc8] sm:$0xff] }
  0x63   : > { %v1345_v34 = vor.u32 %v1344_v23, %v1341_v22  ;;  %v9266_v35 = vrot.slane %v1348_v24, 5  ;;  %929 = vst [vmem:[#allocation2 + $0x44] sm:$0x1] %v928_v31  ;;  %v399_v38 = vmax.f32 %v367_v48, 0.0  ;;  %v453_v56 = vsel %vm8953_vm3, 0, %v452_v14 }
  0x64   : > { %v1231_v37 = vsel %vm9032_vm10, %v1226_v3, %v9123_v21  ;;  %v740_v40 = vsel %vm9040_vm11, %v732_v7, %v739_v28  ;;  %v963_v42 = vsel %vm8953_vm3, %v741_v29, %v962_v11  ;;  %v552_v45 = vpack.c.bf16 %v398_v36, %v398_v36  ;;  %454 = vst [vmem:[#allocation2 + $0x60] sm:$0x1] %v453_v56 }
  0x65   : > { %v1346_v44 = vrot.slane %v1345_v34, 4  ;;  %1522 = vrot.lane.b32.xlu2 %v1231_v37, %s8893_s11  ;;  %961 = vst.msk [vmem:[#allocation2 + $0x7c] sm:$0xf] %vm416_vm0, %v740_v40  ;;  %v553_v46 = vpack.c.bf16 %v399_v38, %v399_v38  ;;  %v338_v21 = vmul.f32 %v8965_v2, %v302_v20  ;;  %v339_v48 = vmul.f32 %v8965_v2, %v303_v39  ;;  %v9315_v20 = vld [vmem:[%s12100_s4] ss:$0 sm:$0xff]  ;;  %v301_v34 = vld [vmem:[%s8987_s10 + $0xa8] sm:$0xff] }
  0x66   : > { %964 = vst [vmem:[#allocation2 + $0x80] sm:$0x1] %v963_v42  ;;  %v465_v49 = vsel %vm8953_vm3, 0, %v464_v32  ;;  %v450_v51 = vsel %vm8953_vm3, 0, %v449_v33  ;;  %v678_v53 = vshll.u32 %v9138_v52, 16  ;;  %v692_v30 = vshrl.u32 %v552_v45, 16 }
  0x67   : > { %v1351_v55 = vsel %vm9032_vm10, %v1346_v44, %v9266_v35  ;;  %v695_v57 = vshll.u32 %v552_v45, 16  ;;  %v700_v58 = vshrl.u32 %v553_v46, 16  ;;  %1532 = vrot.lane.b32.xlu1 %v1289_v25, %s8893_s11  ;;  %v703_v2 = vshll.u32 %v553_v46, 16  ;;  %466 = vst [vmem:[#allocation2 + $0x90] sm:$0x1] %v465_v49 }
  0x68   : > { %1542 = vrot.lane.b32.xlu0 %v1351_v55, %s8893_s11  ;;  %v374_v60 = vadd.f32 %v8972_v4, %v338_v21  ;;  %v375_v17 = vadd.f32 %v8972_v4, %v339_v48  ;;  %v512_v52 = vsel %vm8978_vm5, 0, %v511_v47  ;;  %v694_v61 = vrot.slane %v692_v30, 7  ;;  %451 = vst [vmem:[#allocation2 + $0x54] sm:$0x1] %v450_v51  ;;  %v9305_v4 = vld [vmem:[%s12099_s3] ss:$0 sm:$0xff] }
  0x69   : > { %v9298_v62 = vrot.slane %v700_v58, 7  ;;  %v680_v43 = vor.u32 %v678_v53, %v9158_v12  ;;  %v724_v26 = vrot.slane %v9216_v10, 4  ;;  %513 = vst [vmem:[#allocation2 + $0x74] sm:$0x1] %v512_v52  ;;  %v340_v14 = vmul.f32 %v9305_v4, %v304_v54  ;;  %v300_v10 = vld [vmem:[%s8987_s10 + $0xa0] sm:$0xff] }
  0x6a   : > { %v1088_v5 = vld [vmem:[#allocation2 + $0x44] sm:$0x1]  ;;  %v406_v8 = vmax.f32 %v374_v60, 0.0  ;;  %v407_v11 = vmax.f32 %v375_v17, 0.0  ;;  %v341_v13 = vmul.f32 %v9305_v4, %v305_v59  ;;  %v697_v18 = vor.u32 %v695_v57, %v694_v61  ;;  %v508_v60 = vld [vmem:[#allocation2 + $0x68] sm:$0x1] }
  0x6b   : > { %v1262_v7 = vshll.u32 %v1088_v5, 16  ;;  %v698_v22 = vrot.slane %v694_v61, 4  ;;  %v705_v12 = vor.u32 %v703_v2, %v9298_v62  ;;  %v1352_v27 = vshrl.u32 %v9254_v15, 16  ;;  %v944_v38 = vld [vmem:[#allocation2 + $0x60] sm:$0xf] }
  0x6c   : > { %v1102_v23 = vld [vmem:[#allocation2 + $0x7c] sm:$0xf]  ;;  %v560_v24 = vpack.c.bf16 %v406_v8, %v406_v8  ;;  %v561_v25 = vpack.c.bf16 %v407_v11, %v407_v11  ;;  %v376_v3 = vadd.f32 %v9315_v20, %v340_v14  ;;  %v377_v39 = vadd.f32 %v9315_v20, %v341_v13  ;;  %v523_v46 = vld [vmem:[#allocation2 + $0xa4] sm:$0x1] }
  0x6d   : > { %v1103_v28 = vld [vmem:[#allocation2 + $0x80] sm:$0x1]  ;;  %v1372_v29 = vshll.u32 %v1102_v23, 16  ;;  %v1376_v31 = vshrl.u32 %v1102_v23, 16  ;;  %v1264_v32 = vrot.slane %v1262_v7, 5  ;;  %v706_v33 = vsel %vm9040_vm11, %v698_v22, %v705_v12 }
  0x6e   : > { %v1382_v36 = vshll.u32 %v1103_v28, 16  ;;  %947 = vst.msk [vmem:[#allocation2 + $0x64] sm:$0xf] %vm416_vm0, %v706_v33  ;;  %v760_v15 = vshrl.u32 %v560_v24, 16  ;;  %v336_v37 = vmul.f32 %v9305_v4, %v300_v10  ;;  %v945_v44 = vsel %vm9026_vm9, %v697_v18, %v944_v38  ;;  %v972_v45 = vld [vmem:[#allocation2 + $0x90] sm:$0xf] }
  0x6f   : > { %v9324_v40 = vrot.slane %v1372_v29, 5  ;;  %v1378_v42 = vrot.slane %v1376_v31, 4  ;;  %v1265_v56 = vsel %vm9032_vm10, %v9257_v19, %v1264_v32  ;;  %946 = vst [vmem:[#allocation2 + $0x60] sm:$0xf] %v945_v44  ;;  %v763_v48 = vshll.u32 %v560_v24, 16 }
  0x70   : > { %v1384_v21 = vrot.slane %v1382_v36, 5  ;;  %1528 = vrot.lane.b32.xlu2 %v1265_v56, %s8893_s11  ;;  %v762_v47 = vrot.slane %v760_v15, 7  ;;  %v768_v49 = vshrl.u32 %v561_v25, 16  ;;  %v771_v53 = vshll.u32 %v561_v25, 16  ;;  %v937_v54 = vld [vmem:[#allocation2 + $0x54] sm:$0xf] }
  0x71   : > { %v1379_v51 = vor.u32 %v1378_v42, %v9324_v40  ;;  %v955_v55 = vld [vmem:[#allocation2 + $0x74] sm:$0x1]  ;;  %v1354_v30 = vrot.slane %v1352_v27, 4  ;;  %v337_v19 = vmul.f32 %v9305_v4, %v301_v34  ;;  %v938_v2 = vsel %vm9026_vm9, %v680_v43, %v937_v54  ;;  %v461_v54 = vld [vmem:[#allocation2 + $0x84] sm:$0x1] }
  0x72   : > { %v765_v57 = vor.u32 %v763_v48, %v762_v47  ;;  %v766_v58 = vrot.slane %v762_v47, 4  ;;  %v9334_v59 = vrot.slane %v768_v49, 7  ;;  %939 = vst [vmem:[#allocation2 + $0x54] sm:$0xf] %v938_v2  ;;  %v956_v52 = vsel %vm8953_vm3, %v724_v26, %v955_v55  ;;  %v308_v2 = vld [vmem:[%s8987_s10 + $0xe0] sm:$0xff] }
  0x73   : > { %v1380_v17 = vrot.slane %v1379_v51, 4  ;;  %v1355_v61 = vor.u32 %v1354_v30, %v9266_v35  ;;  %v408_v5 = vmax.f32 %v376_v3, 0.0  ;;  %957 = vst [vmem:[#allocation2 + $0x74] sm:$0x1] %v956_v52  ;;  %v409_v14 = vmax.f32 %v377_v39, 0.0 }
  0x74   : > { %v773_v8 = vor.u32 %v771_v53, %v9334_v59  ;;  %v973_v11 = vsel %vm9026_vm9, %v765_v57, %v972_v45  ;;  %v524_v13 = vsel %vm8978_vm5, 0, %v523_v46  ;;  %v509_v35 = vsel %vm8978_vm5, 0, %v508_v60 }
  0x75   : > { %v1385_v43 = vsel %vm9032_vm10, %v1380_v17, %v1384_v21  ;;  %v1096_v7 = vld [vmem:[#allocation2 + $0x64] sm:$0xf]  ;;  %974 = vst [vmem:[#allocation2 + $0x90] sm:$0xf] %v973_v11  ;;  %v9348_v18 = vpack.c.bf16 %v408_v5, %v408_v5  ;;  %v9355_v12 = vrot.slane %v1355_v61, 4  ;;  %v563_v10 = vpack.c.bf16 %v409_v14, %v409_v14 }
  0x76   : > { %1548 = vrot.lane.b32.xlu0 %v1385_v43, %s8893_s11  ;;  %v1324_v26 = vshll.u32 %v1096_v7, 16  ;;  %v774_v22 = vsel %vm9040_vm11, %v766_v58, %v773_v8  ;;  %525 = vst [vmem:[#allocation2 + $0xa4] sm:$0x1] %v524_v13  ;;  %v1095_v23 = vld [vmem:[#allocation2 + $0x60] sm:$0xf]  ;;  %v1328_v25 = vshrl.u32 %v1096_v7, 16  ;;  %v372_v27 = vadd.f32 %v9315_v20, %v336_v37 }
  0x77   : > { %975 = vst.msk [vmem:[#allocation2 + $0x94] sm:$0xf] %vm416_vm0, %v774_v22  ;;  %v777_v24 = vshrl.u32 %v9348_v18, 16  ;;  %v373_v3 = vadd.f32 %v9315_v20, %v337_v19  ;;  %v1315_v28 = vshrl.u32 %v1095_v23, 16  ;;  %v1318_v29 = vshll.u32 %v1095_v23, 16 }
  0x78   : > { %v785_v31 = vshrl.u32 %v563_v10, 16  ;;  %510 = vst [vmem:[#allocation2 + $0x68] sm:$0x1] %v509_v35  ;;  %v707_v32 = vrot.slane %v9298_v62, 4  ;;  %v9362_v33 = vrot.slane %v1324_v26, 5  ;;  %v788_v36 = vshll.u32 %v563_v10, 16 }
  0x79   : > { %v9364_v34 = vrot.slane %v777_v24, 7  ;;  %v9366_v38 = vrot.slane %v1328_v25, 4  ;;  %v1317_v15 = vrot.slane %v1315_v28, 4  ;;  %v1320_v39 = vrot.slane %v1318_v29, 5  ;;  %v1092_v42 = vld [vmem:[#allocation2 + $0x54] sm:$0xf] }
  0x7a   : > { %v787_v56 = vrot.slane %v785_v31, 7  ;;  %v404_v37 = vmax.f32 %v372_v27, 0.0  ;;  %v1291_v44 = vshrl.u32 %v1092_v42, 16  ;;  %v1294_v45 = vshll.u32 %v1092_v42, 16  ;;  %v1100_v46 = vld [vmem:[#allocation2 + $0x74] sm:$0x1] }
  0x7b   : > { %v783_v21 = vrot.slane %v9364_v34, 4  ;;  %v405_v47 = vmax.f32 %v373_v3, 0.0  ;;  %v1321_v62 = vor.u32 %v1320_v39, %v1317_v15  ;;  %v1358_v49 = vshll.u32 %v1100_v46, 16  ;;  %v473_v8 = vld [vmem:[#allocation2 + $0xb4] sm:$0x1]  ;;  %v309_v35 = vld [vmem:[%s8987_s10 + $0xe8] sm:$0xff] }
  0x7c   : > { %v1107_v48 = vld [vmem:[#allocation2 + $0x90] sm:$0xf]  ;;  %v790_v51 = vor.u32 %v788_v36, %v787_v56  ;;  %v792_v53 = vrot.slane %v787_v56, 4  ;;  %v1293_v19 = vrot.slane %v1291_v44, 4  ;;  %v1296_v57 = vrot.slane %v1294_v45, 5 }
  0x7d   : > { %v1411_v55 = vshrl.u32 %v1107_v48, 16  ;;  %v1414_v30 = vshll.u32 %v1107_v48, 16  ;;  %v983_v58 = vld [vmem:[#allocation2 + $0xa4] sm:$0x1]  ;;  %v1322_v60 = vrot.slane %v1321_v62, 4  ;;  %v1360_v52 = vrot.slane %v1358_v49, 5 }
  0x7e   : > { %v9370_v17 = vld [vmem:[#allocation2 + $0x94] sm:$0xf]  ;;  %v791_v61 = vsel %vm9040_vm11, %v783_v21, %v790_v51  ;;  %v984_v5 = vsel %vm8953_vm3, %v792_v53, %v983_v58  ;;  %v458_v11 = vld [vmem:[#allocation2 + $0x78] sm:$0x1]  ;;  %v1297_v7 = vor.u32 %v1296_v57, %v1293_v19  ;;  %v1331_v23 = vor.u32 %v9366_v38, %v9362_v33 }
  0x7f   : > { %v1413_v14 = vrot.slane %v1411_v55, 4  ;;  %v1416_v13 = vrot.slane %v1414_v30, 5  ;;  %v1420_v43 = vshll.u32 %v9370_v17, 16  ;;  %982 = vst.msk [vmem:[#allocation2 + $0xa0] sm:$0xf] %vm416_vm0, %v791_v61  ;;  %v1327_v26 = vsel %vm9032_vm10, %v1322_v60, %v9362_v33 }
  0x80   : > { %v1361_v22 = vsel %vm9032_vm10, %v9355_v12, %v1360_v52  ;;  %985 = vst [vmem:[#allocation2 + $0xa4] sm:$0x1] %v984_v5  ;;  %v948_v10 = vld [vmem:[#allocation2 + $0x68] sm:$0x1]  ;;  %v462_v24 = vsel %vm8953_vm3, 0, %v461_v54  ;;  %1538 = vrot.lane.b32.xlu1 %v1327_v26, %s8893_s11  ;;  %v1298_v3 = vrot.slane %v1297_v7, 4  ;;  %v558_v12 = vpack.c.bf16 %v404_v37, %v404_v37 }
  0x81   : > { %v1417_v25 = vor.u32 %v1416_v13, %v1413_v14  ;;  %v9390_v27 = vrot.slane %v1420_v43, 5  ;;  %v949_v28 = vsel %vm8953_vm3, %v707_v32, %v948_v10  ;;  %463 = vst [vmem:[#allocation2 + $0x84] sm:$0x1] %v462_v24  ;;  %v559_v29 = vpack.c.bf16 %v405_v47, %v405_v47  ;;  %v520_v32 = vld [vmem:[#allocation2 + $0x98] sm:$0x1] }
  0x82   : > { %950 = vst [vmem:[#allocation2 + $0x68] sm:$0x1] %v949_v28  ;;  %v344_v31 = vmul.f32 %v9305_v4, %v308_v2  ;;  %v345_v33 = vmul.f32 %v9305_v4, %v309_v35  ;;  %v1303_v38 = vsel %vm9032_vm10, %v1298_v3, %v9211_v50  ;;  %v474_v15 = vsel %vm8953_vm3, 0, %v473_v8 }
  0x83   : > { %v1418_v36 = vrot.slane %v1417_v25, 4  ;;  %v459_v39 = vsel %vm8953_vm3, 0, %v458_v11  ;;  %1534 = vrot.lane.b32.xlu2 %v1303_v38, %s8893_s11  ;;  %v743_v42 = vshrl.u32 %v558_v12, 16  ;;  %v746_v56 = vshll.u32 %v558_v12, 16  ;;  %475 = vst [vmem:[#allocation2 + $0xb4] sm:$0x1] %v474_v15 }
  0x84   : > { %v751_v37 = vshrl.u32 %v559_v29, 16  ;;  %v754_v44 = vshll.u32 %v559_v29, 16  ;;  %v1332_v46 = vrot.slane %v1331_v23, 4  ;;  %v380_v50 = vadd.f32 %v9315_v20, %v344_v31  ;;  %460 = vst [vmem:[#allocation2 + $0x78] sm:$0x1] %v459_v39  ;;  %v306_v23 = vld [vmem:[%s8987_s10 + $0xd0] sm:$0xff] }
  0x85   : > { %v1423_v45 = vsel %vm9032_vm10, %v1418_v36, %v9390_v27  ;;  %v381_v21 = vadd.f32 %v9315_v20, %v345_v33  ;;  %v745_v62 = vrot.slane %v743_v42, 7  ;;  %v729_v49 = vshll.u32 %v9243_v41, 16 }
  0x86   : > { %1554 = vrot.lane.b32.xlu0 %v1423_v45, %s8893_s11  ;;  %v1111_v47 = vld [vmem:[#allocation2 + $0xa0] sm:$0xf]  ;;  %v9410_v48 = vrot.slane %v751_v37, 7  ;;  %v521_v51 = vsel %vm8978_vm5, 0, %v520_v32  ;;  %v412_v30 = vmax.f32 %v380_v50, 0.0  ;;  %v775_v28 = vrot.slane %v9334_v59, 4 }
  0x87   : > { %v1112_v53 = vld [vmem:[#allocation2 + $0xa4] sm:$0x1]  ;;  %v1444_v54 = vshll.u32 %v1111_v47, 16  ;;  %v1448_v55 = vshrl.u32 %v1111_v47, 16  ;;  %v413_v19 = vmax.f32 %v381_v21, 0.0  ;;  %v748_v58 = vor.u32 %v746_v56, %v745_v62 }
  0x88   : > { %v1454_v57 = vshll.u32 %v1112_v53, 16  ;;  %v749_v2 = vrot.slane %v745_v62, 4  ;;  %v756_v60 = vor.u32 %v754_v44, %v9410_v48  ;;  %v965_v52 = vld [vmem:[#allocation2 + $0x84] sm:$0xf]  ;;  %522 = vst [vmem:[#allocation2 + $0x98] sm:$0x1] %v521_v51  ;;  %1544 = vrot.lane.b32.xlu1 %v1361_v22, %s8893_s11  ;;  %v566_v8 = vpack.c.bf16 %v412_v30, %v412_v30 }
  0x89   : > { %v9417_v61 = vrot.slane %v1444_v54, 5  ;;  %v1450_v41 = vrot.slane %v1448_v55, 4  ;;  %v1097_v5 = vld [vmem:[#allocation2 + $0x68] sm:$0x1]  ;;  %v567_v11 = vpack.c.bf16 %v413_v19, %v413_v19  ;;  %v966_v7 = vsel %vm9026_vm9, %v748_v58, %v965_v52  ;;  %v517_v32 = vld [vmem:[#allocation2 + $0x8c] sm:$0x1] }
  0x8a   : > { %v1456_v14 = vrot.slane %v1454_v57, 5  ;;  %v1334_v13 = vshll.u32 %v1097_v5, 16  ;;  %v757_v43 = vsel %vm9040_vm11, %v749_v2, %v756_v60  ;;  %967 = vst [vmem:[#allocation2 + $0x84] sm:$0xf] %v966_v7  ;;  %v811_v26 = vshrl.u32 %v566_v8, 16  ;;  %v307_v44 = vld [vmem:[%s8987_s10 + $0xd8] sm:$0xff] }
  0x8b   : > { %v1451_v35 = vor.u32 %v1450_v41, %v9417_v61  ;;  %v814_v10 = vshll.u32 %v566_v8, 16  ;;  %v819_v22 = vshrl.u32 %v567_v11, 16  ;;  %968 = vst.msk [vmem:[#allocation2 + $0x88] sm:$0xf] %vm416_vm0, %v757_v43  ;;  %v822_v25 = vshll.u32 %v567_v11, 16 }
  0x8c   : > { %v1336_v24 = vrot.slane %v1334_v13, 5  ;;  %v731_v3 = vor.u32 %v729_v49, %v9249_v0  ;;  %v813_v29 = vrot.slane %v811_v26, 7  ;;  %v958_v33 = vld [vmem:[#allocation2 + $0x78] sm:$0xf]  ;;  %v1424_v36 = vshrl.u32 %v9370_v17, 16 }
  0x8d   : > { %v1452_v12 = vrot.slane %v1451_v35, 4  ;;  %v9428_v31 = vrot.slane %v819_v22, 7  ;;  %v993_v15 = vld [vmem:[#allocation2 + $0xb4] sm:$0xf]  ;;  %v342_v0 = vmul.f32 %v9305_v4, %v306_v23  ;;  %v518_v47 = vsel %vm8978_vm5, 0, %v517_v32 }
  0x8e   : > { %v1337_v38 = vsel %vm9032_vm10, %v1332_v46, %v1336_v24  ;;  %v959_v39 = vsel %vm9026_vm9, %v731_v3, %v958_v33  ;;  %v816_v42 = vor.u32 %v814_v10, %v813_v29  ;;  %v817_v56 = vrot.slane %v813_v29, 4  ;;  %v470_v53 = vld [vmem:[#allocation2 + $0xa8] sm:$0x1]  ;;  %519 = vst [vmem:[#allocation2 + $0x8c] sm:$0x1] %v518_v47 }
  0x8f   : > { %v1457_v59 = vsel %vm9032_vm10, %v1452_v12, %v1456_v14  ;;  %1540 = vrot.lane.b32.xlu2 %v1337_v38, %s8893_s11  ;;  %v824_v37 = vor.u32 %v822_v25, %v9428_v31  ;;  %960 = vst [vmem:[#allocation2 + $0x78] sm:$0xf] %v959_v39  ;;  %v976_v17 = vld [vmem:[#allocation2 + $0x98] sm:$0x1]  ;;  %v1426_v46 = vrot.slane %v1424_v36, 4  ;;  %v343_v49 = vmul.f32 %v9305_v4, %v307_v44 }
  0x90   : > { %1560 = vrot.lane.b32.xlu0 %v1457_v59, %s8893_s11  ;;  %v977_v45 = vsel %vm8953_vm3, %v775_v28, %v976_v17  ;;  %v994_v21 = vsel %vm9026_vm9, %v816_v42, %v993_v15  ;;  %v378_v51 = vadd.f32 %v9315_v20, %v342_v0  ;;  %v467_v41 = vld [vmem:[#allocation2 + $0x9c] sm:$0x1]  ;;  %v471_v11 = vsel %vm8953_vm3, 0, %v470_v53  ;;  %v9464_v33 = vld [vmem:[#allocation2 + $0x4] sm:$0xf] }
  0x91   : > { %v825_v50 = vsel %vm9040_vm11, %v817_v56, %v824_v37  ;;  %978 = vst [vmem:[#allocation2 + $0x98] sm:$0x1] %v977_v45  ;;  %v1104_v62 = vld [vmem:[#allocation2 + $0x84] sm:$0xf]  ;;  %v1427_v57 = vor.u32 %v1426_v46, %v9390_v27  ;;  %v379_v60 = vadd.f32 %v9315_v20, %v343_v49  ;;  %v758_v26 = vrot.slane %v9410_v48, 4 }
  0x92   : > { %995 = vst [vmem:[#allocation2 + $0xb4] sm:$0xf] %v994_v21  ;;  %v1105_v54 = vld [vmem:[#allocation2 + $0x88] sm:$0xf]  ;;  %v1387_v55 = vshrl.u32 %v1104_v62, 16  ;;  %v1390_v30 = vshll.u32 %v1104_v62, 16 }
  0x93   : > { %996 = vst.msk [vmem:[#allocation2 + $0xb8] sm:$0xf] %vm416_vm0, %v825_v50  ;;  %v1396_v19 = vshll.u32 %v1105_v54, 16  ;;  %v410_v52 = vmax.f32 %v378_v51, 0.0  ;;  %v1400_v8 = vshrl.u32 %v1105_v54, 16  ;;  %v411_v7 = vmax.f32 %v379_v60, 0.0 }
  0x94   : > { %v1389_v58 = vrot.slane %v1387_v55, 4  ;;  %v1392_v2 = vrot.slane %v1390_v30, 5  ;;  %472 = vst [vmem:[#allocation2 + $0xa8] sm:$0x1] %v471_v11  ;;  %v1428_v35 = vrot.slane %v1427_v57, 4  ;;  %v468_v20 = vsel %vm8953_vm3, 0, %v467_v41 }
  0x95   : > { %v9455_v5 = vrot.slane %v1396_v19, 5  ;;  %v564_v10 = vpack.c.bf16 %v410_v52, %v410_v52  ;;  %v1402_v36 = vrot.slane %v1400_v8, 4  ;;  %v565_v38 = vpack.c.bf16 %v411_v7, %v411_v7  ;;  %v969_v32 = vld [vmem:[#allocation2 + $0x8c] sm:$0x1]  ;;  %469 = vst [vmem:[#allocation2 + $0x9c] sm:$0x1] %v468_v20 }
  0x96   : > { %v1101_v4 = vld [vmem:[#allocation2 + $0x78] sm:$0xf]  ;;  %v1393_v14 = vor.u32 %v1392_v2, %v1389_v58  ;;  %v780_v0 = vshll.u32 %v9348_v18, 16  ;;  %v970_v56 = vsel %vm8953_vm3, %v758_v26, %v969_v32  ;;  %v529_v17 = vld [vmem:[#allocation2 + $0xbc] sm:$0x1]  ;;  %v1736_v53 = vrot.slane %v9464_v33, 5 }
  0x97   : > { %v1363_v13 = vshrl.u32 %v1101_v4, 16  ;;  %v1366_v43 = vshll.u32 %v1101_v4, 16  ;;  %v794_v37 = vshrl.u32 %v564_v10, 16  ;;  %971 = vst [vmem:[#allocation2 + $0x8c] sm:$0x1] %v970_v56  ;;  %v797_v50 = vshll.u32 %v564_v10, 16 }
  0x98   : > { %v1109_v27 = vld [vmem:[#allocation2 + $0x98] sm:$0x1]  ;;  %v1394_v22 = vrot.slane %v1393_v14, 4  ;;  %v1637_v47 = vld [vmem:[#allocation2 + $0x8] sm:$0x1]  ;;  %v802_v49 = vshrl.u32 %v565_v38, 16  ;;  %v782_v55 = vor.u32 %v780_v0, %v9364_v34 }
  0x99   : > { %v1116_v23 = vld [vmem:[#allocation2 + $0xb4] sm:$0xf]  ;;  %v1365_v24 = vrot.slane %v1363_v13, 4  ;;  %v1368_v25 = vrot.slane %v1366_v43, 5  ;;  %v1430_v3 = vshll.u32 %v1109_v27, 16  ;;  %v796_v62 = vrot.slane %v794_v37, 7  ;;  %v1509_v37 = vpop.permute.xlu0 %1508 }
  0x9a   : > { %v9462_v28 = vld [vmem:[#allocation2 + $0xb8] sm:$0xf]  ;;  %v1483_v12 = vshrl.u32 %v1116_v23, 16  ;;  %v1486_v29 = vshll.u32 %v1116_v23, 16  ;;  %v1399_v48 = vsel %vm9032_vm10, %v1394_v22, %v9455_v5  ;;  %v805_v18 = vshll.u32 %v565_v38, 16 }
  0x9b   : > { %v1492_v15 = vshll.u32 %v9462_v28, 16  ;;  %v1369_v39 = vor.u32 %v1368_v25, %v1365_v24  ;;  %1550 = vrot.lane.b32.xlu1 %v1399_v48, %s8893_s11  ;;  %v1432_v46 = vrot.slane %v1430_v3, 5  ;;  %v986_v54 = vld [vmem:[#allocation2 + $0xa8] sm:$0xf]  ;;  %v530_v30 = vsel %vm8978_vm5, 0, %v529_v17 }
  0x9c   : > { %v1485_v59 = vrot.slane %v1483_v12, 4  ;;  %v1488_v42 = vrot.slane %v1486_v29, 5  ;;  %v526_v19 = vld [vmem:[#allocation2 + $0xb0] sm:$0x1]  ;;  %v799_v58 = vor.u32 %v797_v50, %v796_v62  ;;  %v800_v2 = vrot.slane %v796_v62, 4 }
  0x9d   : > { %v9474_v44 = vrot.slane %v1492_v15, 5  ;;  %v1370_v45 = vrot.slane %v1369_v39, 4  ;;  %v804_v60 = vrot.slane %v802_v49, 7  ;;  %531 = vst [vmem:[#allocation2 + $0xbc] sm:$0x1] %v530_v30  ;;  %v1433_v52 = vsel %vm9032_vm10, %v1428_v35, %v1432_v46 }
  0x9e   : > { %v1489_v21 = vor.u32 %v1488_v42, %v1485_v59  ;;  %v987_v4 = vsel %vm9026_vm9, %v799_v58, %v986_v54  ;;  %v979_v8 = vld [vmem:[#allocation2 + $0x9c] sm:$0xf]  ;;  %v1739_v11 = vrot.slane %v1637_v47, 5  ;;  %v1738_v13 = vrot.slane %v1736_v53, 4  ;;  %v1106_v43 = vld [vmem:[#allocation2 + $0x8c] sm:$0x1] }
  0x9f   : > { %v1375_v51 = vsel %vm9032_vm10, %v1370_v45, %v9324_v40  ;;  %v1403_v40 = vor.u32 %v1402_v36, %v9455_v5  ;;  %v807_v41 = vor.u32 %v805_v18, %v804_v60  ;;  %988 = vst [vmem:[#allocation2 + $0xa8] sm:$0xf] %v987_v4  ;;  %v980_v14 = vsel %vm9026_vm9, %v782_v55, %v979_v8  ;;  %v1641_v22 = vld [vmem:[#allocation2 + $0x18] sm:$0xe]  ;;  %v9517_v12 = vld [vmem:[#allocation2 + $0x1c] sm:$0xf] }
  0xa0   : > { %v1490_v57 = vrot.slane %v1489_v21, 4  ;;  %1546 = vrot.lane.b32.xlu2 %v1375_v51, %s8893_s11  ;;  %v527_v5 = vsel %vm8978_vm5, 0, %v526_v19  ;;  %981 = vst [vmem:[#allocation2 + $0x9c] sm:$0xf] %v980_v14  ;;  %v826_v27 = vrot.slane %v9428_v31, 4  ;;  %v1406_v10 = vshll.u32 %v1106_v43, 16 }
  0xa1   : > { %v808_v7 = vsel %vm9040_vm11, %v800_v2, %v807_v41  ;;  %v1404_v26 = vrot.slane %v1403_v40, 4  ;;  %528 = vst [vmem:[#allocation2 + $0xb0] sm:$0x1] %v527_v5  ;;  %v1740_v24 = vsel %vm9505_vm14, %v1738_v13, %v1739_v11  ;;  %v1496_v25 = vshrl.u32 %v9462_v28, 16  ;;  %v9521_v32 = vld [vmem:[#allocation2 + $0x28] sm:$0xf]  ;;  %v1507_v14 = vpop.permute.xlu0 %1506 }
  0xa2   : > { %v1495_v34 = vsel %vm9032_vm10, %v1490_v57, %v9474_v44  ;;  %989 = vst.msk [vmem:[#allocation2 + $0xac] sm:$0xf] %vm416_vm0, %v808_v7  ;;  %v1408_v20 = vrot.slane %v1406_v10, 5  ;;  %v8507_v36 = vrot.slane %v1641_v22, 9  ;;  %v809_v38 = vrot.slane %v804_v60, 4 }
  0xa3   : > { %1566 = vrot.lane.b32.xlu0 %v1495_v34, %s8893_s11  ;;  %1556 = vrot.lane.b32.xlu1 %v1433_v52, %s8893_s11  ;;  %v1750_v0 = vrot.slane %v9517_v12, 5  ;;  %v1498_v56 = vrot.slane %v1496_v25, 4  ;;  %vm1602_vm15 = vcmask 60448   ;;  %v1008_v18 = vld [vmem:[#allocation2 + $0x4] sm:$0xf]  ;;  %v1757_v58 = vrot.slane %v9521_v32, 5 }
  0xa4   : > { %v997_v23 = vld [vmem:[#allocation2 + $0xbc] sm:$0x1]  ;;  %v1409_v3 = vsel %vm9032_vm10, %v1404_v26, %v1408_v20  ;;  %1040 = vst.msk [vmem:[#allocation3 + $0x4] sm:$0xf] %vm416_vm0, %v1008_v18  ;;  %v1646_v40 = vld [vmem:[#allocation2 + $0x2c] sm:$0x1] }
  0xa5   : > { %v998_v31 = vsel %vm8953_vm3, %v826_v27, %v997_v23  ;;  %v1751_v30 = vsel %vm9505_vm14, %v8507_v36, %v1750_v0  ;;  %v1499_v60 = vor.u32 %v1498_v56, %v9474_v44  ;;  %1604 = vst.msk [vmem:[#allocation3 + $0x4] sm:$0xf] %vm1602_vm15, %v1509_v37  ;;  %v1759_v44 = vrot.slane %v1757_v58, 4  ;;  %v1007_v5 = vld [vmem:[#allocation2] sm:$0xf] }
  0xa6   : > { %999 = vst [vmem:[#allocation2 + $0xbc] sm:$0x1] %v998_v31  ;;  %v1113_v29 = vld [vmem:[#allocation2 + $0xa8] sm:$0xf]  ;;  %v1760_v11 = vrot.slane %v1646_v40, 5  ;;  %v1752_v33 = vrot.slane %v1750_v0, 4 }
  0xa7   : > { %v1459_v48 = vshrl.u32 %v1113_v29, 16  ;;  %v1462_v15 = vshll.u32 %v1113_v29, 16  ;;  %v1110_v39 = vld [vmem:[#allocation2 + $0x9c] sm:$0xf]  ;;  %v1515_v13 = vpop.permute.xlu2 %1514  ;;  %v1011_v43 = vld [vmem:[#allocation2 + $0x18] sm:$0xf] }
  0xa8   : > { %1552 = vrot.lane.b32.xlu2 %v1409_v3, %s8893_s11  ;;  %v1435_v59 = vshrl.u32 %v1110_v39, 16  ;;  %v1438_v42 = vshll.u32 %v1110_v39, 16  ;;  %v990_v50 = vld [vmem:[#allocation2 + $0xb0] sm:$0x1]  ;;  %v1500_v7 = vrot.slane %v1499_v60, 4  ;;  %vm1942_vm1 = vcmask 93248  }
  0xa9   : > { %v1114_v28 = vld [vmem:[#allocation2 + $0xac] sm:$0xf]  ;;  %v1461_v17 = vrot.slane %v1459_v48, 4  ;;  %v1464_v45 = vrot.slane %v1462_v15, 5  ;;  %v991_v49 = vsel %vm8953_vm3, %v809_v38, %v990_v50  ;;  %1039 = vst.msk [vmem:[#allocation3] sm:$0xf] %vm416_vm0, %v1007_v5  ;;  %v1519_v15 = vpop.permute.xlu0 %1518 }
  0xaa   : > { %v1468_v46 = vshll.u32 %v1114_v28, 16  ;;  %v1472_v21 = vshrl.u32 %v1114_v28, 16  ;;  %v1437_v47 = vrot.slane %v1435_v59, 4  ;;  %v1440_v62 = vrot.slane %v1438_v42, 5  ;;  %992 = vst [vmem:[#allocation2 + $0xb0] sm:$0x1] %v991_v49 }
  0xab   : > { %1848 = vrot.lane.b32.xlu0 %v1740_v24, %s8894_s16  ;;  %v1465_v51 = vor.u32 %v1464_v45, %v1461_v17  ;;  %1603 = vst.msk [vmem:[#allocation3] sm:$0xf] %vm1602_vm15, %v1507_v14  ;;  %v1650_v24 = vld [vmem:[#allocation2 + $0x3c] sm:$0xe]  ;;  %v9552_v31 = vld [vmem:[#allocation2 + $0x40] sm:$0xf]  ;;  %v1511_v17 = vpop.permute.xlu1 %1510 }
  0xac   : > { %v1470_v54 = vrot.slane %v1468_v46, 5  ;;  %v1474_v55 = vrot.slane %v1472_v21, 4  ;;  %v1441_v19 = vor.u32 %v1440_v62, %v1437_v47  ;;  %1043 = vst.msk [vmem:[#allocation3 + $0x10] sm:$0xf] %vm416_vm0, %v1011_v43  ;;  %v1638_v25 = vld [vmem:[#allocation2 + $0xc] sm:$0xe] }
  0xad   : > { %v1118_v57 = vld [vmem:[#allocation2 + $0xbc] sm:$0x1]  ;;  %v1466_v2 = vrot.slane %v1465_v51, 4  ;;  %1607 = vst.msk [vmem:[#allocation3 + $0x10] sm:$0xf] %vm1602_vm15, %v1515_v13  ;;  %v8510_v38 = vrot.slane %v1650_v24, 9 }
  0xae   : > { %v1502_v52 = vshll.u32 %v1118_v57, 16  ;;  %v1442_v34 = vrot.slane %v1441_v19, 4  ;;  %v1475_v4 = vor.u32 %v1474_v55, %v1470_v54  ;;  %v1639_v3 = vld [vmem:[#allocation2 + $0x10] sm:$0xf]  ;;  %v1635_v36 = vld [vmem:[#allocation2] sm:$0xe] }
  0xaf   : > { %v1471_v41 = vsel %vm9032_vm10, %v1466_v2, %v1470_v54  ;;  %v1771_v48 = vrot.slane %v9552_v31, 5  ;;  %v1013_v39 = vld [vmem:[#allocation2 + $0x24] sm:$0xf]  ;;  %v1012_v28 = vld [vmem:[#allocation2 + $0x1c] sm:$0xf]  ;;  %v8506_v42 = vrot.slane %v1638_v25, 9 }
  0xb0   : > { %1562 = vrot.lane.b32.xlu1 %v1471_v41, %s8893_s11  ;;  %v1447_v8 = vsel %vm9032_vm10, %v1442_v34, %v9417_v61  ;;  %v1504_v27 = vrot.slane %v1502_v52, 5  ;;  %v1476_v10 = vrot.slane %v1475_v4, 4  ;;  %v1761_v61 = vsel %vm9505_vm14, %v1759_v44, %v1760_v11  ;;  %v1517_v59 = vpop.permute.xlu2 %1516  ;;  %v9560_v37 = vld [vmem:[#allocation2 + $0x4c] sm:$0xf]  ;;  %1045 = vst.msk [vmem:[#allocation3 + $0x18] sm:$0xf] %vm416_vm0, %v1013_v39 }
  0xb1   : > { %1558 = vrot.lane.b32.xlu2 %v1447_v8, %s8893_s11  ;;  %v1115_v26 = vld [vmem:[#allocation2 + $0xb0] sm:$0x1]  ;;  %v1743_v56 = vrot.slane %v1639_v3, 5  ;;  %v8505_v45 = vrot.slane %v1635_v36, 9  ;;  %1609 = vst.msk [vmem:[#allocation3 + $0x18] sm:$0xf] %vm1602_vm15, %v1519_v15  ;;  %v1772_v50 = vsel %vm9505_vm14, %v8510_v38, %v1771_v48  ;;  %v1525_v19 = vpop.permute.xlu0 %1524 }
  0xb2   : > { %v1478_v20 = vshll.u32 %v1115_v26, 16  ;;  %v1505_v22 = vsel %vm9032_vm10, %v1500_v7, %v1504_v27  ;;  %v1009_v46 = vld [vmem:[#allocation2 + $0xc] sm:$0xf]  ;;  %1044 = vst.msk [vmem:[#allocation3 + $0x14] sm:$0xf] %vm416_vm0, %v1012_v28  ;;  %v1778_v21 = vrot.slane %v9560_v37, 5 }
  0xb3   : > { %1854 = vrot.lane.b32.xlu0 %v1751_v30, %s8894_s16  ;;  %1608 = vst.msk [vmem:[#allocation3 + $0x14] sm:$0xf] %vm1602_vm15, %v1517_v59  ;;  %v1744_v47 = vsel %vm9505_vm14, %v8506_v42, %v1743_v56  ;;  %v1655_v62 = vld [vmem:[#allocation2 + $0x50] sm:$0x1]  ;;  %v1737_v49 = vsel %vm9505_vm14, %v8505_v45, %v1736_v53  ;;  %v1643_v18 = vld [vmem:[#allocation2 + $0x20] sm:$0x1]  ;;  %v1513_v60 = vpop.permute.xlu1 %1512 }
  0xb4   : > { %v1480_v23 = vrot.slane %v1478_v20, 5  ;;  %1041 = vst.msk [vmem:[#allocation3 + $0x8] sm:$0xf] %vm416_vm0, %v1009_v46  ;;  %v1640_v51 = vld [vmem:[#allocation2 + $0x14] sm:$0x1]  ;;  %v1780_v54 = vrot.slane %v1778_v21, 4 }
  0xb5   : > { %1605 = vst.msk [vmem:[#allocation3 + $0x8] sm:$0xf] %vm1602_vm15, %v1511_v17  ;;  %v1781_v55 = vrot.slane %v1655_v62, 5  ;;  %v1016_v30 = vld [vmem:[#allocation2 + $0x34] sm:$0xf]  ;;  %v1753_v53 = vrot.slane %v1643_v18, 5 }
  0xb6   : > { %v1481_v29 = vsel %vm9032_vm10, %v1476_v10, %v1480_v23  ;;  %v1015_v57 = vld [vmem:[#allocation2 + $0x30] sm:$0xf]  ;;  %1048 = vst.msk [vmem:[#allocation3 + $0x24] sm:$0xf] %vm416_vm0, %v1016_v30  ;;  %v1745_v52 = vrot.slane %v1743_v56, 4  ;;  %v1746_v40 = vrot.slane %v1640_v51, 5 }
  0xb7   : > { %1612 = vst.msk [vmem:[#allocation3 + $0x24] sm:$0xf] %vm1602_vm15, %v1525_v19  ;;  %v1010_v34 = vld [vmem:[#allocation2 + $0x10] sm:$0xf]  ;;  %v1782_v41 = vsel %vm9505_vm14, %v1780_v54, %v1781_v55  ;;  %v1754_v12 = vsel %vm9505_vm14, %v1752_v33, %v1753_v53  ;;  %v1659_v0 = vld [vmem:[#allocation2 + $0x60] sm:$0xe] }
  0xb8   : > { %1568 = vrot.lane.b32.xlu1 %v1505_v22, %s8893_s11  ;;  %1047 = vst.msk [vmem:[#allocation3 + $0x20] sm:$0xf] %vm416_vm0, %v1015_v57  ;;  %v9594_v4 = vld [vmem:[#allocation2 + $0x64] sm:$0xf]  ;;  %v1747_v8 = vsel %vm9505_vm14, %v1745_v52, %v1746_v40  ;;  %v1647_v44 = vld [vmem:[#allocation2 + $0x30] sm:$0xe] }
  0xb9   : > { %1564 = vrot.lane.b32.xlu2 %v1481_v29, %s8893_s11  ;;  %1042 = vst.msk [vmem:[#allocation3 + $0xc] sm:$0xf] %vm416_vm0, %v1010_v34  ;;  %v1648_v11 = vld [vmem:[#allocation2 + $0x34] sm:$0xf]  ;;  %v1644_v14 = vld [vmem:[#allocation2 + $0x24] sm:$0xe]  ;;  %v1531_v7 = vpop.permute.xlu0 %1530 }
  0xba   : > { %1606 = vst.msk [vmem:[#allocation3 + $0xc] sm:$0xf] %vm1602_vm15, %v1513_v60  ;;  %v8513_v5 = vrot.slane %v1659_v0, 9  ;;  %v1792_v13 = vrot.slane %v9594_v4, 5  ;;  %v1019_v43 = vld [vmem:[#allocation2 + $0x48] sm:$0xf] }
  0xbb   : > { %1860 = vrot.lane.b32.xlu0 %v1761_v61, %s8894_s16  ;;  %v1018_v27 = vld [vmem:[#allocation2 + $0x40] sm:$0xf]  ;;  %v8509_v26 = vrot.slane %v1647_v44, 9  ;;  %v1764_v10 = vrot.slane %v1648_v11, 5  ;;  %v9604_v20 = vld [vmem:[#allocation2 + $0x70] sm:$0xf]  ;;  %v1521_v61 = vpop.permute.xlu1 %1520 }
  0xbc   : > { %1051 = vst.msk [vmem:[#allocation3 + $0x30] sm:$0xf] %vm416_vm0, %v1019_v43  ;;  %v8508_v22 = vrot.slane %v1644_v14, 9  ;;  %v1014_v23 = vld [vmem:[#allocation2 + $0x28] sm:$0xf]  ;;  %v1793_v25 = vsel %vm9505_vm14, %v8513_v5, %v1792_v13  ;;  %v1799_v3 = vrot.slane %v9604_v20, 5 }
  0xbd   : > { %1615 = vst.msk [vmem:[#allocation3 + $0x30] sm:$0xf] %vm1602_vm15, %v1531_v7  ;;  %v1765_v29 = vsel %vm9505_vm14, %v8509_v26, %v1764_v10  ;;  %v1664_v36 = vld [vmem:[#allocation2 + $0x74] sm:$0x1]  ;;  %v1652_v15 = vld [vmem:[#allocation2 + $0x44] sm:$0x1] }
  0xbe   : > { %1050 = vst.msk [vmem:[#allocation3 + $0x2c] sm:$0xf] %vm416_vm0, %v1018_v27  ;;  %v1758_v38 = vsel %vm9505_vm14, %v8508_v22, %v1757_v58  ;;  %v1649_v39 = vld [vmem:[#allocation2 + $0x38] sm:$0x1]  ;;  %v1801_v28 = vrot.slane %v1799_v3, 4  ;;  %v1802_v59 = vrot.slane %v1664_v36, 5 }
  0xbf   : > { %v1523_v2 = vpop.permute.xlu2 %1522  ;;  %1046 = vst.msk [vmem:[#allocation3 + $0x1c] sm:$0xf] %vm416_vm0, %v1014_v23  ;;  %v1022_v42 = vld [vmem:[#allocation2 + $0x58] sm:$0xf]  ;;  %v1021_v17 = vld [vmem:[#allocation2 + $0x54] sm:$0xf] }
  0xc0   : > { %1850 = vrot.lane.b32.xlu1 %v1744_v47, %s8894_s16  ;;  %1611 = vst.msk [vmem:[#allocation3 + $0x20] sm:$0xf] %vm1602_vm15, %v1523_v2  ;;  %v1773_v32 = vrot.slane %v1771_v48, 4  ;;  %v1774_v58 = vrot.slane %v1652_v15, 5  ;;  %v1017_v45 = vld [vmem:[#allocation2 + $0x3c] sm:$0xf]  ;;  %v1803_v62 = vsel %vm9505_vm14, %v1801_v28, %v1802_v59 }
  0xc1   : > { %1846 = vrot.lane.b32.xlu2 %v1737_v49, %s8894_s16  ;;  %1610 = vst.msk [vmem:[#allocation3 + $0x1c] sm:$0xf] %vm1602_vm15, %v1521_v61  ;;  %v1767_v47 = vrot.slane %v1649_v39, 5  ;;  %v1668_v48 = vld [vmem:[#allocation2 + $0x84] sm:$0xe]  ;;  %v1794_v37 = vrot.slane %v1792_v13, 4 }
  0xc2   : > { %1054 = vst.msk [vmem:[#allocation3 + $0x3c] sm:$0xf] %vm416_vm0, %v1022_v42  ;;  %v1775_v31 = vsel %vm9505_vm14, %v1773_v32, %v1774_v58  ;;  %v9638_v49 = vld [vmem:[#allocation2 + $0x88] sm:$0xf]  ;;  %v1656_v51 = vld [vmem:[#allocation2 + $0x54] sm:$0xe] }
  0xc3   : > { %1866 = vrot.lane.b32.xlu0 %v1772_v50, %s8894_s16  ;;  %v1766_v50 = vrot.slane %v1764_v10, 4  ;;  %1053 = vst.msk [vmem:[#allocation3 + $0x38] sm:$0xf] %vm416_vm0, %v1021_v17  ;;  %v1657_v54 = vld [vmem:[#allocation2 + $0x58] sm:$0xf]  ;;  %v8516_v30 = vrot.slane %v1668_v48, 9 }
  0xc4   : > { %1049 = vst.msk [vmem:[#allocation3 + $0x28] sm:$0xf] %vm416_vm0, %v1017_v45  ;;  %v1653_v55 = vld [vmem:[#allocation2 + $0x48] sm:$0xe]  ;;  %v1813_v19 = vrot.slane %v9638_v49, 5  ;;  %v8512_v53 = vrot.slane %v1656_v51, 9 }
  0xc5   : > { %v1768_v18 = vsel %vm9505_vm14, %v1766_v50, %v1767_v47  ;;  %v9646_v57 = vld [vmem:[#allocation2 + $0x94] sm:$0xf]  ;;  %v1025_v33 = vld [vmem:[#allocation2 + $0x6c] sm:$0xf]  ;;  %v1785_v2 = vrot.slane %v1657_v54, 5  ;;  %v8511_v40 = vrot.slane %v1653_v55, 9 }
  0xc6   : > { %1057 = vst.msk [vmem:[#allocation3 + $0x48] sm:$0xf] %vm416_vm0, %v1025_v33  ;;  %v1024_v52 = vld [vmem:[#allocation2 + $0x64] sm:$0xf]  ;;  %v1673_v44 = vld [vmem:[#allocation2 + $0x98] sm:$0x1] }
  0xc7   : > { %1056 = vst.msk [vmem:[#allocation3 + $0x44] sm:$0xf] %vm416_vm0, %v1024_v52  ;;  %v1786_v11 = vsel %vm9505_vm14, %v8512_v53, %v1785_v2  ;;  %v1779_v14 = vsel %vm9505_vm14, %v8511_v40, %v1778_v21  ;;  %v1661_v5 = vld [vmem:[#allocation2 + $0x68] sm:$0x1]  ;;  %v1823_v7 = vrot.slane %v1673_v44, 5  ;;  %v1787_v22 = vrot.slane %v1785_v2, 4 }
  0xc8   : > { %1856 = vrot.lane.b32.xlu1 %v1754_v12, %s8894_s16  ;;  %v1820_v12 = vrot.slane %v9646_v57, 5  ;;  %v1658_v27 = vld [vmem:[#allocation2 + $0x5c] sm:$0x1]  ;;  %v1027_v10 = vld [vmem:[#allocation2 + $0x78] sm:$0xf]  ;;  %v1795_v21 = vrot.slane %v1661_v5, 5 }
  0xc9   : > { %1852 = vrot.lane.b32.xlu2 %v1747_v8, %s8894_s16  ;;  %v1814_v8 = vsel %vm9505_vm14, %v8516_v30, %v1813_v19  ;;  %v1028_v26 = vld [vmem:[#allocation2 + $0x7c] sm:$0xf]  ;;  %v1023_v61 = vld [vmem:[#allocation2 + $0x60] sm:$0xf]  ;;  %v1788_v23 = vrot.slane %v1658_v27, 5  ;;  %v1815_v20 = vrot.slane %v1813_v19, 4 }
  0xca   : > { %v1529_v24 = vpop.permute.xlu2 %1528  ;;  %v1537_v56 = vpop.permute.xlu0 %1536  ;;  %v1822_v43 = vrot.slane %v1820_v12, 4  ;;  %1060 = vst.msk [vmem:[#allocation3 + $0x54] sm:$0xf] %vm416_vm0, %v1028_v26  ;;  %v1796_v4 = vsel %vm9505_vm14, %v1794_v37, %v1795_v21  ;;  %v1665_v15 = vld [vmem:[#allocation2 + $0x78] sm:$0xe]  ;;  %vm2135_vm2 = vcmask 126048  }
  0xcb   : > { %1872 = vrot.lane.b32.xlu0 %v1782_v41, %s8894_s16  ;;  %1614 = vst.msk [vmem:[#allocation3 + $0x2c] sm:$0xf] %vm1602_vm15, %v1529_v24  ;;  %v1020_v41 = vld [vmem:[#allocation2 + $0x4c] sm:$0xf]  ;;  %v1666_v39 = vld [vmem:[#allocation2 + $0x7c] sm:$0xf] }
  0xcc   : > { %1618 = vst.msk [vmem:[#allocation3 + $0x3c] sm:$0xf] %vm1602_vm15, %v1537_v56  ;;  %v1824_v24 = vsel %vm9505_vm14, %v1822_v43, %v1823_v7  ;;  %v1662_v42 = vld [vmem:[#allocation2 + $0x6c] sm:$0xe]  ;;  %v9688_v56 = vld [vmem:[#allocation2 + $0xb8] sm:$0xf] }
  0xcd   : > { %1052 = vst.msk [vmem:[#allocation3 + $0x34] sm:$0xf] %vm416_vm0, %v1020_v41  ;;  %v1031_v17 = vld [vmem:[#allocation2 + $0x90] sm:$0xf]  ;;  %v1030_v32 = vld [vmem:[#allocation2 + $0x88] sm:$0xf] }
  0xce   : > { %1059 = vst.msk [vmem:[#allocation3 + $0x50] sm:$0xf] %vm416_vm0, %v1027_v10  ;;  %v1026_v58 = vld [vmem:[#allocation2 + $0x70] sm:$0xf]  ;;  %v8515_v45 = vrot.slane %v1665_v15, 9  ;;  %v8514_v50 = vrot.slane %v1662_v42, 9 }
  0xcf   : > { %1055 = vst.msk [vmem:[#allocation3 + $0x40] sm:$0xf] %vm416_vm0, %v1023_v61  ;;  %v1841_v47 = vrot.slane %v9688_v56, 5  ;;  %v1670_v51 = vld [vmem:[#allocation2 + $0x8c] sm:$0x1]  ;;  %vm2696_vm4 = vcmask 158848  }
  0xd0   : > { %1862 = vrot.lane.b32.xlu1 %v1765_v29, %s8894_s16  ;;  %v9678_v29 = vld [vmem:[#allocation2 + $0xac] sm:$0xf]  ;;  %1063 = vst.msk [vmem:[#allocation3 + $0x60] sm:$0xf] %vm416_vm0, %v1031_v17  ;;  %v1667_v30 = vld [vmem:[#allocation2 + $0x80] sm:$0x1] }
  0xd1   : > { %1858 = vrot.lane.b32.xlu2 %v1758_v38, %s8894_s16  ;;  %v1527_v46 = vpop.permute.xlu1 %1526  ;;  %v1789_v38 = vsel %vm9505_vm14, %v1787_v22, %v1788_v23  ;;  %v1834_v59 = vrot.slane %v9678_v29, 5  ;;  %1062 = vst.msk [vmem:[#allocation3 + $0x5c] sm:$0xf] %vm416_vm0, %v1030_v32  ;;  %v1843_v54 = vrot.slane %v1841_v47, 4  ;;  %v1034_v53 = vld [vmem:[#allocation2 + $0xa0] sm:$0xf] }
  0xd2   : > { %1613 = vst.msk [vmem:[#allocation3 + $0x28] sm:$0xf] %vm1602_vm15, %v1527_v46  ;;  %v1806_v46 = vrot.slane %v1666_v39, 5  ;;  %v1033_v2 = vld [vmem:[#allocation2 + $0x9c] sm:$0xf]  ;;  %v1809_v40 = vrot.slane %v1667_v30, 5 }
  0xd3   : > { %1878 = vrot.lane.b32.xlu0 %v1793_v25, %s8894_s16  ;;  %v1677_v25 = vld [vmem:[#allocation2 + $0xa8] sm:$0xe]  ;;  %1058 = vst.msk [vmem:[#allocation3 + $0x4c] sm:$0xf] %vm416_vm0, %v1026_v58  ;;  %v1674_v19 = vld [vmem:[#allocation2 + $0x9c] sm:$0xe] }
  0xd4   : > { %v8519_v28 = vrot.slane %v1677_v25, 9  ;;  %v1807_v48 = vsel %vm9505_vm14, %v8515_v45, %v1806_v46  ;;  %1066 = vst.msk [vmem:[#allocation3 + $0x6c] sm:$0xf] %vm416_vm0, %v1034_v53  ;;  %v1808_v52 = vrot.slane %v1806_v46, 4  ;;  %v1037_v5 = vld [vmem:[#allocation2 + $0xb4] sm:$0xf] }
  0xd5   : > { %1065 = vst.msk [vmem:[#allocation3 + $0x68] sm:$0xf] %vm416_vm0, %v1033_v2  ;;  %v1036_v43 = vld [vmem:[#allocation2 + $0xac] sm:$0xf]  ;;  %v8518_v7 = vrot.slane %v1674_v19, 9  ;;  %v1836_v57 = vrot.slane %v1834_v59, 4 }
  0xd6   : > { %v1810_v49 = vsel %vm9505_vm14, %v1808_v52, %v1809_v40  ;;  %1069 = vst.msk [vmem:[#allocation3 + $0x78] sm:$0xf] %vm416_vm0, %v1037_v5  ;;  %v1032_v26 = vld [vmem:[#allocation2 + $0x94] sm:$0xf]  ;;  %v1977_v61 = vld [vmem:[#allocation2 + $0x18] sm:$0xf] }
  0xd7   : > { %1068 = vst.msk [vmem:[#allocation3 + $0x74] sm:$0xf] %vm416_vm0, %v1036_v43  ;;  %v1679_v22 = vld [vmem:[#allocation2 + $0xb0] sm:$0x1]  ;;  %v1038_v29 = vld [vmem:[#allocation2 + $0xb8] sm:$0xf] }
  0xd8   : > { %1868 = vrot.lane.b32.xlu1 %v1775_v31, %s8894_s16  ;;  %v1682_v31 = vld [vmem:[#allocation2 + $0xbc] sm:$0x1]  ;;  %1064 = vst.msk [vmem:[#allocation3 + $0x64] sm:$0xf] %vm416_vm0, %v1032_v26  ;;  %v1975_v58 = vld [vmem:[#allocation2 + $0xc] sm:$0xf] }
  0xd9   : > { %1864 = vrot.lane.b32.xlu2 %v1768_v18, %s8894_s16  ;;  %v1533_v0 = vpop.permute.xlu1 %1532  ;;  %v1800_v18 = vsel %vm9505_vm14, %v8514_v50, %v1799_v3  ;;  %v1844_v55 = vrot.slane %v1682_v31, 5  ;;  %v1816_v3 = vrot.slane %v1670_v51, 5  ;;  %1070 = vst.msk [vmem:[#allocation3 + $0x7c] sm:$0xf] %vm416_vm0, %v1038_v29  ;;  %v1983_v32 = vld [vmem:[#allocation2 + $0x3c] sm:$0xf] }
  0xda   : > { %v1543_v60 = vpop.permute.xlu0 %1542  ;;  %1616 = vst.msk [vmem:[#allocation3 + $0x34] sm:$0xf] %vm1602_vm15, %v1533_v0  ;;  %v1986_v31 = vld [vmem:[#allocation2 + $0x4c] sm:$0xf]  ;;  %v1978_v56 = vld [vmem:[#allocation2 + $0x1c] sm:$0xf] }
  0xdb   : > { %1884 = vrot.lane.b32.xlu0 %v1803_v62, %s8894_s16  ;;  %1621 = vst.msk [vmem:[#allocation3 + $0x48] sm:$0xf] %vm1602_vm15, %v1543_v60  ;;  %v1835_v62 = vsel %vm9505_vm14, %v8519_v28, %v1834_v59  ;;  %v1029_v60 = vld [vmem:[#allocation2 + $0x84] sm:$0xf]  ;;  %v1817_v0 = vsel %vm9505_vm14, %v1815_v20, %v1816_v3  ;;  %v1680_v28 = vld [vmem:[#allocation2 + $0xb4] sm:$0xe] }
  0xdc   : > { %1061 = vst.msk [vmem:[#allocation3 + $0x58] sm:$0xf] %vm416_vm0, %v1029_v60  ;;  %v8520_v42 = vrot.slane %v1680_v28, 9  ;;  %v1989_v51 = vld [vmem:[#allocation2 + $0x60] sm:$0xf]  ;;  %v310_v60 = vld [vmem:[%s8987_s10 + $0xf0] sm:$0xff] }
  0xdd   : > { %v1535_v34 = vpop.permute.xlu2 %1534  ;;  %v1992_v2 = vld [vmem:[#allocation2 + $0x70] sm:$0xf]  ;;  %v1984_v20 = vld [vmem:[#allocation2 + $0x40] sm:$0xf]  ;;  %v1982_v3 = vld [vmem:[#allocation2 + $0x34] sm:$0xf] }
  0xde   : > { %1617 = vst.msk [vmem:[#allocation3 + $0x38] sm:$0xf] %vm1602_vm15, %v1535_v34  ;;  %v1845_v34 = vsel %vm9505_vm14, %v1843_v54, %v1844_v55  ;;  %v1842_v45 = vsel %vm9505_vm14, %v8520_v42, %v1841_v47  ;;  %v1981_v54 = vld [vmem:[#allocation2 + $0x30] sm:$0xf]  ;;  %v1979_v55 = vld [vmem:[#allocation2 + $0x24] sm:$0xf] }
  0xdf   : > { %v8846_v40 = vld [vmem:[%s12099_s3] ss:$0 sm:$0xff]  ;;  %v1985_v5 = vld [vmem:[#allocation2 + $0x48] sm:$0xf]  ;;  %vm3033_vm6 = vcmask 191648   ;;  %vm3227_vm7 = vcmask 224448  }
  0xe0   : > { %1874 = vrot.lane.b32.xlu1 %v1786_v11, %s8894_s16  ;;  %v1671_v11 = vld [vmem:[#allocation2 + $0x90] sm:$0xe]  ;;  %v2001_v29 = vld [vmem:[#allocation2 + $0xa8] sm:$0xf]  ;;  %vm4339_vm8 = vcmask 1041408   ;;  %vm4125_vm12 = vcmask 290048  }
  0xe1   : > { %1870 = vrot.lane.b32.xlu2 %v1779_v14, %s8894_s16  ;;  %v8517_v10 = vrot.slane %v1671_v11, 9  ;;  %vm4290_vm13 = vcmask 293888  }
  0xe3   : > { %1890 = vrot.lane.b32.xlu0 %v1814_v8, %s8894_s16  ;;  %v1675_v8 = vld [vmem:[#allocation2 + $0xa0] sm:$0xf]  ;;  %v1821_v21 = vsel %vm9505_vm14, %v8517_v10, %v1820_v12 }
  0xe4   : > { %v1827_v27 = vrot.slane %v1675_v8, 5  ;;  %v1995_v8 = vld [vmem:[#allocation2 + $0x84] sm:$0xf] }
  0xe6   : > { %v1828_v37 = vsel %vm9505_vm14, %v8518_v7, %v1827_v27  ;;  %v1829_v12 = vrot.slane %v1827_v27, 4 }
  0xe8   : > { %v1549_v36 = vpop.permute.xlu0 %1548  ;;  %1880 = vrot.lane.b32.xlu1 %v1796_v4, %s8894_s16  ;;  %v1837_v4 = vrot.slane %v1679_v22, 5 }
  0xe9   : > { %v1541_v13 = vpop.permute.xlu2 %1540  ;;  %1624 = vst.msk [vmem:[#allocation3 + $0x54] sm:$0xf] %vm1602_vm15, %v1549_v36  ;;  %1876 = vrot.lane.b32.xlu2 %v1789_v38, %s8894_s16  ;;  %v1035_v36 = vld [vmem:[#allocation2 + $0xa8] sm:$0xf] }
  0xea   : > { %1620 = vst.msk [vmem:[#allocation3 + $0x44] sm:$0xf] %vm1602_vm15, %v1541_v13  ;;  %v1980_v38 = vld [vmem:[#allocation2 + $0x28] sm:$0xf]  ;;  %v1838_v15 = vsel %vm9505_vm14, %v1836_v57, %v1837_v4  ;;  %v311_v4 = vld [vmem:[%s8987_s10 + $0xf8] sm:$0xff] }
  0xeb   : > { %1896 = vrot.lane.b32.xlu0 %v1824_v24, %s8894_s16  ;;  %v1676_v24 = vld [vmem:[#allocation2 + $0xa4] sm:$0x1]  ;;  %1067 = vst.msk [vmem:[#allocation3 + $0x70] sm:$0xf] %vm416_vm0, %v1035_v36 }
  0xec   : > { %v1830_v13 = vrot.slane %v1676_v24, 5  ;;  %v1988_v24 = vld [vmem:[#allocation2 + $0x58] sm:$0xf] }
  0xee   : > { %v1831_v39 = vsel %vm9505_vm14, %v1829_v12, %v1830_v13  ;;  %v2168_v13 = vld [vmem:[#allocation2 + $0xc] sm:$0xf] }
  0xef   : > { %v2220_v42 = vshll.u32 %v2168_v13, 16 }
  0xf0   : > { %1886 = vrot.lane.b32.xlu1 %v1807_v48, %s8894_s16  ;;  %v1976_v48 = vld [vmem:[#allocation2 + $0x10] sm:$0xf] }
  0xf1   : > { %1882 = vrot.lane.b32.xlu2 %v1800_v18, %s8894_s16 }
  0xf2   : > { %v1539_v33 = vpop.permute.xlu1 %1538 }
  0xf3   : > { %1902 = vrot.lane.b32.xlu0 %v1835_v62, %s8894_s16  ;;  %1619 = vst.msk [vmem:[#allocation3 + $0x40] sm:$0xf] %vm1602_vm15, %v1539_v33 }
  0xf8   : > { %v1555_v41 = vpop.permute.xlu0 %1554  ;;  %1892 = vrot.lane.b32.xlu1 %v1817_v0, %s8894_s16 }
  0xf9   : > { %1627 = vst.msk [vmem:[#allocation3 + $0x60] sm:$0xf] %vm1602_vm15, %v1555_v41  ;;  %1888 = vrot.lane.b32.xlu2 %v1810_v49, %s8894_s16  ;;  %v8847_v49 = vld [vmem:[%s12100_s4] ss:$0 sm:$0xff] }
  0xfa   : > { %v1547_v44 = vpop.permute.xlu2 %1546  ;;  %v1545_v14 = vpop.permute.xlu1 %1544 }
  0xfb   : > { %1908 = vrot.lane.b32.xlu0 %v1845_v34, %s8894_s16  ;;  %1623 = vst.msk [vmem:[#allocation3 + $0x50] sm:$0xf] %vm1602_vm15, %v1547_v44  ;;  %v346_v34 = vmul.f32 %v8846_v40, %v310_v60  ;;  %v1987_v44 = vld [vmem:[#allocation2 + $0x54] sm:$0xf] }
  0xfc   : > { %1622 = vst.msk [vmem:[#allocation3 + $0x4c] sm:$0xf] %vm1602_vm15, %v1545_v14  ;;  %v476_v14 = vld [vmem:[#allocation2 + $0xc0] sm:$0x1] }
  0xfd   : > { %v382_v19 = vadd.f32 %v8847_v49, %v346_v34  ;;  %v477_v43 = vsel %vm8953_vm3, 0, %v476_v14 }
  0xfe   : > { %478 = vst [vmem:[#allocation2 + $0xc0] sm:$0x1] %v477_v43 }
  0xff   : > { %v414_v11 = vmax.f32 %v382_v19, 0.0 }
 0x100   : > { %1898 = vrot.lane.b32.xlu1 %v1828_v37, %s8894_s16 }
 0x101   : > { %1894 = vrot.lane.b32.xlu2 %v1821_v21, %s8894_s16  ;;  %v568_v7 = vpack.c.bf16 %v414_v11, %v414_v11  ;;  %v1998_v21 = vld [vmem:[#allocation2 + $0x94] sm:$0xf] }
 0x102   : > { %v1561_v23 = vpop.permute.xlu0 %1560  ;;  %v1553_v25 = vpop.permute.xlu2 %1552 }
 0x103   : > { %2043 = vrot.lane.b32.xlu0 %v1977_v61, %s8895_s17  ;;  %1630 = vst.msk [vmem:[#allocation3 + $0x6c] sm:$0xf] %vm1602_vm15, %v1561_v23  ;;  %v828_v26 = vshrl.u32 %v568_v7, 16  ;;  %v831_v22 = vshll.u32 %v568_v7, 16  ;;  %v1990_v23 = vld [vmem:[#allocation2 + $0x64] sm:$0xf] }
 0x104   : > { %1626 = vst.msk [vmem:[#allocation3 + $0x5c] sm:$0xf] %vm1602_vm15, %v1553_v25 }
 0x105   : > { %v9797_v37 = vrot.slane %v828_v26, 7  ;;  %v1000_v36 = vld [vmem:[#allocation2 + $0xc0] sm:$0xf] }
 0x107   : > { %v833_v25 = vor.u32 %v831_v22, %v9797_v37 }
 0x108   : > { %1904 = vrot.lane.b32.xlu1 %v1838_v15, %s8894_s16 }
 0x109   : > { %1900 = vrot.lane.b32.xlu2 %v1831_v39, %s8894_s16  ;;  %v1001_v57 = vsel %vm9026_vm9, %v833_v25, %v1000_v36  ;;  %v9843_v25 = vld [vmem:[#allocation2 + $0x34] sm:$0xf]  ;;  %v2181_v36 = vld [vmem:[#allocation2 + $0x40] sm:$0xf] }
 0x10a   : > { %1002 = vst [vmem:[#allocation2 + $0xc0] sm:$0xf] %v1001_v57 }
 0x10b   : > { %2049 = vrot.lane.b32.xlu0 %v1980_v38, %s8895_s17  ;;  %v1559_v17 = vpop.permute.xlu2 %1558  ;;  %v347_v38 = vmul.f32 %v8846_v40, %v311_v4 }
 0x10c   : > { %1629 = vst.msk [vmem:[#allocation3 + $0x68] sm:$0xf] %vm1602_vm15, %v1559_v17  ;;  %v1993_v17 = vld [vmem:[#allocation2 + $0x78] sm:$0xf] }
 0x10d   : > { %v1551_v59 = vpop.permute.xlu1 %1550  ;;  %v383_v28 = vadd.f32 %v8847_v49, %v347_v38  ;;  %v2298_v38 = vshll.u32 %v9843_v25, 16 }
 0x10e   : > { %1625 = vst.msk [vmem:[#allocation3 + $0x58] sm:$0xf] %vm1602_vm15, %v1551_v59  ;;  %v2217_v59 = vshrl.u32 %v2168_v13, 16 }
 0x110   : > { %2039 = vrot.lane.b32.xlu1 %v1975_v58, %s8895_s17  ;;  %v1991_v58 = vld [vmem:[#allocation2 + $0x6c] sm:$0xf] }
 0x111   : > { %1906 = vrot.lane.b32.xlu2 %v1842_v45, %s8894_s16  ;;  %v2219_v45 = vrot.slane %v2217_v59, 4  ;;  %v2000_v59 = vld [vmem:[#allocation2 + $0xa0] sm:$0xf] }
 0x113   : > { %2055 = vrot.lane.b32.xlu0 %v1983_v32, %s8895_s17  ;;  %v1565_v62 = vpop.permute.xlu2 %1564  ;;  %v415_v32 = vmax.f32 %v383_v28, 0.0  ;;  %v2002_v28 = vld [vmem:[#allocation2 + $0xac] sm:$0xf] }
 0x114   : > { %1632 = vst.msk [vmem:[#allocation3 + $0x74] sm:$0xf] %vm1602_vm15, %v1565_v62 }
 0x115   : > { %v1567_v46 = vpop.permute.xlu0 %1566  ;;  %v1557_v50 = vpop.permute.xlu1 %1556  ;;  %v569_v62 = vpack.c.bf16 %v415_v32, %v415_v32 }
 0x116   : > { %1633 = vst.msk [vmem:[#allocation3 + $0x78] sm:$0xf] %vm1602_vm15, %v1567_v46  ;;  %v2222_v46 = vrot.slane %v2220_v42, 5 }
 0x117   : > { %1628 = vst.msk [vmem:[#allocation3 + $0x64] sm:$0xf] %vm1602_vm15, %v1557_v50  ;;  %v2172_v50 = vld [vmem:[#allocation2 + $0x1c] sm:$0xf] }
 0x118   : > { %2045 = vrot.lane.b32.xlu1 %v1978_v56, %s8895_s17  ;;  %v9813_v56 = vld [vmem:[#allocation2 + $0x10] sm:$0xf] }
 0x119   : > { %2041 = vrot.lane.b32.xlu2 %v1976_v48, %s8895_s17 }
 0x11b   : > { %2061 = vrot.lane.b32.xlu0 %v1986_v31, %s8895_s17  ;;  %v1847_v18 = vpop.permute.xlu2 %1846 }
 0x11c   : > { %1943 = vst.msk [vmem:[#allocation3] sm:$0xf] %vm1942_vm1, %v1847_v18  ;;  %v2004_v18 = vld [vmem:[#allocation2 + $0xb8] sm:$0xf] }
 0x11d   : > { %v1849_v47 = vpop.permute.xlu0 %1848 }
 0x11e   : > { %1944 = vst.msk [vmem:[#allocation3 + $0x4] sm:$0xf] %vm1942_vm1, %v1849_v47 }
 0x120   : > { %2051 = vrot.lane.b32.xlu1 %v1981_v54, %s8895_s17  ;;  %v2254_v54 = vshrl.u32 %v2172_v50, 16 }
 0x121   : > { %2047 = vrot.lane.b32.xlu2 %v1979_v55, %s8895_s17  ;;  %v2223_v55 = vor.u32 %v2222_v46, %v2219_v45  ;;  %v2186_v45 = vld [vmem:[#allocation2 + $0x54] sm:$0xf] }
 0x122   : > { %v1563_v33 = vpop.permute.xlu1 %1562  ;;  %v2256_v40 = vrot.slane %v2254_v54, 4  ;;  %v2364_v54 = vshll.u32 %v2186_v45, 16 }
 0x123   : > { %2067 = vrot.lane.b32.xlu0 %v1989_v51, %s8895_s17  ;;  %1631 = vst.msk [vmem:[#allocation3 + $0x70] sm:$0xf] %vm1602_vm15, %v1563_v33  ;;  %v1853_v53 = vpop.permute.xlu2 %1852  ;;  %v2250_v51 = vshll.u32 %v2172_v50, 16  ;;  %v836_v33 = vshrl.u32 %v569_v62, 16  ;;  %v2224_v34 = vrot.slane %v2223_v55, 4 }
 0x124   : > { %1946 = vst.msk [vmem:[#allocation3 + $0xc] sm:$0xf] %vm1942_vm1, %v1853_v53  ;;  %v839_v53 = vshll.u32 %v569_v62, 16  ;;  %v2182_v62 = vld [vmem:[#allocation2 + $0x44] sm:$0x1] }
 0x125   : > { %v1855_v30 = vpop.permute.xlu0 %1854  ;;  %v9820_v60 = vrot.slane %v836_v33, 7  ;;  %v2332_v33 = vshll.u32 %v2182_v62, 16 }
 0x126   : > { %1947 = vst.msk [vmem:[#allocation3 + $0x10] sm:$0xf] %vm1942_vm1, %v1855_v30  ;;  %v2226_v30 = vshll.u32 %v9813_v56, 16 }
 0x127   : > { %v841_v49 = vor.u32 %v839_v53, %v9820_v60  ;;  %v2005_v53 = vld [vmem:[#allocation2 + $0xc0] sm:$0xf] }
 0x128   : > { %2057 = vrot.lane.b32.xlu1 %v1984_v20, %s8895_s17  ;;  %v1994_v20 = vld [vmem:[#allocation2 + $0x7c] sm:$0xf] }
 0x129   : > { %2053 = vrot.lane.b32.xlu2 %v1982_v3, %s8895_s17  ;;  %v834_v3 = vrot.slane %v9797_v37, 4 }
 0x12a   : > { %v1569_v41 = vpop.permute.xlu1 %1568 }
 0x12b   : > { %2073 = vrot.lane.b32.xlu0 %v1992_v2, %s8895_s17  ;;  %1634 = vst.msk [vmem:[#allocation3 + $0x7c] sm:$0xf] %vm1602_vm15, %v1569_v41  ;;  %v1859_v0 = vpop.permute.xlu2 %1858  ;;  %v1996_v2 = vld [vmem:[#allocation2 + $0x88] sm:$0xf]  ;;  %v9826_v41 = vrot.slane %v2226_v30, 5  ;;  %v842_v11 = vsel %vm9040_vm11, %v834_v3, %v841_v49 }
 0x12c   : > { %1949 = vst.msk [vmem:[#allocation3 + $0x18] sm:$0xf] %vm1942_vm1, %v1859_v0  ;;  %v2173_v0 = vld [vmem:[#allocation2 + $0x20] sm:$0x1] }
 0x12d   : > { %v1861_v52 = vpop.permute.xlu0 %1860  ;;  %v2260_v43 = vshll.u32 %v2173_v0, 16  ;;  %v2229_v7 = vsel %vm9032_vm10, %v2224_v34, %v9826_v41  ;;  %1003 = vst.msk [vmem:[#allocation2 + $0xc4] sm:$0xf] %vm416_vm0, %v842_v11  ;;  %v2003_v34 = vld [vmem:[#allocation2 + $0xb4] sm:$0xf]  ;;  %v2334_v11 = vrot.slane %v2332_v33, 5 }
 0x12e   : > { %1950 = vst.msk [vmem:[#allocation3 + $0x1c] sm:$0xf] %vm1942_vm1, %v1861_v52  ;;  %v9823_v52 = vrot.slane %v2250_v51, 5  ;;  %v2361_v51 = vshrl.u32 %v2186_v45, 16 }
 0x130   : > { %2063 = vrot.lane.b32.xlu1 %v1987_v44, %s8895_s17 }
 0x131   : > { %2059 = vrot.lane.b32.xlu2 %v1985_v5, %s8895_s17  ;;  %v2257_v5 = vor.u32 %v2256_v40, %v9823_v52 }
 0x132   : > { %v1851_v10 = vpop.permute.xlu1 %1850 }
 0x133   : > { %2079 = vrot.lane.b32.xlu0 %v1995_v8, %s8895_s17  ;;  %1945 = vst.msk [vmem:[#allocation3 + $0x8] sm:$0xf] %vm1942_vm1, %v1851_v10  ;;  %v1865_v61 = vpop.permute.xlu2 %1864  ;;  %v2177_v8 = vld [vmem:[#allocation2 + $0x30] sm:$0xf]  ;;  %v1999_v10 = vld [vmem:[#allocation2 + $0x9c] sm:$0xf] }
 0x134   : > { %1952 = vst.msk [vmem:[#allocation3 + $0x24] sm:$0xf] %vm1942_vm1, %v1865_v61  ;;  %v2292_v26 = vshll.u32 %v2177_v8, 16  ;;  %v1997_v61 = vld [vmem:[#allocation2 + $0x90] sm:$0xf]  ;;  %v2258_v37 = vrot.slane %v2257_v5, 4 }
 0x135   : > { %v1867_v27 = vpop.permute.xlu0 %1866  ;;  %v2190_v5 = vld [vmem:[#allocation2 + $0x64] sm:$0xf] }
 0x136   : > { %1953 = vst.msk [vmem:[#allocation3 + $0x28] sm:$0xf] %vm1942_vm1, %v1867_v27  ;;  %v2289_v27 = vshrl.u32 %v2177_v8, 16  ;;  %v2366_v8 = vrot.slane %v2364_v54, 5 }
 0x138   : > { %2069 = vrot.lane.b32.xlu1 %v1990_v23, %s8895_s17  ;;  %v2291_v22 = vrot.slane %v2289_v27, 4  ;;  %v2294_v23 = vrot.slane %v2292_v26, 5  ;;  %v2175_v27 = vld [vmem:[#allocation2 + $0x28] sm:$0xf] }
 0x139   : > { %2065 = vrot.lane.b32.xlu2 %v1988_v24, %s8895_s17 }
 0x13a   : > { %v1857_v15 = vpop.permute.xlu1 %1856  ;;  %v2295_v13 = vor.u32 %v2294_v23, %v2291_v22  ;;  %v2302_v22 = vshrl.u32 %v9843_v25, 16 }
 0x13b   : > { %2085 = vrot.lane.b32.xlu0 %v1998_v21, %s8895_s17  ;;  %1948 = vst.msk [vmem:[#allocation3 + $0x14] sm:$0xf] %vm1942_vm1, %v1857_v15  ;;  %v1871_v39 = vpop.permute.xlu2 %1870  ;;  %v2262_v21 = vrot.slane %v2260_v43, 5  ;;  %v2322_v15 = vshll.u32 %v2181_v36, 16 }
 0x13c   : > { %1955 = vst.msk [vmem:[#allocation3 + $0x30] sm:$0xf] %vm1942_vm1, %v1871_v39  ;;  %v2326_v39 = vshrl.u32 %v2181_v36, 16  ;;  %v2296_v42 = vrot.slane %v2295_v13, 4 }
 0x13d   : > { %v1873_v12 = vpop.permute.xlu0 %1872  ;;  %v9856_v32 = vrot.slane %v2322_v15, 5  ;;  %v2274_v15 = vshll.u32 %v2175_v27, 16 }
 0x13e   : > { %1956 = vst.msk [vmem:[#allocation3 + $0x34] sm:$0xf] %vm1942_vm1, %v1873_v12  ;;  %v2263_v12 = vsel %vm9032_vm10, %v2258_v37, %v2262_v21 }
 0x140   : > { %2075 = vrot.lane.b32.xlu1 %v1993_v17, %s8895_s17  ;;  %v9854_v17 = vrot.slane %v2298_v38, 5 }
 0x141   : > { %2071 = vrot.lane.b32.xlu2 %v1991_v58, %s8895_s17  ;;  %v2328_v58 = vrot.slane %v2326_v39, 4  ;;  %v2006_v39 = vld [vmem:[#allocation2 + $0xc4] sm:$0xf] }
 0x142   : > { %v1863_v48 = vpop.permute.xlu1 %1862  ;;  %v2301_v55 = vsel %vm9032_vm10, %v2296_v42, %v9854_v17 }
 0x143   : > { %2091 = vrot.lane.b32.xlu0 %v2001_v29, %s8895_s17  ;;  %1951 = vst.msk [vmem:[#allocation3 + $0x20] sm:$0xf] %vm1942_vm1, %v1863_v48  ;;  %v1877_v47 = vpop.permute.xlu2 %1876  ;;  %v2230_v29 = vshrl.u32 %v9813_v56, 16  ;;  %v2170_v56 = vld [vmem:[#allocation2 + $0x14] sm:$0x1]  ;;  %v2329_v30 = vor.u32 %v2328_v58, %v9856_v32 }
 0x144   : > { %1958 = vst.msk [vmem:[#allocation3 + $0x3c] sm:$0xf] %vm1942_vm1, %v1877_v47  ;;  %v2174_v48 = vld [vmem:[#allocation2 + $0x24] sm:$0xf] }
 0x145   : > { %v1879_v31 = vpop.permute.xlu0 %1878  ;;  %v2232_v50 = vrot.slane %v2230_v29, 4  ;;  %v2265_v3 = vshrl.u32 %v2174_v48, 16  ;;  %v2268_v40 = vshll.u32 %v2174_v48, 16  ;;  %v2278_v29 = vshrl.u32 %v2175_v27, 16  ;;  %v2183_v48 = vld [vmem:[#allocation2 + $0x48] sm:$0xf] }
 0x146   : > { %1959 = vst.msk [vmem:[#allocation3 + $0x40] sm:$0xf] %vm1942_vm1, %v1879_v31 }
 0x147   : > { %v2267_v26 = vrot.slane %v2265_v3, 4 }
 0x148   : > { %2081 = vrot.lane.b32.xlu1 %v1996_v2, %s8895_s17  ;;  %v2233_v2 = vor.u32 %v2232_v50, %v9826_v41  ;;  %v2191_v50 = vld [vmem:[#allocation2 + $0x68] sm:$0x1] }
 0x149   : > { %2077 = vrot.lane.b32.xlu2 %v1994_v20, %s8895_s17  ;;  %v2236_v20 = vshll.u32 %v2170_v56, 16 }
 0x14a   : > { %v1869_v44 = vpop.permute.xlu1 %1868  ;;  %v2234_v41 = vrot.slane %v2233_v2, 4 }
 0x14b   : > { %2097 = vrot.lane.b32.xlu0 %v2004_v18, %s8895_s17  ;;  %1954 = vst.msk [vmem:[#allocation3 + $0x2c] sm:$0xf] %vm1942_vm1, %v1869_v44  ;;  %v1883_v14 = vpop.permute.xlu2 %1882  ;;  %v2171_v18 = vld [vmem:[#allocation2 + $0x18] sm:$0xf]  ;;  %v2330_v44 = vrot.slane %v2329_v30, 4  ;;  %v2238_v43 = vrot.slane %v2236_v20, 5 }
 0x14c   : > { %1961 = vst.msk [vmem:[#allocation3 + $0x48] sm:$0xf] %vm1942_vm1, %v1883_v14  ;;  %v2241_v0 = vshrl.u32 %v2171_v18, 16  ;;  %v2244_v49 = vshll.u32 %v2171_v18, 16  ;;  %v9869_v14 = vld [vmem:[#allocation2 + $0x58] sm:$0xf] }
 0x14d   : > { %v1885_v19 = vpop.permute.xlu0 %1884  ;;  %v2370_v36 = vshll.u32 %v9869_v14, 16  ;;  %v2239_v13 = vsel %vm9032_vm10, %v2234_v41, %v2238_v43  ;;  %v2180_v30 = vld [vmem:[#allocation2 + $0x3c] sm:$0xf]  ;;  %v2176_v20 = vld [vmem:[#allocation2 + $0x2c] sm:$0x1] }
 0x14e   : > { %1962 = vst.msk [vmem:[#allocation3 + $0x4c] sm:$0xf] %vm1942_vm1, %v1885_v19  ;;  %v2363_v19 = vrot.slane %v2361_v51, 4  ;;  %v2243_v37 = vrot.slane %v2241_v0, 4  ;;  %v2246_v21 = vrot.slane %v2244_v49, 5  ;;  %v2340_v0 = vshll.u32 %v2183_v48, 16 }
 0x14f   : > { %v9882_v42 = vrot.slane %v2370_v36, 5  ;;  %v2284_v43 = vshll.u32 %v2176_v20, 16  ;;  %v9904_v36 = vld [vmem:[#allocation2 + $0x7c] sm:$0xf] }
 0x150   : > { %2087 = vrot.lane.b32.xlu1 %v1999_v10, %s8895_s17  ;;  %v2270_v10 = vrot.slane %v2268_v40, 5  ;;  %v2247_v25 = vor.u32 %v2246_v21, %v2243_v37  ;;  %v2404_v40 = vshll.u32 %v2191_v50, 16  ;;  %v2342_v37 = vrot.slane %v2340_v0, 5 }
 0x151   : > { %2083 = vrot.lane.b32.xlu2 %v1997_v61, %s8895_s17 }
 0x152   : > { %v1875_v57 = vpop.permute.xlu1 %1874  ;;  %v2271_v38 = vor.u32 %v2270_v10, %v2267_v26  ;;  %v2248_v51 = vrot.slane %v2247_v25, 4  ;;  %v2406_v26 = vrot.slane %v2404_v40, 5  ;;  %v2184_v10 = vld [vmem:[#allocation2 + $0x4c] sm:$0xf]  ;;  %v2374_v25 = vshrl.u32 %v9869_v14, 16 }
 0x153   : > { %2600 = vrot.lane.b32.xlu0 %v2229_v7, %s8896_s22  ;;  %1957 = vst.msk [vmem:[#allocation3 + $0x38] sm:$0xf] %vm1942_vm1, %v1875_v57  ;;  %v1889_v4 = vpop.permute.xlu2 %1888  ;;  %v2394_v57 = vshll.u32 %v2190_v5, 16  ;;  %v2200_v40 = vld [vmem:[#allocation2 + $0x8c] sm:$0x1] }
 0x154   : > { %1964 = vst.msk [vmem:[#allocation3 + $0x54] sm:$0xf] %vm1942_vm1, %v1889_v4  ;;  %v2398_v4 = vshrl.u32 %v2190_v5, 16  ;;  %v2272_v62 = vrot.slane %v2271_v38, 4 }
 0x155   : > { %v1891_v24 = vpop.permute.xlu0 %1890  ;;  %v9884_v58 = vrot.slane %v2394_v57, 5  ;;  %v2199_v57 = vld [vmem:[#allocation2 + $0x88] sm:$0xf] }
 0x156   : > { %1965 = vst.msk [vmem:[#allocation3 + $0x58] sm:$0xf] %vm1942_vm1, %v1891_v24  ;;  %v2367_v24 = vor.u32 %v2366_v8, %v2363_v19  ;;  %v2400_v45 = vrot.slane %v2398_v4, 4  ;;  %v2313_v8 = vshrl.u32 %v2180_v30, 16 }
 0x158   : > { %2093 = vrot.lane.b32.xlu1 %v2002_v28, %s8895_s17  ;;  %v2304_v28 = vrot.slane %v2302_v22, 4  ;;  %v2401_v3 = vor.u32 %v2400_v45, %v9884_v58  ;;  %v2470_v45 = vshrl.u32 %v2199_v57, 16 }
 0x159   : > { %2089 = vrot.lane.b32.xlu2 %v2000_v59, %s8895_s17  ;;  %v2368_v59 = vrot.slane %v2367_v24, 4 }
 0x15a   : > { %v1881_v31 = vpop.permute.xlu1 %1880  ;;  %v2305_v54 = vor.u32 %v2304_v28, %v9854_v17  ;;  %v2402_v27 = vrot.slane %v2401_v3, 4 }
 0x15b   : > { %2606 = vrot.lane.b32.xlu0 %v2263_v12, %s8896_s22  ;;  %1960 = vst.msk [vmem:[#allocation3 + $0x44] sm:$0xf] %vm1942_vm1, %v1881_v31  ;;  %v1895_v47 = vpop.permute.xlu2 %1894  ;;  %v2335_v12 = vsel %vm9032_vm10, %v2330_v44, %v2334_v11  ;;  %v2276_v31 = vrot.slane %v2274_v15, 5  ;;  %v2316_v44 = vshll.u32 %v2180_v30, 16  ;;  %v2253_v11 = vsel %vm9032_vm10, %v2248_v51, %v9823_v52 }
 0x15c   : > { %1967 = vst.msk [vmem:[#allocation3 + $0x60] sm:$0xf] %vm1942_vm1, %v1895_v47  ;;  %v2195_v47 = vld [vmem:[#allocation2 + $0x78] sm:$0xf]  ;;  %v2306_v5 = vrot.slane %v2305_v54, 4  ;;  %v2315_v52 = vrot.slane %v2313_v8, 4  ;;  %v2407_v15 = vsel %vm9032_vm10, %v2402_v27, %v2406_v26 }
 0x15d   : > { %v1897_v46 = vpop.permute.xlu0 %1896  ;;  %v2433_v49 = vshrl.u32 %v2195_v47, 16  ;;  %v2436_v17 = vshll.u32 %v2195_v47, 16  ;;  %v2277_v19 = vsel %vm9032_vm10, %v2272_v62, %v2276_v31  ;;  %v2318_v24 = vrot.slane %v2316_v44, 5  ;;  %v2192_v47 = vld [vmem:[#allocation2 + $0x6c] sm:$0xf] }
 0x15e   : > { %1968 = vst.msk [vmem:[#allocation3 + $0x64] sm:$0xf] %vm1942_vm1, %v1897_v46  ;;  %v2179_v46 = vld [vmem:[#allocation2 + $0x38] sm:$0x1]  ;;  %v2472_v30 = vrot.slane %v2470_v45, 4  ;;  %v2476_v27 = vshll.u32 %v2200_v40, 16 }
 0x15f   : > { %v2308_v2 = vshll.u32 %v2179_v46, 16  ;;  %v2435_v21 = vrot.slane %v2433_v49, 4  ;;  %v2438_v22 = vrot.slane %v2436_v17, 5  ;;  %v2319_v62 = vor.u32 %v2318_v24, %v2315_v52  ;;  %v2185_v49 = vld [vmem:[#allocation2 + $0x50] sm:$0x1] }
 0x160   : > { %2099 = vrot.lane.b32.xlu1 %v2005_v53, %s8895_s17  ;;  %v2373_v53 = vsel %vm9032_vm10, %v2368_v59, %v9882_v42  ;;  %v2466_v59 = vshll.u32 %v2199_v57, 16  ;;  %v2189_v44 = vld [vmem:[#allocation2 + $0x60] sm:$0xf] }
 0x161   : > { %2095 = vrot.lane.b32.xlu2 %v2003_v34, %s8895_s17  ;;  %v2337_v34 = vshrl.u32 %v2183_v48, 16  ;;  %v2439_v28 = vor.u32 %v2438_v22, %v2435_v21  ;;  %v2350_v48 = vshrl.u32 %v2184_v10, 16  ;;  %v2320_v20 = vrot.slane %v2319_v62, 4 }
 0x162   : > { %v1887_v61 = vpop.permute.xlu1 %1886  ;;  %v2385_v21 = vshrl.u32 %v2189_v44, 16  ;;  %v2388_v22 = vshll.u32 %v2189_v44, 16 }
 0x163   : > { %2612 = vrot.lane.b32.xlu0 %v2301_v55, %s8896_s22  ;;  %1963 = vst.msk [vmem:[#allocation3 + $0x50] sm:$0xf] %vm1942_vm1, %v1887_v61  ;;  %v1901_v23 = vpop.permute.xlu2 %1900  ;;  %v2280_v55 = vrot.slane %v2278_v29, 4  ;;  %v2339_v61 = vrot.slane %v2337_v34, 4  ;;  %v2442_v29 = vshll.u32 %v9904_v36, 16  ;;  %v2440_v51 = vrot.slane %v2439_v28, 4 }
 0x164   : > { %1970 = vst.msk [vmem:[#allocation3 + $0x6c] sm:$0xf] %vm1942_vm1, %v1901_v23  ;;  %v2409_v34 = vshrl.u32 %v2192_v47, 16  ;;  %v2352_v17 = vrot.slane %v2350_v48, 4  ;;  %v2387_v45 = vrot.slane %v2385_v21, 4  ;;  %v2446_v48 = vshrl.u32 %v9904_v36, 16 }
 0x165   : > { %v1903_v7 = vpop.permute.xlu0 %1902  ;;  %v2281_v41 = vor.u32 %v2280_v55, %v2276_v31  ;;  %v2343_v50 = vor.u32 %v2342_v37, %v2339_v61  ;;  %v9919_v54 = vrot.slane %v2442_v29, 5  ;;  %v9921_v55 = vrot.slane %v2466_v59, 5  ;;  %v2197_v36 = vld [vmem:[#allocation2 + $0x80] sm:$0x1]  ;;  %v2194_v21 = vld [vmem:[#allocation2 + $0x74] sm:$0x1] }
 0x166   : > { %1971 = vst.msk [vmem:[#allocation3 + $0x70] sm:$0xf] %vm1942_vm1, %v1903_v7  ;;  %v2310_v7 = vrot.slane %v2308_v2, 5  ;;  %v2356_v37 = vshll.u32 %v2185_v49, 16 }
 0x168   : > { %2602 = vrot.lane.b32.xlu1 %v2239_v13, %s8896_s22  ;;  %v2286_v13 = vrot.slane %v2284_v43, 5  ;;  %v2311_v46 = vsel %vm9032_vm10, %v2306_v5, %v2310_v7  ;;  %v2473_v7 = vor.u32 %v2472_v30, %v9921_v55  ;;  %v2358_v59 = vrot.slane %v2356_v37, 5 }
 0x169   : > { %2101 = vrot.lane.b32.xlu2 %v2006_v39, %s8895_s17  ;;  %v2346_v39 = vshll.u32 %v2184_v10, 16  ;;  %v2325_v10 = vsel %vm9032_vm10, %v2320_v20, %v9856_v32 }
 0x16a   : > { %v1893_v18 = vpop.permute.xlu1 %1892 }
 0x16b   : > { %2618 = vrot.lane.b32.xlu0 %v2335_v12, %s8896_s22  ;;  %1966 = vst.msk [vmem:[#allocation3 + $0x5c] sm:$0xf] %vm1942_vm1, %v1893_v18  ;;  %v1907_v33 = vpop.permute.xlu2 %1906  ;;  %v2282_v12 = vrot.slane %v2281_v41, 4  ;;  %v2348_v14 = vrot.slane %v2346_v39, 5  ;;  %v2376_v18 = vrot.slane %v2374_v25, 4  ;;  %v2445_v41 = vsel %vm9032_vm10, %v2440_v51, %v9919_v54 }
 0x16c   : > { %1973 = vst.msk [vmem:[#allocation3 + $0x78] sm:$0xf] %vm1942_vm1, %v1907_v33  ;;  %v2204_v33 = vld [vmem:[#allocation2 + $0x9c] sm:$0xf]  ;;  %v2208_v39 = vld [vmem:[#allocation2 + $0xac] sm:$0xf] }
 0x16d   : > { %v1909_v56 = vpop.permute.xlu0 %1908  ;;  %v2287_v31 = vsel %vm9032_vm10, %v2282_v12, %v2286_v13  ;;  %v2508_v5 = vshll.u32 %v2204_v33, 16  ;;  %v2377_v43 = vor.u32 %v2376_v18, %v9882_v42  ;;  %v2353_v61 = vor.u32 %v2352_v17, %v2348_v14  ;;  %v532_v25 = vld [vmem:[#allocation2 + $0xc8] sm:$0x1] }
 0x16e   : > { %1974 = vst.msk [vmem:[#allocation3 + $0x7c] sm:$0xf] %vm1942_vm1, %v1909_v56  ;;  %v2188_v56 = vld [vmem:[#allocation2 + $0x5c] sm:$0x1]  ;;  %v2474_v12 = vrot.slane %v2473_v7, 4  ;;  %v2478_v13 = vrot.slane %v2476_v27, 5 }
 0x16f   : > { %v2380_v3 = vshll.u32 %v2188_v56, 16  ;;  %v2510_v42 = vrot.slane %v2508_v5, 5  ;;  %v2378_v57 = vrot.slane %v2377_v43, 4  ;;  %v2354_v29 = vrot.slane %v2353_v61, 4  ;;  %v2213_v43 = vld [vmem:[#allocation2 + $0xc0] sm:$0xf] }
 0x170   : > { %2608 = vrot.lane.b32.xlu1 %v2277_v19, %s8896_s22  ;;  %v2412_v19 = vshll.u32 %v2192_v47, 16  ;;  %v2479_v47 = vsel %vm9032_vm10, %v2474_v12, %v2478_v13  ;;  %v2542_v18 = vshrl.u32 %v2208_v39, 16  ;;  %v533_v51 = vsel %vm8978_vm5, 0, %v532_v25 }
 0x171   : > { %2604 = vrot.lane.b32.xlu2 %v2253_v11, %s8896_s22  ;;  %v2505_v11 = vshrl.u32 %v2204_v33, 16  ;;  %534 = vst [vmem:[#allocation2 + $0xc8] sm:$0x1] %v533_v51  ;;  %v2452_v5 = vshll.u32 %v2197_v36, 16 }
 0x172   : > { %v1899_v4 = vpop.permute.xlu1 %1898  ;;  %v2414_v52 = vrot.slane %v2412_v19, 5  ;;  %v2544_v19 = vrot.slane %v2542_v18, 4 }
 0x173   : > { %2624 = vrot.lane.b32.xlu0 %v2373_v53, %s8896_s22  ;;  %1969 = vst.msk [vmem:[#allocation3 + $0x68] sm:$0xf] %vm1942_vm1, %v1899_v4  ;;  %v2042_v38 = vpop.permute.xlu2 %2041  ;;  %v2344_v53 = vrot.slane %v2343_v50, 4  ;;  %v2507_v24 = vrot.slane %v2505_v11, 4  ;;  %v2382_v4 = vrot.slane %v2380_v3, 5 }
 0x174   : > { %2137 = vst.msk [vmem:[#allocation3 + $0x4] sm:$0xf] %vm2135_vm2, %v2042_v38  ;;  %v9939_v38 = vld [vmem:[#allocation2 + $0xa0] sm:$0xf] }
 0x175   : > { %v2044_v23 = vpop.permute.xlu0 %2043  ;;  %v2349_v26 = vsel %vm9032_vm10, %v2344_v53, %v2348_v14  ;;  %v2514_v56 = vshll.u32 %v9939_v38, 16  ;;  %v2538_v14 = vshll.u32 %v2208_v39, 16  ;;  %v2383_v30 = vsel %vm9032_vm10, %v2378_v57, %v2382_v4 }
 0x176   : > { %2138 = vst.msk [vmem:[#allocation3 + $0x8] sm:$0xf] %vm2135_vm2, %v2044_v23  ;;  %v2411_v23 = vrot.slane %v2409_v34, 4  ;;  %v2359_v53 = vsel %vm9032_vm10, %v2354_v29, %v2358_v59  ;;  %v2448_v34 = vrot.slane %v2446_v48, 4  ;;  %v2580_v57 = vshll.u32 %v2213_v43, 16 }
 0x177   : > { %v9956_v40 = vrot.slane %v2514_v56, 5  ;;  %v9960_v17 = vrot.slane %v2538_v14, 5  ;;  %v2428_v39 = vshll.u32 %v2194_v21, 16  ;;  %v2454_v29 = vrot.slane %v2452_v5, 5  ;;  %v2202_v56 = vld [vmem:[#allocation2 + $0x94] sm:$0xf] }
 0x178   : > { %2614 = vrot.lane.b32.xlu1 %v2311_v46, %s8896_s22  ;;  %v2390_v46 = vrot.slane %v2388_v22, 5  ;;  %v2415_v62 = vor.u32 %v2414_v52, %v2411_v23  ;;  %v2449_v37 = vor.u32 %v2448_v34, %v9919_v54  ;;  %v9981_v14 = vld [vmem:[#allocation2 + $0xc4] sm:$0xf]  ;;  %v2490_v36 = vshll.u32 %v2202_v56, 16  ;;  %v2203_v21 = vld [vmem:[#allocation2 + $0x98] sm:$0x1] }
 0x179   : > { %2610 = vrot.lane.b32.xlu2 %v2287_v31, %s8896_s22  ;;  %v2511_v31 = vor.u32 %v2510_v42, %v2507_v24  ;;  %v2545_v52 = vor.u32 %v2544_v19, %v9960_v17  ;;  %v2577_v42 = vshrl.u32 %v2213_v43, 16 }
 0x17a   : > { %v1905_v0 = vpop.permute.xlu1 %1904  ;;  %v2416_v49 = vrot.slane %v2415_v62, 4 }
 0x17b   : > { %2630 = vrot.lane.b32.xlu0 %v2407_v15, %s8896_s22  ;;  %1972 = vst.msk [vmem:[#allocation3 + $0x74] sm:$0xf] %vm1942_vm1, %v1905_v0  ;;  %v2048_v8 = vpop.permute.xlu2 %2047  ;;  %v2193_v15 = vld [vmem:[#allocation2 + $0x70] sm:$0xf]  ;;  %v2512_v3 = vrot.slane %v2511_v31, 4  ;;  %v843_v0 = vrot.slane %v9820_v60, 4 }
 0x17c   : > { %2140 = vst.msk [vmem:[#allocation3 + $0x10] sm:$0xf] %vm2135_vm2, %v2048_v8  ;;  %v2418_v33 = vshll.u32 %v2193_v15, 16  ;;  %v2422_v20 = vshrl.u32 %v2193_v15, 16  ;;  %v2201_v8 = vld [vmem:[#allocation2 + $0x90] sm:$0xf] }
 0x17d   : > { %v2050_v2 = vpop.permute.xlu0 %2049  ;;  %v2198_v60 = vld [vmem:[#allocation2 + $0x84] sm:$0xf]  ;;  %v2517_v61 = vsel %vm9032_vm10, %v2512_v3, %v9956_v40  ;;  %v2481_v22 = vshrl.u32 %v2201_v8, 16  ;;  %v2484_v23 = vshll.u32 %v2201_v8, 16  ;;  %v2579_v62 = vrot.slane %v2577_v42, 4 }
 0x17e   : > { %2141 = vst.msk [vmem:[#allocation3 + $0x14] sm:$0xf] %vm2135_vm2, %v2050_v2  ;;  %v2391_v2 = vor.u32 %v2390_v46, %v2387_v45  ;;  %v2420_v44 = vrot.slane %v2418_v33, 5  ;;  %v2457_v12 = vshrl.u32 %v2198_v60, 16  ;;  %v2460_v13 = vshll.u32 %v2198_v60, 16 }
 0x17f   : > { %v2483_v59 = vrot.slane %v2481_v22, 4  ;;  %v2486_v45 = vrot.slane %v2484_v23, 5  ;;  %v2546_v46 = vrot.slane %v2545_v52, 4  ;;  %v2582_v31 = vrot.slane %v2580_v57, 5  ;;  %v2207_v22 = vld [vmem:[#allocation2 + $0xa8] sm:$0xf] }
 0x180   : > { %2620 = vrot.lane.b32.xlu1 %v2349_v26, %s8896_s22  ;;  %v2392_v27 = vrot.slane %v2391_v2, 4  ;;  %v2424_v26 = vrot.slane %v2422_v20, 4  ;;  %v2421_v4 = vsel %vm9032_vm10, %v2416_v49, %v2420_v44  ;;  %v2459_v48 = vrot.slane %v2457_v12, 4  ;;  %v2731_v12 = vld [vmem:[#allocation2 + $0x14] sm:$0x1] }
 0x181   : > { %2616 = vrot.lane.b32.xlu2 %v2325_v10, %s8896_s22  ;;  %v2583_v20 = vor.u32 %v2582_v31, %v2579_v62  ;;  %v2586_v3 = vshll.u32 %v9981_v14, 16  ;;  %v2518_v49 = vshrl.u32 %v9939_v38, 16  ;;  %v2494_v8 = vshrl.u32 %v2202_v56, 16  ;;  %v9999_v38 = vld [vmem:[#allocation2 + $0x10] sm:$0xf] }
 0x182   : > { %v2040_v28 = vpop.permute.xlu1 %2039  ;;  %v2397_v54 = vsel %vm9032_vm10, %v2392_v27, %v9884_v58  ;;  %v2425_v15 = vor.u32 %v2424_v26, %v2420_v44  ;;  %v2206_v27 = vld [vmem:[#allocation2 + $0xa4] sm:$0x1]  ;;  %v2827_v42 = vrot.slane %v9999_v38, 5 }
 0x183   : > { %2636 = vrot.lane.b32.xlu0 %v2445_v41, %s8896_s22  ;;  %2136 = vst.msk [vmem:[#allocation3] sm:$0xf] %vm2135_vm2, %v2040_v28  ;;  %v2054_v50 = vpop.permute.xlu2 %2053  ;;  %v2209_v41 = vld [vmem:[#allocation2 + $0xb0] sm:$0x1]  ;;  %v2450_v28 = vrot.slane %v2449_v37, 4  ;;  %v2584_v5 = vrot.slane %v2583_v20, 4 }
 0x184   : > { %2143 = vst.msk [vmem:[#allocation3 + $0x1c] sm:$0xf] %vm2135_vm2, %v2054_v50  ;;  %v2548_v24 = vshll.u32 %v2209_v41, 16  ;;  %v2426_v51 = vrot.slane %v2425_v15, 4  ;;  %v9996_v41 = vrot.slane %v2586_v3, 5  ;;  %v2520_v26 = vrot.slane %v2518_v49, 4 }
 0x185   : > { %v2056_v32 = vpop.permute.xlu0 %2055  ;;  %v2455_v34 = vsel %vm9032_vm10, %v2450_v28, %v2454_v29  ;;  %v2500_v15 = vshll.u32 %v2203_v21, 16  ;;  %v2829_v28 = vrot.slane %v2827_v42, 4  ;;  %v2830_v29 = vrot.slane %v2731_v12, 5 }
 0x186   : > { %2144 = vst.msk [vmem:[#allocation3 + $0x20] sm:$0xf] %vm2135_vm2, %v2056_v32  ;;  %v1004_v32 = vld [vmem:[#allocation2 + $0xc8] sm:$0x1]  ;;  %v2550_v50 = vrot.slane %v2548_v24, 5  ;;  %v2589_v52 = vsel %vm9032_vm10, %v2584_v5, %v9996_v41  ;;  %v2524_v24 = vshll.u32 %v2206_v27, 16 }
 0x187   : > { %v1005_v25 = vsel %vm8953_vm3, %v843_v0, %v1004_v32 }
 0x188   : > { %2626 = vrot.lane.b32.xlu1 %v2383_v30, %s8896_s22  ;;  %1006 = vst [vmem:[#allocation2 + $0xc8] sm:$0x1] %v1005_v25  ;;  %v2430_v30 = vrot.slane %v2428_v39, 5  ;;  %v2551_v2 = vsel %vm9032_vm10, %v2546_v46, %v2550_v50  ;;  %v2529_v39 = vshrl.u32 %v2207_v22, 16  ;;  %v2532_v25 = vshll.u32 %v2207_v22, 16 }
 0x189   : > { %2622 = vrot.lane.b32.xlu2 %v2359_v53, %s8896_s22  ;;  %v2487_v53 = vor.u32 %v2486_v45, %v2483_v59  ;;  %v2526_v59 = vrot.slane %v2524_v24, 5  ;;  %v2211_v45 = vld [vmem:[#allocation2 + $0xb8] sm:$0xf] }
 0x18a   : > { %v2046_v7 = vpop.permute.xlu1 %2045  ;;  %v2431_v19 = vsel %vm9032_vm10, %v2426_v51, %v2430_v30  ;;  %v2531_v56 = vrot.slane %v2529_v39, 4 }
 0x18b   : > { %2642 = vrot.lane.b32.xlu0 %v2479_v47, %s8896_s22  ;;  %2139 = vst.msk [vmem:[#allocation3 + $0xc] sm:$0xf] %vm2135_vm2, %v2046_v7  ;;  %v2060_v10 = vpop.permute.xlu2 %2059  ;;  %v2462_v47 = vrot.slane %v2460_v13, 5  ;;  %v2488_v44 = vrot.slane %v2487_v53, 4  ;;  %v2735_v53 = vld [vmem:[#allocation2 + $0x24] sm:$0xe] }
 0x18c   : > { %2146 = vst.msk [vmem:[#allocation3 + $0x28] sm:$0xf] %vm2135_vm2, %v2060_v10  ;;  %v2496_v10 = vrot.slane %v2494_v8, 4 }
 0x18d   : > { %v2062_v11 = vpop.permute.xlu0 %2061  ;;  %v2463_v0 = vor.u32 %v2462_v47, %v2459_v48  ;;  %v2534_v48 = vrot.slane %v2532_v25, 5 }
 0x18e   : > { %2147 = vst.msk [vmem:[#allocation3 + $0x2c] sm:$0xf] %vm2135_vm2, %v2062_v11  ;;  %v2492_v11 = vrot.slane %v2490_v36, 5  ;;  %v2590_v36 = vshrl.u32 %v9981_v14, 16  ;;  %v10035_v14 = vld [vmem:[#allocation2 + $0x34] sm:$0xf] }
 0x18f   : > { %v2464_v7 = vrot.slane %v2463_v0, 4  ;;  %v2535_v3 = vor.u32 %v2534_v48, %v2531_v56  ;;  %v8523_v0 = vrot.slane %v2735_v53, 9  ;;  %v10071_v48 = vld [vmem:[#allocation2 + $0x58] sm:$0xf] }
 0x190   : > { %2632 = vrot.lane.b32.xlu1 %v2421_v4, %s8896_s22  ;;  %v2493_v23 = vsel %vm9032_vm10, %v2488_v44, %v2492_v11  ;;  %v2521_v4 = vor.u32 %v2520_v26, %v9956_v40 }
 0x191   : > { %2628 = vrot.lane.b32.xlu2 %v2397_v54, %s8896_s22  ;;  %v2469_v57 = vsel %vm9032_vm10, %v2464_v7, %v9921_v55  ;;  %v2497_v54 = vor.u32 %v2496_v10, %v2492_v11  ;;  %v2592_v11 = vrot.slane %v2590_v36, 4  ;;  %v2215_v7 = vld [vmem:[#allocation2 + $0xc8] sm:$0x1]  ;;  %v2749_v36 = vld [vmem:[#allocation2 + $0x5c] sm:$0x1] }
 0x192   : > { %v2052_v18 = vpop.permute.xlu1 %2051  ;;  %v2522_v55 = vrot.slane %v2521_v4, 4  ;;  %v2596_v22 = vshll.u32 %v2215_v7, 16 }
 0x193   : > { %2648 = vrot.lane.b32.xlu0 %v2517_v61, %s8896_s22  ;;  %2142 = vst.msk [vmem:[#allocation3 + $0x18] sm:$0xf] %vm2135_vm2, %v2052_v18  ;;  %v2066_v33 = vpop.permute.xlu2 %2065  ;;  %v2210_v61 = vld [vmem:[#allocation2 + $0xb4] sm:$0xf]  ;;  %v2498_v31 = vrot.slane %v2497_v54, 4  ;;  %v2831_v18 = vsel %vm9505_vm14, %v2829_v28, %v2830_v29  ;;  %v2593_v21 = vor.u32 %v2592_v11, %v9996_v41 }
 0x194   : > { %2149 = vst.msk [vmem:[#allocation3 + $0x34] sm:$0xf] %vm2135_vm2, %v2066_v33  ;;  %v2553_v13 = vshrl.u32 %v2210_v61, 16  ;;  %v2556_v32 = vshll.u32 %v2210_v61, 16  ;;  %v2527_v51 = vsel %vm9032_vm10, %v2522_v55, %v2526_v59  ;;  %v2562_v33 = vshll.u32 %v2211_v45, 16 }
 0x195   : > { %v2068_v58 = vpop.permute.xlu0 %2067  ;;  %v2848_v61 = vrot.slane %v10035_v14, 5  ;;  %v2598_v41 = vrot.slane %v2596_v22, 5  ;;  %v2744_v29 = vld [vmem:[#allocation2 + $0x48] sm:$0xe]  ;;  %v10063_v55 = vld [vmem:[#allocation2 + $0x4c] sm:$0xf] }
 0x196   : > { %2150 = vst.msk [vmem:[#allocation3 + $0x38] sm:$0xf] %vm2135_vm2, %v2068_v58  ;;  %v2555_v46 = vrot.slane %v2553_v13, 4  ;;  %v2558_v50 = vrot.slane %v2556_v32, 5  ;;  %v2502_v58 = vrot.slane %v2500_v15, 5  ;;  %v2564_v8 = vrot.slane %v2562_v33, 5 }
 0x197   : > { %v2850_v4 = vrot.slane %v2848_v61, 4  ;;  %v2594_v13 = vrot.slane %v2593_v21, 4  ;;  %v2869_v33 = vrot.slane %v10071_v48, 5 }
 0x198   : > { %2638 = vrot.lane.b32.xlu1 %v2455_v34, %s8896_s22  ;;  %v2559_v30 = vor.u32 %v2558_v50, %v2555_v46  ;;  %v2503_v20 = vsel %vm9032_vm10, %v2498_v31, %v2502_v58  ;;  %v2566_v34 = vshrl.u32 %v2211_v45, 16  ;;  %v2733_v45 = vld [vmem:[#allocation2 + $0x1c] sm:$0xf]  ;;  %v2729_v46 = vld [vmem:[#allocation2 + $0xc] sm:$0xe]  ;;  %v8526_v50 = vrot.slane %v2744_v29, 9 }
 0x199   : > { %2634 = vrot.lane.b32.xlu2 %v2431_v19, %s8896_s22  ;;  %v2599_v28 = vsel %vm9032_vm10, %v2594_v13, %v2598_v41  ;;  %v2834_v58 = vrot.slane %v2733_v45, 5 }
 0x19a   : > { %v2058_v60 = vpop.permute.xlu1 %2057  ;;  %v2560_v19 = vrot.slane %v2559_v30, 4  ;;  %v2568_v27 = vrot.slane %v2566_v34, 4  ;;  %v2734_v34 = vld [vmem:[#allocation2 + $0x20] sm:$0x1] }
 0x19b   : > { %2654 = vrot.lane.b32.xlu0 %v2551_v2, %s8896_s22  ;;  %2145 = vst.msk [vmem:[#allocation3 + $0x24] sm:$0xf] %vm2135_vm2, %v2058_v60  ;;  %v2072_v37 = vpop.permute.xlu2 %2071  ;;  %v10026_v2 = vld [vmem:[#allocation2 + $0x28] sm:$0xf]  ;;  %v2212_v60 = vld [vmem:[#allocation2 + $0xbc] sm:$0x1] }
 0x19c   : > { %2152 = vst.msk [vmem:[#allocation3 + $0x40] sm:$0xf] %vm2135_vm2, %v2072_v37  ;;  %v2841_v49 = vrot.slane %v10026_v2, 5  ;;  %v2565_v37 = vsel %vm9032_vm10, %v2560_v19, %v2564_v8  ;;  %v2569_v24 = vor.u32 %v2568_v27, %v2564_v8  ;;  %v2872_v19 = vrot.slane %v2749_v36, 5  ;;  %v2753_v2 = vld [vmem:[#allocation2 + $0x6c] sm:$0xe] }
 0x19d   : > { %v2074_v43 = vpop.permute.xlu0 %2073  ;;  %v8529_v21 = vrot.slane %v2753_v2, 9 }
 0x19e   : > { %2153 = vst.msk [vmem:[#allocation3 + $0x44] sm:$0xf] %vm2135_vm2, %v2074_v43  ;;  %v2536_v43 = vrot.slane %v2535_v3, 4  ;;  %v2842_v10 = vsel %vm9505_vm14, %v8523_v0, %v2841_v49  ;;  %v2570_v15 = vrot.slane %v2569_v24, 4  ;;  %v2737_v3 = vld [vmem:[#allocation2 + $0x2c] sm:$0x1] }
 0x19f   : > { %v2871_v0 = vrot.slane %v2869_v33, 4  ;;  %v2843_v8 = vrot.slane %v2841_v49, 4  ;;  %v2844_v38 = vrot.slane %v2737_v3, 5  ;;  %v10101_v49 = vld [vmem:[#allocation2 + $0x70] sm:$0xf] }
 0x1a0   : > { %2644 = vrot.lane.b32.xlu1 %v2493_v23, %s8896_s22  ;;  %v2740_v23 = vld [vmem:[#allocation2 + $0x38] sm:$0x1]  ;;  %v2883_v22 = vrot.slane %v10101_v49, 5  ;;  %v2771_v49 = vld [vmem:[#allocation2 + $0xb4] sm:$0xe] }
 0x1a1   : > { %2640 = vrot.lane.b32.xlu2 %v2469_v57, %s8896_s22  ;;  %v2572_v57 = vshll.u32 %v2212_v60, 16  ;;  %v2851_v12 = vrot.slane %v2740_v23, 5  ;;  %v2873_v7 = vsel %vm9505_vm14, %v2871_v0, %v2872_v19  ;;  %v2845_v27 = vsel %vm9505_vm14, %v2843_v8, %v2844_v38  ;;  %v2741_v60 = vld [vmem:[#allocation2 + $0x3c] sm:$0xe] }
 0x1a2   : > { %v2064_v62 = vpop.permute.xlu1 %2063  ;;  %v8525_v23 = vrot.slane %v2741_v60, 9  ;;  %v2884_v41 = vsel %vm9505_vm14, %v8529_v21, %v2883_v22 }
 0x1a3   : > { %2660 = vrot.lane.b32.xlu0 %v2589_v52, %s8896_s22  ;;  %2148 = vst.msk [vmem:[#allocation3 + $0x30] sm:$0xf] %vm2135_vm2, %v2064_v62  ;;  %v2078_v47 = vpop.permute.xlu2 %2077  ;;  %v2541_v52 = vsel %vm9032_vm10, %v2536_v43, %v9960_v17  ;;  %v2574_v17 = vrot.slane %v2572_v57, 5  ;;  %v2852_v25 = vsel %vm9505_vm14, %v2850_v4, %v2851_v12  ;;  %v2862_v62 = vrot.slane %v10063_v55, 5  ;;  %v10109_v57 = vld [vmem:[#allocation2 + $0x7c] sm:$0xf] }
 0x1a4   : > { %2155 = vst.msk [vmem:[#allocation3 + $0x4c] sm:$0xf] %vm2135_vm2, %v2078_v47  ;;  %v2762_v55 = vld [vmem:[#allocation2 + $0x90] sm:$0xe] }
 0x1a5   : > { %v2080_v40 = vpop.permute.xlu0 %2079  ;;  %v2575_v59 = vsel %vm9032_vm10, %v2570_v15, %v2574_v17  ;;  %v2863_v30 = vsel %vm9505_vm14, %v8526_v50, %v2862_v62  ;;  %v2758_v15 = vld [vmem:[#allocation2 + $0x80] sm:$0x1] }
 0x1a6   : > { %2156 = vst.msk [vmem:[#allocation3 + $0x50] sm:$0xf] %vm2135_vm2, %v2080_v40  ;;  %v2732_v40 = vld [vmem:[#allocation2 + $0x18] sm:$0xe]  ;;  %v2893_v29 = vrot.slane %v2758_v15, 5 }
 0x1a7   : > { %v8522_v31 = vrot.slane %v2732_v40, 9 }
 0x1a8   : > { %2650 = vrot.lane.b32.xlu1 %v2527_v51, %s8896_s22 }
 0x1a9   : > { %2646 = vrot.lane.b32.xlu2 %v2503_v20, %s8896_s22  ;;  %v2835_v53 = vsel %vm9505_vm14, %v8522_v31, %v2834_v58 }
 0x1aa   : > { %v2070_v5 = vpop.permute.xlu1 %2069 }
 0x1ab   : > { %2939 = vrot.lane.b32.xlu0 %v2831_v18, %s8897_s23  ;;  %2151 = vst.msk [vmem:[#allocation3 + $0x3c] sm:$0xf] %vm2135_vm2, %v2070_v5  ;;  %v2084_v26 = vpop.permute.xlu2 %2083  ;;  %v8521_v18 = vrot.slane %v2729_v46, 9  ;;  %v2837_v5 = vrot.slane %v2734_v34, 5  ;;  %v10147_v34 = vld [vmem:[#allocation2 + $0xa0] sm:$0xf] }
 0x1ac   : > { %2158 = vst.msk [vmem:[#allocation3 + $0x58] sm:$0xf] %vm2135_vm2, %v2084_v26 }
 0x1ad   : > { %v2086_v44 = vpop.permute.xlu0 %2085  ;;  %v2828_v20 = vsel %vm9505_vm14, %v8521_v18, %v2827_v42  ;;  %v2836_v42 = vrot.slane %v2834_v58, 4  ;;  %v2751_v18 = vld [vmem:[#allocation2 + $0x64] sm:$0xf] }
 0x1ae   : > { %2159 = vst.msk [vmem:[#allocation3 + $0x5c] sm:$0xf] %vm2135_vm2, %v2086_v44 }
 0x1af   : > { %v2838_v26 = vsel %vm9505_vm14, %v2836_v42, %v2837_v5  ;;  %v2767_v42 = vld [vmem:[#allocation2 + $0xa4] sm:$0x1] }
 0x1b0   : > { %2656 = vrot.lane.b32.xlu1 %v2565_v37, %s8896_s22  ;;  %v2738_v37 = vld [vmem:[#allocation2 + $0x30] sm:$0xe]  ;;  %v2914_v2 = vrot.slane %v2767_v42, 5 }
 0x1b1   : > { %2652 = vrot.lane.b32.xlu2 %v2541_v52, %s8896_s22  ;;  %v8524_v12 = vrot.slane %v2738_v37, 9 }
 0x1b2   : > { %v2076_v54 = vpop.permute.xlu1 %2075 }
 0x1b3   : > { %2945 = vrot.lane.b32.xlu0 %v2842_v10, %s8897_s23  ;;  %2154 = vst.msk [vmem:[#allocation3 + $0x48] sm:$0xf] %vm2135_vm2, %v2076_v54  ;;  %v2090_v39 = vpop.permute.xlu2 %2089  ;;  %v2742_v10 = vld [vmem:[#allocation2 + $0x40] sm:$0xf]  ;;  %v2849_v17 = vsel %vm9505_vm14, %v8524_v12, %v2848_v61  ;;  %v2760_v12 = vld [vmem:[#allocation2 + $0x88] sm:$0xf] }
 0x1b4   : > { %2161 = vst.msk [vmem:[#allocation3 + $0x64] sm:$0xf] %vm2135_vm2, %v2090_v39  ;;  %v2855_v52 = vrot.slane %v2742_v10, 5  ;;  %v2746_v39 = vld [vmem:[#allocation2 + $0x50] sm:$0x1] }
 0x1b5   : > { %v2092_v32 = vpop.permute.xlu0 %2091  ;;  %v2865_v40 = vrot.slane %v2746_v39, 5 }
 0x1b6   : > { %2162 = vst.msk [vmem:[#allocation3 + $0x68] sm:$0xf] %vm2135_vm2, %v2092_v32  ;;  %v2890_v32 = vrot.slane %v10109_v57, 5  ;;  %v2856_v54 = vsel %vm9505_vm14, %v8525_v23, %v2855_v52  ;;  %v2857_v61 = vrot.slane %v2855_v52, 4 }
 0x1b8   : > { %2662 = vrot.lane.b32.xlu1 %v2599_v28, %s8896_s22  ;;  %v2892_v28 = vrot.slane %v2890_v32, 4 }
 0x1b9   : > { %2658 = vrot.lane.b32.xlu2 %v2575_v59, %s8896_s22  ;;  %v2864_v59 = vrot.slane %v2862_v62, 4  ;;  %v10139_v62 = vld [vmem:[#allocation2 + $0x94] sm:$0xf] }
 0x1ba   : > { %v2082_v47 = vpop.permute.xlu1 %2081  ;;  %v2894_v31 = vsel %vm9505_vm14, %v2892_v28, %v2893_v29 }
 0x1bb   : > { %2951 = vrot.lane.b32.xlu0 %v2852_v25, %s8897_s23  ;;  %2157 = vst.msk [vmem:[#allocation3 + $0x54] sm:$0xf] %vm2135_vm2, %v2082_v47  ;;  %v2096_v51 = vpop.permute.xlu2 %2095  ;;  %v2743_v25 = vld [vmem:[#allocation2 + $0x44] sm:$0x1]  ;;  %v2866_v58 = vsel %vm9505_vm14, %v2864_v59, %v2865_v40  ;;  %v2750_v47 = vld [vmem:[#allocation2 + $0x60] sm:$0xe] }
 0x1bc   : > { %2164 = vst.msk [vmem:[#allocation3 + $0x70] sm:$0xf] %vm2135_vm2, %v2096_v51  ;;  %v2858_v46 = vrot.slane %v2743_v25, 5  ;;  %v2747_v51 = vld [vmem:[#allocation2 + $0x54] sm:$0xe]  ;;  %v8528_v36 = vrot.slane %v2750_v47, 9 }
 0x1bd   : > { %v2098_v56 = vpop.permute.xlu0 %2097  ;;  %v8527_v19 = vrot.slane %v2747_v51, 9  ;;  %v10185_v25 = vld [vmem:[#allocation2 + $0xc4] sm:$0xf] }
 0x1be   : > { %2165 = vst.msk [vmem:[#allocation3 + $0x74] sm:$0xf] %vm2135_vm2, %v2098_v56  ;;  %v2859_v56 = vsel %vm9505_vm14, %v2857_v61, %v2858_v46  ;;  %v2776_v61 = vld [vmem:[#allocation2 + $0xc8] sm:$0x1] }
 0x1bf   : > { %v2870_v5 = vsel %vm9505_vm14, %v8527_v19, %v2869_v33 }
 0x1c0   : > { %2941 = vrot.lane.b32.xlu1 %v2835_v53, %s8897_s23  ;;  %v2904_v53 = vrot.slane %v10139_v62, 5 }
 0x1c1   : > { %2937 = vrot.lane.b32.xlu2 %v2828_v20, %s8897_s23  ;;  %v2876_v20 = vrot.slane %v2751_v18, 5 }
 0x1c2   : > { %v2088_v11 = vpop.permute.xlu1 %2087 }
 0x1c3   : > { %2957 = vrot.lane.b32.xlu0 %v2863_v30, %s8897_s23  ;;  %2160 = vst.msk [vmem:[#allocation3 + $0x60] sm:$0xf] %vm2135_vm2, %v2088_v11  ;;  %v2102_v43 = vpop.permute.xlu2 %2101  ;;  %v8532_v30 = vrot.slane %v2762_v55, 9  ;;  %v2877_v11 = vsel %vm9505_vm14, %v8528_v36, %v2876_v20  ;;  %v2878_v33 = vrot.slane %v2876_v20, 4  ;;  %v2935_v55 = vrot.slane %v2776_v61, 5 }
 0x1c4   : > { %2167 = vst.msk [vmem:[#allocation3 + $0x7c] sm:$0xf] %vm2135_vm2, %v2102_v43  ;;  %v2755_v43 = vld [vmem:[#allocation2 + $0x74] sm:$0x1]  ;;  %v3073_v61 = vld [vmem:[#allocation2 + $0x3c] sm:$0xf] }
 0x1c5   : > { %v2601_v44 = vpop.permute.xlu0 %2600  ;;  %v2905_v38 = vsel %vm9505_vm14, %v8532_v30, %v2904_v53  ;;  %v2886_v60 = vrot.slane %v2755_v43, 5  ;;  %v3069_v43 = vld [vmem:[#allocation2 + $0x24] sm:$0xf] }
 0x1c6   : > { %2697 = vst.msk [vmem:[#allocation3] sm:$0xf] %vm2696_vm4, %v2601_v44  ;;  %v2911_v44 = vrot.slane %v10147_v34, 5 }
 0x1c8   : > { %2947 = vrot.lane.b32.xlu1 %v2845_v27, %s8897_s23  ;;  %v2913_v27 = vrot.slane %v2911_v44, 4 }
 0x1c9   : > { %2943 = vrot.lane.b32.xlu2 %v2838_v26, %s8897_s23  ;;  %v2885_v26 = vrot.slane %v2883_v22, 4  ;;  %v10177_v22 = vld [vmem:[#allocation2 + $0xb8] sm:$0xf] }
 0x1ca   : > { %v2094_v4 = vpop.permute.xlu1 %2093  ;;  %v2915_v23 = vsel %vm9505_vm14, %v2913_v27, %v2914_v2  ;;  %v2773_v2 = vld [vmem:[#allocation2 + $0xbc] sm:$0x1] }
 0x1cb   : > { %2963 = vrot.lane.b32.xlu0 %v2873_v7, %s8897_s23  ;;  %2163 = vst.msk [vmem:[#allocation3 + $0x6c] sm:$0xf] %vm2135_vm2, %v2094_v4  ;;  %v2605_v13 = vpop.permute.xlu2 %2604  ;;  %v2752_v7 = vld [vmem:[#allocation2 + $0x68] sm:$0x1]  ;;  %v2887_v52 = vsel %vm9505_vm14, %v2885_v26, %v2886_v60  ;;  %v2759_v4 = vld [vmem:[#allocation2 + $0x84] sm:$0xe] }
 0x1cc   : > { %2699 = vst.msk [vmem:[#allocation3 + $0x8] sm:$0xf] %vm2696_vm4, %v2605_v13  ;;  %v2879_v37 = vrot.slane %v2752_v7, 5  ;;  %v2756_v13 = vld [vmem:[#allocation2 + $0x78] sm:$0xe]  ;;  %v8531_v15 = vrot.slane %v2759_v4, 9 }
 0x1cd   : > { %v2607_v24 = vpop.permute.xlu0 %2606  ;;  %v8530_v29 = vrot.slane %v2756_v13, 9  ;;  %v2770_v26 = vld [vmem:[#allocation2 + $0xb0] sm:$0x1]  ;;  %v3075_v13 = vld [vmem:[#allocation2 + $0x48] sm:$0xf] }
 0x1ce   : > { %2700 = vst.msk [vmem:[#allocation3 + $0xc] sm:$0xf] %vm2696_vm4, %v2607_v24  ;;  %v2880_v24 = vsel %vm9505_vm14, %v2878_v33, %v2879_v37  ;;  %v2921_v34 = vrot.slane %v2770_v26, 5  ;;  %v3085_v26 = vld [vmem:[#allocation2 + $0x84] sm:$0xf] }
 0x1cf   : > { %v2891_v46 = vsel %vm9505_vm14, %v8530_v29, %v2890_v32  ;;  %v3068_v29 = vld [vmem:[#allocation2 + $0x1c] sm:$0xf] }
 0x1d0   : > { %2953 = vrot.lane.b32.xlu1 %v2856_v54, %s8897_s23  ;;  %v2925_v54 = vrot.slane %v10177_v22, 5 }
 0x1d1   : > { %2949 = vrot.lane.b32.xlu2 %v2849_v17, %s8897_s23  ;;  %v2897_v17 = vrot.slane %v2760_v12, 5 }
 0x1d2   : > { %v2100_v45 = vpop.permute.xlu1 %2099  ;;  %v2927_v60 = vrot.slane %v2925_v54, 4 }
 0x1d3   : > { %2969 = vrot.lane.b32.xlu0 %v2884_v41, %s8897_s23  ;;  %2166 = vst.msk [vmem:[#allocation3 + $0x78] sm:$0xf] %vm2135_vm2, %v2100_v45  ;;  %v2611_v50 = vpop.permute.xlu2 %2610  ;;  %v8535_v41 = vrot.slane %v2771_v49, 9  ;;  %v2898_v45 = vsel %vm9505_vm14, %v8531_v15, %v2897_v17  ;;  %v2899_v32 = vrot.slane %v2897_v17, 4  ;;  %v2774_v49 = vld [vmem:[#allocation2 + $0xc0] sm:$0xe] }
 0x1d4   : > { %2702 = vst.msk [vmem:[#allocation3 + $0x14] sm:$0xf] %vm2696_vm4, %v2611_v50  ;;  %v2764_v50 = vld [vmem:[#allocation2 + $0x98] sm:$0x1]  ;;  %v8536_v4 = vrot.slane %v2774_v49, 9 }
 0x1d5   : > { %v2613_v14 = vpop.permute.xlu0 %2612  ;;  %v2926_v40 = vsel %vm9505_vm14, %v8535_v41, %v2925_v54  ;;  %v2907_v47 = vrot.slane %v2764_v50, 5  ;;  %v3067_v41 = vld [vmem:[#allocation2 + $0x18] sm:$0xf] }
 0x1d6   : > { %2703 = vst.msk [vmem:[#allocation3 + $0x18] sm:$0xf] %vm2696_vm4, %v2613_v14  ;;  %v2932_v14 = vrot.slane %v10185_v25, 5  ;;  %v3070_v25 = vld [vmem:[#allocation2 + $0x28] sm:$0xf] }
 0x1d8   : > { %2959 = vrot.lane.b32.xlu1 %v2866_v58, %s8897_s23  ;;  %v2934_v58 = vrot.slane %v2932_v14, 4  ;;  %v2933_v54 = vsel %vm9505_vm14, %v8536_v4, %v2932_v14  ;;  %v3088_v4 = vld [vmem:[#allocation2 + $0x94] sm:$0xf] }
 0x1d9   : > { %2955 = vrot.lane.b32.xlu2 %v2859_v56, %s8897_s23  ;;  %v2906_v56 = vrot.slane %v2904_v53, 4  ;;  %v2768_v53 = vld [vmem:[#allocation2 + $0xa8] sm:$0xe] }
 0x1da   : > { %v2603_v0 = vpop.permute.xlu1 %2602  ;;  %v2936_v36 = vsel %vm9505_vm14, %v2934_v58, %v2935_v55  ;;  %v8534_v19 = vrot.slane %v2768_v53, 9  ;;  %v3084_v55 = vld [vmem:[#allocation2 + $0x7c] sm:$0xf] }
 0x1db   : > { %2975 = vrot.lane.b32.xlu0 %v2894_v31, %s8897_s23  ;;  %2698 = vst.msk [vmem:[#allocation3 + $0x4] sm:$0xf] %vm2696_vm4, %v2603_v0  ;;  %v2617_v8 = vpop.permute.xlu2 %2616  ;;  %v2761_v31 = vld [vmem:[#allocation2 + $0x8c] sm:$0x1]  ;;  %v2908_v20 = vsel %vm9505_vm14, %v2906_v56, %v2907_v47  ;;  %v2765_v0 = vld [vmem:[#allocation2 + $0x9c] sm:$0xe] }
 0x1dc   : > { %2705 = vst.msk [vmem:[#allocation3 + $0x20] sm:$0xf] %vm2696_vm4, %v2617_v8  ;;  %v2900_v51 = vrot.slane %v2761_v31, 5  ;;  %v8533_v42 = vrot.slane %v2765_v0, 9  ;;  %v3076_v56 = vld [vmem:[#allocation2 + $0x4c] sm:$0xf] }
 0x1dd   : > { %v2619_v3 = vpop.permute.xlu0 %2618  ;;  %v3074_v47 = vld [vmem:[#allocation2 + $0x40] sm:$0xf]  ;;  %v3082_v0 = vld [vmem:[#allocation2 + $0x70] sm:$0xf] }
 0x1de   : > { %2706 = vst.msk [vmem:[#allocation3 + $0x24] sm:$0xf] %vm2696_vm4, %v2619_v3  ;;  %v2901_v62 = vsel %vm9505_vm14, %v2899_v32, %v2900_v51  ;;  %v2769_v3 = vld [vmem:[#allocation2 + $0xac] sm:$0xf]  ;;  %v2912_v27 = vsel %vm9505_vm14, %v8533_v42, %v2911_v44  ;;  %v3087_v51 = vld [vmem:[#allocation2 + $0x90] sm:$0xf] }
 0x1df   : > { %v2918_v8 = vrot.slane %v2769_v3, 5  ;;  %v3090_v3 = vld [vmem:[#allocation2 + $0xa0] sm:$0xf]  ;;  %v3260_v42 = vld [vmem:[#allocation2 + $0x18] sm:$0xf] }
 0x1e0   : > { %2965 = vrot.lane.b32.xlu1 %v2877_v11, %s8897_s23 }
 0x1e1   : > { %2961 = vrot.lane.b32.xlu2 %v2870_v5, %s8897_s23  ;;  %v2919_v7 = vsel %vm9505_vm14, %v8534_v19, %v2918_v8  ;;  %v2920_v37 = vrot.slane %v2918_v8, 4  ;;  %v3080_v19 = vld [vmem:[#allocation2 + $0x64] sm:$0xf]  ;;  %v479_v8 = vld [vmem:[#allocation2 + $0xcc] sm:$0x1] }
 0x1e2   : > { %v2609_v10 = vpop.permute.xlu1 %2608 }
 0x1e3   : > { %2981 = vrot.lane.b32.xlu0 %v2905_v38, %s8897_s23  ;;  %2701 = vst.msk [vmem:[#allocation3 + $0x10] sm:$0xf] %vm2696_vm4, %v2609_v10  ;;  %v2623_v21 = vpop.permute.xlu2 %2622 }
 0x1e4   : > { %2708 = vst.msk [vmem:[#allocation3 + $0x2c] sm:$0xf] %vm2696_vm4, %v2623_v21  ;;  %v3072_v21 = vld [vmem:[#allocation2 + $0x34] sm:$0xf] }
 0x1e5   : > { %v2625_v48 = vpop.permute.xlu0 %2624 }
 0x1e6   : > { %2709 = vst.msk [vmem:[#allocation3 + $0x30] sm:$0xf] %vm2696_vm4, %v2625_v48  ;;  %v2928_v48 = vrot.slane %v2773_v2, 5  ;;  %v3312_v2 = vshll.u32 %v3260_v42, 16 }
 0x1e8   : > { %2971 = vrot.lane.b32.xlu1 %v2887_v52, %s8897_s23  ;;  %v2922_v52 = vsel %vm9505_vm14, %v2920_v37, %v2921_v34  ;;  %v10288_v37 = vld [vmem:[#allocation2 + $0x1c] sm:$0xf]  ;;  %v3264_v34 = vld [vmem:[#allocation2 + $0x28] sm:$0xf] }
 0x1e9   : > { %2967 = vrot.lane.b32.xlu2 %v2880_v24, %s8897_s23  ;;  %v3318_v49 = vshll.u32 %v10288_v37, 16 }
 0x1ea   : > { %v2615_v28 = vpop.permute.xlu1 %2614 }
 0x1eb   : > { %2987 = vrot.lane.b32.xlu0 %v2915_v23, %s8897_s23  ;;  %2704 = vst.msk [vmem:[#allocation3 + $0x1c] sm:$0xf] %vm2696_vm4, %v2615_v28  ;;  %v2629_v59 = vpop.permute.xlu2 %2628  ;;  %v2929_v23 = vsel %vm9505_vm14, %v2927_v60, %v2928_v48  ;;  %v3078_v28 = vld [vmem:[#allocation2 + $0x58] sm:$0xf] }
 0x1ec   : > { %2711 = vst.msk [vmem:[#allocation3 + $0x38] sm:$0xf] %vm2696_vm4, %v2629_v59  ;;  %v3083_v60 = vld [vmem:[#allocation2 + $0x78] sm:$0xf] }
 0x1ed   : > { %v2631_v39 = vpop.permute.xlu0 %2630 }
 0x1ee   : > { %2712 = vst.msk [vmem:[#allocation3 + $0x3c] sm:$0xf] %vm2696_vm4, %v2631_v39 }
 0x1f0   : > { %2977 = vrot.lane.b32.xlu1 %v2898_v45, %s8897_s23  ;;  %v3081_v45 = vld [vmem:[#allocation2 + $0x6c] sm:$0xf] }
 0x1f1   : > { %2973 = vrot.lane.b32.xlu2 %v2891_v46, %s8897_s23  ;;  %v3071_v46 = vld [vmem:[#allocation2 + $0x30] sm:$0xf] }
 0x1f2   : > { %v2621_v18 = vpop.permute.xlu1 %2620 }
 0x1f3   : > { %2993 = vrot.lane.b32.xlu0 %v2926_v40, %s8897_s23  ;;  %2707 = vst.msk [vmem:[#allocation3 + $0x28] sm:$0xf] %vm2696_vm4, %v2621_v18  ;;  %v2635_v30 = vpop.permute.xlu2 %2634 }
 0x1f4   : > { %2714 = vst.msk [vmem:[#allocation3 + $0x44] sm:$0xf] %vm2696_vm4, %v2635_v30  ;;  %v3079_v30 = vld [vmem:[#allocation2 + $0x60] sm:$0xf] }
 0x1f5   : > { %v2637_v57 = vpop.permute.xlu0 %2636 }
 0x1f6   : > { %2715 = vst.msk [vmem:[#allocation3 + $0x48] sm:$0xf] %vm2696_vm4, %v2637_v57 }
 0x1f8   : > { %2983 = vrot.lane.b32.xlu1 %v2908_v20, %s8897_s23 }
 0x1f9   : > { %2979 = vrot.lane.b32.xlu2 %v2901_v62, %s8897_s23 }
 0x1fa   : > { %v2627_v11 = vpop.permute.xlu1 %2626 }
 0x1fb   : > { %2999 = vrot.lane.b32.xlu0 %v2936_v36, %s8897_s23  ;;  %2710 = vst.msk [vmem:[#allocation3 + $0x34] sm:$0xf] %vm2696_vm4, %v2627_v11  ;;  %v2641_v5 = vpop.permute.xlu2 %2640  ;;  %v3077_v36 = vld [vmem:[#allocation2 + $0x54] sm:$0xf] }
 0x1fc   : > { %2717 = vst.msk [vmem:[#allocation3 + $0x50] sm:$0xf] %vm2696_vm4, %v2641_v5 }
 0x1fd   : > { %v2643_v38 = vpop.permute.xlu0 %2642 }
 0x1fe   : > { %2718 = vst.msk [vmem:[#allocation3 + $0x54] sm:$0xf] %vm2696_vm4, %v2643_v38  ;;  %v480_v38 = vsel %vm8953_vm3, 0, %v479_v8 }
 0x1ff   : > { %481 = vst [vmem:[#allocation2 + $0xcc] sm:$0x1] %v480_v38 }
 0x200   : > { %2989 = vrot.lane.b32.xlu1 %v2919_v7, %s8897_s23  ;;  %v3093_v7 = vld [vmem:[#allocation2 + $0xb4] sm:$0xf] }
 0x201   : > { %2985 = vrot.lane.b32.xlu2 %v2912_v27, %s8897_s23  ;;  %v3309_v27 = vshrl.u32 %v3260_v42, 16  ;;  %v3262_v42 = vld [vmem:[#allocation2 + $0x20] sm:$0x1] }
 0x202   : > { %v2633_v33 = vpop.permute.xlu1 %2632 }
 0x203   : > { %3135 = vrot.lane.b32.xlu0 %v3069_v43, %s8898_s26  ;;  %2713 = vst.msk [vmem:[#allocation3 + $0x40] sm:$0xf] %vm2696_vm4, %v2633_v33  ;;  %v2647_v44 = vpop.permute.xlu2 %2646  ;;  %v3311_v48 = vrot.slane %v3309_v27, 4  ;;  %v3274_v27 = vld [vmem:[#allocation2 + $0x50] sm:$0x1] }
 0x204   : > { %2720 = vst.msk [vmem:[#allocation3 + $0x5c] sm:$0xf] %vm2696_vm4, %v2647_v44 }
 0x205   : > { %v2649_v10 = vpop.permute.xlu0 %2648 }
 0x206   : > { %2721 = vst.msk [vmem:[#allocation3 + $0x60] sm:$0xf] %vm2696_vm4, %v2649_v10  ;;  %v3314_v10 = vrot.slane %v3312_v2, 5  ;;  %v3278_v2 = vld [vmem:[#allocation2 + $0x60] sm:$0xf] }
 0x208   : > { %2995 = vrot.lane.b32.xlu1 %v2929_v23, %s8897_s23  ;;  %v3096_v23 = vld [vmem:[#allocation2 + $0xc4] sm:$0xf] }
 0x209   : > { %2991 = vrot.lane.b32.xlu2 %v2922_v52, %s8897_s23  ;;  %v3315_v52 = vor.u32 %v3314_v10, %v3311_v48  ;;  %v3263_v48 = vld [vmem:[#allocation2 + $0x24] sm:$0xf] }
 0x20a   : > { %v2639_v24 = vpop.permute.xlu1 %2638 }
 0x20b   : > { %3141 = vrot.lane.b32.xlu0 %v3072_v21, %s8898_s26  ;;  %2716 = vst.msk [vmem:[#allocation3 + $0x4c] sm:$0xf] %vm2696_vm4, %v2639_v24  ;;  %v2653_v12 = vpop.permute.xlu2 %2652  ;;  %v3346_v24 = vshrl.u32 %v3264_v34, 16 }
 0x20c   : > { %2723 = vst.msk [vmem:[#allocation3 + $0x68] sm:$0xf] %vm2696_vm4, %v2653_v12  ;;  %v3086_v12 = vld [vmem:[#allocation2 + $0x88] sm:$0xf] }
 0x20d   : > { %v2655_v22 = vpop.permute.xlu0 %2654 }
 0x20e   : > { %2724 = vst.msk [vmem:[#allocation3 + $0x6c] sm:$0xf] %vm2696_vm4, %v2655_v22  ;;  %v3342_v22 = vshll.u32 %v3264_v34, 16  ;;  %v3328_v34 = vshll.u32 %v3262_v42, 16 }
 0x210   : > { %3131 = vrot.lane.b32.xlu1 %v3067_v41, %s8898_s26  ;;  %v10296_v41 = vrot.slane %v3318_v49, 5  ;;  %v3097_v49 = vld [vmem:[#allocation2 + $0xcc] sm:$0xf] }
 0x211   : > { %2997 = vrot.lane.b32.xlu2 %v2933_v54, %s8897_s23  ;;  %v10298_v54 = vrot.slane %v3342_v22, 5 }
 0x212   : > { %v2645_v17 = vpop.permute.xlu1 %2644 }
 0x213   : > { %3147 = vrot.lane.b32.xlu0 %v3075_v13, %s8898_s26  ;;  %2719 = vst.msk [vmem:[#allocation3 + $0x58] sm:$0xf] %vm2696_vm4, %v2645_v17  ;;  %v2659_v39 = vpop.permute.xlu2 %2658  ;;  %v3316_v13 = vrot.slane %v3315_v52, 4  ;;  %v3269_v17 = vld [vmem:[#allocation2 + $0x3c] sm:$0xf]  ;;  %v3456_v52 = vshll.u32 %v3278_v2, 16 }
 0x214   : > { %2726 = vst.msk [vmem:[#allocation3 + $0x74] sm:$0xf] %vm2696_vm4, %v2659_v39 }
 0x215   : > { %v2661_v15 = vpop.permute.xlu0 %2660 }
 0x216   : > { %2727 = vst.msk [vmem:[#allocation3 + $0x78] sm:$0xf] %vm2696_vm4, %v2661_v15  ;;  %v3348_v15 = vrot.slane %v3346_v24, 4 }
 0x218   : > { %3137 = vrot.lane.b32.xlu1 %v3070_v25, %s8898_s26 }
 0x219   : > { %3133 = vrot.lane.b32.xlu2 %v3068_v29, %s8898_s26 }
 0x21a   : > { %v2651_v40 = vpop.permute.xlu1 %2650 }
 0x21b   : > { %3153 = vrot.lane.b32.xlu0 %v3078_v28, %s8898_s26  ;;  %2722 = vst.msk [vmem:[#allocation3 + $0x64] sm:$0xf] %vm2696_vm4, %v2651_v40  ;;  %v2938_v14 = vpop.permute.xlu2 %2937  ;;  %v3265_v28 = vld [vmem:[#allocation2 + $0x2c] sm:$0x1]  ;;  %v3384_v40 = vshll.u32 %v3269_v17, 16 }
 0x21c   : > { %3034 = vst.msk [vmem:[#allocation3] sm:$0xf] %vm3033_vm6, %v2938_v14  ;;  %v3321_v14 = vsel %vm9032_vm10, %v3316_v13, %v10296_v41  ;;  %v3095_v13 = vld [vmem:[#allocation2 + $0xc0] sm:$0xf] }
 0x21d   : > { %v2940_v59 = vpop.permute.xlu0 %2939 }
 0x21e   : > { %3035 = vst.msk [vmem:[#allocation3 + $0x4] sm:$0xf] %vm3033_vm6, %v2940_v59  ;;  %v3381_v59 = vshrl.u32 %v3269_v17, 16  ;;  %v3330_v17 = vrot.slane %v3328_v34, 5  ;;  %v3272_v34 = vld [vmem:[#allocation2 + $0x48] sm:$0xf] }
 0x220   : > { %3143 = vrot.lane.b32.xlu1 %v3073_v61, %s8898_s26  ;;  %v3352_v61 = vshll.u32 %v3265_v28, 16 }
 0x221   : > { %3139 = vrot.lane.b32.xlu2 %v3071_v46, %s8898_s26  ;;  %v3091_v46 = vld [vmem:[#allocation2 + $0xa8] sm:$0xf] }
 0x222   : > { %v2657_v31 = vpop.permute.xlu1 %2656 }
 0x223   : > { %3159 = vrot.lane.b32.xlu0 %v3081_v45, %s8898_s26  ;;  %2725 = vst.msk [vmem:[#allocation3 + $0x70] sm:$0xf] %vm2696_vm4, %v2657_v31  ;;  %v2944_v58 = vpop.permute.xlu2 %2943  ;;  %v3349_v45 = vor.u32 %v3348_v15, %v10298_v54  ;;  %v3383_v31 = vrot.slane %v3381_v59, 4  ;;  %v3282_v59 = vld [vmem:[#allocation2 + $0x70] sm:$0xf] }
 0x224   : > { %3037 = vst.msk [vmem:[#allocation3 + $0xc] sm:$0xf] %vm3033_vm6, %v2944_v58  ;;  %v3386_v58 = vrot.slane %v3384_v40, 5 }
 0x225   : > { %v2946_v50 = vpop.permute.xlu0 %2945 }
 0x226   : > { %3038 = vst.msk [vmem:[#allocation3 + $0x10] sm:$0xf] %vm3033_vm6, %v2946_v50  ;;  %v3089_v50 = vld [vmem:[#allocation2 + $0x9c] sm:$0xf] }
 0x228   : > { %3149 = vrot.lane.b32.xlu1 %v3076_v56, %s8898_s26  ;;  %v3354_v56 = vrot.slane %v3352_v61, 5 }
 0x229   : > { %3145 = vrot.lane.b32.xlu2 %v3074_v47, %s8898_s26  ;;  %v10310_v47 = vld [vmem:[#allocation2 + $0x40] sm:$0xf] }
 0x22a   : > { %v2663_v18 = vpop.permute.xlu1 %2662 }
 0x22b   : > { %3165 = vrot.lane.b32.xlu0 %v3084_v55, %s8898_s26  ;;  %2728 = vst.msk [vmem:[#allocation3 + $0x7c] sm:$0xf] %vm2696_vm4, %v2663_v18  ;;  %v2950_v32 = vpop.permute.xlu2 %2949  ;;  %v3350_v55 = vrot.slane %v3349_v45, 4  ;;  %v3273_v18 = vld [vmem:[#allocation2 + $0x4c] sm:$0xf] }
 0x22c   : > { %3040 = vst.msk [vmem:[#allocation3 + $0x18] sm:$0xf] %vm3033_vm6, %v2950_v32 }
 0x22d   : > { %v2952_v57 = vpop.permute.xlu0 %2951 }
 0x22e   : > { %3041 = vst.msk [vmem:[#allocation3 + $0x1c] sm:$0xf] %vm3033_vm6, %v2952_v57 }
 0x230   : > { %3155 = vrot.lane.b32.xlu1 %v3079_v30, %s8898_s26  ;;  %v3387_v30 = vor.u32 %v3386_v58, %v3383_v31 }
 0x231   : > { %3151 = vrot.lane.b32.xlu2 %v3077_v36, %s8898_s26  ;;  %v3390_v36 = vshll.u32 %v10310_v47, 16 }
 0x232   : > { %v2942_v62 = vpop.permute.xlu1 %2941  ;;  %v3388_v8 = vrot.slane %v3387_v30, 4 }
 0x233   : > { %3171 = vrot.lane.b32.xlu0 %v3087_v51, %s8898_s26  ;;  %3036 = vst.msk [vmem:[#allocation3 + $0x8] sm:$0xf] %vm3033_vm6, %v2942_v62  ;;  %v2956_v53 = vpop.permute.xlu2 %2955  ;;  %v3355_v62 = vsel %vm9032_vm10, %v3350_v55, %v3354_v56  ;;  %v10321_v38 = vrot.slane %v3390_v36, 5  ;;  %v3394_v55 = vshrl.u32 %v10310_v47, 16  ;;  %v3486_v56 = vshll.u32 %v3282_v59, 16 }
 0x234   : > { %3043 = vst.msk [vmem:[#allocation3 + $0x24] sm:$0xf] %vm3033_vm6, %v2956_v53  ;;  %v3414_v53 = vshll.u32 %v3273_v18, 16 }
 0x235   : > { %v2958_v20 = vpop.permute.xlu0 %2957  ;;  %v3396_v47 = vrot.slane %v3394_v55, 4 }
 0x236   : > { %3044 = vst.msk [vmem:[#allocation3 + $0x28] sm:$0xf] %vm3033_vm6, %v2958_v20  ;;  %v3322_v20 = vshrl.u32 %v10288_v37, 16 }
 0x238   : > { %3161 = vrot.lane.b32.xlu1 %v3082_v0, %s8898_s26  ;;  %v3094_v0 = vld [vmem:[#allocation2 + $0xb8] sm:$0xf] }
 0x239   : > { %3157 = vrot.lane.b32.xlu2 %v3080_v19, %s8898_s26  ;;  %v3092_v19 = vld [vmem:[#allocation2 + $0xac] sm:$0xf] }
 0x23a   : > { %v2948_v5 = vpop.permute.xlu1 %2947 }
 0x23b   : > { %3177 = vrot.lane.b32.xlu0 %v3090_v3, %s8898_s26  ;;  %3039 = vst.msk [vmem:[#allocation3 + $0x14] sm:$0xf] %vm3033_vm6, %v2948_v5  ;;  %v2962_v43 = vpop.permute.xlu2 %2961  ;;  %v3418_v3 = vshrl.u32 %v3273_v18, 16  ;;  %v10324_v5 = vrot.slane %v3414_v53, 5  ;;  %v3098_v53 = vld [vmem:[#allocation2 + $0xd0] sm:$0xf] }
 0x23c   : > { %3046 = vst.msk [vmem:[#allocation3 + $0x30] sm:$0xf] %vm3033_vm6, %v2962_v43 }
 0x23d   : > { %v2964_v11 = vpop.permute.xlu0 %2963  ;;  %v3420_v43 = vrot.slane %v3418_v3, 4 }
 0x23e   : > { %3047 = vst.msk [vmem:[#allocation3 + $0x34] sm:$0xf] %vm3033_vm6, %v2964_v11  ;;  %v3324_v11 = vrot.slane %v3322_v20, 4 }
 0x240   : > { %3167 = vrot.lane.b32.xlu1 %v3085_v26, %s8898_s26  ;;  %v3325_v37 = vor.u32 %v3324_v11, %v10296_v41 }
 0x241   : > { %3163 = vrot.lane.b32.xlu2 %v3083_v60, %s8898_s26  ;;  %v3266_v60 = vld [vmem:[#allocation2 + $0x30] sm:$0xf] }
 0x242   : > { %v2954_v44 = vpop.permute.xlu1 %2953  ;;  %v3357_v22 = vshrl.u32 %v3266_v60, 16  ;;  %v3360_v24 = vshll.u32 %v3266_v60, 16  ;;  %v3326_v15 = vrot.slane %v3325_v37, 4  ;;  %v3271_v60 = vld [vmem:[#allocation2 + $0x44] sm:$0x1] }
 0x243   : > { %3183 = vrot.lane.b32.xlu0 %v3093_v7, %s8898_s26  ;;  %3042 = vst.msk [vmem:[#allocation3 + $0x20] sm:$0xf] %vm3033_vm6, %v2954_v44  ;;  %v2968_v21 = vpop.permute.xlu2 %2967  ;;  %v3421_v44 = vor.u32 %v3420_v43, %v10324_v5 }
 0x244   : > { %3049 = vst.msk [vmem:[#allocation3 + $0x3c] sm:$0xf] %vm3033_vm6, %v2968_v21  ;;  %v3424_v21 = vshll.u32 %v3274_v27, 16  ;;  %v3362_v45 = vrot.slane %v3360_v24, 5  ;;  %v3331_v36 = vsel %vm9032_vm10, %v3326_v15, %v3330_v17  ;;  %v3405_v17 = vshrl.u32 %v3272_v34, 16 }
 0x245   : > { %v2970_v33 = vpop.permute.xlu0 %2969  ;;  %v3422_v41 = vrot.slane %v3421_v44, 4 }
 0x246   : > { %3050 = vst.msk [vmem:[#allocation3 + $0x40] sm:$0xf] %vm3033_vm6, %v2970_v33  ;;  %v3393_v33 = vsel %vm9032_vm10, %v3388_v8, %v10321_v38  ;;  %v3426_v28 = vrot.slane %v3424_v21, 5  ;;  %v3275_v8 = vld [vmem:[#allocation2 + $0x54] sm:$0xf]  ;;  %v3397_v21 = vor.u32 %v3396_v47, %v10321_v38 }
 0x247   : > { %v3429_v37 = vshrl.u32 %v3275_v8, 16 }
 0x248   : > { %3173 = vrot.lane.b32.xlu1 %v3088_v4, %s8898_s26  ;;  %v3333_v4 = vshrl.u32 %v3263_v48, 16  ;;  %v3427_v18 = vsel %vm9032_vm10, %v3422_v41, %v3426_v28 }
 0x249   : > { %3169 = vrot.lane.b32.xlu2 %v3086_v12, %s8898_s26  ;;  %v3336_v12 = vshll.u32 %v3263_v48, 16  ;;  %v3287_v48 = vld [vmem:[#allocation2 + $0x84] sm:$0xf] }
 0x24a   : > { %v2960_v25 = vpop.permute.xlu1 %2959  ;;  %v3335_v61 = vrot.slane %v3333_v4, 4  ;;  %v3400_v4 = vshll.u32 %v3271_v60, 16 }
 0x24b   : > { %3189 = vrot.lane.b32.xlu0 %v3096_v23, %s8898_s26  ;;  %3045 = vst.msk [vmem:[#allocation3 + $0x2c] sm:$0xf] %vm3033_vm6, %v2960_v25  ;;  %v2974_v29 = vpop.permute.xlu2 %2973  ;;  %v3453_v23 = vshrl.u32 %v3278_v2, 16 }
 0x24c   : > { %3052 = vst.msk [vmem:[#allocation3 + $0x48] sm:$0xf] %vm3033_vm6, %v2974_v29  ;;  %v3458_v29 = vrot.slane %v3456_v52, 5 }
 0x24d   : > { %v2976_v39 = vpop.permute.xlu0 %2975  ;;  %v3455_v25 = vrot.slane %v3453_v23, 4  ;;  %v3268_v23 = vld [vmem:[#allocation2 + $0x38] sm:$0x1] }
 0x24e   : > { %3053 = vst.msk [vmem:[#allocation3 + $0x4c] sm:$0xf] %vm3033_vm6, %v2976_v39  ;;  %v3267_v39 = vld [vmem:[#allocation2 + $0x34] sm:$0xf]  ;;  %v3376_v28 = vshll.u32 %v3268_v23, 16 }
 0x24f   : > { %v3370_v3 = vshrl.u32 %v3267_v39, 16 }
 0x250   : > { %3179 = vrot.lane.b32.xlu1 %v3091_v46, %s8898_s26  ;;  %v3338_v46 = vrot.slane %v3336_v12, 5  ;;  %v3525_v12 = vshrl.u32 %v3287_v48, 16 }
 0x251   : > { %3175 = vrot.lane.b32.xlu2 %v3089_v50, %s8898_s26  ;;  %v10338_v50 = vld [vmem:[#allocation2 + $0x64] sm:$0xf] }
 0x252   : > { %v2966_v32 = vpop.permute.xlu1 %2965  ;;  %v3462_v30 = vshll.u32 %v10338_v50, 16 }
 0x253   : > { %3692 = vrot.lane.b32.xlu0 %v3321_v14, %s8899_s27  ;;  %3048 = vst.msk [vmem:[#allocation3 + $0x38] sm:$0xf] %vm3033_vm6, %v2966_v32  ;;  %v2980_v51 = vpop.permute.xlu2 %2979  ;;  %v3359_v14 = vrot.slane %v3357_v22, 4  ;;  %v3366_v32 = vshll.u32 %v3267_v39, 16  ;;  %v3432_v22 = vshll.u32 %v3275_v8, 16  ;;  %v3408_v39 = vshll.u32 %v3272_v34, 16 }
 0x254   : > { %3055 = vst.msk [vmem:[#allocation3 + $0x54] sm:$0xf] %vm3033_vm6, %v2980_v51  ;;  %v3459_v51 = vor.u32 %v3458_v29, %v3455_v25  ;;  %v10353_v43 = vrot.slane %v3462_v30, 5 }
 0x255   : > { %v2982_v57 = vpop.permute.xlu0 %2981  ;;  %v3363_v20 = vor.u32 %v3362_v45, %v3359_v14  ;;  %v3368_v11 = vrot.slane %v3366_v32, 5  ;;  %v3398_v14 = vrot.slane %v3397_v21, 4  ;;  %v3402_v45 = vrot.slane %v3400_v4, 5 }
 0x256   : > { %3056 = vst.msk [vmem:[#allocation3 + $0x58] sm:$0xf] %vm3033_vm6, %v2982_v57  ;;  %v3490_v57 = vshrl.u32 %v3282_v59, 16  ;;  %v3460_v42 = vrot.slane %v3459_v51, 4  ;;  %v3431_v59 = vrot.slane %v3429_v37, 4  ;;  %v3410_v55 = vrot.slane %v3408_v39, 5 }
 0x257   : > { %v3364_v27 = vrot.slane %v3363_v20, 4  ;;  %v3378_v51 = vrot.slane %v3376_v28, 5  ;;  %v3403_v8 = vsel %vm9032_vm10, %v3398_v14, %v3402_v45 }
 0x258   : > { %3185 = vrot.lane.b32.xlu1 %v3094_v0, %s8898_s26  ;;  %v10350_v0 = vrot.slane %v3486_v56, 5  ;;  %v3465_v24 = vsel %vm9032_vm10, %v3460_v42, %v10353_v43  ;;  %v10372_v56 = vld [vmem:[#allocation2 + $0x88] sm:$0xf]  ;;  %v3466_v42 = vshrl.u32 %v10338_v50, 16 }
 0x259   : > { %3181 = vrot.lane.b32.xlu2 %v3092_v19, %s8898_s26  ;;  %v3492_v19 = vrot.slane %v3490_v57, 4  ;;  %v3369_v15 = vsel %vm9032_vm10, %v3364_v27, %v3368_v11  ;;  %v3291_v57 = vld [vmem:[#allocation2 + $0x94] sm:$0xf] }
 0x25a   : > { %v2972_v26 = vpop.permute.xlu1 %2971  ;;  %v3558_v47 = vshll.u32 %v3291_v57, 16  ;;  %v3468_v23 = vrot.slane %v3466_v42, 4 }
 0x25b   : > { %3698 = vrot.lane.b32.xlu0 %v3355_v62, %s8899_s27  ;;  %3051 = vst.msk [vmem:[#allocation3 + $0x44] sm:$0xf] %vm3033_vm6, %v2972_v26  ;;  %v2986_v10 = vpop.permute.xlu2 %2985  ;;  %v3339_v62 = vor.u32 %v3338_v46, %v3335_v61  ;;  %v3493_v52 = vor.u32 %v3492_v19, %v10350_v0  ;;  %v3276_v61 = vld [vmem:[#allocation2 + $0x58] sm:$0xf]  ;;  %v3527_v46 = vrot.slane %v3525_v12, 4  ;;  %v3562_v19 = vshrl.u32 %v3291_v57, 16 }
 0x25c   : > { %3058 = vst.msk [vmem:[#allocation3 + $0x60] sm:$0xf] %vm3033_vm6, %v2986_v10  ;;  %v3442_v27 = vshrl.u32 %v3276_v61, 16  ;;  %v10389_v37 = vrot.slane %v3558_v47, 5  ;;  %v3281_v12 = vld [vmem:[#allocation2 + $0x6c] sm:$0xf] }
 0x25d   : > { %v2988_v7 = vpop.permute.xlu0 %2987  ;;  %v3340_v26 = vrot.slane %v3339_v62, 4  ;;  %v3494_v25 = vrot.slane %v3493_v52, 4  ;;  %v3438_v62 = vshll.u32 %v3276_v61, 16  ;;  %v3564_v34 = vrot.slane %v3562_v19, 4  ;;  %v3292_v52 = vld [vmem:[#allocation2 + $0x98] sm:$0x1] }
 0x25e   : > { %3059 = vst.msk [vmem:[#allocation3 + $0x64] sm:$0xf] %vm3033_vm6, %v2988_v7  ;;  %v3283_v7 = vld [vmem:[#allocation2 + $0x74] sm:$0x1]  ;;  %v3480_v14 = vshll.u32 %v3281_v12, 16 }
 0x25f   : > { %v3345_v38 = vsel %vm9032_vm10, %v3340_v26, %v10298_v54  ;;  %v3407_v54 = vrot.slane %v3405_v17, 4  ;;  %v3440_v60 = vrot.slane %v3438_v62, 5  ;;  %v3565_v28 = vor.u32 %v3564_v34, %v10389_v37  ;;  %v3300_v62 = vld [vmem:[#allocation2 + $0xb8] sm:$0xf] }
 0x260   : > { %3191 = vrot.lane.b32.xlu1 %v3097_v49, %s8898_s26  ;;  %v3496_v49 = vshll.u32 %v3283_v7, 16 }
 0x261   : > { %3187 = vrot.lane.b32.xlu2 %v3095_v13, %s8898_s26  ;;  %v3528_v13 = vshll.u32 %v3287_v48, 16  ;;  %v3566_v57 = vrot.slane %v3565_v28, 4 }
 0x262   : > { %v2978_v31 = vpop.permute.xlu1 %2977  ;;  %v3498_v29 = vrot.slane %v3496_v49, 5 }
 0x263   : > { %3704 = vrot.lane.b32.xlu0 %v3393_v33, %s8899_s27  ;;  %3054 = vst.msk [vmem:[#allocation3 + $0x50] sm:$0xf] %vm3033_vm6, %v2978_v31  ;;  %v2992_v58 = vpop.permute.xlu2 %2991  ;;  %v3372_v33 = vrot.slane %v3370_v3, 4  ;;  %v3530_v31 = vrot.slane %v3528_v13, 5  ;;  %v3534_v3 = vshll.u32 %v10372_v56, 16 }
 0x264   : > { %3061 = vst.msk [vmem:[#allocation3 + $0x6c] sm:$0xf] %vm3033_vm6, %v2992_v58 }
 0x265   : > { %v2994_v40 = vpop.permute.xlu0 %2993  ;;  %v3373_v41 = vor.u32 %v3372_v33, %v3368_v11  ;;  %v3411_v11 = vor.u32 %v3410_v55, %v3407_v54  ;;  %v3280_v33 = vld [vmem:[#allocation2 + $0x68] sm:$0x1] }
 0x266   : > { %3062 = vst.msk [vmem:[#allocation3 + $0x70] sm:$0xf] %vm3033_vm6, %v2994_v40  ;;  %v3434_v40 = vrot.slane %v3432_v22, 5 }
 0x267   : > { %v3374_v32 = vrot.slane %v3373_v41, 4  ;;  %v3412_v21 = vrot.slane %v3411_v11, 4 }
 0x268   : > { %3694 = vrot.lane.b32.xlu1 %v3331_v36, %s8899_s27  ;;  %v3499_v36 = vsel %vm9032_vm10, %v3494_v25, %v3498_v29  ;;  %v3435_v20 = vor.u32 %v3434_v40, %v3431_v59  ;;  %v3568_v25 = vshll.u32 %v3292_v52, 16  ;;  %v3469_v29 = vor.u32 %v3468_v23, %v10353_v43  ;;  %v3285_v43 = vld [vmem:[#allocation2 + $0x7c] sm:$0xf] }
 0x269   : > { %3193 = vrot.lane.b32.xlu2 %v3098_v53, %s8898_s26  ;;  %v3531_v53 = vor.u32 %v3530_v31, %v3527_v46  ;;  %v3379_v7 = vsel %vm9032_vm10, %v3374_v32, %v3378_v51  ;;  %v3472_v59 = vshll.u32 %v3280_v33, 16  ;;  %v3477_v40 = vshrl.u32 %v3281_v12, 16  ;;  %v10407_v32 = vld [vmem:[#allocation2 + $0xac] sm:$0xf] }
 0x26a   : > { %v2984_v10 = vpop.permute.xlu1 %2983  ;;  %v3436_v26 = vrot.slane %v3435_v20, 4  ;;  %v3417_v45 = vsel %vm9032_vm10, %v3412_v21, %v10324_v5  ;;  %v3470_v51 = vrot.slane %v3469_v29, 4  ;;  %v3482_v20 = vrot.slane %v3480_v14, 5 }
 0x26b   : > { %3710 = vrot.lane.b32.xlu0 %v3427_v18, %s8899_s27  ;;  %3057 = vst.msk [vmem:[#allocation3 + $0x5c] sm:$0xf] %vm3033_vm6, %v2984_v10  ;;  %v2998_v44 = vpop.permute.xlu2 %2997  ;;  %v3532_v48 = vrot.slane %v3531_v53, 4  ;;  %v10387_v10 = vrot.slane %v3534_v3, 5  ;;  %v3510_v11 = vshll.u32 %v3285_v43, 16  ;;  %v3538_v33 = vshrl.u32 %v10372_v56, 16 }
 0x26c   : > { %3064 = vst.msk [vmem:[#allocation3 + $0x78] sm:$0xf] %vm3033_vm6, %v2998_v44  ;;  %v3296_v44 = vld [vmem:[#allocation2 + $0xa8] sm:$0xf] }
 0x26d   : > { %v3000_v2 = vpop.permute.xlu0 %2999  ;;  %v3597_v17 = vshrl.u32 %v3296_v44, 16  ;;  %v3600_v39 = vshll.u32 %v3296_v44, 16  ;;  %v3537_v41 = vsel %vm9032_vm10, %v3532_v48, %v10387_v10  ;;  %v3514_v44 = vshrl.u32 %v3285_v43, 16 }
 0x26e   : > { %3065 = vst.msk [vmem:[#allocation3 + $0x7c] sm:$0xf] %vm3033_vm6, %v3000_v2  ;;  %v3284_v2 = vld [vmem:[#allocation2 + $0x78] sm:$0xf]  ;;  %v3512_v21 = vrot.slane %v3510_v11, 5 }
 0x26f   : > { %v3501_v49 = vshrl.u32 %v3284_v2, 16  ;;  %v3504_v4 = vshll.u32 %v3284_v2, 16  ;;  %v3599_v54 = vrot.slane %v3597_v17, 4  ;;  %v3602_v55 = vrot.slane %v3600_v39, 5  ;;  %v3305_v17 = vld [vmem:[#allocation2 + $0xcc] sm:$0xf] }
 0x270   : > { %3700 = vrot.lane.b32.xlu1 %v3369_v15, %s8899_s27  ;;  %v3277_v15 = vld [vmem:[#allocation2 + $0x5c] sm:$0x1]  ;;  %v3630_v2 = vshll.u32 %v3300_v62, 16  ;;  %v535_v39 = vld [vmem:[#allocation2 + $0xd4] sm:$0x1]  ;;  %v3516_v28 = vrot.slane %v3514_v44, 4 }
 0x271   : > { %3696 = vrot.lane.b32.xlu2 %v3345_v38, %s8899_s27  ;;  %v3441_v38 = vsel %vm9032_vm10, %v3436_v26, %v3440_v60  ;;  %v3448_v46 = vshll.u32 %v3277_v15, 16  ;;  %v3503_v31 = vrot.slane %v3501_v49, 4  ;;  %v3603_v42 = vor.u32 %v3602_v55, %v3599_v54  ;;  %v3293_v49 = vld [vmem:[#allocation2 + $0x9c] sm:$0xf] }
 0x272   : > { %v2990_v18 = vpop.permute.xlu1 %2989  ;;  %v3634_v26 = vshrl.u32 %v3300_v62, 16  ;;  %v3540_v15 = vrot.slane %v3538_v33, 4  ;;  %v3576_v14 = vshll.u32 %v3293_v49, 16  ;;  %v3517_v43 = vor.u32 %v3516_v28, %v3512_v21 }
 0x273   : > { %3716 = vrot.lane.b32.xlu0 %v3465_v24, %s8899_s27  ;;  %3060 = vst.msk [vmem:[#allocation3 + $0x68] sm:$0xf] %vm3033_vm6, %v2990_v18  ;;  %v3134_v30 = vpop.permute.xlu2 %3133  ;;  %v3444_v24 = vrot.slane %v3442_v27, 4  ;;  %v3570_v18 = vrot.slane %v3568_v25, 5  ;;  %v3450_v47 = vrot.slane %v3448_v46, 5  ;;  %v3604_v23 = vrot.slane %v3603_v42, 4 }
 0x274   : > { %3229 = vst.msk [vmem:[#allocation3 + $0x4] sm:$0xf] %vm3227_vm7, %v3134_v30  ;;  %v3474_v30 = vrot.slane %v3472_v59, 5  ;;  %v3636_v12 = vrot.slane %v3634_v26, 4  ;;  %v3573_v25 = vshrl.u32 %v3293_v49, 16  ;;  %v3669_v46 = vshrl.u32 %v3305_v17, 16 }
 0x275   : > { %v3136_v58 = vpop.permute.xlu0 %3135  ;;  %v3445_v61 = vor.u32 %v3444_v24, %v3440_v60  ;;  %v3571_v27 = vsel %vm9032_vm10, %v3566_v57, %v3570_v18  ;;  %v3301_v24 = vld [vmem:[#allocation2 + $0xbc] sm:$0x1]  ;;  %v3541_v57 = vor.u32 %v3540_v15, %v10387_v10  ;;  %v3578_v6 = vrot.slane %v3576_v14, 5  ;;  %v3295_v14 = vld [vmem:[#allocation2 + $0xa4] sm:$0x1] }
 0x276   : > { %3230 = vst.msk [vmem:[#allocation3 + $0x8] sm:$0xf] %vm3227_vm7, %v3136_v58  ;;  %v3506_v58 = vrot.slane %v3504_v4, 5  ;;  %v3475_v60 = vsel %vm9032_vm10, %v3470_v51, %v3474_v30  ;;  %v10425_v4 = vrot.slane %v3630_v2, 5  ;;  %v3518_v42 = vrot.slane %v3517_v43, 4 }
 0x277   : > { %v3446_v3 = vrot.slane %v3445_v61, 4 }
 0x278   : > { %3706 = vrot.lane.b32.xlu1 %v3403_v8, %s8899_s27  ;;  %v3507_v8 = vor.u32 %v3506_v58, %v3503_v31  ;;  %v3637_v61 = vor.u32 %v3636_v12, %v10425_v4  ;;  %v3672_v31 = vshll.u32 %v3305_v17, 16  ;;  %v536_v58 = vsel %vm8978_vm5, 0, %v535_v39  ;;  %v3298_v17 = vld [vmem:[#allocation2 + $0xb0] sm:$0x1]  ;;  %v10464_v39 = vld [vmem:[#allocation2 + $0x1c] sm:$0xf] }
 0x279   : > { %3702 = vrot.lane.b32.xlu2 %v3379_v7, %s8899_s27  ;;  %v3606_v7 = vshll.u32 %v10407_v32, 16  ;;  %v3451_v34 = vsel %vm9032_vm10, %v3446_v3, %v3450_v47  ;;  %537 = vst [vmem:[#allocation2 + $0xd4] sm:$0x1] %v536_v58  ;;  %v3671_v3 = vrot.slane %v3669_v46, 4  ;;  %v3616_v46 = vshll.u32 %v3298_v17, 16 }
 0x27a   : > { %v2996_v22 = vpop.permute.xlu1 %2995  ;;  %v3674_v47 = vrot.slane %v3672_v31, 5  ;;  %v3919_v31 = vrot.slane %v10464_v39, 5  ;;  %v3823_v58 = vld [vmem:[#allocation2 + $0x20] sm:$0x1]  ;;  %vm3788_vm5 = vcmask 257248  }
 0x27b   : > { %3722 = vrot.lane.b32.xlu0 %v3499_v36, %s8899_s27  ;;  %3063 = vst.msk [vmem:[#allocation3 + $0x74] sm:$0xf] %vm3033_vm6, %v2996_v22  ;;  %v3140_v13 = vpop.permute.xlu2 %3139  ;;  %v3479_v36 = vrot.slane %v3477_v40, 4  ;;  %v10422_v52 = vrot.slane %v3606_v7, 5  ;;  %v3289_v22 = vld [vmem:[#allocation2 + $0x8c] sm:$0x1] }
 0x27c   : > { %3232 = vst.msk [vmem:[#allocation3 + $0x10] sm:$0xf] %vm3227_vm7, %v3140_v13  ;;  %v3640_v40 = vshll.u32 %v3301_v24, 16  ;;  %v3544_v18 = vshll.u32 %v3289_v22, 16 }
 0x27d   : > { %v3142_v50 = vpop.permute.xlu0 %3141  ;;  %v3483_v48 = vor.u32 %v3482_v20, %v3479_v36  ;;  %v3609_v59 = vsel %vm9032_vm10, %v3604_v23, %v10422_v52  ;;  %v3575_v36 = vrot.slane %v3573_v25, 4  ;;  %v3638_v20 = vrot.slane %v3637_v61, 4 }
 0x27e   : > { %3233 = vst.msk [vmem:[#allocation3 + $0x14] sm:$0xf] %vm3227_vm7, %v3142_v50  ;;  %v3508_v50 = vrot.slane %v3507_v8, 4  ;;  %v3642_v62 = vrot.slane %v3640_v40, 5  ;;  %v3546_v10 = vrot.slane %v3544_v18, 5 }
 0x27f   : > { %v3484_v13 = vrot.slane %v3483_v48, 4  ;;  %v10446_v8 = vld [vmem:[#allocation2 + $0xd0] sm:$0xf] }
 0x280   : > { %3712 = vrot.lane.b32.xlu1 %v3441_v38, %s8899_s27  ;;  %v3513_v54 = vsel %vm9032_vm10, %v3508_v50, %v3512_v21  ;;  %v3643_v33 = vsel %vm9032_vm10, %v3638_v20, %v3642_v62  ;;  %v3678_v44 = vshll.u32 %v10446_v8, 16  ;;  %v3610_v50 = vshrl.u32 %v10407_v32, 16 }
 0x281   : > { %3708 = vrot.lane.b32.xlu2 %v3417_v45, %s8899_s27  ;;  %v3290_v45 = vld [vmem:[#allocation2 + $0x90] sm:$0xf]  ;;  %v3489_v55 = vsel %vm9032_vm10, %v3484_v13, %v10350_v0  ;;  %v3542_v0 = vrot.slane %v3541_v57, 4 }
 0x282   : > { %v3132_v53 = vpop.permute.xlu1 %3131  ;;  %v3549_v30 = vshrl.u32 %v3290_v45, 16  ;;  %v10461_v13 = vrot.slane %v3678_v44, 5  ;;  %v3612_v15 = vrot.slane %v3610_v50, 4 }
 0x283   : > { %3728 = vrot.lane.b32.xlu0 %v3537_v41, %s8899_s27  ;;  %3228 = vst.msk [vmem:[#allocation3] sm:$0xf] %vm3227_vm7, %v3132_v53  ;;  %v3146_v19 = vpop.permute.xlu2 %3145  ;;  %v3286_v41 = vld [vmem:[#allocation2 + $0x80] sm:$0x1]  ;;  %v3547_v21 = vsel %vm9032_vm10, %v3542_v0, %v3546_v10 }
 0x284   : > { %3235 = vst.msk [vmem:[#allocation3 + $0x1c] sm:$0xf] %vm3227_vm7, %v3146_v19  ;;  %v3520_v51 = vshll.u32 %v3286_v41, 16  ;;  %v3294_v53 = vld [vmem:[#allocation2 + $0xa0] sm:$0xf]  ;;  %v3613_v61 = vor.u32 %v3612_v15, %v10422_v52  ;;  %v3618_v52 = vrot.slane %v3616_v46, 5 }
 0x285   : > { %v3148_v5 = vpop.permute.xlu0 %3147  ;;  %v3582_v48 = vshll.u32 %v3294_v53, 16  ;;  %v3586_v22 = vshrl.u32 %v3294_v53, 16 }
 0x286   : > { %3236 = vst.msk [vmem:[#allocation3 + $0x20] sm:$0xf] %vm3227_vm7, %v3148_v5  ;;  %v3552_v5 = vshll.u32 %v3290_v45, 16  ;;  %v3522_v7 = vrot.slane %v3520_v51, 5 }
 0x287   : > { %v3584_v12 = vrot.slane %v3582_v48, 5  ;;  %v3588_v25 = vrot.slane %v3586_v22, 4  ;;  %v3827_v48 = vld [vmem:[#allocation2 + $0x30] sm:$0xe]  ;;  %v3307_v22 = vld [vmem:[#allocation2 + $0xd4] sm:$0x1] }
 0x288   : > { %3718 = vrot.lane.b32.xlu1 %v3475_v60, %s8899_s27  ;;  %v3554_v2 = vrot.slane %v3552_v5, 5  ;;  %v3579_v60 = vor.u32 %v3578_v6, %v3575_v36  ;;  %v3523_v23 = vsel %vm9032_vm10, %v3518_v42, %v3522_v7  ;;  %v3614_v5 = vrot.slane %v3613_v61, 4 }
 0x289   : > { %3714 = vrot.lane.b32.xlu2 %v3451_v34, %s8899_s27  ;;  %v3675_v34 = vor.u32 %v3674_v47, %v3671_v3  ;;  %v3589_v51 = vor.u32 %v3588_v25, %v3584_v12  ;;  %v3921_v36 = vrot.slane %v3919_v31, 4  ;;  %v3922_v6 = vrot.slane %v3823_v58, 5 }
 0x28a   : > { %v3138_v38 = vpop.permute.xlu1 %3137  ;;  %v3580_v24 = vrot.slane %v3579_v60, 4  ;;  %v3682_v42 = vshrl.u32 %v10446_v8, 16  ;;  %v10495_v8 = vld [vmem:[#allocation2 + $0x34] sm:$0xf]  ;;  %v8539_v44 = vrot.slane %v3827_v48, 9 }
 0x28b   : > { %3734 = vrot.lane.b32.xlu0 %v3571_v27, %s8899_s27  ;;  %3231 = vst.msk [vmem:[#allocation3 + $0xc] sm:$0xf] %vm3227_vm7, %v3138_v38  ;;  %v3152_v29 = vpop.permute.xlu2 %3151  ;;  %v3551_v27 = vrot.slane %v3549_v30, 4  ;;  %v3302_v38 = vld [vmem:[#allocation2 + $0xc0] sm:$0xf]  ;;  %v3592_v30 = vshll.u32 %v3295_v14, 16  ;;  %v3923_v7 = vsel %vm9505_vm14, %v3921_v36, %v3922_v6 }
 0x28c   : > { %3238 = vst.msk [vmem:[#allocation3 + $0x28] sm:$0xf] %vm3227_vm7, %v3152_v29  ;;  %v3299_v29 = vld [vmem:[#allocation2 + $0xb4] sm:$0xf]  ;;  %v3590_v0 = vrot.slane %v3589_v51, 4  ;;  %v3933_v15 = vrot.slane %v10495_v8, 5 }
 0x28d   : > { %v3154_v56 = vpop.permute.xlu0 %3153  ;;  %v3555_v49 = vor.u32 %v3554_v2, %v3551_v27  ;;  %v3621_v57 = vshrl.u32 %v3299_v29, 16  ;;  %v3624_v18 = vshll.u32 %v3299_v29, 16  ;;  %v3594_v10 = vrot.slane %v3592_v30, 5  ;;  %v3824_v36 = vld [vmem:[#allocation2 + $0x24] sm:$0xe] }
 0x28e   : > { %3239 = vst.msk [vmem:[#allocation3 + $0x2c] sm:$0xf] %vm3227_vm7, %v3154_v56  ;;  %v3676_v56 = vrot.slane %v3675_v34, 4  ;;  %v3619_v27 = vsel %vm9032_vm10, %v3614_v5, %v3618_v52  ;;  %v3836_v5 = vld [vmem:[#allocation2 + $0x54] sm:$0xe] }
 0x28f   : > { %v3556_v28 = vrot.slane %v3555_v49, 4  ;;  %v3623_v3 = vrot.slane %v3621_v57, 4  ;;  %v3626_v47 = vrot.slane %v3624_v18, 5  ;;  %v3825_v6 = vld [vmem:[#allocation2 + $0x28] sm:$0xf] }
 0x290   : > { %3724 = vrot.lane.b32.xlu1 %v3513_v54, %s8899_s27  ;;  %v3681_v45 = vsel %vm9032_vm10, %v3676_v56, %v10461_v13  ;;  %v3645_v54 = vshrl.u32 %v3302_v38, 16  ;;  %v3829_v48 = vld [vmem:[#allocation2 + $0x38] sm:$0x1]  ;;  %v3845_v8 = vld [vmem:[#allocation2 + $0x78] sm:$0xe] }
 0x291   : > { %3720 = vrot.lane.b32.xlu2 %v3489_v55, %s8899_s27  ;;  %v3648_v55 = vshll.u32 %v3302_v38, 16  ;;  %v3561_v43 = vsel %vm9032_vm10, %v3556_v28, %v10389_v37  ;;  %v3627_v60 = vor.u32 %v3626_v47, %v3623_v3  ;;  %v3304_v38 = vld [vmem:[#allocation2 + $0xc8] sm:$0x1]  ;;  %v8538_v3 = vrot.slane %v3824_v36, 9  ;;  %v3850_v36 = vld [vmem:[#allocation2 + $0x8c] sm:$0x1] }
 0x292   : > { %v3144_v11 = vpop.permute.xlu1 %3143  ;;  %v3647_v62 = vrot.slane %v3645_v54, 4  ;;  %v3664_v61 = vshll.u32 %v3304_v38, 16  ;;  %v3926_v47 = vrot.slane %v3825_v6, 5  ;;  %v3936_v39 = vrot.slane %v3829_v48, 5  ;;  %v3830_v38 = vld [vmem:[#allocation2 + $0x3c] sm:$0xe] }
 0x293   : > { %3740 = vrot.lane.b32.xlu0 %v3609_v59, %s8899_s27  ;;  %3234 = vst.msk [vmem:[#allocation3 + $0x18] sm:$0xf] %vm3227_vm7, %v3144_v11  ;;  %v3158_v26 = vpop.permute.xlu2 %3157  ;;  %v3585_v59 = vsel %vm9032_vm10, %v3580_v24, %v3584_v12  ;;  %v3650_v53 = vrot.slane %v3648_v55, 5  ;;  %v3628_v49 = vrot.slane %v3627_v60, 4  ;;  %v3684_v24 = vrot.slane %v3682_v42, 4 }
 0x294   : > { %3241 = vst.msk [vmem:[#allocation3 + $0x34] sm:$0xf] %vm3227_vm7, %v3158_v26  ;;  %v3847_v48 = vld [vmem:[#allocation2 + $0x80] sm:$0x1] }
 0x295   : > { %v3160_v19 = vpop.permute.xlu0 %3159  ;;  %v3651_v2 = vor.u32 %v3650_v53, %v3647_v62  ;;  %v3685_v29 = vor.u32 %v3684_v24, %v10461_v13  ;;  %v3633_v14 = vsel %vm9032_vm10, %v3628_v49, %v10425_v4  ;;  %v3666_v4 = vrot.slane %v3664_v61, 5  ;;  %v10531_v62 = vld [vmem:[#allocation2 + $0x58] sm:$0xf] }
 0x296   : > { %3242 = vst.msk [vmem:[#allocation3 + $0x38] sm:$0xf] %vm3227_vm7, %v3160_v19  ;;  %v3303_v19 = vld [vmem:[#allocation2 + $0xc4] sm:$0xf]  ;;  %v8542_v53 = vrot.slane %v3836_v5, 9 }
 0x297   : > { %v3654_v26 = vshll.u32 %v3303_v19, 16  ;;  %v3658_v34 = vshrl.u32 %v3303_v19, 16  ;;  %v3652_v50 = vrot.slane %v3651_v2, 4  ;;  %v3686_v54 = vrot.slane %v3685_v29, 4 }
 0x298   : > { %3730 = vrot.lane.b32.xlu1 %v3547_v21, %s8899_s27  ;;  %v3954_v19 = vrot.slane %v10531_v62, 5  ;;  %v3927_v2 = vsel %vm9505_vm14, %v8538_v3, %v3926_v47  ;;  %v3985_v62 = vrot.slane %v3850_v36, 5  ;;  %v3843_v3 = vld [vmem:[#allocation2 + $0x70] sm:$0xf] }
 0x299   : > { %3726 = vrot.lane.b32.xlu2 %v3523_v23, %s8899_s27  ;;  %v3656_v21 = vrot.slane %v3654_v26, 5  ;;  %v3660_v56 = vrot.slane %v3658_v34, 4  ;;  %v3841_v26 = vld [vmem:[#allocation2 + $0x68] sm:$0x1] }
 0x29a   : > { %v3150_v41 = vpop.permute.xlu1 %3149 }
 0x29b   : > { %3746 = vrot.lane.b32.xlu0 %v3643_v33, %s8899_s27  ;;  %3237 = vst.msk [vmem:[#allocation3 + $0x24] sm:$0xf] %vm3227_vm7, %v3150_v41  ;;  %v3164_v40 = vpop.permute.xlu2 %3163  ;;  %v3595_v33 = vsel %vm9032_vm10, %v3590_v0, %v3594_v10  ;;  %v3934_v41 = vsel %vm9505_vm14, %v8539_v44, %v3933_v15  ;;  %v3657_v25 = vsel %vm9032_vm10, %v3652_v50, %v3656_v21  ;;  %v3964_v44 = vrot.slane %v3841_v26, 5 }
 0x29c   : > { %3244 = vst.msk [vmem:[#allocation3 + $0x40] sm:$0xf] %vm3227_vm7, %v3164_v40  ;;  %v3832_v40 = vld [vmem:[#allocation2 + $0x44] sm:$0x1]  ;;  %v3935_v50 = vrot.slane %v3933_v15, 4 }
 0x29d   : > { %v3166_v32 = vpop.permute.xlu0 %3165  ;;  %v3943_v58 = vrot.slane %v3832_v40, 5  ;;  %v3834_v15 = vld [vmem:[#allocation2 + $0x4c] sm:$0xf] }
 0x29e   : > { %3245 = vst.msk [vmem:[#allocation3 + $0x44] sm:$0xf] %vm3227_vm7, %v3166_v32  ;;  %v10501_v32 = vld [vmem:[#allocation2 + $0x40] sm:$0xf] }
 0x29f   : > { %v3940_v28 = vrot.slane %v10501_v32, 5 }
 0x2a0   : > { %3736 = vrot.lane.b32.xlu1 %v3585_v59, %s8899_s27  ;;  %v3688_v59 = vshll.u32 %v3307_v22, 16 }
 0x2a1   : > { %3732 = vrot.lane.b32.xlu2 %v3561_v43, %s8899_s27  ;;  %v3942_v46 = vrot.slane %v3940_v28, 4 }
 0x2a2   : > { %v3156_v37 = vpop.permute.xlu1 %3155  ;;  %v3690_v13 = vrot.slane %v3688_v59, 5  ;;  %v3947_v59 = vrot.slane %v3834_v15, 5 }
 0x2a3   : > { %3752 = vrot.lane.b32.xlu0 %v3681_v45, %s8899_s27  ;;  %3240 = vst.msk [vmem:[#allocation3 + $0x30] sm:$0xf] %vm3227_vm7, %v3156_v37  ;;  %v3170_v11 = vpop.permute.xlu2 %3169  ;;  %v3661_v45 = vor.u32 %v3660_v56, %v3656_v21  ;;  %v3944_v51 = vsel %vm9505_vm14, %v3942_v46, %v3943_v58  ;;  %v3833_v56 = vld [vmem:[#allocation2 + $0x48] sm:$0xe] }
 0x2a4   : > { %3247 = vst.msk [vmem:[#allocation3 + $0x4c] sm:$0xf] %vm3227_vm7, %v3170_v11  ;;  %v3691_v30 = vsel %vm9032_vm10, %v3686_v54, %v3690_v13  ;;  %v10537_v11 = vld [vmem:[#allocation2 + $0x64] sm:$0xf]  ;;  %v8541_v29 = vrot.slane %v3833_v56, 9 }
 0x2a5   : > { %v3172_v20 = vpop.permute.xlu0 %3171  ;;  %v3662_v18 = vrot.slane %v3661_v45, 4  ;;  %v8540_v45 = vrot.slane %v3830_v38, 9  ;;  %v3838_v13 = vld [vmem:[#allocation2 + $0x5c] sm:$0x1]  ;;  %v3848_v38 = vld [vmem:[#allocation2 + $0x84] sm:$0xe] }
 0x2a6   : > { %3248 = vst.msk [vmem:[#allocation3 + $0x50] sm:$0xf] %vm3227_vm7, %v3172_v20  ;;  %v3821_v20 = vld [vmem:[#allocation2 + $0x18] sm:$0xe]  ;;  %v3948_v54 = vsel %vm9505_vm14, %v8541_v29, %v3947_v59 }
 0x2a7   : > { %v3667_v52 = vsel %vm9032_vm10, %v3662_v18, %v3666_v4  ;;  %v8537_v10 = vrot.slane %v3821_v20, 9  ;;  %v3956_v18 = vrot.slane %v3954_v19, 4  ;;  %v3957_v4 = vrot.slane %v3838_v13, 5 }
 0x2a8   : > { %3742 = vrot.lane.b32.xlu1 %v3619_v27, %s8899_s27  ;;  %v3961_v27 = vrot.slane %v10537_v11, 5 }
 0x2a9   : > { %3738 = vrot.lane.b32.xlu2 %v3595_v33, %s8899_s27  ;;  %v3920_v60 = vsel %vm9505_vm14, %v8537_v10, %v3919_v31  ;;  %v3826_v33 = vld [vmem:[#allocation2 + $0x2c] sm:$0x1]  ;;  %v3928_v31 = vrot.slane %v3926_v47, 4  ;;  %v3958_v6 = vsel %vm9505_vm14, %v3956_v18, %v3957_v4 }
 0x2aa   : > { %v3162_v12 = vpop.permute.xlu1 %3161  ;;  %v3963_v34 = vrot.slane %v3961_v27, 4  ;;  %v3929_v49 = vrot.slane %v3826_v33, 5 }
 0x2ab   : > { %4031 = vrot.lane.b32.xlu0 %v3923_v7, %s8900_s29  ;;  %3243 = vst.msk [vmem:[#allocation3 + $0x3c] sm:$0xf] %vm3227_vm7, %v3162_v12  ;;  %v3176_v17 = vpop.permute.xlu2 %3175  ;;  %v3955_v7 = vsel %vm9505_vm14, %v8542_v53, %v3954_v19  ;;  %v3937_v12 = vsel %vm9505_vm14, %v3935_v50, %v3936_v39  ;;  %v3842_v53 = vld [vmem:[#allocation2 + $0x6c] sm:$0xe]  ;;  %v3968_v19 = vrot.slane %v3843_v3, 5  ;;  %v3978_v50 = vrot.slane %v3847_v48, 5 }
 0x2ac   : > { %3250 = vst.msk [vmem:[#allocation3 + $0x58] sm:$0xf] %vm3227_vm7, %v3176_v17  ;;  %v3965_v24 = vsel %vm9505_vm14, %v3963_v34, %v3964_v44  ;;  %v3930_v17 = vsel %vm9505_vm14, %v3928_v31, %v3929_v49  ;;  %v8544_v10 = vrot.slane %v3842_v53, 9  ;;  %v3844_v34 = vld [vmem:[#allocation2 + $0x74] sm:$0x1] }
 0x2ad   : > { %v3178_v23 = vpop.permute.xlu0 %3177  ;;  %v3971_v31 = vrot.slane %v3844_v34, 5  ;;  %v3858_v3 = vld [vmem:[#allocation2 + $0xac] sm:$0xf] }
 0x2ae   : > { %3251 = vst.msk [vmem:[#allocation3 + $0x5c] sm:$0xf] %vm3227_vm7, %v3178_v23 }
 0x2b0   : > { %3748 = vrot.lane.b32.xlu1 %v3657_v25, %s8899_s27  ;;  %v8545_v25 = vrot.slane %v3845_v8, 9 }
 0x2b1   : > { %3744 = vrot.lane.b32.xlu2 %v3633_v14, %s8899_s27 }
 0x2b2   : > { %v3168_v57 = vpop.permute.xlu1 %3167 }
 0x2b3   : > { %4037 = vrot.lane.b32.xlu0 %v3934_v41, %s8900_s29  ;;  %3246 = vst.msk [vmem:[#allocation3 + $0x48] sm:$0xf] %vm3227_vm7, %v3168_v57  ;;  %v3182_v43 = vpop.permute.xlu2 %3181  ;;  %v3846_v41 = vld [vmem:[#allocation2 + $0x7c] sm:$0xf]  ;;  %v3835_v57 = vld [vmem:[#allocation2 + $0x50] sm:$0x1] }
 0x2b4   : > { %3253 = vst.msk [vmem:[#allocation3 + $0x64] sm:$0xf] %vm3227_vm7, %v3182_v43  ;;  %v3975_v61 = vrot.slane %v3846_v41, 5  ;;  %v3950_v5 = vrot.slane %v3835_v57, 5  ;;  %v8546_v41 = vrot.slane %v3848_v38, 9 }
 0x2b5   : > { %v3184_v55 = vpop.permute.xlu0 %3183 }
 0x2b6   : > { %3254 = vst.msk [vmem:[#allocation3 + $0x68] sm:$0xf] %vm3227_vm7, %v3184_v55  ;;  %v3976_v58 = vsel %vm9505_vm14, %v8545_v25, %v3975_v61  ;;  %v3941_v55 = vsel %vm9505_vm14, %v8540_v45, %v3940_v28  ;;  %v3977_v44 = vrot.slane %v3975_v61, 4  ;;  %v3854_v61 = vld [vmem:[#allocation2 + $0x9c] sm:$0xe] }
 0x2b8   : > { %3754 = vrot.lane.b32.xlu1 %v3691_v30, %s8899_s27  ;;  %v3949_v30 = vrot.slane %v3947_v59, 4  ;;  %v3979_v11 = vsel %vm9505_vm14, %v3977_v44, %v3978_v50  ;;  %v3860_v50 = vld [vmem:[#allocation2 + $0xb4] sm:$0xe] }
 0x2b9   : > { %3750 = vrot.lane.b32.xlu2 %v3667_v52, %s8899_s27  ;;  %v3849_v52 = vld [vmem:[#allocation2 + $0x88] sm:$0xf] }
 0x2ba   : > { %v3174_v0 = vpop.permute.xlu1 %3173  ;;  %v3982_v28 = vrot.slane %v3849_v52, 5  ;;  %v3951_v47 = vsel %vm9505_vm14, %v3949_v30, %v3950_v5  ;;  %v3853_v30 = vld [vmem:[#allocation2 + $0x98] sm:$0x1] }
 0x2bb   : > { %4043 = vrot.lane.b32.xlu0 %v3944_v51, %s8900_s29  ;;  %3249 = vst.msk [vmem:[#allocation3 + $0x54] sm:$0xf] %vm3227_vm7, %v3174_v0  ;;  %v3188_v42 = vpop.permute.xlu2 %3187  ;;  %v3992_v52 = vrot.slane %v3853_v30, 5 }
 0x2bc   : > { %3256 = vst.msk [vmem:[#allocation3 + $0x70] sm:$0xf] %vm3227_vm7, %v3188_v42  ;;  %v3984_v20 = vrot.slane %v3982_v28, 4  ;;  %v3983_v29 = vsel %vm9505_vm14, %v8546_v41, %v3982_v28  ;;  %v3864_v41 = vld [vmem:[#allocation2 + $0xc4] sm:$0xf] }
 0x2bd   : > { %v3190_v37 = vpop.permute.xlu0 %3189 }
 0x2be   : > { %3257 = vst.msk [vmem:[#allocation3 + $0x74] sm:$0xf] %vm3227_vm7, %v3190_v37  ;;  %v3839_v37 = vld [vmem:[#allocation2 + $0x60] sm:$0xe]  ;;  %v3986_v0 = vsel %vm9505_vm14, %v3984_v20, %v3985_v62 }
 0x2c0   : > { %4033 = vrot.lane.b32.xlu1 %v3927_v2, %s8900_s29  ;;  %v8543_v2 = vrot.slane %v3839_v37, 9  ;;  %v4003_v37 = vrot.slane %v3858_v3, 5 }
 0x2c1   : > { %4029 = vrot.lane.b32.xlu2 %v3920_v60, %s8900_s29  ;;  %v3969_v60 = vsel %vm9505_vm14, %v8544_v10, %v3968_v19  ;;  %v3859_v10 = vld [vmem:[#allocation2 + $0xb0] sm:$0x1] }
 0x2c2   : > { %v3180_v23 = vpop.permute.xlu1 %3179  ;;  %v3962_v33 = vsel %vm9505_vm14, %v8543_v2, %v3961_v27 }
 0x2c3   : > { %4049 = vrot.lane.b32.xlu0 %v3955_v7, %s8900_s29  ;;  %3252 = vst.msk [vmem:[#allocation3 + $0x60] sm:$0xf] %vm3227_vm7, %v3180_v23  ;;  %v3194_v22 = vpop.permute.xlu2 %3193  ;;  %v3970_v23 = vrot.slane %v3968_v19, 4  ;;  %v4005_v19 = vrot.slane %v4003_v37, 4 }
 0x2c4   : > { %3259 = vst.msk [vmem:[#allocation3 + $0x7c] sm:$0xf] %vm3227_vm7, %v3194_v22  ;;  %v3851_v22 = vld [vmem:[#allocation2 + $0x90] sm:$0xe] }
 0x2c5   : > { %v3693_v21 = vpop.permute.xlu0 %3692  ;;  %v3972_v27 = vsel %vm9505_vm14, %v3970_v23, %v3971_v31  ;;  %v8547_v8 = vrot.slane %v3851_v22, 9  ;;  %v3857_v22 = vld [vmem:[#allocation2 + $0xa8] sm:$0xe] }
 0x2c6   : > { %3789 = vst.msk [vmem:[#allocation3] sm:$0xf] %vm3788_vm5, %v3693_v21 }
 0x2c8   : > { %4039 = vrot.lane.b32.xlu1 %v3937_v12, %s8900_s29 }
 0x2c9   : > { %4035 = vrot.lane.b32.xlu2 %v3930_v17, %s8900_s29 }
 0x2ca   : > { %v3186_v14 = vpop.permute.xlu1 %3185 }
 0x2cb   : > { %4055 = vrot.lane.b32.xlu0 %v3965_v24, %s8900_s29  ;;  %3255 = vst.msk [vmem:[#allocation3 + $0x6c] sm:$0xf] %vm3227_vm7, %v3186_v14  ;;  %v3697_v46 = vpop.permute.xlu2 %3696  ;;  %v3852_v24 = vld [vmem:[#allocation2 + $0x94] sm:$0xf]  ;;  %v3855_v14 = vld [vmem:[#allocation2 + $0xa0] sm:$0xf] }
 0x2cc   : > { %3791 = vst.msk [vmem:[#allocation3 + $0x8] sm:$0xf] %vm3788_vm5, %v3697_v46  ;;  %v3989_v56 = vrot.slane %v3852_v24, 5  ;;  %v3996_v46 = vrot.slane %v3855_v14, 5  ;;  %v8549_v24 = vrot.slane %v3857_v22, 9 }
 0x2cd   : > { %v3699_v40 = vpop.permute.xlu0 %3698 }
 0x2ce   : > { %3792 = vst.msk [vmem:[#allocation3 + $0xc] sm:$0xf] %vm3788_vm5, %v3699_v40  ;;  %v3990_v25 = vsel %vm9505_vm14, %v8547_v8, %v3989_v56  ;;  %v3998_v13 = vrot.slane %v3996_v46, 4  ;;  %v3991_v5 = vrot.slane %v3989_v56, 4  ;;  %v4004_v8 = vsel %vm9505_vm14, %v8549_v24, %v4003_v37  ;;  %v5000_v56 = vld [vmem:[#allocation2] sm:$0xf] }
 0x2d0   : > { %4045 = vrot.lane.b32.xlu1 %v3948_v54, %s8900_s29  ;;  %v3856_v54 = vld [vmem:[#allocation2 + $0xa4] sm:$0x1]  ;;  %v3993_v36 = vsel %vm9505_vm14, %v3991_v5, %v3992_v52 }
 0x2d1   : > { %4041 = vrot.lane.b32.xlu2 %v3941_v55, %s8900_s29  ;;  %v3999_v55 = vrot.slane %v3856_v54, 5 }
 0x2d2   : > { %v3192_v51 = vpop.permute.xlu1 %3191 }
 0x2d3   : > { %4061 = vrot.lane.b32.xlu0 %v3976_v58, %s8900_s29  ;;  %3258 = vst.msk [vmem:[#allocation3 + $0x78] sm:$0xf] %vm3227_vm7, %v3192_v51  ;;  %v3703_v32 = vpop.permute.xlu2 %3702  ;;  %v8548_v58 = vrot.slane %v3854_v61, 9  ;;  %v4000_v18 = vsel %vm9505_vm14, %v3998_v13, %v3999_v55  ;;  %v3865_v61 = vld [vmem:[#allocation2 + $0xc8] sm:$0x1] }
 0x2d4   : > { %3794 = vst.msk [vmem:[#allocation3 + $0x14] sm:$0xf] %vm3788_vm5, %v3703_v32  ;;  %v4194_v32 = vld [vmem:[%s12097_s1 + $0x10] sm:$0x3] }
 0x2d5   : > { %v3705_v43 = vpop.permute.xlu0 %3704  ;;  %v3997_v57 = vsel %vm9505_vm14, %v8548_v58, %v3996_v46  ;;  %v4284_v28 = vunpack.c.l.b16 %v4194_v32  ;;  %v4020_v46 = vrot.slane %v3865_v61, 5 }
 0x2d6   : > { %3795 = vst.msk [vmem:[#allocation3 + $0x18] sm:$0xf] %vm3788_vm5, %v3705_v43 }
 0x2d8   : > { %4051 = vrot.lane.b32.xlu1 %v3958_v6, %s8900_s29  ;;  %v4287_v6 = vpack.c.b16 %v4284_v28, %v4284_v28 }
 0x2d9   : > { %4047 = vrot.lane.b32.xlu2 %v3951_v47, %s8900_s29 }
 0x2da   : > { %v3695_v7 = vpop.permute.xlu1 %3694  ;;  %v4341_v62 = vsel %vm4339_vm8, %v4287_v6, 0 }
 0x2db   : > { %4067 = vrot.lane.b32.xlu0 %v3986_v0, %s8900_s29  ;;  %3790 = vst.msk [vmem:[#allocation3 + $0x4] sm:$0xf] %vm3788_vm5, %v3695_v7  ;;  %v3709_v26 = vpop.permute.xlu2 %3708  ;;  %4348 = vmatpush.bf16.msra.mxu0 %v4341_v62  ;;  %v8798_v0 = vld [vmem:[%s12097_s1 + $0x8] sm:$0xff]  ;;  %v8797_v7 = vld [vmem:[%s12097_s1] sm:$0xff] }
 0x2dc   : > { %3797 = vst.msk [vmem:[#allocation3 + $0x20] sm:$0xf] %vm3788_vm5, %v3709_v26  ;;  %8817 = vmatpush.bf16.msra.mxu2 %v4341_v62 }
 0x2dd   : > { %v3711_v42 = vpop.permute.xlu0 %3710 }
 0x2de   : > { %3798 = vst.msk [vmem:[#allocation3 + $0x24] sm:$0xf] %vm3788_vm5, %v3711_v42  ;;  %v4006_v42 = vrot.slane %v3859_v10, 5 }
 0x2df   : > { %4349 = vmatpush.bf16.msra.mxu0 %v8798_v0 }
 0x2e0   : > { %4057 = vrot.lane.b32.xlu1 %v3969_v60, %s8900_s29  ;;  %8818 = vmatpush.bf16.msra.mxu2 %v8798_v0  ;;  %v4007_v2 = vsel %vm9505_vm14, %v4005_v19, %v4006_v42 }
 0x2e1   : > { %4053 = vrot.lane.b32.xlu2 %v3962_v33, %s8900_s29 }
 0x2e2   : > { %v3701_v21 = vpop.permute.xlu1 %3700 }
 0x2e3   : > { %3793 = vst.msk [vmem:[#allocation3 + $0x10] sm:$0xf] %vm3788_vm5, %v3701_v21  ;;  %v3715_v49 = vpop.permute.xlu2 %3714  ;;  %4073 = vrot.lane.b32.xlu0 %v3997_v57, %s8900_s29  ;;  %4350 = vmatpush.bf16.msra.mxu0 %v8797_v7  ;;  %v8550_v21 = vrot.slane %v3860_v50, 9 }
 0x2e4   : > { %3800 = vst.msk [vmem:[#allocation3 + $0x2c] sm:$0xf] %vm3788_vm5, %v3715_v49  ;;  %8819 = vmatpush.bf16.msra.mxu2 %v8797_v7 }
 0x2e5   : > { %v3717_v39 = vpop.permute.xlu0 %3716 }
 0x2e6   : > { %3801 = vst.msk [vmem:[#allocation3 + $0x30] sm:$0xf] %vm3788_vm5, %v3717_v39  ;;  %v3861_v39 = vld [vmem:[#allocation2 + $0xb8] sm:$0xf] }
 0x2e7   : > { %v4010_v23 = vrot.slane %v3861_v39, 5 }
 0x2e8   : > { %4063 = vrot.lane.b32.xlu1 %v3979_v11, %s8900_s29 }
 0x2e9   : > { %4059 = vrot.lane.b32.xlu2 %v3972_v27, %s8900_s29  ;;  %v4011_v31 = vsel %vm9505_vm14, %v8550_v21, %v4010_v23 }
 0x2ea   : > { %v3707_v15 = vpop.permute.xlu1 %3706 }
 0x2eb   : > { %3796 = vst.msk [vmem:[#allocation3 + $0x1c] sm:$0xf] %vm3788_vm5, %v3707_v15  ;;  %v3721_v17 = vpop.permute.xlu2 %3720  ;;  %4079 = vrot.lane.b32.xlu0 %v4007_v2, %s8900_s29 }
 0x2ec   : > { %3803 = vst.msk [vmem:[#allocation3 + $0x38] sm:$0xf] %vm3788_vm5, %v3721_v17 }
 0x2ed   : > { %v3723_v12 = vpop.permute.xlu0 %3722 }
 0x2ee   : > { %3804 = vst.msk [vmem:[#allocation3 + $0x3c] sm:$0xf] %vm3788_vm5, %v3723_v12  ;;  %v5001_v12 = vld [vmem:[#allocation2 + $0x4] sm:$0xf] }
 0x2f0   : > { %4069 = vrot.lane.b32.xlu1 %v3990_v25, %s8900_s29 }
 0x2f1   : > { %4065 = vrot.lane.b32.xlu2 %v3983_v29, %s8900_s29 }
 0x2f2   : > { %v3713_v40 = vpop.permute.xlu1 %3712 }
 0x2f3   : > { %3799 = vst.msk [vmem:[#allocation3 + $0x28] sm:$0xf] %vm3788_vm5, %v3713_v40  ;;  %v3727_v45 = vpop.permute.xlu2 %3726 }
 0x2f4   : > { %3806 = vst.msk [vmem:[#allocation3 + $0x44] sm:$0xf] %vm3788_vm5, %v3727_v45  ;;  %v4017_v45 = vrot.slane %v3864_v41, 5 }
 0x2f5   : > { %v3729_v59 = vpop.permute.xlu0 %3728 }
 0x2f6   : > { %3807 = vst.msk [vmem:[#allocation3 + $0x48] sm:$0xf] %vm3788_vm5, %v3729_v59  ;;  %v3863_v59 = vld [vmem:[#allocation2 + $0xc0] sm:$0xe]  ;;  %v4019_v54 = vrot.slane %v4017_v45, 4 }
 0x2f7   : > { %v8551_v14 = vrot.slane %v3863_v59, 9 }
 0x2f8   : > { %4075 = vrot.lane.b32.xlu1 %v4000_v18, %s8900_s29  ;;  %v4021_v13 = vsel %vm9505_vm14, %v4019_v54, %v4020_v46 }
 0x2f9   : > { %4071 = vrot.lane.b32.xlu2 %v3993_v36, %s8900_s29  ;;  %v4018_v58 = vsel %vm9505_vm14, %v8551_v14, %v4017_v45 }
 0x2fa   : > { %v3719_v43 = vpop.permute.xlu1 %3718  ;;  %4085 = vrot.lane.b32.xlu0 %v4018_v58, %s8900_s29  ;;  %v5065_v58 = vld [vmem:[#allocation2 + $0x4] sm:$0xf] }
 0x2fb   : > { %3802 = vst.msk [vmem:[#allocation3 + $0x34] sm:$0xf] %vm3788_vm5, %v3719_v43  ;;  %v3733_v51 = vpop.permute.xlu2 %3732  ;;  %v4012_v43 = vrot.slane %v4010_v23, 4 }
 0x2fc   : > { %3809 = vst.msk [vmem:[#allocation3 + $0x50] sm:$0xf] %vm3788_vm5, %v3733_v51 }
 0x2fd   : > { %v3735_v4 = vpop.permute.xlu0 %3734 }
 0x2fe   : > { %3810 = vst.msk [vmem:[#allocation3 + $0x54] sm:$0xf] %vm3788_vm5, %v3735_v4  ;;  %v3862_v4 = vld [vmem:[#allocation2 + $0xbc] sm:$0x1] }
 0x2ff   : > { %v4013_v51 = vrot.slane %v3862_v4, 5 }
 0x300   : > { %4081 = vrot.lane.b32.xlu1 %v4011_v31, %s8900_s29 }
 0x301   : > { %4077 = vrot.lane.b32.xlu2 %v4004_v8, %s8900_s29  ;;  %v4014_v30 = vsel %vm9505_vm14, %v4012_v43, %v4013_v51 }
 0x302   : > { %v3725_v53 = vpop.permute.xlu1 %3724 }
 0x303   : > { %3805 = vst.msk [vmem:[#allocation3 + $0x40] sm:$0xf] %vm3788_vm5, %v3725_v53  ;;  %v3739_v47 = vpop.permute.xlu2 %3738 }
 0x304   : > { %3812 = vst.msk [vmem:[#allocation3 + $0x5c] sm:$0xf] %vm3788_vm5, %v3739_v47 }
 0x305   : > { %v3741_v20 = vpop.permute.xlu0 %3740 }
 0x306   : > { %3813 = vst.msk [vmem:[#allocation3 + $0x60] sm:$0xf] %vm3788_vm5, %v3741_v20 }
 0x308   : > { %4087 = vrot.lane.b32.xlu1 %v4021_v13, %s8900_s29 }
 0x309   : > { %4083 = vrot.lane.b32.xlu2 %v4014_v30, %s8900_s29 }
 0x30a   : > { %v3731_v60 = vpop.permute.xlu1 %3730 }
 0x30b   : > { %3808 = vst.msk [vmem:[#allocation3 + $0x4c] sm:$0xf] %vm3788_vm5, %v3731_v60  ;;  %v3745_v48 = vpop.permute.xlu2 %3744 }
 0x30c   : > { %3815 = vst.msk [vmem:[#allocation3 + $0x68] sm:$0xf] %vm3788_vm5, %v3745_v48 }
 0x30d   : > { %v3747_v26 = vpop.permute.xlu0 %3746 }
 0x30e   : > { %3816 = vst.msk [vmem:[#allocation3 + $0x6c] sm:$0xf] %vm3788_vm5, %v3747_v26 }
 0x312   : > { %v3737_v34 = vpop.permute.xlu1 %3736 }
 0x313   : > { %3811 = vst.msk [vmem:[#allocation3 + $0x58] sm:$0xf] %vm3788_vm5, %v3737_v34  ;;  %v3751_v44 = vpop.permute.xlu2 %3750 }
 0x314   : > { %3818 = vst.msk [vmem:[#allocation3 + $0x74] sm:$0xf] %vm3788_vm5, %v3751_v44 }
 0x315   : > { %v3753_v33 = vpop.permute.xlu0 %3752 }
 0x316   : > { %3819 = vst.msk [vmem:[#allocation3 + $0x78] sm:$0xf] %vm3788_vm5, %v3753_v33 }
 0x31a   : > { %v3743_v11 = vpop.permute.xlu1 %3742 }
 0x31b   : > { %3814 = vst.msk [vmem:[#allocation3 + $0x64] sm:$0xf] %vm3788_vm5, %v3743_v11  ;;  %v4030_v27 = vpop.permute.xlu2 %4029 }
 0x31c   : > { %4126 = vst.msk [vmem:[#allocation3] sm:$0xf] %vm4125_vm12, %v4030_v27 }
 0x31d   : > { %v4032_v49 = vpop.permute.xlu0 %4031 }
 0x31e   : > { %4127 = vst.msk [vmem:[#allocation3 + $0x4] sm:$0xf] %vm4125_vm12, %v4032_v49 }
 0x322   : > { %v3749_v38 = vpop.permute.xlu1 %3748 }
 0x323   : > { %v8555_v25 = vld [vmem:[#allocation3] sm:$0xf]  ;;  %3817 = vst.msk [vmem:[#allocation3 + $0x70] sm:$0xf] %vm3788_vm5, %v3749_v38  ;;  %v4036_v29 = vpop.permute.xlu2 %4035  ;;  %v10731_v38 = vld [vmem:[%s12102_s6] ss:$0 sm:$0xff] }
 0x324   : > { %5032 = vst.msk [vmem:[#allocation3] sm:$0xf] %vm416_vm0, %v5000_v56  ;;  %v10726_v56 = vld [vmem:[%s12101_s5] ss:$0 sm:$0xff] }
 0x325   : > { %v8781_v15 = vld [vmem:[#allocation3] sm:$0xf0]  ;;  %v4038_v17 = vpop.permute.xlu0 %4037  ;;  %4129 = vst.msk [vmem:[#allocation3 + $0xc] sm:$0xf] %vm4125_vm12, %v4036_v29 }
 0x326   : > { %5033 = vst.msk [vmem:[#allocation3 + $0x4] sm:$0xf] %vm416_vm0, %v5001_v12  ;;  %v8556_v40 = vor.u32 %v8781_v15, %v8555_v25  ;;  %v3867_v15 = vld [vmem:[#allocation2 + $0xd0] sm:$0xf] }
 0x327   : > { %4130 = vst.msk [vmem:[#allocation3 + $0x10] sm:$0xf] %vm4125_vm12, %v4038_v17  ;;  %v5064_v17 = vld [vmem:[#allocation2] sm:$0xf]  ;;  %v4024_v41 = vrot.slane %v3867_v15, 5 }
 0x328   : > { %8625 = vmatmul.msk.bf16.vlgmr.msra.gmra.mxu0 %vm4290_vm13, %v8556_v40  ;;  %v5113_v25 = vshrl.u32 %v5064_v17, 16  ;;  %v5116_v29 = vshll.u32 %v5064_v17, 16  ;;  %v3868_v40 = vld [vmem:[#allocation2 + $0xd4] sm:$0x1] }
 0x329   : > { %v4026_v45 = vrot.slane %v4024_v41, 4  ;;  %v4027_v61 = vrot.slane %v3868_v40, 5 }
 0x32a   : > { %v3755_v57 = vpop.permute.xlu1 %3754  ;;  %v5115_v46 = vrot.slane %v5113_v25, 4  ;;  %v5118_v54 = vrot.slane %v5116_v29, 5 }
 0x32b   : > { %3820 = vst.msk [vmem:[#allocation3 + $0x7c] sm:$0xf] %vm3788_vm5, %v3755_v57  ;;  %v4042_v18 = vpop.permute.xlu2 %4041  ;;  %v5122_v57 = vshll.u32 %v5065_v58, 16 }
 0x32c   : > { %4132 = vst.msk [vmem:[#allocation3 + $0x18] sm:$0xf] %vm4125_vm12, %v4042_v18  ;;  %v5119_v18 = vor.u32 %v5118_v54, %v5115_v46 }
 0x32d   : > { %v4044_v55 = vpop.permute.xlu0 %4043  ;;  %v5124_v43 = vrot.slane %v5122_v57, 5 }
 0x32e   : > { %4133 = vst.msk [vmem:[#allocation3 + $0x1c] sm:$0xf] %vm4125_vm12, %v4044_v55  ;;  %v4028_v55 = vsel %vm9505_vm14, %v4026_v45, %v4027_v61  ;;  %v5120_v51 = vrot.slane %v5119_v18, 4 }
 0x32f   : > { %4091 = vrot.lane.b32.xlu0 %v4028_v55, %s8900_s29 }
 0x332   : > { %v4034_v52 = vpop.permute.xlu1 %4033 }
 0x333   : > { %4128 = vst.msk [vmem:[#allocation3 + $0x8] sm:$0xf] %vm4125_vm12, %v4034_v52  ;;  %v4048_v32 = vpop.permute.xlu2 %4047  ;;  %v5125_v52 = vsel %vm9032_vm10, %v5120_v51, %v5124_v43 }
 0x334   : > { %4135 = vst.msk [vmem:[#allocation3 + $0x24] sm:$0xf] %vm4125_vm12, %v4048_v32  ;;  %v3866_v32 = vld [vmem:[#allocation2 + $0xcc] sm:$0xe]  ;;  %5496 = vrot.lane.b32.xlu1 %v5125_v52, %s8893_s11  ;;  %v4895_v52 = vld [vmem:[#allocation2 + $0x18] sm:$0xf] }
 0x335   : > { %v4050_v5 = vpop.permute.xlu0 %4049  ;;  %v8784_v2 = vld [vmem:[#allocation3 + $0x18] sm:$0xff] }
 0x336   : > { %4136 = vst.msk [vmem:[#allocation3 + $0x28] sm:$0xf] %vm4125_vm12, %v4050_v5 }
 0x33a   : > { %v4040_v36 = vpop.permute.xlu1 %4039  ;;  %v8782_v6 = vld [vmem:[#allocation3 + $0x8] sm:$0xff] }
 0x33b   : > { %4131 = vst.msk [vmem:[#allocation3 + $0x14] sm:$0xf] %vm4125_vm12, %v4040_v36  ;;  %v4054_v20 = vpop.permute.xlu2 %4053  ;;  %8626 = vmatmul.msk.bf16.gmra.mxu0 %vm4290_vm13, %v8782_v6 }
 0x33c   : > { %4138 = vst.msk [vmem:[#allocation3 + $0x30] sm:$0xf] %vm4125_vm12, %v4054_v20  ;;  %v8552_v20 = vrot.slane %v3866_v32, 9 }
 0x33d   : > { %v4056_v28 = vpop.permute.xlu0 %4055 }
 0x33e   : > { %4139 = vst.msk [vmem:[#allocation3 + $0x34] sm:$0xf] %vm4125_vm12, %v4056_v28 }
 0x342   : > { %v4046_v53 = vpop.permute.xlu1 %4045  ;;  %v8783_v37 = vld [vmem:[#allocation3 + $0x10] sm:$0xff] }
 0x343   : > { %4134 = vst.msk [vmem:[#allocation3 + $0x20] sm:$0xf] %vm4125_vm12, %v4046_v53  ;;  %v4060_v3 = vpop.permute.xlu2 %4059 }
 0x344   : > { %4141 = vst.msk [vmem:[#allocation3 + $0x3c] sm:$0xf] %vm4125_vm12, %v4060_v3  ;;  %v5126_v3 = vshrl.u32 %v5065_v58, 16 }
 0x345   : > { %v4062_v62 = vpop.permute.xlu0 %4061  ;;  %v8787_v31 = vld [vmem:[#allocation3 + $0x30] sm:$0xff] }
 0x346   : > { %4142 = vst.msk [vmem:[#allocation3 + $0x40] sm:$0xf] %vm4125_vm12, %v4062_v62 }
 0x34a   : > { %v4052_v47 = vpop.permute.xlu1 %4051  ;;  %v8785_v33 = vld [vmem:[#allocation3 + $0x20] sm:$0xff] }
 0x34b   : > { %4137 = vst.msk [vmem:[#allocation3 + $0x2c] sm:$0xf] %vm4125_vm12, %v4052_v47  ;;  %v4066_v10 = vpop.permute.xlu2 %4065  ;;  %8627 = vmatmul.msk.bf16.gmra.mxu0 %vm4290_vm13, %v8783_v37  ;;  %v4025_v47 = vsel %vm9505_vm14, %v8552_v20, %v4024_v41  ;;  %v4888_v37 = vld [vmem:[#allocation2 + $0xc] sm:$0xf] }
 0x34c   : > { %4144 = vst.msk [vmem:[#allocation3 + $0x48] sm:$0xf] %vm4125_vm12, %v4066_v10  ;;  %4089 = vrot.lane.b32.xlu2 %v4025_v47, %s8900_s29 }
 0x34d   : > { %v4068_v0 = vpop.permute.xlu0 %4067 }
 0x34e   : > { %4145 = vst.msk [vmem:[#allocation3 + $0x4c] sm:$0xf] %vm4125_vm12, %v4068_v0 }
 0x352   : > { %v4058_v19 = vpop.permute.xlu1 %4057  ;;  %v8786_v50 = vld [vmem:[#allocation3 + $0x28] sm:$0xff] }
 0x353   : > { %4140 = vst.msk [vmem:[#allocation3 + $0x38] sm:$0xf] %vm4125_vm12, %v4058_v19  ;;  %v4072_v42 = vpop.permute.xlu2 %4071 }
 0x354   : > { %4147 = vst.msk [vmem:[#allocation3 + $0x54] sm:$0xf] %vm4125_vm12, %v4072_v42  ;;  %v5128_v42 = vrot.slane %v5126_v3, 4 }
 0x355   : > { %v4074_v48 = vpop.permute.xlu0 %4073  ;;  %v8790_v44 = vld [vmem:[#allocation3 + $0x48] sm:$0xff] }
 0x356   : > { %4148 = vst.msk [vmem:[#allocation3 + $0x58] sm:$0xf] %vm4125_vm12, %v4074_v48 }
 0x35a   : > { %v4064_v7 = vpop.permute.xlu1 %4063  ;;  %v8788_v22 = vld [vmem:[#allocation3 + $0x38] sm:$0xff] }
 0x35b   : > { %4143 = vst.msk [vmem:[#allocation3 + $0x44] sm:$0xf] %vm4125_vm12, %v4064_v7  ;;  %8628 = vmatmul.msk.bf16.gmra.mxu0 %vm4290_vm13, %v8784_v2  ;;  %v4078_v39 = vpop.permute.xlu2 %4077  ;;  %v5066_v7 = vld [vmem:[#allocation2 + $0x8] sm:$0x1] }
 0x35c   : > { %4150 = vst.msk [vmem:[#allocation3 + $0x60] sm:$0xf] %vm4125_vm12, %v4078_v39  ;;  %v5132_v48 = vshll.u32 %v5066_v7, 16 }
 0x35d   : > { %v4080_v21 = vpop.permute.xlu0 %4079 }
 0x35e   : > { %4151 = vst.msk [vmem:[#allocation3 + $0x64] sm:$0xf] %vm4125_vm12, %v4080_v21 }
 0x362   : > { %v8789_v26 = vld [vmem:[#allocation3 + $0x40] sm:$0xff]  ;;  %v4070_v60 = vpop.permute.xlu1 %4069 }
 0x363   : > { %4146 = vst.msk [vmem:[#allocation3 + $0x50] sm:$0xf] %vm4125_vm12, %v4070_v60  ;;  %8633 = vmatmul.msk.bf16.vlgmr.msra.gmra.mxu2 %vm4290_vm13, %v8789_v26  ;;  %v4084_v49 = vpop.permute.xlu2 %4083  ;;  %v5129_v60 = vor.u32 %v5128_v42, %v5124_v43 }
 0x364   : > { %4153 = vst.msk [vmem:[#allocation3 + $0x6c] sm:$0xf] %vm4125_vm12, %v4084_v49 }
 0x365   : > { %v8793_v8 = vld [vmem:[#allocation3 + $0x60] sm:$0xff] }
 0x36a   : > { %v4076_v34 = vpop.permute.xlu1 %4075  ;;  %v8791_v23 = vld [vmem:[#allocation3 + $0x50] sm:$0xff] }
 0x36b   : > { %4149 = vst.msk [vmem:[#allocation3 + $0x5c] sm:$0xf] %vm4125_vm12, %v4076_v34  ;;  %8629 = vmatmul.msk.bf16.gmra.mxu0 %vm4290_vm13, %v8785_v33 }
 0x36c   : > { %v4086_v24 = vpop.permute.xlu0 %4085 }
 0x36d   : > { %4154 = vst.msk [vmem:[#allocation3 + $0x70] sm:$0xf] %vm4125_vm12, %v4086_v24 }
 0x372   : > { %v4082_v11 = vpop.permute.xlu1 %4081  ;;  %v8792_v27 = vld [vmem:[#allocation3 + $0x58] sm:$0xff] }
 0x373   : > { %8634 = vmatmul.msk.bf16.gmra.mxu2 %vm4290_vm13, %v8790_v44  ;;  %4152 = vst.msk [vmem:[#allocation3 + $0x68] sm:$0xf] %vm4125_vm12, %v4082_v11  ;;  %v5130_v44 = vrot.slane %v5129_v60, 4 }
 0x37a   : > { %v4088_v12 = vpop.permute.xlu1 %4087  ;;  %v8794_v19 = vld [vmem:[#allocation3 + $0x68] sm:$0xff] }
 0x37b   : > { %8630 = vmatmul.msk.bf16.gmra.mxu0 %vm4290_vm13, %v8786_v50  ;;  %4155 = vst.msk [vmem:[#allocation3 + $0x74] sm:$0xf] %vm4125_vm12, %v4088_v12  ;;  %v5134_v50 = vrot.slane %v5132_v48, 5  ;;  %v4899_v48 = vld [vmem:[#allocation2 + $0x20] sm:$0x1] }
 0x382   : > { %v8795_v61 = vld [vmem:[#allocation3 + $0x70] sm:$0xff] }
 0x383   : > { %8635 = vmatmul.msk.bf16.gmra.mxu2 %vm4290_vm13, %v8791_v23  ;;  %v5135_v23 = vsel %vm9032_vm10, %v5130_v44, %v5134_v50 }
 0x384   : > { %5498 = vrot.lane.b32.xlu2 %v5135_v23, %s8893_s11 }
 0x38b   : > { %8631 = vmatmul.msk.bf16.gmra.mxu0 %vm4290_vm13, %v8787_v31  ;;  %v4892_v31 = vld [vmem:[#allocation2 + $0x14] sm:$0x1] }
 0x393   : > { %8636 = vmatmul.msk.bf16.gmra.mxu2 %vm4290_vm13, %v8792_v27 }
 0x39b   : > { %8632 = vmatmul.msk.bf16.gmra.mxu0 %vm4290_vm13, %v8788_v22 }
 0x3a3   : > { %8637 = vmatmul.msk.bf16.gmra.mxu2 %vm4290_vm13, %v8793_v8 }
 0x3a5   : > { %v4352_v59 = vpop.f32.mrf.mxu0 }
 0x3a6   : > { %v4436_v14 = vmul.f32 %v10726_v56, %v4352_v59 }
 0x3a8   : > { %v4472_v13 = vadd.f32 %v10731_v38, %v4436_v14 }
 0x3aa   : > { %v4504_v4 = vmax.f32 %v4472_v13, 0.0 }
 0x3ac   : > { %v4536_v30 = vpack.c.bf16 %v4504_v4, %v4504_v4 }
 0x3ad   : > { %v4354_v5 = vpop.f32.mrf.mxu0 }
 0x3ae   : > { %v4569_v28 = vshrl.u32 %v4536_v30, 16  ;;  %v4572_v36 = vshll.u32 %v4536_v30, 16  ;;  %v4437_v6 = vmul.f32 %v10726_v56, %v4354_v5 }
 0x3b0   : > { %v4571_v62 = vrot.slane %v4569_v28, 7  ;;  %v4473_v53 = vadd.f32 %v10731_v38, %v4437_v6 }
 0x3b2   : > { %v4574_v0 = vor.u32 %v4572_v36, %v4571_v62  ;;  %v4505_v10 = vmax.f32 %v4473_v53, 0.0  ;;  %v4575_v39 = vrot.slane %v4571_v62, 4 }
 0x3b3   : > { %8638 = vmatmul.msk.bf16.gmra.mxu2 %vm4290_vm13, %v8794_v19 }
 0x3b4   : > { %v4889_v2 = vsel %vm9026_vm9, %v4574_v0, %v4888_v37  ;;  %v4537_v26 = vpack.c.bf16 %v4505_v10, %v4505_v10 }
 0x3b5   : > { %4890 = vst [vmem:[#allocation2 + $0xc] sm:$0xf] %v4889_v2 }
 0x3b6   : > { %v4577_v33 = vshrl.u32 %v4537_v26, 16  ;;  %v4580_v34 = vshll.u32 %v4537_v26, 16 }
 0x3b8   : > { %v4579_v21 = vrot.slane %v4577_v33, 7  ;;  %v4357_v27 = vpop.f32.mrf.mxu0 }
 0x3b9   : > { %v4438_v12 = vmul.f32 %v10726_v56, %v4357_v27 }
 0x3ba   : > { %v4582_v49 = vor.u32 %v4580_v34, %v4579_v21  ;;  %v4584_v11 = vrot.slane %v4579_v21, 4 }
 0x3bb   : > { %v4474_v25 = vadd.f32 %v10731_v38, %v4438_v12 }
 0x3bc   : > { %v4583_v22 = vsel %vm9040_vm11, %v4575_v39, %v4582_v49  ;;  %v4893_v24 = vsel %vm8953_vm3, %v4584_v11, %v4892_v31  ;;  %v5067_v8 = vld [vmem:[#allocation2 + $0xc] sm:$0xf] }
 0x3bd   : > { %v5002_v15 = vld [vmem:[#allocation2 + $0xc] sm:$0xf]  ;;  %4891 = vst.msk [vmem:[#allocation2 + $0x10] sm:$0xf] %vm416_vm0, %v4583_v22  ;;  %v5137_v17 = vshrl.u32 %v5067_v8, 16  ;;  %v5140_v41 = vshll.u32 %v5067_v8, 16 }
 0x3be   : > { %4894 = vst [vmem:[#allocation2 + $0x14] sm:$0x1] %v4893_v24  ;;  %v4506_v40 = vmax.f32 %v4474_v25, 0.0 }
 0x3bf   : > { %v5139_v29 = vrot.slane %v5137_v17, 4  ;;  %v5142_v59 = vrot.slane %v5140_v41, 5  ;;  %5034 = vst.msk [vmem:[#allocation3 + $0x8] sm:$0xf] %vm416_vm0, %v5002_v15 }
 0x3c0   : > { %v4538_v45 = vpack.c.bf16 %v4506_v40, %v4506_v40  ;;  %v4359_v46 = vpop.f32.mrf.mxu0 }
 0x3c1   : > { %v5143_v14 = vor.u32 %v5142_v59, %v5139_v29  ;;  %v4439_v54 = vmul.f32 %v10726_v56, %v4359_v46  ;;  %v4902_v29 = vld [vmem:[#allocation2 + $0x24] sm:$0xf] }
 0x3c2   : > { %v4586_v58 = vshrl.u32 %v4538_v45, 16  ;;  %v4589_v30 = vshll.u32 %v4538_v45, 16 }
 0x3c3   : > { %v5144_v55 = vrot.slane %v5143_v14, 4  ;;  %v4475_v5 = vadd.f32 %v10731_v38, %v4439_v54  ;;  %8639 = vmatmul.msk.bf16.gmra.mxu2 %vm4290_vm13, %v8795_v61 }
 0x3c4   : > { %v5068_v13 = vld [vmem:[#allocation2 + $0x10] sm:$0xf]  ;;  %v4588_v51 = vrot.slane %v4586_v58, 7 }
 0x3c5   : > { %v5003_v57 = vld [vmem:[#allocation2 + $0x10] sm:$0xf]  ;;  %v5146_v18 = vshll.u32 %v5068_v13, 16  ;;  %v5150_v4 = vshrl.u32 %v5068_v13, 16  ;;  %v5069_v43 = vld [vmem:[#allocation2 + $0x14] sm:$0x1] }
 0x3c6   : > { %5035 = vst.msk [vmem:[#allocation3 + $0xc] sm:$0xf] %vm416_vm0, %v5003_v57  ;;  %v5156_v36 = vshll.u32 %v5069_v43, 16  ;;  %v4591_v6 = vor.u32 %v4589_v30, %v4588_v51  ;;  %v4507_v20 = vmax.f32 %v4475_v5, 0.0  ;;  %v4592_v33 = vrot.slane %v4588_v51, 4 }
 0x3c7   : > { %v5148_v32 = vrot.slane %v5146_v18, 5  ;;  %v5152_v28 = vrot.slane %v5150_v4, 4 }
 0x3c8   : > { %v4896_v3 = vsel %vm9026_vm9, %v4591_v6, %v4895_v52  ;;  %v4539_v47 = vpack.c.bf16 %v4507_v20, %v4507_v20  ;;  %v4362_v37 = vpop.f32.mrf.mxu0  ;;  %v5158_v10 = vrot.slane %v5156_v36, 5 }
 0x3c9   : > { %v5149_v62 = vsel %vm9032_vm10, %v5144_v55, %v5148_v32  ;;  %v5153_v53 = vor.u32 %v5152_v28, %v5148_v32  ;;  %4897 = vst [vmem:[#allocation2 + $0x18] sm:$0xf] %v4896_v3  ;;  %v4440_v42 = vmul.f32 %v10726_v56, %v4362_v37  ;;  %v4906_v28 = vld [vmem:[#allocation2 + $0x2c] sm:$0x1] }
 0x3ca   : > { %5500 = vrot.lane.b32.xlu0 %v5149_v62, %s8893_s11  ;;  %v4594_v19 = vshrl.u32 %v4539_v47, 16  ;;  %v4597_v26 = vshll.u32 %v4539_v47, 16 }
 0x3cb   : > { %v5154_v0 = vrot.slane %v5153_v53, 4  ;;  %v4476_v60 = vadd.f32 %v10731_v38, %v4440_v42 }
 0x3cc   : > { %v4596_v2 = vrot.slane %v4594_v19, 7 }
 0x3cd   : > { %v5159_v7 = vsel %vm9032_vm10, %v5154_v0, %v5158_v10  ;;  %v4508_v50 = vmax.f32 %v4476_v60, 0.0 }
 0x3ce   : > { %5502 = vrot.lane.b32.xlu1 %v5159_v7, %s8893_s11  ;;  %v4599_v34 = vor.u32 %v4597_v26, %v4596_v2  ;;  %v4601_v44 = vrot.slane %v4596_v2, 4 }
 0x3cf   : > { %v4540_v23 = vpack.c.bf16 %v4508_v50, %v4508_v50 }
 0x3d0   : > { %v4600_v39 = vsel %vm9040_vm11, %v4592_v33, %v4599_v34  ;;  %v4900_v21 = vsel %vm8953_vm3, %v4601_v44, %v4899_v48  ;;  %v5070_v31 = vld [vmem:[#allocation2 + $0x18] sm:$0xf]  ;;  %v4364_v11 = vpop.f32.mrf.mxu0 }
 0x3d1   : > { %v5004_v49 = vld [vmem:[#allocation2 + $0x18] sm:$0xf]  ;;  %4898 = vst.msk [vmem:[#allocation2 + $0x1c] sm:$0xf] %vm416_vm0, %v4600_v39  ;;  %v5161_v27 = vshrl.u32 %v5070_v31, 16  ;;  %v5164_v22 = vshll.u32 %v5070_v31, 16  ;;  %v4441_v12 = vmul.f32 %v10726_v56, %v4364_v11 }
 0x3d2   : > { %4901 = vst [vmem:[#allocation2 + $0x20] sm:$0x1] %v4900_v21  ;;  %v4603_v24 = vshrl.u32 %v4540_v23, 16  ;;  %v4606_v41 = vshll.u32 %v4540_v23, 16  ;;  %v4909_v23 = vld [vmem:[#allocation2 + $0x30] sm:$0xf] }
 0x3d3   : > { %v5163_v8 = vrot.slane %v5161_v27, 4  ;;  %v5166_v15 = vrot.slane %v5164_v22, 5  ;;  %5036 = vst.msk [vmem:[#allocation3 + $0x10] sm:$0xf] %vm416_vm0, %v5004_v49  ;;  %v4477_v25 = vadd.f32 %v10731_v38, %v4441_v12 }
 0x3d4   : > { %v4605_v17 = vrot.slane %v4603_v24, 7 }
 0x3d5   : > { %v4509_v40 = vmax.f32 %v4477_v25, 0.0  ;;  %v5167_v14 = vor.u32 %v5166_v15, %v5163_v8 }
 0x3d6   : > { %v4608_v59 = vor.u32 %v4606_v41, %v4605_v17  ;;  %v4609_v20 = vrot.slane %v4605_v17, 4 }
 0x3d7   : > { %v4541_v61 = vpack.c.bf16 %v4509_v40, %v4509_v40  ;;  %v5168_v4 = vrot.slane %v5167_v14, 4 }
 0x3d8   : > { %v4903_v45 = vsel %vm9026_vm9, %v4608_v59, %v4902_v29  ;;  %v5071_v46 = vld [vmem:[#allocation2 + $0x1c] sm:$0xf]  ;;  %v4367_v58 = vpop.f32.mrf.mxu0 }
 0x3d9   : > { %4904 = vst [vmem:[#allocation2 + $0x24] sm:$0xf] %v4903_v45  ;;  %v5170_v54 = vshll.u32 %v5071_v46, 16  ;;  %v5174_v13 = vshrl.u32 %v5071_v46, 16  ;;  %v5072_v55 = vld [vmem:[#allocation2 + $0x20] sm:$0x1]  ;;  %v4442_v18 = vmul.f32 %v10726_v56, %v4367_v58 }
 0x3da   : > { %v4611_v57 = vshrl.u32 %v4541_v61, 16  ;;  %v5180_v30 = vshll.u32 %v5072_v55, 16  ;;  %v4614_v52 = vshll.u32 %v4541_v61, 16  ;;  %v5005_v22 = vld [vmem:[#allocation2 + $0x1c] sm:$0xf] }
 0x3db   : > { %v5172_v43 = vrot.slane %v5170_v54, 5  ;;  %v5176_v51 = vrot.slane %v5174_v13, 4  ;;  %v4478_v32 = vadd.f32 %v10731_v38, %v4442_v18  ;;  %5037 = vst.msk [vmem:[#allocation3 + $0x14] sm:$0xf] %vm416_vm0, %v5005_v22 }
 0x3dc   : > { %v4613_v5 = vrot.slane %v4611_v57, 7  ;;  %v5182_v37 = vrot.slane %v5180_v30, 5 }
 0x3dd   : > { %v5173_v36 = vsel %vm9032_vm10, %v5168_v4, %v5172_v43  ;;  %v5177_v6 = vor.u32 %v5176_v51, %v5172_v43  ;;  %v4510_v3 = vmax.f32 %v4478_v32, 0.0  ;;  %v4913_v4 = vld [vmem:[#allocation2 + $0x38] sm:$0x1] }
 0x3de   : > { %v4616_v62 = vor.u32 %v4614_v52, %v4613_v5  ;;  %v4618_v53 = vrot.slane %v4613_v5, 4  ;;  %5504 = vrot.lane.b32.xlu2 %v5173_v36, %s8893_s11 }
 0x3df   : > { %v5178_v47 = vrot.slane %v5177_v6, 4  ;;  %v4542_v19 = vpack.c.bf16 %v4510_v3, %v4510_v3 }
 0x3e0   : > { %v4617_v0 = vsel %vm9040_vm11, %v4609_v20, %v4616_v62  ;;  %v4907_v10 = vsel %vm8953_vm3, %v4618_v53, %v4906_v28  ;;  %v5073_v42 = vld [vmem:[#allocation2 + $0x24] sm:$0xf]  ;;  %v4369_v7 = vpop.f32.mrf.mxu0 }
 0x3e1   : > { %4905 = vst.msk [vmem:[#allocation2 + $0x28] sm:$0xf] %vm416_vm0, %v4617_v0  ;;  %v5183_v2 = vsel %vm9032_vm10, %v5178_v47, %v5182_v37  ;;  %v5185_v26 = vshrl.u32 %v5073_v42, 16  ;;  %v5188_v60 = vshll.u32 %v5073_v42, 16  ;;  %v4620_v48 = vshrl.u32 %v4542_v19, 16 }
 0x3e2   : > { %4908 = vst [vmem:[#allocation2 + $0x2c] sm:$0x1] %v4907_v10  ;;  %v4443_v33 = vmul.f32 %v10726_v56, %v4369_v7  ;;  %5506 = vrot.lane.b32.xlu0 %v5183_v2, %s8893_s11  ;;  %v4623_v39 = vshll.u32 %v4542_v19, 16  ;;  %v5006_v20 = vld [vmem:[#allocation2 + $0x24] sm:$0xf] }
 0x3e3   : > { %v5187_v34 = vrot.slane %v5185_v26, 4  ;;  %v5190_v44 = vrot.slane %v5188_v60, 5  ;;  %v4622_v50 = vrot.slane %v4620_v48, 7  ;;  %5038 = vst.msk [vmem:[#allocation3 + $0x18] sm:$0xf] %vm416_vm0, %v5006_v20 }
 0x3e4   : > { %v4479_v21 = vadd.f32 %v10731_v38, %v4443_v33  ;;  %v4944_v48 = vld [vmem:[#allocation2 + $0x6c] sm:$0xf] }
 0x3e5   : > { %v4625_v31 = vor.u32 %v4623_v39, %v4622_v50  ;;  %v5191_v27 = vor.u32 %v5190_v44, %v5187_v34  ;;  %v4626_v18 = vrot.slane %v4622_v50, 4 }
 0x3e6   : > { %v4511_v49 = vmax.f32 %v4479_v21, 0.0  ;;  %v4392_v11 = vpop.f32.mrf.mxu2 }
 0x3e7   : > { %v4910_v24 = vsel %vm9026_vm9, %v4625_v31, %v4909_v23  ;;  %v4452_v8 = vmul.f32 %v10726_v56, %v4392_v11  ;;  %v5192_v45 = vrot.slane %v5191_v27, 4  ;;  %v4916_v27 = vld [vmem:[#allocation2 + $0x3c] sm:$0xf] }
 0x3e8   : > { %v4543_v12 = vpack.c.bf16 %v4511_v49, %v4511_v49  ;;  %v5074_v15 = vld [vmem:[#allocation2 + $0x28] sm:$0xf]  ;;  %4911 = vst [vmem:[#allocation2 + $0x30] sm:$0xf] %v4910_v24  ;;  %v4372_v17 = vpop.f32.mrf.mxu0 }
 0x3e9   : > { %v5194_v41 = vshll.u32 %v5074_v15, 16  ;;  %v5198_v25 = vshrl.u32 %v5074_v15, 16  ;;  %v5075_v29 = vld [vmem:[#allocation2 + $0x2c] sm:$0x1]  ;;  %v4488_v40 = vadd.f32 %v10731_v38, %v4452_v8  ;;  %v4444_v14 = vmul.f32 %v10726_v56, %v4372_v17 }
 0x3ea   : > { %v4628_v59 = vshrl.u32 %v4543_v12, 16  ;;  %v5204_v58 = vshll.u32 %v5075_v29, 16  ;;  %v4631_v13 = vshll.u32 %v4543_v12, 16 }
 0x3eb   : > { %v5196_v61 = vrot.slane %v5194_v41, 5  ;;  %v5200_v46 = vrot.slane %v5198_v25, 4  ;;  %v4520_v55 = vmax.f32 %v4488_v40, 0.0  ;;  %v4480_v57 = vadd.f32 %v10731_v38, %v4444_v14  ;;  %v5007_v40 = vld [vmem:[#allocation2 + $0x28] sm:$0xf] }
 0x3ec   : > { %v4630_v54 = vrot.slane %v4628_v59, 7  ;;  %v5206_v6 = vrot.slane %v5204_v58, 5  ;;  %5039 = vst.msk [vmem:[#allocation3 + $0x1c] sm:$0xf] %vm416_vm0, %v5007_v40 }
 0x3ed   : > { %v5197_v43 = vsel %vm9032_vm10, %v5192_v45, %v5196_v61  ;;  %v5201_v51 = vor.u32 %v5200_v46, %v5196_v61  ;;  %v4552_v52 = vpack.c.bf16 %v4520_v55, %v4520_v55  ;;  %v4512_v32 = vmax.f32 %v4480_v57, 0.0 }
 0x3ee   : > { %v4633_v30 = vor.u32 %v4631_v13, %v4630_v54  ;;  %v4635_v5 = vrot.slane %v4630_v54, 4  ;;  %5508 = vrot.lane.b32.xlu1 %v5197_v43, %s8893_s11  ;;  %v4394_v28 = vpop.f32.mrf.mxu2 }
 0x3ef   : > { %v5202_v36 = vrot.slane %v5201_v51, 4  ;;  %v4705_v3 = vshrl.u32 %v4552_v52, 16  ;;  %v5076_v47 = vld [vmem:[#allocation2 + $0x30] sm:$0xf]  ;;  %v4544_v37 = vpack.c.bf16 %v4512_v32, %v4512_v32  ;;  %v4453_v0 = vmul.f32 %v10726_v56, %v4394_v28 }
 0x3f0   : > { %v4634_v62 = vsel %vm9040_vm11, %v4626_v18, %v4633_v30  ;;  %v4914_v53 = vsel %vm8953_vm3, %v4635_v5, %v4913_v4  ;;  %v4374_v10 = vpop.f32.mrf.mxu0  ;;  %v5209_v42 = vshrl.u32 %v5076_v47, 16  ;;  %v4708_v2 = vshll.u32 %v4552_v52, 16  ;;  %v4948_v5 = vld [vmem:[#allocation2 + $0x74] sm:$0x1] }
 0x3f1   : > { %4912 = vst.msk [vmem:[#allocation2 + $0x34] sm:$0xf] %vm416_vm0, %v4634_v62  ;;  %v5207_v19 = vsel %vm9032_vm10, %v5202_v36, %v5206_v6  ;;  %v4707_v7 = vrot.slane %v4705_v3, 7  ;;  %v4445_v26 = vmul.f32 %v10726_v56, %v4374_v10  ;;  %v5212_v60 = vshll.u32 %v5076_v47, 16  ;;  %v4920_v62 = vld [vmem:[#allocation2 + $0x44] sm:$0x1] }
 0x3f2   : > { %4915 = vst [vmem:[#allocation2 + $0x38] sm:$0x1] %v4914_v53  ;;  %5510 = vrot.lane.b32.xlu2 %v5207_v19, %s8893_s11  ;;  %v4637_v33 = vshrl.u32 %v4544_v37, 16  ;;  %v4489_v34 = vadd.f32 %v10731_v38, %v4453_v0  ;;  %v5211_v44 = vrot.slane %v5209_v42, 4  ;;  %v4640_v31 = vshll.u32 %v4544_v37, 16 }
 0x3f3   : > { %v4710_v50 = vor.u32 %v4708_v2, %v4707_v7  ;;  %v4481_v39 = vadd.f32 %v10731_v38, %v4445_v26  ;;  %v5214_v21 = vrot.slane %v5212_v60, 5  ;;  %v4711_v17 = vrot.slane %v4707_v7, 4 }
 0x3f4   : > { %v4639_v23 = vrot.slane %v4637_v33, 7  ;;  %v4521_v49 = vmax.f32 %v4489_v34, 0.0  ;;  %v5008_v34 = vld [vmem:[#allocation2 + $0x30] sm:$0xf] }
 0x3f5   : > { %v4945_v11 = vsel %vm9026_vm9, %v4710_v50, %v4944_v48  ;;  %v4513_v22 = vmax.f32 %v4481_v39, 0.0  ;;  %v5215_v24 = vor.u32 %v5214_v21, %v5211_v44  ;;  %5040 = vst.msk [vmem:[#allocation3 + $0x20] sm:$0xf] %vm416_vm0, %v5008_v34 }
 0x3f6   : > { %4946 = vst [vmem:[#allocation2 + $0x6c] sm:$0xf] %v4945_v11  ;;  %v4642_v12 = vor.u32 %v4640_v31, %v4639_v23  ;;  %v4553_v8 = vpack.c.bf16 %v4521_v49, %v4521_v49  ;;  %v4397_v15 = vpop.f32.mrf.mxu2  ;;  %v4643_v41 = vrot.slane %v4639_v23, 4 }
 0x3f7   : > { %v4545_v25 = vpack.c.bf16 %v4513_v22, %v4513_v22  ;;  %v4454_v29 = vmul.f32 %v10726_v56, %v4397_v15  ;;  %v5216_v46 = vrot.slane %v5215_v24, 4  ;;  %v4951_v24 = vld [vmem:[#allocation2 + $0x78] sm:$0xf] }
 0x3f8   : > { %v5077_v59 = vld [vmem:[#allocation2 + $0x34] sm:$0xf]  ;;  %v4917_v14 = vsel %vm9026_vm9, %v4642_v12, %v4916_v27  ;;  %v4713_v45 = vshrl.u32 %v4553_v8, 16  ;;  %v4377_v61 = vpop.f32.mrf.mxu0  ;;  %v4716_v13 = vshll.u32 %v4553_v8, 16 }
 0x3f9   : > { %v5218_v58 = vshll.u32 %v5077_v59, 16  ;;  %v5078_v54 = vld [vmem:[#allocation2 + $0x38] sm:$0x1]  ;;  %4918 = vst [vmem:[#allocation2 + $0x3c] sm:$0xf] %v4917_v14  ;;  %v4645_v55 = vshrl.u32 %v4545_v25, 16  ;;  %v4490_v57 = vadd.f32 %v10731_v38, %v4454_v29  ;;  %v4446_v18 = vmul.f32 %v10726_v56, %v4377_v61 }
 0x3fa   : > { %v4715_v4 = vrot.slane %v4713_v45, 7  ;;  %v4648_v43 = vshll.u32 %v4545_v25, 16  ;;  %v5222_v30 = vshrl.u32 %v5077_v59, 16  ;;  %v5228_v36 = vshll.u32 %v5078_v54, 16  ;;  %v4923_v61 = vld [vmem:[#allocation2 + $0x48] sm:$0xf] }
 0x3fb   : > { %v5220_v51 = vrot.slane %v5218_v58, 5  ;;  %v4647_v52 = vrot.slane %v4645_v55, 7  ;;  %v4522_v32 = vmax.f32 %v4490_v57, 0.0  ;;  %v4482_v28 = vadd.f32 %v10731_v38, %v4446_v18 }
 0x3fc   : > { %v4718_v6 = vor.u32 %v4716_v13, %v4715_v4  ;;  %v4720_v20 = vrot.slane %v4715_v4, 4  ;;  %v5224_v3 = vrot.slane %v5222_v30, 4  ;;  %v5230_v33 = vrot.slane %v5228_v36, 5 }
 0x3fd   : > { %v5221_v53 = vsel %vm9032_vm10, %v5216_v46, %v5220_v51  ;;  %v4650_v47 = vor.u32 %v4648_v43, %v4647_v52  ;;  %v4652_v37 = vrot.slane %v4647_v52, 4  ;;  %v4554_v0 = vpack.c.bf16 %v4522_v32, %v4522_v32 }
 0x3fe   : > { %v4514_v10 = vmax.f32 %v4482_v28, 0.0  ;;  %5512 = vrot.lane.b32.xlu0 %v5221_v53, %s8893_s11  ;;  %v4719_v19 = vsel %vm9040_vm11, %v4711_v17, %v4718_v6  ;;  %v4949_v42 = vsel %vm8953_vm3, %v4720_v20, %v4948_v5  ;;  %v4399_v7 = vpop.f32.mrf.mxu2  ;;  %v5225_v2 = vor.u32 %v5224_v3, %v5220_v51  ;;  %v4955_v28 = vld [vmem:[#allocation2 + $0x80] sm:$0x1] }
 0x3ff   : > { %4947 = vst.msk [vmem:[#allocation2 + $0x70] sm:$0xf] %vm416_vm0, %v4719_v19  ;;  %v4651_v26 = vsel %vm9040_vm11, %v4643_v41, %v4650_v47  ;;  %v4921_v60 = vsel %vm8953_vm3, %v4652_v37, %v4920_v62  ;;  %v4722_v48 = vshrl.u32 %v4554_v0, 16  ;;  %v4725_v44 = vshll.u32 %v4554_v0, 16 }
 0x400   : > { %4950 = vst [vmem:[#allocation2 + $0x74] sm:$0x1] %v4949_v42  ;;  %v4546_v50 = vpack.c.bf16 %v4514_v10, %v4514_v10  ;;  %v4455_v39 = vmul.f32 %v10726_v56, %v4399_v7  ;;  %v4379_v21 = vpop.f32.mrf.mxu0  ;;  %v5226_v23 = vrot.slane %v5225_v2, 4  ;;  %v5079_v31 = vld [vmem:[#allocation2 + $0x3c] sm:$0xf] }
 0x401   : > { %4919 = vst.msk [vmem:[#allocation2 + $0x40] sm:$0xf] %vm416_vm0, %v4651_v26  ;;  %v10846_v49 = vrot.slane %v4722_v48, 7  ;;  %v4447_v11 = vmul.f32 %v10726_v56, %v4379_v21  ;;  %v5233_v27 = vshrl.u32 %v5079_v31, 16  ;;  %v5236_v22 = vshll.u32 %v5079_v31, 16 }
 0x402   : > { %4922 = vst [vmem:[#allocation2 + $0x44] sm:$0x1] %v4921_v60  ;;  %v4654_v12 = vshrl.u32 %v4546_v50, 16  ;;  %v4491_v8 = vadd.f32 %v10731_v38, %v4455_v39  ;;  %v5231_v15 = vsel %vm9032_vm10, %v5226_v23, %v5230_v33  ;;  %v4657_v59 = vshll.u32 %v4546_v50, 16  ;;  %v5009_v10 = vld [vmem:[#allocation2 + $0x34] sm:$0xf]  ;;  %v4090_v23 = vpop.permute.xlu2 %4089 }
 0x403   : > { %v4727_v17 = vor.u32 %v4725_v44, %v10846_v49  ;;  %v4483_v41 = vadd.f32 %v10731_v38, %v4447_v11  ;;  %5514 = vrot.lane.b32.xlu1 %v5231_v15, %s8893_s11  ;;  %v5235_v25 = vrot.slane %v5233_v27, 4  ;;  %v5238_v14 = vrot.slane %v5236_v22, 5  ;;  %5041 = vst.msk [vmem:[#allocation3 + $0x24] sm:$0xf] %vm416_vm0, %v5009_v10  ;;  %v4927_v48 = vld [vmem:[#allocation2 + $0x50] sm:$0x1] }
 0x404   : > { %v4656_v29 = vrot.slane %v4654_v12, 7  ;;  %v4523_v40 = vmax.f32 %v4491_v8, 0.0  ;;  %v4728_v57 = vrot.slane %v10846_v49, 4  ;;  %4156 = vst.msk [vmem:[#allocation3 + $0x78] sm:$0xf] %vm4125_vm12, %v4090_v23 }
 0x405   : > { %v4952_v45 = vsel %vm9026_vm9, %v4727_v17, %v4951_v24  ;;  %v4515_v46 = vmax.f32 %v4483_v41, 0.0  ;;  %v5239_v55 = vor.u32 %v5238_v14, %v5235_v25  ;;  %v5091_v24 = vld [vmem:[#allocation2 + $0x6c] sm:$0xf]  ;;  %v5010_v41 = vld [vmem:[#allocation2 + $0x3c] sm:$0xf] }
 0x406   : > { %4953 = vst [vmem:[#allocation2 + $0x78] sm:$0xf] %v4952_v45  ;;  %v4659_v58 = vor.u32 %v4657_v59, %v4656_v29  ;;  %v4555_v54 = vpack.c.bf16 %v4523_v40, %v4523_v40  ;;  %v4402_v13 = vpop.f32.mrf.mxu2  ;;  %v4660_v43 = vrot.slane %v4656_v29, 4 }
 0x407   : > { %v4547_v18 = vpack.c.bf16 %v4515_v46, %v4515_v46  ;;  %v4456_v4 = vmul.f32 %v10726_v56, %v4402_v13  ;;  %v5240_v62 = vrot.slane %v5239_v55, 4  ;;  %v4958_v13 = vld [vmem:[#allocation2 + $0x84] sm:$0xf]  ;;  %5042 = vst.msk [vmem:[#allocation3 + $0x28] sm:$0xf] %vm416_vm0, %v5010_v41 }
 0x408   : > { %v4924_v51 = vsel %vm9026_vm9, %v4659_v58, %v4923_v61  ;;  %v4730_v30 = vshrl.u32 %v4555_v54, 16  ;;  %v4733_v5 = vshll.u32 %v4555_v54, 16  ;;  %v4382_v52 = vpop.f32.mrf.mxu0  ;;  %v5080_v32 = vld [vmem:[#allocation2 + $0x40] sm:$0xf] }
 0x409   : > { %4925 = vst [vmem:[#allocation2 + $0x48] sm:$0xf] %v4924_v51  ;;  %v4662_v36 = vshrl.u32 %v4547_v18, 16  ;;  %v4492_v6 = vadd.f32 %v10731_v38, %v4456_v4  ;;  %v4448_v20 = vmul.f32 %v10726_v56, %v4382_v52  ;;  %v5081_v53 = vld [vmem:[#allocation2 + $0x44] sm:$0x1]  ;;  %v4665_v47 = vshll.u32 %v4547_v18, 16 }
 0x40a   : > { %v4732_v3 = vrot.slane %v4730_v30, 7  ;;  %v5242_v37 = vshll.u32 %v5080_v32, 16  ;;  %v5246_v0 = vshrl.u32 %v5080_v32, 16  ;;  %v5252_v2 = vshll.u32 %v5081_v53, 16 }
 0x40b   : > { %v4664_v19 = vrot.slane %v4662_v36, 7  ;;  %v4524_v42 = vmax.f32 %v4492_v6, 0.0  ;;  %v4484_v7 = vadd.f32 %v10731_v38, %v4448_v20  ;;  %v5329_v4 = vshrl.u32 %v5091_v24, 16  ;;  %v4930_v20 = vld [vmem:[#allocation2 + $0x54] sm:$0xf] }
 0x40c   : > { %v4735_v26 = vor.u32 %v4733_v5, %v4732_v3  ;;  %v4737_v60 = vrot.slane %v4732_v3, 4  ;;  %v5244_v33 = vrot.slane %v5242_v37, 5  ;;  %v5248_v34 = vrot.slane %v5246_v0, 4  ;;  %v5499_v0 = vpop.permute.xlu2 %5498 }
 0x40d   : > { %v4667_v44 = vor.u32 %v4665_v47, %v4664_v19  ;;  %v4669_v50 = vrot.slane %v4664_v19, 4  ;;  %v4556_v39 = vpack.c.bf16 %v4524_v42, %v4524_v42  ;;  %v4516_v21 = vmax.f32 %v4484_v7, 0.0  ;;  %5593 = vst.msk [vmem:[#allocation3 + $0x4] sm:$0xf] %vm1602_vm15, %v5499_v0  ;;  %v4965_v0 = vld [vmem:[#allocation2 + $0x90] sm:$0xf] }
 0x40e   : > { %v4736_v31 = vsel %vm9040_vm11, %v4728_v57, %v4735_v26  ;;  %v4956_v49 = vsel %vm8953_vm3, %v4737_v60, %v4955_v28  ;;  %v5245_v11 = vsel %vm9032_vm10, %v5240_v62, %v5244_v33  ;;  %v4404_v27 = vpop.f32.mrf.mxu2  ;;  %v5249_v22 = vor.u32 %v5248_v34, %v5244_v33 }
 0x40f   : > { %4954 = vst.msk [vmem:[#allocation2 + $0x7c] sm:$0xf] %vm416_vm0, %v4736_v31  ;;  %v4668_v12 = vsel %vm9040_vm11, %v4660_v43, %v4667_v44  ;;  %v4928_v8 = vsel %vm8953_vm3, %v4669_v50, %v4927_v48  ;;  %v4739_v15 = vshrl.u32 %v4556_v39, 16  ;;  %v4742_v17 = vshll.u32 %v4556_v39, 16  ;;  %5516 = vrot.lane.b32.xlu2 %v5245_v11, %s8893_s11 }
 0x410   : > { %4957 = vst [vmem:[#allocation2 + $0x80] sm:$0x1] %v4956_v49  ;;  %v4548_v25 = vpack.c.bf16 %v4516_v21, %v4516_v21  ;;  %v4457_v29 = vmul.f32 %v10726_v56, %v4404_v27  ;;  %v4384_v59 = vpop.f32.mrf.mxu0  ;;  %v5250_v40 = vrot.slane %v5249_v22, 4  ;;  %v5254_v14 = vrot.slane %v5252_v2, 5  ;;  %v5082_v45 = vld [vmem:[#allocation2 + $0x48] sm:$0xf] }
 0x411   : > { %4926 = vst.msk [vmem:[#allocation2 + $0x4c] sm:$0xf] %vm416_vm0, %v4668_v12  ;;  %v10881_v61 = vrot.slane %v4739_v15, 7  ;;  %v4449_v46 = vmul.f32 %v10726_v56, %v4384_v59  ;;  %v5257_v58 = vshrl.u32 %v5082_v45, 16  ;;  %v5260_v54 = vshll.u32 %v5082_v45, 16 }
 0x412   : > { %4929 = vst [vmem:[#allocation2 + $0x50] sm:$0x1] %v4928_v8  ;;  %v4671_v55 = vshrl.u32 %v4548_v25, 16  ;;  %v4493_v57 = vadd.f32 %v10731_v38, %v4457_v29  ;;  %v5255_v18 = vsel %vm9032_vm10, %v5250_v40, %v5254_v14  ;;  %v5332_v5 = vshll.u32 %v5091_v24, 16  ;;  %v4962_v24 = vld [vmem:[#allocation2 + $0x8c] sm:$0x1] }
 0x413   : > { %v4744_v43 = vor.u32 %v4742_v17, %v10881_v61  ;;  %v4485_v51 = vadd.f32 %v10731_v38, %v4449_v46  ;;  %5518 = vrot.lane.b32.xlu0 %v5255_v18, %s8893_s11  ;;  %v5259_v30 = vrot.slane %v5257_v58, 4  ;;  %v4674_v32 = vshll.u32 %v4548_v25, 16  ;;  %v4934_v29 = vld [vmem:[#allocation2 + $0x5c] sm:$0x1]  ;;  %v4092_v58 = vpop.permute.xlu0 %4091 }
 0x414   : > { %v4673_v52 = vrot.slane %v4671_v55, 7  ;;  %v4525_v28 = vmax.f32 %v4493_v57, 0.0  ;;  %v5262_v36 = vrot.slane %v5260_v54, 5  ;;  %v10893_v10 = vrot.slane %v5329_v4, 4  ;;  %4157 = vst.msk [vmem:[#allocation3 + $0x7c] sm:$0xf] %vm4125_vm12, %v4092_v58 }
 0x415   : > { %v4959_v6 = vsel %vm9026_vm9, %v4744_v43, %v4958_v13  ;;  %v4517_v62 = vmax.f32 %v4485_v51, 0.0  ;;  %v4745_v19 = vrot.slane %v10881_v61, 4  ;;  %v10898_v2 = vrot.slane %v5332_v5, 5  ;;  %v10912_v4 = vld [vmem:[#allocation2 + $0x70] sm:$0xf] }
 0x416   : > { %4960 = vst [vmem:[#allocation2 + $0x84] sm:$0xf] %v4959_v6  ;;  %v4676_v53 = vor.u32 %v4674_v32, %v4673_v52  ;;  %v4557_v3 = vpack.c.bf16 %v4525_v28, %v4525_v28  ;;  %v4407_v47 = vpop.f32.mrf.mxu2  ;;  %v5263_v37 = vor.u32 %v5262_v36, %v5259_v30  ;;  %v4677_v26 = vrot.slane %v4673_v52, 4  ;;  %v5095_v52 = vld [vmem:[#allocation2 + $0x7c] sm:$0xf] }
 0x417   : > { %v4549_v42 = vpack.c.bf16 %v4517_v62, %v4517_v62  ;;  %v4458_v7 = vmul.f32 %v10726_v56, %v4407_v47  ;;  %v4969_v58 = vld [vmem:[#allocation2 + $0x98] sm:$0x1] }
 0x418   : > { %v4931_v60 = vsel %vm9026_vm9, %v4676_v53, %v4930_v20  ;;  %v4747_v48 = vshrl.u32 %v4557_v3, 16  ;;  %v4750_v33 = vshll.u32 %v4557_v3, 16  ;;  %v4387_v34 = vpop.f32.mrf.mxu0  ;;  %v5083_v44 = vld [vmem:[#allocation2 + $0x4c] sm:$0xf]  ;;  %v5264_v23 = vrot.slane %v5263_v37, 4 }
 0x419   : > { %4932 = vst [vmem:[#allocation2 + $0x54] sm:$0xf] %v4931_v60  ;;  %v4679_v50 = vshrl.u32 %v4549_v42, 16  ;;  %v4494_v39 = vadd.f32 %v10731_v38, %v4458_v7  ;;  %v4450_v21 = vmul.f32 %v10726_v56, %v4387_v34  ;;  %v5084_v31 = vld [vmem:[#allocation2 + $0x50] sm:$0x1]  ;;  %v4682_v11 = vshll.u32 %v4549_v42, 16 }
 0x41a   : > { %v4749_v49 = vrot.slane %v4747_v48, 7  ;;  %v5266_v27 = vshll.u32 %v5083_v44, 16  ;;  %v5270_v22 = vshrl.u32 %v5083_v44, 16  ;;  %v5276_v17 = vshll.u32 %v5084_v31, 16 }
 0x41b   : > { %v4681_v12 = vrot.slane %v4679_v50, 7  ;;  %v4526_v8 = vmax.f32 %v4494_v39, 0.0  ;;  %v4486_v15 = vadd.f32 %v10731_v38, %v4450_v21 }
 0x41c   : > { %v4752_v41 = vor.u32 %v4750_v33, %v4749_v49  ;;  %v4754_v25 = vrot.slane %v4749_v49, 4  ;;  %v5268_v59 = vrot.slane %v5266_v27, 5  ;;  %v5272_v40 = vrot.slane %v5270_v22, 4 }
 0x41d   : > { %v4684_v14 = vor.u32 %v4682_v11, %v4681_v12  ;;  %v4686_v45 = vrot.slane %v4681_v12, 4  ;;  %v4558_v61 = vpack.c.bf16 %v4526_v8, %v4526_v8  ;;  %v4518_v46 = vmax.f32 %v4486_v15, 0.0  ;;  %v5497_v8 = vpop.permute.xlu1 %5496 }
 0x41e   : > { %v4753_v54 = vsel %vm9040_vm11, %v4745_v19, %v4752_v41  ;;  %v4963_v13 = vsel %vm8953_vm3, %v4754_v25, %v4962_v24  ;;  %v5269_v55 = vsel %vm9032_vm10, %v5264_v23, %v5268_v59  ;;  %v4409_v57 = vpop.f32.mrf.mxu2  ;;  %v5273_v18 = vor.u32 %v5272_v40, %v5268_v59  ;;  %v4937_v23 = vld [vmem:[#allocation2 + $0x60] sm:$0xf]  ;;  %5592 = vst.msk [vmem:[#allocation3] sm:$0xf] %vm1602_vm15, %v5497_v8  ;;  %v4972_v8 = vld [vmem:[#allocation2 + $0x9c] sm:$0xf] }
 0x41f   : > { %4961 = vst.msk [vmem:[#allocation2 + $0x88] sm:$0xf] %vm416_vm0, %v4753_v54  ;;  %v4685_v43 = vsel %vm9040_vm11, %v4677_v26, %v4684_v14  ;;  %v4935_v51 = vsel %vm8953_vm3, %v4686_v45, %v4934_v29  ;;  %v4756_v30 = vshrl.u32 %v4558_v61, 16  ;;  %v4759_v5 = vshll.u32 %v4558_v61, 16  ;;  %5520 = vrot.lane.b32.xlu1 %v5269_v55, %s8893_s11  ;;  %v10944_v41 = vld [vmem:[%s12101_s5] ss:$0 sm:$0xff] }
 0x420   : > { %4964 = vst [vmem:[#allocation2 + $0x8c] sm:$0x1] %v4963_v13  ;;  %v4550_v32 = vpack.c.bf16 %v4518_v46, %v4518_v46  ;;  %v4459_v28 = vmul.f32 %v10726_v56, %v4409_v57  ;;  %v4389_v36 = vpop.f32.mrf.mxu0  ;;  %v5274_v6 = vrot.slane %v5273_v18, 4  ;;  %v5278_v20 = vrot.slane %v5276_v17, 5  ;;  %v5085_v62 = vld [vmem:[#allocation2 + $0x54] sm:$0xf] }
 0x421   : > { %4933 = vst.msk [vmem:[#allocation2 + $0x58] sm:$0xf] %vm416_vm0, %v4685_v43  ;;  %v10922_v53 = vrot.slane %v4756_v30, 7  ;;  %v4451_v3 = vmul.f32 %v10726_v56, %v4389_v36  ;;  %v5281_v47 = vshrl.u32 %v5085_v62, 16  ;;  %v5284_v37 = vshll.u32 %v5085_v62, 16 }
 0x422   : > { %4936 = vst [vmem:[#allocation2 + $0x5c] sm:$0x1] %v4935_v51  ;;  %v4688_v19 = vshrl.u32 %v4550_v32, 16  ;;  %v4495_v42 = vadd.f32 %v10731_v38, %v4459_v28  ;;  %v5279_v7 = vsel %vm9032_vm10, %v5274_v6, %v5278_v20  ;;  %v5338_v26 = vshll.u32 %v10912_v4, 16  ;;  %v5013_v46 = vld [vmem:[#allocation2 + $0x4c] sm:$0xf] }
 0x423   : > { %v4761_v60 = vor.u32 %v4759_v5, %v10922_v53  ;;  %v4487_v48 = vadd.f32 %v10731_v38, %v4451_v3  ;;  %5522 = vrot.lane.b32.xlu2 %v5279_v7, %s8893_s11  ;;  %v5283_v33 = vrot.slane %v5281_v47, 4  ;;  %v5362_v56 = vshll.u32 %v5095_v52, 16  ;;  %v10958_v13 = vld [vmem:[%s12102_s6] ss:$0 sm:$0xff]  ;;  %v4941_v51 = vld [vmem:[#allocation2 + $0x68] sm:$0x1] }
 0x424   : > { %v10932_v34 = vrot.slane %v4688_v19, 7  ;;  %v4691_v44 = vshll.u32 %v4550_v32, 16  ;;  %v4527_v50 = vmax.f32 %v4495_v42, 0.0  ;;  %v5286_v39 = vrot.slane %v5284_v37, 5  ;;  %v5096_v20 = vld [vmem:[#allocation2 + $0x80] sm:$0x1] }
 0x425   : > { %v4966_v21 = vsel %vm9026_vm9, %v4761_v60, %v4965_v0  ;;  %v4519_v31 = vmax.f32 %v4487_v48, 0.0  ;;  %v5342_v49 = vshrl.u32 %v10912_v4, 16  ;;  %v5366_v11 = vshrl.u32 %v5095_v52, 16  ;;  %5045 = vst.msk [vmem:[#allocation3 + $0x34] sm:$0xf] %vm416_vm0, %v5013_v46 }
 0x426   : > { %4967 = vst [vmem:[#allocation2 + $0x90] sm:$0xf] %v4966_v21  ;;  %v4693_v38 = vor.u32 %v4691_v44, %v10932_v34  ;;  %v4559_v27 = vpack.c.bf16 %v4527_v50, %v4527_v50  ;;  %v4412_v22 = vpop.f32.mrf.mxu2  ;;  %v5287_v24 = vor.u32 %v5286_v39, %v5283_v33  ;;  %v10938_v12 = vrot.slane %v5338_v26, 5  ;;  %v10974_v39 = vld [vmem:[#allocation2 + $0x78] sm:$0xf] }
 0x427   : > { %v4762_v15 = vrot.slane %v10922_v53, 4  ;;  %v4551_v17 = vpack.c.bf16 %v4519_v31, %v4519_v31  ;;  %v4460_v25 = vmul.f32 %v10944_v41, %v4412_v22  ;;  %v10948_v29 = vrot.slane %v5362_v56, 5 }
 0x428   : > { %v4694_v59 = vrot.slane %v10932_v34, 4  ;;  %v4938_v40 = vsel %vm9026_vm9, %v4693_v38, %v4937_v23  ;;  %v4764_v14 = vshrl.u32 %v4559_v27, 16  ;;  %v5086_v45 = vld [vmem:[#allocation2 + $0x58] sm:$0xf]  ;;  %v5335_v61 = vor.u32 %v10898_v2, %v10893_v10 }
 0x429   : > { %4939 = vst [vmem:[#allocation2 + $0x60] sm:$0xf] %v4938_v40  ;;  %v4696_v54 = vshrl.u32 %v4551_v17, 16  ;;  %v4496_v55 = vadd.f32 %v10958_v13, %v4460_v25  ;;  %v5290_v57 = vshll.u32 %v5086_v45, 16  ;;  %v5368_v18 = vrot.slane %v5366_v11, 4 }
 0x42a   : > { %v4766_v4 = vrot.slane %v4764_v14, 7  ;;  %v4767_v43 = vshll.u32 %v4559_v27, 16  ;;  %v5288_v30 = vrot.slane %v5287_v24, 4  ;;  %v5294_v5 = vshrl.u32 %v5086_v45, 16  ;;  %v5087_v52 = vld [vmem:[#allocation2 + $0x5c] sm:$0x1] }
 0x42b   : > { %v4698_v32 = vrot.slane %v4696_v54, 7  ;;  %v4699_v28 = vshll.u32 %v4551_v17, 16  ;;  %v4528_v36 = vmax.f32 %v4496_v55, 0.0  ;;  %v5292_v6 = vrot.slane %v5290_v57, 5  ;;  %v10984_v25 = vld [vmem:[#allocation2 + $0x74] sm:$0x1] }
 0x42c   : > { %v4769_v62 = vor.u32 %v4767_v43, %v4766_v4  ;;  %v4771_v53 = vrot.slane %v4766_v4, 4  ;;  %v5296_v3 = vrot.slane %v5294_v5, 4  ;;  %v5300_v47 = vshll.u32 %v5087_v52, 16 }
 0x42d   : > { %v4701_v37 = vor.u32 %v4699_v28, %v4698_v32  ;;  %v4703_v0 = vrot.slane %v4698_v32, 4  ;;  %v4560_v19 = vpack.c.bf16 %v4528_v36, %v4528_v36  ;;  %v5293_v42 = vsel %vm9032_vm10, %v5288_v30, %v5292_v6  ;;  %v5100_v32 = vld [vmem:[#allocation2 + $0x90] sm:$0xf] }
 0x42e   : > { %v4770_v7 = vsel %vm9040_vm11, %v4762_v15, %v4769_v62  ;;  %v4970_v26 = vsel %vm8953_vm3, %v4771_v53, %v4969_v58  ;;  %5524 = vrot.lane.b32.xlu0 %v5293_v42, %s8893_s11  ;;  %v4414_v60 = vpop.f32.mrf.mxu2  ;;  %v5297_v48 = vor.u32 %v5296_v3, %v5292_v6  ;;  %v5344_v33 = vrot.slane %v5342_v49, 4  ;;  %v5097_v6 = vld [vmem:[#allocation2 + $0x84] sm:$0xf] }
 0x42f   : > { %4968 = vst.msk [vmem:[#allocation2 + $0x94] sm:$0xf] %vm416_vm0, %v4770_v7  ;;  %v4702_v56 = vsel %vm9040_vm11, %v4694_v59, %v4701_v37  ;;  %v4942_v34 = vsel %vm8953_vm3, %v4703_v0, %v4941_v51  ;;  %v4773_v44 = vshrl.u32 %v4560_v19, 16  ;;  %v5372_v50 = vshll.u32 %v5096_v20, 16 }
 0x430   : > { %4971 = vst [vmem:[#allocation2 + $0x98] sm:$0x1] %v4970_v26  ;;  %v4461_v21 = vmul.f32 %v10944_v41, %v4414_v60  ;;  %v5298_v23 = vrot.slane %v5297_v48, 4  ;;  %v5302_v31 = vrot.slane %v5300_v47, 5  ;;  %v5088_v11 = vld [vmem:[#allocation2 + $0x60] sm:$0xf]  ;;  %v5369_v49 = vor.u32 %v5368_v18, %v10948_v29 }
 0x431   : > { %4940 = vst.msk [vmem:[#allocation2 + $0x64] sm:$0xf] %vm416_vm0, %v4702_v56  ;;  %v10979_v38 = vrot.slane %v4773_v44, 7  ;;  %v4776_v27 = vshll.u32 %v4560_v19, 16  ;;  %v5305_v22 = vshrl.u32 %v5088_v11, 16  ;;  %v5308_v24 = vshll.u32 %v5088_v11, 16 }
 0x432   : > { %4943 = vst [vmem:[#allocation2 + $0x68] sm:$0x1] %v4942_v34  ;;  %v4497_v15 = vadd.f32 %v10958_v13, %v4461_v21  ;;  %v5303_v17 = vsel %vm9032_vm10, %v5298_v23, %v5302_v31  ;;  %v5345_v59 = vor.u32 %v5344_v33, %v10938_v12  ;;  %v5353_v46 = vshrl.u32 %v10974_v39, 16  ;;  %v4976_v34 = vld [vmem:[#allocation2 + $0xa4] sm:$0x1] }
 0x433   : > { %v4778_v40 = vor.u32 %v4776_v27, %v10979_v38  ;;  %5526 = vrot.lane.b32.xlu1 %v5303_v17, %s8893_s11  ;;  %v5307_v14 = vrot.slane %v5305_v22, 4  ;;  %v5310_v45 = vrot.slane %v5308_v24, 5  ;;  %v5336_v54 = vrot.slane %v5335_v61, 4 }
 0x434   : > { %v4529_v58 = vmax.f32 %v4497_v15, 0.0  ;;  %v10993_v55 = vrot.slane %v5372_v50, 5  ;;  %v10997_v4 = vrot.slane %v5369_v49, 4  ;;  %v5348_v43 = vshll.u32 %v10984_v25, 16 }
 0x435   : > { %v4973_v57 = vsel %vm9026_vm9, %v4778_v40, %v4972_v8  ;;  %v5311_v18 = vor.u32 %v5310_v45, %v5307_v14  ;;  %v4779_v51 = vrot.slane %v10979_v38, 4  ;;  %v11001_v52 = vrot.slane %v5345_v59, 4  ;;  %v5098_v14 = vld [vmem:[#allocation2 + $0x88] sm:$0xf] }
 0x436   : > { %4974 = vst [vmem:[#allocation2 + $0x9c] sm:$0xf] %v4973_v57  ;;  %v4561_v30 = vpack.c.bf16 %v4529_v58, %v4529_v58  ;;  %v4417_v5 = vpop.f32.mrf.mxu2  ;;  %v5401_v61 = vshrl.u32 %v5100_v32, 16  ;;  %v5404_v28 = vshll.u32 %v5100_v32, 16  ;;  %v11004_v36 = vrot.slane %v5353_v46, 4 }
 0x437   : > { %v4462_v10 = vmul.f32 %v10944_v41, %v4417_v5  ;;  %v5341_v62 = vsel %vm9032_vm10, %v5336_v54, %v10938_v12  ;;  %v11010_v3 = vld [vmem:[#allocation2 + $0x94] sm:$0xf]  ;;  %v5356_v47 = vshll.u32 %v10974_v39, 16  ;;  %v5312_v0 = vrot.slane %v5311_v18, 4 }
 0x438   : > { %v5505_v2 = vpop.permute.xlu2 %5504  ;;  %v4781_v20 = vshrl.u32 %v4561_v30, 16  ;;  %v5089_v53 = vld [vmem:[#allocation2 + $0x64] sm:$0xf]  ;;  %v4784_v48 = vshll.u32 %v4561_v30, 16  ;;  %v5403_v56 = vrot.slane %v5401_v61, 4  ;;  %v5406_v39 = vrot.slane %v5404_v28, 5 }
 0x439   : > { %5596 = vst.msk [vmem:[#allocation3 + $0x10] sm:$0xf] %vm1602_vm15, %v5505_v2  ;;  %v4498_v37 = vadd.f32 %v10958_v13, %v4462_v10  ;;  %v5314_v19 = vshll.u32 %v5089_v53, 16  ;;  %v5318_v42 = vshrl.u32 %v5089_v53, 16  ;;  %v5090_v26 = vld [vmem:[#allocation2 + $0x68] sm:$0x1] }
 0x43a   : > { %v4783_v60 = vrot.slane %v4781_v20, 7  ;;  %v5324_v33 = vshll.u32 %v5090_v26, 16  ;;  %v5377_v31 = vshrl.u32 %v5097_v6, 16  ;;  %v5380_v11 = vshll.u32 %v5097_v6, 16  ;;  %v5011_v61 = vld [vmem:[#allocation2 + $0x40] sm:$0xf] }
 0x43b   : > { %v4530_v12 = vmax.f32 %v4498_v37, 0.0  ;;  %5532 = vrot.lane.b32.xlu1 %v5341_v62, %s8893_s11  ;;  %v5316_v44 = vrot.slane %v5314_v19, 5  ;;  %v5320_v50 = vrot.slane %v5318_v42, 4  ;;  %v5410_v24 = vshll.u32 %v11010_v3, 16  ;;  %v4979_v28 = vld [vmem:[#allocation2 + $0xa8] sm:$0xf] }
 0x43c   : > { %v5501_v7 = vpop.permute.xlu0 %5500  ;;  %v4786_v21 = vor.u32 %v4784_v48, %v4783_v60  ;;  %v4788_v23 = vrot.slane %v4783_v60, 4  ;;  %v5326_v59 = vrot.slane %v5324_v33, 5  ;;  %v5358_v40 = vrot.slane %v5356_v47, 5  ;;  %5043 = vst.msk [vmem:[#allocation3 + $0x2c] sm:$0xf] %vm416_vm0, %v5011_v61 }
 0x43d   : > { %5594 = vst.msk [vmem:[#allocation3 + $0x8] sm:$0xf] %vm1602_vm15, %v5501_v7  ;;  %v4562_v49 = vpack.c.bf16 %v4530_v12, %v4530_v12  ;;  %v5317_v38 = vsel %vm9032_vm10, %v5312_v0, %v5316_v44  ;;  %v5321_v27 = vor.u32 %v5320_v50, %v5316_v44  ;;  %v5407_v54 = vor.u32 %v5406_v39, %v5403_v56  ;;  %v5099_v0 = vld [vmem:[#allocation2 + $0x8c] sm:$0x1]  ;;  %v5975_v1 = vld [vmem:[#allocation2 + $0x64] sm:$0xf] }
 0x43e   : > { %v4787_v8 = vsel %vm9040_vm11, %v4779_v51, %v4786_v21  ;;  %v4977_v15 = vsel %vm8953_vm3, %v4788_v23, %v4976_v34  ;;  %5528 = vrot.lane.b32.xlu2 %v5317_v38, %s8893_s11  ;;  %v4419_v17 = vpop.f32.mrf.mxu2  ;;  %v5359_v18 = vor.u32 %v5358_v40, %v11004_v36  ;;  %v5379_v51 = vrot.slane %v5377_v31, 4 }
 0x43f   : > { %4975 = vst.msk [vmem:[#allocation2 + $0xa0] sm:$0xf] %vm416_vm0, %v4787_v8  ;;  %v4790_v45 = vshrl.u32 %v4562_v49, 16  ;;  %v4463_v46 = vmul.f32 %v10944_v41, %v4419_v17  ;;  %v5322_v58 = vrot.slane %v5321_v27, 4  ;;  %v4793_v57 = vshll.u32 %v4562_v49, 16 }
 0x440   : > { %v5503_v22 = vpop.permute.xlu1 %5502  ;;  %4978 = vst [vmem:[#allocation2 + $0xa4] sm:$0x1] %v4977_v15  ;;  %v5382_v30 = vrot.slane %v5380_v11, 5  ;;  %v5386_v2 = vshll.u32 %v5098_v14, 16  ;;  %v5375_v6 = vsel %vm9032_vm10, %v10997_v4, %v10993_v55  ;;  %v11038_v36 = vrot.slane %v5410_v24, 5 }
 0x441   : > { %5595 = vst.msk [vmem:[#allocation3 + $0xc] sm:$0xf] %vm1602_vm15, %v5503_v22  ;;  %v11028_v5 = vrot.slane %v4790_v45, 7  ;;  %v4499_v32 = vadd.f32 %v10958_v13, %v4463_v46  ;;  %v5327_v10 = vsel %vm9032_vm10, %v5322_v58, %v5326_v59  ;;  %v5390_v20 = vshrl.u32 %v5098_v14, 16  ;;  %v4983_v24 = vld [vmem:[#allocation2 + $0xb0] sm:$0x1] }
 0x442   : > { %5530 = vrot.lane.b32.xlu0 %v5327_v10, %s8893_s11  ;;  %v5350_v47 = vrot.slane %v5348_v43, 5  ;;  %v5414_v37 = vshrl.u32 %v11010_v3, 16  ;;  %v5408_v19 = vrot.slane %v5407_v54, 4  ;;  %v5383_v55 = vor.u32 %v5382_v30, %v5379_v51  ;;  %v5102_v46 = vld [vmem:[#allocation2 + $0x98] sm:$0x1]  ;;  %v8796_v58 = vld [vmem:[#allocation3 + $0x78] sm:$0xff] }
 0x443   : > { %v4795_v62 = vor.u32 %v4793_v57, %v11028_v5  ;;  %v4531_v53 = vmax.f32 %v4499_v32, 0.0  ;;  %5538 = vrot.lane.b32.xlu1 %v5375_v6, %s8893_s11  ;;  %v5388_v4 = vrot.slane %v5386_v2, 5  ;;  %v5392_v42 = vrot.slane %v5390_v20, 4  ;;  %v5018_v30 = vld [vmem:[#allocation2 + $0x6c] sm:$0xf]  ;;  %8640 = vmatmul.msk.bf16.gmra.mxu2 %vm4290_vm13, %v8796_v58 }
 0x444   : > { %v5351_v60 = vsel %vm9032_vm10, %v11001_v52, %v5350_v47  ;;  %v5360_v48 = vrot.slane %v5359_v18, 4  ;;  %v5413_v43 = vsel %vm9032_vm10, %v5408_v19, %v11038_v36  ;;  %v5396_v33 = vshll.u32 %v5099_v0, 16  ;;  %v5103_v52 = vld [vmem:[#allocation2 + $0x9c] sm:$0xf]  ;;  %5050 = vst.msk [vmem:[#allocation3 + $0x48] sm:$0xf] %vm416_vm0, %v5018_v30 }
 0x445   : > { %v4980_v7 = vsel %vm9026_vm9, %v4795_v62, %v4979_v28  ;;  %v4563_v26 = vpack.c.bf16 %v4531_v53, %v4531_v53  ;;  %v5384_v50 = vrot.slane %v5383_v55, 4  ;;  %v5393_v21 = vor.u32 %v5392_v42, %v5388_v4 }
 0x446   : > { %4981 = vst [vmem:[#allocation2 + $0xa8] sm:$0xf] %v4980_v7  ;;  %5534 = vrot.lane.b32.xlu2 %v5351_v60, %s8893_s11  ;;  %v4422_v25 = vpop.f32.mrf.mxu2  ;;  %v5104_v3 = vld [vmem:[#allocation2 + $0xa0] sm:$0xf]  ;;  %v5365_v12 = vsel %vm9032_vm10, %v5360_v48, %v10948_v29  ;;  %v5416_v23 = vrot.slane %v5414_v37, 4  ;;  %v4796_v22 = vrot.slane %v11028_v5, 4 }
 0x447   : > { %v4798_v56 = vshrl.u32 %v4563_v26, 16  ;;  %v4464_v34 = vmul.f32 %v10944_v41, %v4422_v25  ;;  %v5434_v44 = vshll.u32 %v5104_v3, 16  ;;  %v5438_v39 = vshrl.u32 %v5104_v3, 16  ;;  %v5105_v38 = vld [vmem:[#allocation2 + $0xa4] sm:$0x1] }
 0x448   : > { %v4801_v11 = vshll.u32 %v4563_v26, 16  ;;  %v5425_v29 = vshrl.u32 %v5103_v52, 16  ;;  %v5428_v15 = vshll.u32 %v5103_v52, 16  ;;  %v5389_v45 = vsel %vm9032_vm10, %v5384_v50, %v5388_v4  ;;  %v5019_v4 = vld [vmem:[#allocation2 + $0x70] sm:$0xf] }
 0x449   : > { %v4800_v31 = vrot.slane %v4798_v56, 7  ;;  %v4500_v49 = vadd.f32 %v10958_v13, %v4464_v34  ;;  %v11060_v27 = vrot.slane %v5434_v44, 5  ;;  %v5440_v8 = vrot.slane %v5438_v39, 4  ;;  %v4986_v48 = vld [vmem:[#allocation2 + $0xb4] sm:$0xf] }
 0x44a   : > { %5536 = vrot.lane.b32.xlu0 %v5365_v12, %s8893_s11  ;;  %v5444_v57 = vshll.u32 %v5105_v38, 16  ;;  %v5394_v18 = vrot.slane %v5393_v21, 4  ;;  %v5417_v51 = vor.u32 %v5416_v23, %v11038_v36  ;;  %v5398_v2 = vrot.slane %v5396_v33, 5  ;;  %5051 = vst.msk [vmem:[#allocation3 + $0x4c] sm:$0xf] %vm416_vm0, %v5019_v4 }
 0x44b   : > { %v4803_v17 = vor.u32 %v4801_v11, %v4800_v31  ;;  %v4805_v59 = vrot.slane %v4800_v31, 4  ;;  %v4532_v40 = vmax.f32 %v4500_v49, 0.0  ;;  %5544 = vrot.lane.b32.xlu1 %v5413_v43, %s8893_s11  ;;  %v5441_v54 = vor.u32 %v5440_v8, %v11060_v27 }
 0x44c   : > { %v5511_v14 = vpop.permute.xlu2 %5510  ;;  %v5420_v36 = vshll.u32 %v5102_v46, 16  ;;  %v5427_v20 = vrot.slane %v5425_v29, 4  ;;  %v5430_v62 = vrot.slane %v5428_v15, 5  ;;  %v5446_v19 = vrot.slane %v5444_v57, 5  ;;  %v4990_v29 = vld [vmem:[#allocation2 + $0xbc] sm:$0x1] }
 0x44d   : > { %5599 = vst.msk [vmem:[#allocation3 + $0x1c] sm:$0xf] %vm1602_vm15, %v5511_v14  ;;  %v4804_v5 = vsel %vm9040_vm11, %v4796_v22, %v4803_v17  ;;  %v4984_v32 = vsel %vm8953_vm3, %v4805_v59, %v4983_v24  ;;  %v4564_v10 = vpack.c.bf16 %v4532_v40, %v4532_v40  ;;  %v5106_v61 = vld [vmem:[#allocation2 + $0xa8] sm:$0xf]  ;;  %v5442_v6 = vrot.slane %v5441_v54, 4 }
 0x44e   : > { %4982 = vst.msk [vmem:[#allocation2 + $0xac] sm:$0xf] %vm416_vm0, %v4804_v5  ;;  %5540 = vrot.lane.b32.xlu2 %v5389_v45, %s8893_s11  ;;  %v4424_v28 = vpop.f32.mrf.mxu2  ;;  %v5449_v37 = vshrl.u32 %v5106_v61, 16  ;;  %v5452_v0 = vshll.u32 %v5106_v61, 16  ;;  %v5399_v55 = vsel %vm9032_vm10, %v5394_v18, %v5398_v2  ;;  %v5418_v60 = vrot.slane %v5417_v51, 4 }
 0x44f   : > { %4985 = vst [vmem:[#allocation2 + $0xb0] sm:$0x1] %v4984_v32  ;;  %v4807_v53 = vshrl.u32 %v4564_v10, 16  ;;  %v4465_v47 = vmul.f32 %v10944_v41, %v4424_v28  ;;  %v4810_v7 = vshll.u32 %v4564_v10, 16  ;;  %v5447_v25 = vsel %vm9032_vm10, %v5442_v6, %v5446_v19  ;;  %v5012_v17 = vld [vmem:[#allocation2 + $0x48] sm:$0xf] }
 0x450   : > { %v5422_v43 = vrot.slane %v5420_v36, 5  ;;  %v5431_v41 = vor.u32 %v5430_v62, %v5427_v20  ;;  %v5451_v34 = vrot.slane %v5449_v37, 4  ;;  %v5454_v12 = vrot.slane %v5452_v0, 5  ;;  %5044 = vst.msk [vmem:[#allocation3 + $0x30] sm:$0xf] %vm416_vm0, %v5012_v17 }
 0x451   : > { %v4809_v42 = vrot.slane %v4807_v53, 7  ;;  %v4501_v26 = vadd.f32 %v10958_v13, %v4465_v47  ;;  %v5020_v14 = vld [vmem:[#allocation2 + $0x78] sm:$0xf]  ;;  %v5624_v61 = vld [vmem:[#allocation2] sm:$0xe] }
 0x452   : > { %5542 = vrot.lane.b32.xlu0 %v5399_v55, %s8893_s11  ;;  %v5423_v52 = vsel %vm9032_vm10, %v5418_v60, %v5422_v43  ;;  %v5432_v31 = vrot.slane %v5431_v41, 4  ;;  %v5455_v11 = vor.u32 %v5454_v12, %v5451_v34  ;;  %5052 = vst.msk [vmem:[#allocation3 + $0x50] sm:$0xf] %vm416_vm0, %v5020_v14  ;;  %v5625_v28 = vld [vmem:[#allocation2 + $0x4] sm:$0xf]  ;;  %v8641_v53 = vrot.slane %v5624_v61, 9 }
 0x453   : > { %v4812_v3 = vor.u32 %v4810_v7, %v4809_v42  ;;  %v4533_v33 = vmax.f32 %v4501_v26, 0.0  ;;  %5550 = vrot.lane.b32.xlu1 %v5447_v25, %s8893_s11  ;;  %v4813_v59 = vrot.slane %v4809_v42, 4  ;;  %v5021_v62 = vld [vmem:[#allocation2 + $0x7c] sm:$0xf]  ;;  %v5722_v47 = vrot.slane %v5625_v28, 5 }
 0x454   : > { %v5507_v56 = vpop.permute.xlu0 %5506  ;;  %v5437_v15 = vsel %vm9032_vm10, %v5432_v31, %v11060_v27  ;;  %v5456_v58 = vrot.slane %v5455_v11, 4  ;;  %5053 = vst.msk [vmem:[#allocation3 + $0x54] sm:$0xf] %vm416_vm0, %v5021_v62  ;;  %v5628_v19 = vld [vmem:[#allocation2 + $0x10] sm:$0xf] }
 0x455   : > { %5597 = vst.msk [vmem:[#allocation3 + $0x14] sm:$0xf] %vm1602_vm15, %v5507_v56  ;;  %v4987_v13 = vsel %vm9026_vm9, %v4812_v3, %v4986_v48  ;;  %v4565_v44 = vpack.c.bf16 %v4533_v33, %v4533_v33  ;;  %v5107_v50 = vld [vmem:[#allocation2 + $0xac] sm:$0xf]  ;;  %v5022_v7 = vld [vmem:[#allocation2 + $0x84] sm:$0xf]  ;;  %v5723_v26 = vsel %vm9505_vm14, %v8641_v53, %v5722_v47 }
 0x456   : > { %4988 = vst [vmem:[#allocation2 + $0xb4] sm:$0xf] %v4987_v13  ;;  %5546 = vrot.lane.b32.xlu2 %v5423_v52, %s8893_s11  ;;  %v5458_v39 = vshll.u32 %v5107_v50, 16  ;;  %v5462_v21 = vshrl.u32 %v5107_v50, 16  ;;  %v5108_v38 = vld [vmem:[#allocation2 + $0xb0] sm:$0x1] }
 0x457   : > { %v4815_v23 = vshrl.u32 %v4565_v44, 16  ;;  %v4818_v8 = vshll.u32 %v4565_v44, 16  ;;  %v5468_v54 = vshll.u32 %v5108_v38, 16  ;;  %5054 = vst.msk [vmem:[#allocation3 + $0x58] sm:$0xf] %vm416_vm0, %v5022_v7  ;;  %v5729_v3 = vrot.slane %v5628_v19, 5 }
 0x458   : > { %v5460_v49 = vrot.slane %v5458_v39, 5  ;;  %v5464_v22 = vrot.slane %v5462_v21, 4  ;;  %v5626_v33 = vld [vmem:[#allocation2 + $0x8] sm:$0x1]  ;;  %v5014_v56 = vld [vmem:[#allocation2 + $0x54] sm:$0xf] }
 0x459   : > { %v4817_v24 = vrot.slane %v4815_v23, 7  ;;  %v5470_v2 = vrot.slane %v5468_v54, 5  ;;  %v5629_v13 = vld [vmem:[#allocation2 + $0x14] sm:$0x1]  ;;  %5046 = vst.msk [vmem:[#allocation3 + $0x38] sm:$0xf] %vm416_vm0, %v5014_v56 }
 0x45a   : > { %5548 = vrot.lane.b32.xlu0 %v5437_v15, %s8893_s11  ;;  %v5465_v40 = vor.u32 %v5464_v22, %v5460_v49  ;;  %v5461_v18 = vsel %vm9032_vm10, %v5456_v58, %v5460_v49  ;;  %v5724_v50 = vrot.slane %v5722_v47, 4  ;;  %v5725_v39 = vrot.slane %v5626_v33, 5  ;;  %v5627_v11 = vld [vmem:[#allocation2 + $0xc] sm:$0xe]  ;;  %v5023_v49 = vld [vmem:[#allocation2 + $0x88] sm:$0xf] }
 0x45b   : > { %v4820_v45 = vor.u32 %v4818_v8, %v4817_v24  ;;  %v4822_v46 = vrot.slane %v4817_v24, 4  ;;  %v5731_v21 = vrot.slane %v5729_v3, 4  ;;  %v5732_v23 = vrot.slane %v5629_v13, 5  ;;  %5055 = vst.msk [vmem:[#allocation3 + $0x5c] sm:$0xf] %vm416_vm0, %v5023_v49 }
 0x45c   : > { %v5466_v51 = vrot.slane %v5465_v40, 4  ;;  %v5726_v22 = vsel %vm9505_vm14, %v5724_v50, %v5725_v39  ;;  %v8642_v8 = vrot.slane %v5627_v11, 9  ;;  %v5634_v15 = vld [vmem:[#allocation2 + $0x28] sm:$0xf]  ;;  %v5631_v17 = vld [vmem:[#allocation2 + $0x1c] sm:$0xf] }
 0x45d   : > { %v4821_v57 = vsel %vm9040_vm11, %v4813_v59, %v4820_v45  ;;  %v4991_v27 = vsel %vm8953_vm3, %v4822_v46, %v4990_v29  ;;  %v5109_v30 = vld [vmem:[#allocation2 + $0xb4] sm:$0xf]  ;;  %v5733_v24 = vsel %vm9505_vm14, %v5731_v21, %v5732_v23  ;;  %v5015_v29 = vld [vmem:[#allocation2 + $0x58] sm:$0xf]  ;;  %v5633_v59 = vld [vmem:[#allocation2 + $0x24] sm:$0xe] }
 0x45e   : > { %4989 = vst.msk [vmem:[#allocation2 + $0xb8] sm:$0xf] %vm416_vm0, %v4821_v57  ;;  %5552 = vrot.lane.b32.xlu2 %v5461_v18, %s8893_s11  ;;  %v5473_v5 = vshrl.u32 %v5109_v30, 16  ;;  %v5476_v32 = vshll.u32 %v5109_v30, 16  ;;  %v5471_v20 = vsel %vm9032_vm10, %v5466_v51, %v5470_v2  ;;  %v5743_v14 = vrot.slane %v5634_v15, 5 }
 0x45f   : > { %4992 = vst [vmem:[#allocation2 + $0xbc] sm:$0x1] %v4991_v27  ;;  %v5630_v45 = vld [vmem:[#allocation2 + $0x18] sm:$0xe]  ;;  %v5736_v46 = vrot.slane %v5631_v17, 5  ;;  %v5730_v58 = vsel %vm9505_vm14, %v8642_v8, %v5729_v3  ;;  %v8644_v27 = vrot.slane %v5633_v59, 9 }
 0x460   : > { %v5509_v10 = vpop.permute.xlu1 %5508  ;;  %v5475_v6 = vrot.slane %v5473_v5, 4  ;;  %v5478_v36 = vrot.slane %v5476_v32, 5  ;;  %5047 = vst.msk [vmem:[#allocation3 + $0x3c] sm:$0xf] %vm416_vm0, %v5015_v29  ;;  %v5637_v54 = vld [vmem:[#allocation2 + $0x34] sm:$0xf] }
 0x461   : > { %5598 = vst.msk [vmem:[#allocation3 + $0x18] sm:$0xf] %vm1602_vm15, %v5509_v10  ;;  %v5024_v57 = vld [vmem:[#allocation2 + $0x90] sm:$0xf]  ;;  %v5016_v18 = vld [vmem:[#allocation2 + $0x60] sm:$0xf]  ;;  %v5744_v30 = vsel %vm9505_vm14, %v8644_v27, %v5743_v14 }
 0x462   : > { %5554 = vrot.lane.b32.xlu0 %v5471_v20, %s8893_s11  ;;  %v5479_v37 = vor.u32 %v5478_v36, %v5475_v6  ;;  %5056 = vst.msk [vmem:[#allocation3 + $0x60] sm:$0xf] %vm416_vm0, %v5024_v57  ;;  %v8643_v51 = vrot.slane %v5630_v45, 9  ;;  %v5632_v5 = vld [vmem:[#allocation2 + $0x20] sm:$0x1]  ;;  %v5750_v32 = vrot.slane %v5637_v54, 5 }
 0x463   : > { %5048 = vst.msk [vmem:[#allocation3 + $0x40] sm:$0xf] %vm416_vm0, %v5016_v18  ;;  %v5738_v2 = vrot.slane %v5736_v46, 4  ;;  %v5739_v61 = vrot.slane %v5632_v5, 5  ;;  %v5638_v28 = vld [vmem:[#allocation2 + $0x38] sm:$0x1] }
 0x464   : > { %v5480_v60 = vrot.slane %v5479_v37, 4  ;;  %v5737_v10 = vsel %vm9505_vm14, %v8643_v51, %v5736_v46  ;;  %v5752_v36 = vrot.slane %v5750_v32, 4  ;;  %v5635_v20 = vld [vmem:[#allocation2 + $0x2c] sm:$0x1]  ;;  %v5745_v53 = vrot.slane %v5743_v14, 4 }
 0x465   : > { %v5110_v0 = vld [vmem:[#allocation2 + $0xb8] sm:$0xf]  ;;  %v5740_v62 = vsel %vm9505_vm14, %v5738_v2, %v5739_v61  ;;  %v5025_v47 = vld [vmem:[#allocation2 + $0x94] sm:$0xf]  ;;  %v5753_v37 = vrot.slane %v5638_v28, 5 }
 0x466   : > { %v5482_v55 = vshll.u32 %v5110_v0, 16  ;;  %v5486_v4 = vshrl.u32 %v5110_v0, 16  ;;  %v5111_v42 = vld [vmem:[#allocation2 + $0xbc] sm:$0x1]  ;;  %5057 = vst.msk [vmem:[#allocation3 + $0x64] sm:$0xf] %vm416_vm0, %v5025_v47 }
 0x467   : > { %v5492_v43 = vshll.u32 %v5111_v42, 16  ;;  %v5746_v0 = vrot.slane %v5635_v20, 5  ;;  %v5754_v19 = vsel %vm9505_vm14, %v5752_v36, %v5753_v37  ;;  %v5643_v7 = vld [vmem:[#allocation2 + $0x4c] sm:$0xf]  ;;  %v5646_v56 = vld [vmem:[#allocation2 + $0x58] sm:$0xf] }
 0x468   : > { %v5484_v48 = vrot.slane %v5482_v55, 5  ;;  %v5488_v25 = vrot.slane %v5486_v4, 4  ;;  %v5636_v55 = vld [vmem:[#allocation2 + $0x30] sm:$0xe]  ;;  %v5017_v4 = vld [vmem:[#allocation2 + $0x64] sm:$0xf] }
 0x469   : > { %v5517_v41 = vpop.permute.xlu2 %5516  ;;  %v5494_v52 = vrot.slane %v5492_v43, 5  ;;  %v5747_v42 = vsel %vm9505_vm14, %v5745_v53, %v5746_v0  ;;  %5049 = vst.msk [vmem:[#allocation3 + $0x44] sm:$0xf] %vm416_vm0, %v5017_v4  ;;  %v5764_v43 = vrot.slane %v5643_v7, 5  ;;  %v5771_v50 = vrot.slane %v5646_v56, 5 }
 0x46a   : > { %5602 = vst.msk [vmem:[#allocation3 + $0x28] sm:$0xf] %vm1602_vm15, %v5517_v41  ;;  %5832 = vrot.lane.b32.xlu0 %v5723_v26, %s8894_s16  ;;  %v5485_v34 = vsel %vm9032_vm10, %v5480_v60, %v5484_v48  ;;  %v5489_v12 = vor.u32 %v5488_v25, %v5484_v48  ;;  %v5640_v26 = vld [vmem:[#allocation2 + $0x40] sm:$0xf]  ;;  %v8645_v60 = vrot.slane %v5636_v55, 9 }
 0x46b   : > { %5556 = vrot.lane.b32.xlu1 %v5485_v34, %s8893_s11  ;;  %v5642_v48 = vld [vmem:[#allocation2 + $0x48] sm:$0xe]  ;;  %v5639_v41 = vld [vmem:[#allocation2 + $0x3c] sm:$0xe]  ;;  %v5757_v3 = vrot.slane %v5640_v26, 5  ;;  %v5773_v11 = vrot.slane %v5771_v50, 4 }
 0x46c   : > { %v5490_v44 = vrot.slane %v5489_v12, 4  ;;  %v5751_v33 = vsel %vm9505_vm14, %v8645_v60, %v5750_v32  ;;  %v5026_v34 = vld [vmem:[#allocation2 + $0x9c] sm:$0xf]  ;;  %v8647_v12 = vrot.slane %v5642_v48, 9  ;;  %v8646_v13 = vrot.slane %v5639_v41, 9 }
 0x46d   : > { %5058 = vst.msk [vmem:[#allocation3 + $0x68] sm:$0xf] %vm416_vm0, %v5026_v34  ;;  %v5759_v21 = vrot.slane %v5757_v3, 4  ;;  %v5644_v49 = vld [vmem:[#allocation2 + $0x50] sm:$0x1] }
 0x46e   : > { %v5495_v31 = vsel %vm9032_vm10, %v5490_v44, %v5494_v52  ;;  %v5765_v44 = vsel %vm9505_vm14, %v8647_v12, %v5764_v43  ;;  %v5641_v52 = vld [vmem:[#allocation2 + $0x44] sm:$0x1]  ;;  %v5758_v39 = vsel %vm9505_vm14, %v8646_v13, %v5757_v3  ;;  %v5767_v29 = vrot.slane %v5644_v49, 5  ;;  %v5645_v59 = vld [vmem:[#allocation2 + $0x54] sm:$0xe] }
 0x46f   : > { %5558 = vrot.lane.b32.xlu2 %v5495_v31, %s8893_s11  ;;  %v5760_v23 = vrot.slane %v5641_v52, 5  ;;  %v5647_v31 = vld [vmem:[#allocation2 + $0x5c] sm:$0x1]  ;;  %v5652_v14 = vld [vmem:[#allocation2 + $0x70] sm:$0xf]  ;;  %v8648_v46 = vrot.slane %v5645_v59, 9 }
 0x470   : > { %v5513_v38 = vpop.permute.xlu0 %5512  ;;  %v5774_v8 = vrot.slane %v5647_v31, 5  ;;  %v5649_v45 = vld [vmem:[#allocation2 + $0x64] sm:$0xf]  ;;  %v5785_v54 = vrot.slane %v5652_v14, 5  ;;  %v5648_v57 = vld [vmem:[#allocation2 + $0x60] sm:$0xe] }
 0x471   : > { %5600 = vst.msk [vmem:[#allocation3 + $0x20] sm:$0xf] %vm1602_vm15, %v5513_v38  ;;  %v5761_v38 = vsel %vm9505_vm14, %v5759_v21, %v5760_v23  ;;  %v5772_v27 = vsel %vm9505_vm14, %v8648_v46, %v5771_v50  ;;  %v5778_v18 = vrot.slane %v5649_v45, 5  ;;  %v5655_v51 = vld [vmem:[#allocation2 + $0x7c] sm:$0xf] }
 0x472   : > { %5838 = vrot.lane.b32.xlu0 %v5733_v24, %s8894_s16  ;;  %v5027_v24 = vld [vmem:[#allocation2 + $0xa0] sm:$0xf]  ;;  %v5775_v17 = vsel %vm9505_vm14, %v5773_v11, %v5774_v8  ;;  %v5650_v61 = vld [vmem:[#allocation2 + $0x68] sm:$0x1]  ;;  %v5792_v28 = vrot.slane %v5655_v51, 5  ;;  %v5787_v0 = vrot.slane %v5785_v54, 4 }
 0x473   : > { %5834 = vrot.lane.b32.xlu1 %v5726_v22, %s8894_s16  ;;  %v5766_v22 = vrot.slane %v5764_v43, 4  ;;  %5059 = vst.msk [vmem:[#allocation3 + $0x6c] sm:$0xf] %vm416_vm0, %v5027_v24  ;;  %v5780_v36 = vrot.slane %v5778_v18, 4  ;;  %v5781_v20 = vrot.slane %v5650_v61, 5 }
 0x474   : > { %v5794_v53 = vrot.slane %v5792_v28, 4  ;;  %v5653_v47 = vld [vmem:[#allocation2 + $0x74] sm:$0x1]  ;;  %v5654_v60 = vld [vmem:[#allocation2 + $0x78] sm:$0xe] }
 0x475   : > { %v5515_v40 = vpop.permute.xlu1 %5514  ;;  %v5782_v37 = vsel %vm9505_vm14, %v5780_v36, %v5781_v20  ;;  %v5788_v7 = vrot.slane %v5653_v47, 5  ;;  %v5658_v43 = vld [vmem:[#allocation2 + $0x88] sm:$0xf]  ;;  %v8651_v41 = vrot.slane %v5654_v60, 9  ;;  %v5660_v3 = vld [vmem:[#allocation2 + $0x90] sm:$0xe] }
 0x476   : > { %5601 = vst.msk [vmem:[#allocation3 + $0x24] sm:$0xf] %vm1602_vm15, %v5515_v40  ;;  %v5768_v40 = vsel %vm9505_vm14, %v5766_v22, %v5767_v29  ;;  %v5657_v34 = vld [vmem:[#allocation2 + $0x84] sm:$0xe]  ;;  %v5799_v13 = vrot.slane %v5658_v43, 5  ;;  %v8653_v52 = vrot.slane %v5660_v3, 9 }
 0x477   : > { %5836 = vrot.lane.b32.xlu2 %v5730_v58, %s8894_s16  ;;  %v5651_v58 = vld [vmem:[#allocation2 + $0x6c] sm:$0xe]  ;;  %v5789_v48 = vsel %vm9505_vm14, %v5787_v0, %v5788_v7  ;;  %v5793_v12 = vsel %vm9505_vm14, %v8651_v41, %v5792_v28  ;;  %v5030_v50 = vld [vmem:[#allocation2 + $0xb4] sm:$0xf]  ;;  %v8652_v21 = vrot.slane %v5657_v34, 9 }
 0x478   : > { %v8650_v5 = vrot.slane %v5651_v58, 9  ;;  %5062 = vst.msk [vmem:[#allocation3 + $0x78] sm:$0xf] %vm416_vm0, %v5030_v50  ;;  %v5659_v31 = vld [vmem:[#allocation2 + $0x8c] sm:$0x1] }
 0x479   : > { %v5800_v49 = vsel %vm9505_vm14, %v8652_v21, %v5799_v13  ;;  %v5031_v22 = vld [vmem:[#allocation2 + $0xb8] sm:$0xf]  ;;  %v5802_v24 = vrot.slane %v5659_v31, 5  ;;  %v5665_v8 = vld [vmem:[#allocation2 + $0xa4] sm:$0x1] }
 0x47a   : > { %5844 = vrot.lane.b32.xlu0 %v5744_v30, %s8894_s16  ;;  %v5028_v30 = vld [vmem:[#allocation2 + $0xa8] sm:$0xf]  ;;  %v5786_v2 = vsel %vm9505_vm14, %v8650_v5, %v5785_v54  ;;  %5063 = vst.msk [vmem:[#allocation3 + $0x7c] sm:$0xf] %vm416_vm0, %v5031_v22  ;;  %v5816_v14 = vrot.slane %v5665_v8, 5 }
 0x47b   : > { %5840 = vrot.lane.b32.xlu1 %v5737_v10, %s8894_s16  ;;  %5060 = vst.msk [vmem:[#allocation3 + $0x70] sm:$0xf] %vm416_vm0, %v5028_v30  ;;  %v8649_v10 = vrot.slane %v5648_v57, 9  ;;  %v5663_v54 = vld [vmem:[#allocation2 + $0x9c] sm:$0xe] }
 0x47c   : > { %v8654_v30 = vrot.slane %v5663_v54, 9  ;;  %v5669_v5 = vld [vmem:[#allocation2 + $0xb4] sm:$0xe]  ;;  %v5961_v60 = vld [vmem:[#allocation2 + $0x10] sm:$0xf] }
 0x47d   : > { %v5523_v6 = vpop.permute.xlu2 %5522  ;;  %v5960_v41 = vld [vmem:[#allocation2 + $0xc] sm:$0xf]  ;;  %v5964_v3 = vld [vmem:[#allocation2 + $0x24] sm:$0xf]  ;;  %v8850_v50 = vld [vmem:[%s12101_s5] ss:$0 sm:$0xff] }
 0x47e   : > { %5605 = vst.msk [vmem:[#allocation3 + $0x34] sm:$0xf] %vm1602_vm15, %v5523_v6  ;;  %v5779_v6 = vsel %vm9505_vm14, %v8649_v10, %v5778_v18  ;;  %v5667_v18 = vld [vmem:[#allocation2 + $0xac] sm:$0xf]  ;;  %v5965_v21 = vld [vmem:[#allocation2 + $0x28] sm:$0xf] }
 0x47f   : > { %5842 = vrot.lane.b32.xlu2 %v5740_v62, %s8894_s16  ;;  %v5656_v62 = vld [vmem:[#allocation2 + $0x80] sm:$0x1]  ;;  %v5820_v28 = vrot.slane %v5667_v18, 5  ;;  %v5970_v8 = vld [vmem:[#allocation2 + $0x48] sm:$0xf] }
 0x480   : > { %v5795_v55 = vrot.slane %v5656_v62, 5  ;;  %v5969_v18 = vld [vmem:[#allocation2 + $0x40] sm:$0xf] }
 0x482   : > { %5850 = vrot.lane.b32.xlu0 %v5754_v19, %s8894_s16  ;;  %v5029_v19 = vld [vmem:[#allocation2 + $0xac] sm:$0xf]  ;;  %v5796_v26 = vsel %vm9505_vm14, %v5794_v53, %v5795_v55  ;;  %v5668_v53 = vld [vmem:[#allocation2 + $0xb0] sm:$0x1] }
 0x483   : > { %5846 = vrot.lane.b32.xlu1 %v5747_v42, %s8894_s16  ;;  %5061 = vst.msk [vmem:[#allocation3 + $0x74] sm:$0xf] %vm416_vm0, %v5029_v19  ;;  %v5823_v19 = vrot.slane %v5668_v53, 5 }
 0x485   : > { %v5519_v25 = vpop.permute.xlu0 %5518 }
 0x486   : > { %5603 = vst.msk [vmem:[#allocation3 + $0x2c] sm:$0xf] %vm1602_vm15, %v5519_v25  ;;  %v5661_v25 = vld [vmem:[#allocation2 + $0x94] sm:$0xf] }
 0x487   : > { %5848 = vrot.lane.b32.xlu2 %v5751_v33, %s8894_s16  ;;  %v5806_v56 = vrot.slane %v5661_v25, 5 }
 0x489   : > { %v5807_v23 = vsel %vm9505_vm14, %v8653_v52, %v5806_v56 }
 0x48a   : > { %5856 = vrot.lane.b32.xlu0 %v5765_v44, %s8894_s16  ;;  %v5664_v44 = vld [vmem:[#allocation2 + $0xa0] sm:$0xf] }
 0x48b   : > { %5852 = vrot.lane.b32.xlu1 %v5758_v39, %s8894_s16  ;;  %v5813_v11 = vrot.slane %v5664_v44, 5  ;;  %v5967_v44 = vld [vmem:[#allocation2 + $0x34] sm:$0xf] }
 0x48d   : > { %v5814_v61 = vsel %vm9505_vm14, %v8654_v30, %v5813_v11 }
 0x48f   : > { %5854 = vrot.lane.b32.xlu2 %v5761_v38, %s8894_s16  ;;  %v5801_v38 = vrot.slane %v5799_v13, 4 }
 0x491   : > { %v5521_v15 = vpop.permute.xlu1 %5520  ;;  %v5803_v59 = vsel %vm9505_vm14, %v5801_v38, %v5802_v24  ;;  %v5966_v38 = vld [vmem:[#allocation2 + $0x30] sm:$0xf] }
 0x492   : > { %5604 = vst.msk [vmem:[#allocation3 + $0x30] sm:$0xf] %vm1602_vm15, %v5521_v15  ;;  %5862 = vrot.lane.b32.xlu0 %v5775_v17, %s8894_s16  ;;  %v5815_v15 = vrot.slane %v5813_v11, 4  ;;  %v5662_v17 = vld [vmem:[#allocation2 + $0x98] sm:$0x1] }
 0x493   : > { %5858 = vrot.lane.b32.xlu1 %v5768_v40, %s8894_s16  ;;  %v5808_v40 = vrot.slane %v5806_v56, 4  ;;  %v5809_v46 = vrot.slane %v5662_v17, 5  ;;  %v5962_v56 = vld [vmem:[#allocation2 + $0x18] sm:$0xf] }
 0x494   : > { %v5817_v58 = vsel %vm9505_vm14, %v5815_v15, %v5816_v14 }
 0x495   : > { %v5810_v57 = vsel %vm9505_vm14, %v5808_v40, %v5809_v46  ;;  %v5968_v40 = vld [vmem:[#allocation2 + $0x3c] sm:$0xf] }
 0x497   : > { %5860 = vrot.lane.b32.xlu2 %v5772_v27, %s8894_s16  ;;  %v5670_v27 = vld [vmem:[#allocation2 + $0xb8] sm:$0xf] }
 0x498   : > { %v5529_v32 = vpop.permute.xlu2 %5528  ;;  %v5827_v10 = vrot.slane %v5670_v27, 5 }
 0x499   : > { %5608 = vst.msk [vmem:[#allocation3 + $0x40] sm:$0xf] %vm1602_vm15, %v5529_v32 }
 0x49a   : > { %5868 = vrot.lane.b32.xlu0 %v5786_v2, %s8894_s16  ;;  %v5666_v2 = vld [vmem:[#allocation2 + $0xa8] sm:$0xe]  ;;  %v5829_v7 = vrot.slane %v5827_v10, 4 }
 0x49b   : > { %5864 = vrot.lane.b32.xlu1 %v5779_v6, %s8894_s16  ;;  %v8656_v6 = vrot.slane %v5669_v5, 9  ;;  %v8655_v20 = vrot.slane %v5666_v2, 9  ;;  %v5973_v5 = vld [vmem:[#allocation2 + $0x58] sm:$0xf] }
 0x49d   : > { %v5828_v62 = vsel %vm9505_vm14, %v8656_v6, %v5827_v10  ;;  %v5821_v47 = vsel %vm9505_vm14, %v8655_v20, %v5820_v28  ;;  %v4997_v20 = vld [vmem:[#allocation2 + $0xc8] sm:$0x1] }
 0x49f   : > { %5866 = vrot.lane.b32.xlu2 %v5782_v37, %s8894_s16  ;;  %v5822_v37 = vrot.slane %v5820_v28, 4 }
 0x4a0   : > { %v5525_v4 = vpop.permute.xlu0 %5524  ;;  %v5535_v42 = vpop.permute.xlu2 %5534 }
 0x4a1   : > { %5606 = vst.msk [vmem:[#allocation3 + $0x38] sm:$0xf] %vm1602_vm15, %v5525_v4  ;;  %v5671_v4 = vld [vmem:[#allocation2 + $0xbc] sm:$0x1] }
 0x4a2   : > { %5611 = vst.msk [vmem:[#allocation3 + $0x4c] sm:$0xf] %vm1602_vm15, %v5535_v42  ;;  %5874 = vrot.lane.b32.xlu0 %v5796_v26, %s8894_s16  ;;  %v5824_v42 = vsel %vm9505_vm14, %v5822_v37, %v5823_v19  ;;  %v5830_v26 = vrot.slane %v5671_v4, 5  ;;  %v5976_v19 = vld [vmem:[#allocation2 + $0x6c] sm:$0xf] }
 0x4a3   : > { %5870 = vrot.lane.b32.xlu1 %v5789_v48, %s8894_s16  ;;  %v5974_v4 = vld [vmem:[#allocation2 + $0x60] sm:$0xf] }
 0x4a4   : > { %v5831_v48 = vsel %vm9505_vm14, %v5829_v7, %v5830_v26  ;;  %v5979_v7 = vld [vmem:[#allocation2 + $0x7c] sm:$0xf] }
 0x4a5   : > { %v5527_v33 = vpop.permute.xlu1 %5526 }
 0x4a6   : > { %5607 = vst.msk [vmem:[#allocation3 + $0x3c] sm:$0xf] %vm1602_vm15, %v5527_v33 }
 0x4a7   : > { %5872 = vrot.lane.b32.xlu2 %v5793_v12, %s8894_s16  ;;  %v5963_v12 = vld [vmem:[#allocation2 + $0x1c] sm:$0xf] }
 0x4a8   : > { %v5541_v39 = vpop.permute.xlu2 %5540 }
 0x4a9   : > { %5614 = vst.msk [vmem:[#allocation3 + $0x58] sm:$0xf] %vm1602_vm15, %v5541_v39 }
 0x4aa   : > { %5880 = vrot.lane.b32.xlu0 %v5807_v23, %s8894_s16  ;;  %v8851_v23 = vld [vmem:[%s12102_s6] ss:$0 sm:$0xff] }
 0x4ab   : > { %5876 = vrot.lane.b32.xlu1 %v5800_v49, %s8894_s16 }
 0x4ad   : > { %v5533_v29 = vpop.permute.xlu1 %5532 }
 0x4ae   : > { %5610 = vst.msk [vmem:[#allocation3 + $0x48] sm:$0xf] %vm1602_vm15, %v5533_v29 }
 0x4af   : > { %5878 = vrot.lane.b32.xlu2 %v5803_v59, %s8894_s16 }
 0x4b0   : > { %v5547_v45 = vpop.permute.xlu2 %5546 }
 0x4b1   : > { %5617 = vst.msk [vmem:[#allocation3 + $0x64] sm:$0xf] %vm1602_vm15, %v5547_v45 }
 0x4b2   : > { %5886 = vrot.lane.b32.xlu0 %v5817_v58, %s8894_s16  ;;  %v4993_v58 = vld [vmem:[#allocation2 + $0xc0] sm:$0xf] }
 0x4b3   : > { %5882 = vrot.lane.b32.xlu1 %v5810_v57, %s8894_s16 }
 0x4b4   : > { %v5531_v51 = vpop.permute.xlu0 %5530 }
 0x4b5   : > { %v5539_v32 = vpop.permute.xlu1 %5538  ;;  %5609 = vst.msk [vmem:[#allocation3 + $0x44] sm:$0xf] %vm1602_vm15, %v5531_v51 }
 0x4b6   : > { %5613 = vst.msk [vmem:[#allocation3 + $0x54] sm:$0xf] %vm1602_vm15, %v5539_v32 }
 0x4b7   : > { %5884 = vrot.lane.b32.xlu2 %v5814_v61, %s8894_s16  ;;  %v5971_v61 = vld [vmem:[#allocation2 + $0x4c] sm:$0xf] }
 0x4b8   : > { %v5553_v36 = vpop.permute.xlu2 %5552 }
 0x4b9   : > { %5620 = vst.msk [vmem:[#allocation3 + $0x70] sm:$0xf] %vm1602_vm15, %v5553_v36 }
 0x4ba   : > { %5892 = vrot.lane.b32.xlu0 %v5828_v62, %s8894_s16 }
 0x4bb   : > { %5888 = vrot.lane.b32.xlu1 %v5821_v47, %s8894_s16  ;;  %v5972_v47 = vld [vmem:[#allocation2 + $0x54] sm:$0xf] }
 0x4bc   : > { %v5537_v0 = vpop.permute.xlu0 %5536 }
 0x4bd   : > { %v5545_v55 = vpop.permute.xlu1 %5544  ;;  %5612 = vst.msk [vmem:[#allocation3 + $0x50] sm:$0xf] %vm1602_vm15, %v5537_v0 }
 0x4be   : > { %5616 = vst.msk [vmem:[#allocation3 + $0x60] sm:$0xf] %vm1602_vm15, %v5545_v55 }
 0x4bf   : > { %5890 = vrot.lane.b32.xlu2 %v5824_v42, %s8894_s16 }
 0x4c2   : > { %6026 = vrot.lane.b32.xlu0 %v5961_v60, %s8895_s17  ;;  %v5977_v60 = vld [vmem:[#allocation2 + $0x70] sm:$0xf] }
 0x4c3   : > { %5894 = vrot.lane.b32.xlu1 %v5831_v48, %s8894_s16 }
 0x4c4   : > { %v5543_v25 = vpop.permute.xlu0 %5542 }
 0x4c5   : > { %v5551_v43 = vpop.permute.xlu1 %5550  ;;  %5615 = vst.msk [vmem:[#allocation3 + $0x5c] sm:$0xf] %vm1602_vm15, %v5543_v25 }
 0x4c6   : > { %5619 = vst.msk [vmem:[#allocation3 + $0x6c] sm:$0xf] %vm1602_vm15, %v5551_v43  ;;  %v4427_v13 = vpop.f32.mrf.mxu2  ;;  %v5978_v43 = vld [vmem:[#allocation2 + $0x78] sm:$0xf] }
 0x4c7   : > { %6024 = vrot.lane.b32.xlu2 %v5960_v41, %s8895_s17  ;;  %v4466_v39 = vmul.f32 %v8850_v50, %v4427_v13  ;;  %v5982_v41 = vld [vmem:[#allocation2 + $0x90] sm:$0xf]  ;;  %v5985_v13 = vld [vmem:[#allocation2 + $0xa0] sm:$0xf] }
 0x4c9   : > { %v5559_v33 = vpop.permute.xlu2 %5558  ;;  %v4502_v31 = vadd.f32 %v8851_v23, %v4466_v39 }
 0x4ca   : > { %6032 = vrot.lane.b32.xlu0 %v5964_v3, %s8895_s17  ;;  %5623 = vst.msk [vmem:[#allocation3 + $0x7c] sm:$0xf] %vm1602_vm15, %v5559_v33  ;;  %v5980_v33 = vld [vmem:[#allocation2 + $0x84] sm:$0xf] }
 0x4cb   : > { %6028 = vrot.lane.b32.xlu1 %v5962_v56, %s8895_s17  ;;  %v4534_v49 = vmax.f32 %v4502_v31, 0.0  ;;  %v6155_v31 = vld [vmem:[#allocation2 + $0x18] sm:$0xf] }
 0x4cc   : > { %v5549_v34 = vpop.permute.xlu0 %5548 }
 0x4cd   : > { %5618 = vst.msk [vmem:[#allocation3 + $0x68] sm:$0xf] %vm1602_vm15, %v5549_v34  ;;  %v4566_v22 = vpack.c.bf16 %v4534_v49, %v4534_v49 }
 0x4ce   : > { %v4429_v24 = vpop.f32.mrf.mxu2 }
 0x4cf   : > { %6030 = vrot.lane.b32.xlu2 %v5963_v12, %s8895_s17  ;;  %v4824_v15 = vshrl.u32 %v4566_v22, 16  ;;  %v4827_v17 = vshll.u32 %v4566_v22, 16  ;;  %v4467_v59 = vmul.f32 %v8850_v50, %v4429_v24  ;;  %v5981_v12 = vld [vmem:[#allocation2 + $0x88] sm:$0xf] }
 0x4d0   : > { %v5986_v24 = vld [vmem:[#allocation2 + $0xa8] sm:$0xf] }
 0x4d1   : > { %v5837_v52 = vpop.permute.xlu2 %5836  ;;  %v4826_v14 = vrot.slane %v4824_v15, 7  ;;  %v4503_v45 = vadd.f32 %v8851_v23, %v4467_v59  ;;  %v6152_v23 = vld [vmem:[#allocation2 + $0xc] sm:$0xf]  ;;  %v6228_v15 = vshll.u32 %v6155_v31, 16  ;;  %v6156_v59 = vld [vmem:[#allocation2 + $0x1c] sm:$0xf] }
 0x4d2   : > { %6038 = vrot.lane.b32.xlu0 %v5967_v44, %s8895_s17  ;;  %5930 = vst.msk [vmem:[#allocation3 + $0x8] sm:$0xf] %vm1942_vm1, %v5837_v52  ;;  %v5983_v52 = vld [vmem:[#allocation2 + $0x94] sm:$0xf]  ;;  %v6204_v22 = vshll.u32 %v6152_v23, 16 }
 0x4d3   : > { %6034 = vrot.lane.b32.xlu1 %v5965_v21, %s8895_s17  ;;  %v4829_v57 = vor.u32 %v4827_v17, %v4826_v14  ;;  %v4535_v27 = vmax.f32 %v4503_v45, 0.0  ;;  %v4830_v28 = vrot.slane %v4826_v14, 4  ;;  %v5984_v21 = vld [vmem:[#allocation2 + $0x9c] sm:$0xf] }
 0x4d4   : > { %v5555_v11 = vpop.permute.xlu0 %5554  ;;  %v6206_v45 = vrot.slane %v6204_v22, 5 }
 0x4d5   : > { %5621 = vst.msk [vmem:[#allocation3 + $0x74] sm:$0xf] %vm1602_vm15, %v5555_v11  ;;  %v4994_v51 = vsel %vm9026_vm9, %v4829_v57, %v4993_v58  ;;  %v4567_v30 = vpack.c.bf16 %v4535_v27, %v4535_v27  ;;  %v5988_v11 = vld [vmem:[#allocation2 + $0xb4] sm:$0xf]  ;;  %v6159_v57 = vld [vmem:[#allocation2 + $0x28] sm:$0xf] }
 0x4d6   : > { %4995 = vst [vmem:[#allocation2 + $0xc0] sm:$0xf] %v4994_v51  ;;  %v6230_v51 = vrot.slane %v6228_v15, 5 }
 0x4d7   : > { %6036 = vrot.lane.b32.xlu2 %v5966_v38, %s8895_s17  ;;  %v4832_v10 = vshrl.u32 %v4567_v30, 16  ;;  %v4835_v2 = vshll.u32 %v4567_v30, 16  ;;  %v6201_v38 = vshrl.u32 %v6152_v23, 16  ;;  %v6234_v30 = vshll.u32 %v6156_v59, 16 }
 0x4d9   : > { %v5843_v29 = vpop.permute.xlu2 %5842  ;;  %v4834_v6 = vrot.slane %v4832_v10, 7  ;;  %v6203_v14 = vrot.slane %v6201_v38, 4 }
 0x4da   : > { %6044 = vrot.lane.b32.xlu0 %v5970_v8, %s8895_s17  ;;  %5933 = vst.msk [vmem:[#allocation3 + $0x14] sm:$0xf] %vm1942_vm1, %v5843_v29  ;;  %v6153_v8 = vld [vmem:[#allocation2 + $0x10] sm:$0xf]  ;;  %v6225_v29 = vshrl.u32 %v6155_v31, 16 }
 0x4db   : > { %6040 = vrot.lane.b32.xlu1 %v5968_v40, %s8895_s17  ;;  %v4837_v62 = vor.u32 %v4835_v2, %v4834_v6  ;;  %v4839_v53 = vrot.slane %v4834_v6, 4  ;;  %v6214_v58 = vshrl.u32 %v6153_v8, 16  ;;  %v6207_v10 = vor.u32 %v6206_v45, %v6203_v14  ;;  %v6154_v2 = vld [vmem:[#allocation2 + $0x14] sm:$0x1]  ;;  %v5989_v6 = vld [vmem:[#allocation2 + $0xb8] sm:$0xf] }
 0x4dc   : > { %v5833_v46 = vpop.permute.xlu0 %5832  ;;  %v6168_v45 = vld [vmem:[#allocation2 + $0x4c] sm:$0xf] }
 0x4dd   : > { %5928 = vst.msk [vmem:[#allocation3] sm:$0xf] %vm1942_vm1, %v5833_v46  ;;  %v5557_v54 = vpop.permute.xlu1 %5556  ;;  %v4838_v37 = vsel %vm9040_vm11, %v4830_v28, %v4837_v62  ;;  %v4998_v0 = vsel %vm8953_vm3, %v4839_v53, %v4997_v20  ;;  %v6210_v46 = vshll.u32 %v6153_v8, 16  ;;  %v6262_v28 = vshrl.u32 %v6159_v57, 16 }
 0x4de   : > { %5622 = vst.msk [vmem:[#allocation3 + $0x78] sm:$0xf] %vm1602_vm15, %v5557_v54  ;;  %v5987_v54 = vld [vmem:[#allocation2 + $0xac] sm:$0xf]  ;;  %v6216_v20 = vrot.slane %v6214_v58, 4  ;;  %v6236_v53 = vrot.slane %v6234_v30, 5 }
 0x4df   : > { %6042 = vrot.lane.b32.xlu2 %v5969_v18, %s8895_s17  ;;  %4996 = vst.msk [vmem:[#allocation2 + $0xc4] sm:$0xf] %vm416_vm0, %v4838_v37  ;;  %v6227_v18 = vrot.slane %v6225_v29, 4  ;;  %v6158_v37 = vld [vmem:[#allocation2 + $0x24] sm:$0xf]  ;;  %vm8408_vm0 = vcmask 31744  }
 0x4e0   : > { %4999 = vst [vmem:[#allocation2 + $0xc8] sm:$0x1] %v4998_v0 }
 0x4e1   : > { %v5849_v32 = vpop.permute.xlu2 %5848 }
 0x4e2   : > { %6050 = vrot.lane.b32.xlu0 %v5973_v5, %s8895_s17  ;;  %5936 = vst.msk [vmem:[#allocation3 + $0x20] sm:$0xf] %vm1942_vm1, %v5849_v32  ;;  %v6238_v5 = vshrl.u32 %v6156_v59, 16 }
 0x4e3   : > { %6046 = vrot.lane.b32.xlu1 %v5971_v61, %s8895_s17  ;;  %v6258_v61 = vshll.u32 %v6159_v57, 16 }
 0x4e4   : > { %v5839_v36 = vpop.permute.xlu0 %5838 }
 0x4e5   : > { %5931 = vst.msk [vmem:[#allocation3 + $0xc] sm:$0xf] %vm1942_vm1, %v5839_v36  ;;  %v5835_v63 = vpop.permute.xlu1 %5834  ;;  %v6212_v36 = vrot.slane %v6210_v46, 5 }
 0x4e6   : > { %5929 = vst.msk [vmem:[#allocation3 + $0x4] sm:$0xf] %vm1942_vm1, %v5835_v63  ;;  %v5991_v27 = vld [vmem:[#allocation2 + $0xc4] sm:$0xf]  ;;  %v6231_v63 = vor.u32 %v6230_v51, %v6227_v18 }
 0x4e7   : > { %6048 = vrot.lane.b32.xlu2 %v5972_v47, %s8895_s17  ;;  %v6240_v47 = vrot.slane %v6238_v5, 4 }
 0x4e9   : > { %v5855_v55 = vpop.permute.xlu2 %5854 }
 0x4ea   : > { %6056 = vrot.lane.b32.xlu0 %v5976_v19, %s8895_s17  ;;  %5939 = vst.msk [vmem:[#allocation3 + $0x2c] sm:$0xf] %vm1942_vm1, %v5855_v55  ;;  %v6208_v19 = vrot.slane %v6207_v10, 4  ;;  %v6220_v55 = vshll.u32 %v6154_v2, 16  ;;  %v6330_v10 = vshll.u32 %v6168_v45, 16  ;;  %v6334_v2 = vshrl.u32 %v6168_v45, 16 }
 0x4eb   : > { %6052 = vrot.lane.b32.xlu1 %v5974_v4, %s8895_s17  ;;  %v11319_v4 = vrot.slane %v6258_v61, 5 }
 0x4ec   : > { %v5845_v42 = vpop.permute.xlu0 %5844 }
 0x4ed   : > { %5934 = vst.msk [vmem:[#allocation3 + $0x18] sm:$0xf] %vm1942_vm1, %v5845_v42  ;;  %v5841_v16 = vpop.permute.xlu1 %5840  ;;  %v6264_v42 = vrot.slane %v6262_v28, 4 }
 0x4ee   : > { %5932 = vst.msk [vmem:[#allocation3 + $0x10] sm:$0xf] %vm1942_vm1, %v5841_v16  ;;  %v5990_v16 = vld [vmem:[#allocation2 + $0xc0] sm:$0xf] }
 0x4ef   : > { %6054 = vrot.lane.b32.xlu2 %v5975_v1, %s8895_s17  ;;  %v6217_v1 = vor.u32 %v6216_v20, %v6212_v36 }
 0x4f1   : > { %v5861_v26 = vpop.permute.xlu2 %5860 }
 0x4f2   : > { %6062 = vrot.lane.b32.xlu0 %v5979_v7, %s8895_s17  ;;  %5942 = vst.msk [vmem:[#allocation3 + $0x38] sm:$0xf] %vm1942_vm1, %v5861_v26  ;;  %v6160_v7 = vld [vmem:[#allocation2 + $0x2c] sm:$0x1]  ;;  %v6232_v26 = vrot.slane %v6231_v63, 4 }
 0x4f3   : > { %6058 = vrot.lane.b32.xlu1 %v5977_v60, %s8895_s17  ;;  %v6241_v60 = vor.u32 %v6240_v47, %v6236_v53  ;;  %v6163_v63 = vld [vmem:[#allocation2 + $0x38] sm:$0x1] }
 0x4f4   : > { %v5851_v48 = vpop.permute.xlu0 %5850 }
 0x4f5   : > { %5937 = vst.msk [vmem:[#allocation3 + $0x24] sm:$0xf] %vm1942_vm1, %v5851_v48  ;;  %v5847_v25 = vpop.permute.xlu1 %5846  ;;  %v6249_v48 = vshrl.u32 %v6158_v37, 16 }
 0x4f6   : > { %5935 = vst.msk [vmem:[#allocation3 + $0x1c] sm:$0xf] %vm1942_vm1, %v5847_v25  ;;  %v6252_v25 = vshll.u32 %v6158_v37, 16 }
 0x4f7   : > { %6060 = vrot.lane.b32.xlu2 %v5978_v43, %s8895_s17  ;;  %v6164_v43 = vld [vmem:[#allocation2 + $0x3c] sm:$0xf]  ;;  %v6251_v22 = vrot.slane %v6249_v48, 4  ;;  %v6166_v48 = vld [vmem:[#allocation2 + $0x44] sm:$0x1] }
 0x4f9   : > { %v5867_v3 = vpop.permute.xlu2 %5866 }
 0x4fa   : > { %6068 = vrot.lane.b32.xlu0 %v5982_v41, %s8895_s17  ;;  %5945 = vst.msk [vmem:[#allocation3 + $0x44] sm:$0xf] %vm1942_vm1, %v5867_v3  ;;  %v6161_v41 = vld [vmem:[#allocation2 + $0x30] sm:$0xf]  ;;  %v6237_v3 = vsel %vm9032_vm10, %v6232_v26, %v6236_v53 }
 0x4fb   : > { %6064 = vrot.lane.b32.xlu1 %v5980_v33, %s8895_s17  ;;  %v6273_v23 = vshrl.u32 %v6161_v41, 16  ;;  %v6276_v31 = vshll.u32 %v6161_v41, 16 }
 0x4fc   : > { %v5857_v56 = vpop.permute.xlu0 %5856 }
 0x4fd   : > { %5940 = vst.msk [vmem:[#allocation3 + $0x30] sm:$0xf] %vm1942_vm1, %v5857_v56  ;;  %v5853_v34 = vpop.permute.xlu1 %5852  ;;  %v6265_v56 = vor.u32 %v6264_v42, %v11319_v4  ;;  %v6278_v57 = vrot.slane %v6276_v31, 5  ;;  %v6167_v42 = vld [vmem:[#allocation2 + $0x48] sm:$0xf] }
 0x4fe   : > { %5938 = vst.msk [vmem:[#allocation3 + $0x28] sm:$0xf] %vm1942_vm1, %v5853_v34  ;;  %v6268_v34 = vshll.u32 %v6160_v7, 16  ;;  %v6292_v7 = vshll.u32 %v6163_v63, 16  ;;  %v6324_v41 = vshll.u32 %v6167_v42, 16 }
 0x4ff   : > { %6066 = vrot.lane.b32.xlu2 %v5981_v12, %s8895_s17  ;;  %v6157_v12 = vld [vmem:[#allocation2 + $0x20] sm:$0x1]  ;;  %v6266_v29 = vrot.slane %v6265_v56, 4  ;;  %v6171_v31 = vld [vmem:[#allocation2 + $0x58] sm:$0xf] }
 0x500   : > { %v6244_v38 = vshll.u32 %v6157_v12, 16  ;;  %v6270_v15 = vrot.slane %v6268_v34, 5  ;;  %v6358_v45 = vshrl.u32 %v6171_v31, 16 }
 0x501   : > { %v5873_v44 = vpop.permute.xlu2 %5872 }
 0x502   : > { %6074 = vrot.lane.b32.xlu0 %v5985_v13, %s8895_s17  ;;  %5948 = vst.msk [vmem:[#allocation3 + $0x50] sm:$0xf] %vm1942_vm1, %v5873_v44  ;;  %v6213_v13 = vsel %vm9032_vm10, %v6208_v19, %v6212_v36  ;;  %v6218_v44 = vrot.slane %v6217_v1, 4  ;;  %v6271_v5 = vsel %vm9032_vm10, %v6266_v29, %v6270_v15  ;;  %v11344_v19 = vrot.slane %v6330_v10, 5 }
 0x503   : > { %6070 = vrot.lane.b32.xlu1 %v5983_v52, %s8895_s17  ;;  %v6222_v52 = vrot.slane %v6220_v55, 5  ;;  %v6336_v55 = vrot.slane %v6334_v2, 4 }
 0x504   : > { %v5863_v50 = vpop.permute.xlu0 %5862 }
 0x505   : > { %5943 = vst.msk [vmem:[#allocation3 + $0x3c] sm:$0xf] %vm1942_vm1, %v5863_v50  ;;  %v5859_v39 = vpop.permute.xlu1 %5858  ;;  %v6297_v50 = vshrl.u32 %v6164_v43, 16  ;;  %v6223_v59 = vsel %vm9032_vm10, %v6218_v44, %v6222_v52  ;;  %v6337_v34 = vor.u32 %v6336_v55, %v11344_v19  ;;  %v6294_v52 = vrot.slane %v6292_v7, 5 }
 0x506   : > { %5941 = vst.msk [vmem:[#allocation3 + $0x34] sm:$0xf] %vm1942_vm1, %v5859_v39  ;;  %v6300_v39 = vshll.u32 %v6164_v43, 16  ;;  %v6321_v43 = vshrl.u32 %v6167_v42, 16  ;;  %v6172_v42 = vld [vmem:[#allocation2 + $0x5c] sm:$0x1] }
 0x507   : > { %6072 = vrot.lane.b32.xlu2 %v5984_v21, %s8895_s17  ;;  %v6162_v21 = vld [vmem:[#allocation2 + $0x34] sm:$0xf]  ;;  %v6299_v46 = vrot.slane %v6297_v50, 4  ;;  %v6338_v15 = vrot.slane %v6337_v34, 4 }
 0x508   : > { %v6286_v14 = vshrl.u32 %v6162_v21, 16  ;;  %v6302_v58 = vrot.slane %v6300_v39, 5  ;;  %v6316_v39 = vshll.u32 %v6166_v48, 16  ;;  %v6178_v48 = vld [vmem:[#allocation2 + $0x74] sm:$0x1] }
 0x509   : > { %v5879_v49 = vpop.permute.xlu2 %5878 }
 0x50a   : > { %6080 = vrot.lane.b32.xlu0 %v5988_v11, %s8895_s17  ;;  %5951 = vst.msk [vmem:[#allocation3 + $0x5c] sm:$0xf] %vm1942_vm1, %v5879_v49  ;;  %v6242_v49 = vrot.slane %v6241_v60, 4  ;;  %v6303_v36 = vor.u32 %v6302_v58, %v6299_v46 }
 0x50b   : > { %6076 = vrot.lane.b32.xlu1 %v5986_v24, %s8895_s17  ;;  %v6254_v24 = vrot.slane %v6252_v25, 5  ;;  %v6169_v25 = vld [vmem:[#allocation2 + $0x50] sm:$0x1] }
 0x50c   : > { %v5869_v17 = vpop.permute.xlu0 %5868  ;;  %v6304_v26 = vrot.slane %v6303_v36, 4  ;;  %v6340_v50 = vshll.u32 %v6169_v25, 16  ;;  %v6360_v36 = vrot.slane %v6358_v45, 4 }
 0x50d   : > { %5946 = vst.msk [vmem:[#allocation3 + $0x48] sm:$0xf] %vm1942_vm1, %v5869_v17  ;;  %v5865_v40 = vpop.permute.xlu1 %5864  ;;  %v6165_v17 = vld [vmem:[#allocation2 + $0x40] sm:$0xf]  ;;  %v6255_v18 = vor.u32 %v6254_v24, %v6251_v22 }
 0x50e   : > { %5944 = vst.msk [vmem:[#allocation3 + $0x40] sm:$0xf] %vm1942_vm1, %v5865_v40  ;;  %v6282_v40 = vshll.u32 %v6162_v21, 16  ;;  %v6306_v51 = vshll.u32 %v6165_v17, 16  ;;  %v6310_v30 = vshrl.u32 %v6165_v17, 16  ;;  %v6342_v46 = vrot.slane %v6340_v50, 5 }
 0x50f   : > { %6078 = vrot.lane.b32.xlu2 %v5987_v54, %s8895_s17  ;;  %v6275_v54 = vrot.slane %v6273_v23, 4  ;;  %v6256_v53 = vrot.slane %v6255_v18, 4 }
 0x510   : > { %v6284_v28 = vrot.slane %v6282_v40, 5  ;;  %v6308_v47 = vrot.slane %v6306_v51, 5  ;;  %v6312_v37 = vrot.slane %v6310_v30, 4  ;;  %v6174_v40 = vld [vmem:[#allocation2 + $0x64] sm:$0xf] }
 0x511   : > { %v5885_v32 = vpop.permute.xlu2 %5884  ;;  %v6279_v20 = vor.u32 %v6278_v57, %v6275_v54  ;;  %v6378_v10 = vshll.u32 %v6174_v40, 16 }
 0x512   : > { %6086 = vrot.lane.b32.xlu0 %v5991_v27, %s8895_s17  ;;  %5954 = vst.msk [vmem:[#allocation3 + $0x68] sm:$0xf] %vm1942_vm1, %v5885_v32  ;;  %v6246_v27 = vrot.slane %v6244_v38, 5  ;;  %v6313_v12 = vor.u32 %v6312_v37, %v6308_v47  ;;  %v6326_v38 = vrot.slane %v6324_v41, 5  ;;  %v6176_v37 = vld [vmem:[#allocation2 + $0x6c] sm:$0xf] }
 0x513   : > { %6082 = vrot.lane.b32.xlu1 %v5989_v6, %s8895_s17  ;;  %v6288_v6 = vrot.slane %v6286_v14, 4  ;;  %v6280_v60 = vrot.slane %v6279_v20, 4  ;;  %v6354_v14 = vshll.u32 %v6171_v31, 16  ;;  %v6380_v55 = vrot.slane %v6378_v10, 5 }
 0x514   : > { %v5875_v62 = vpop.permute.xlu0 %5874  ;;  %v6247_v61 = vsel %vm9032_vm10, %v6242_v49, %v6246_v27  ;;  %v6323_v49 = vrot.slane %v6321_v43, 4  ;;  %v6314_v17 = vrot.slane %v6313_v12, 4  ;;  %v6318_v27 = vrot.slane %v6316_v39, 5  ;;  %v6180_v39 = vld [vmem:[#allocation2 + $0x7c] sm:$0xf] }
 0x515   : > { %5949 = vst.msk [vmem:[#allocation3 + $0x54] sm:$0xf] %vm1942_vm1, %v5875_v62  ;;  %v5871_v0 = vpop.permute.xlu1 %5870  ;;  %v6289_v1 = vor.u32 %v6288_v6, %v6284_v28  ;;  %v6356_v6 = vrot.slane %v6354_v14, 5  ;;  %v6393_v25 = vshrl.u32 %v6176_v37, 16  ;;  %v6396_v43 = vshll.u32 %v6176_v37, 16 }
 0x516   : > { %5947 = vst.msk [vmem:[#allocation3 + $0x4c] sm:$0xf] %vm1942_vm1, %v5871_v0  ;;  %v6327_v18 = vor.u32 %v6326_v38, %v6323_v49  ;;  %v6185_v37 = vld [vmem:[#allocation2 + $0x90] sm:$0xf] }
 0x517   : > { %6084 = vrot.lane.b32.xlu2 %v5990_v16, %s8895_s17  ;;  %v6261_v16 = vsel %vm9032_vm10, %v6256_v53, %v11319_v4  ;;  %v6285_v4 = vsel %vm9032_vm10, %v6280_v60, %v6284_v28  ;;  %v6290_v44 = vrot.slane %v6289_v1, 4  ;;  %v6382_v28 = vshrl.u32 %v6174_v40, 16 }
 0x518   : > { %v6361_v7 = vor.u32 %v6360_v36, %v6356_v6  ;;  %v6430_v40 = vshrl.u32 %v6180_v39, 16 }
 0x519   : > { %v5891_v33 = vpop.permute.xlu2 %5890 }
 0x51a   : > { %6588 = vrot.lane.b32.xlu0 %v6237_v3, %s8896_s22  ;;  %5957 = vst.msk [vmem:[#allocation3 + $0x74] sm:$0xf] %vm1942_vm1, %v5891_v33  ;;  %v6173_v3 = vld [vmem:[#allocation2 + $0x60] sm:$0xf]  ;;  %v6309_v33 = vsel %vm9032_vm10, %v6304_v26, %v6308_v47  ;;  %v6384_v26 = vrot.slane %v6382_v28, 4 }
 0x51b   : > { %6584 = vrot.lane.b32.xlu1 %v6213_v13, %s8896_s22  ;;  %v6170_v13 = vld [vmem:[#allocation2 + $0x54] sm:$0xf]  ;;  %v6369_v21 = vshrl.u32 %v6173_v3, 16  ;;  %v6372_v23 = vshll.u32 %v6173_v3, 16  ;;  %v6364_v3 = vshll.u32 %v6172_v42, 16 }
 0x51c   : > { %v5881_v11 = vpop.permute.xlu0 %5880  ;;  %v6345_v22 = vshrl.u32 %v6170_v13, 16  ;;  %v6348_v24 = vshll.u32 %v6170_v13, 16  ;;  %v6175_v13 = vld [vmem:[#allocation2 + $0x68] sm:$0x1]  ;;  %v6385_v50 = vor.u32 %v6384_v26, %v6380_v55 }
 0x51d   : > { %5952 = vst.msk [vmem:[#allocation3 + $0x60] sm:$0xf] %vm1942_vm1, %v5881_v11  ;;  %v5877_v8 = vpop.permute.xlu1 %5876  ;;  %v6371_v58 = vrot.slane %v6369_v21, 4  ;;  %v6374_v54 = vrot.slane %v6372_v23, 5  ;;  %v6395_v21 = vrot.slane %v6393_v25, 4  ;;  %v6398_v23 = vrot.slane %v6396_v43, 5 }
 0x51e   : > { %5950 = vst.msk [vmem:[#allocation3 + $0x58] sm:$0xf] %vm1942_vm1, %v5877_v8  ;;  %v6177_v8 = vld [vmem:[#allocation2 + $0x70] sm:$0xf]  ;;  %v6347_v51 = vrot.slane %v6345_v22, 4  ;;  %v6350_v30 = vrot.slane %v6348_v24, 5 }
 0x51f   : > { %6586 = vrot.lane.b32.xlu2 %v6223_v59, %s8896_s22  ;;  %v6295_v59 = vsel %vm9032_vm10, %v6290_v44, %v6294_v52  ;;  %v6402_v57 = vshll.u32 %v6177_v8, 16  ;;  %v6406_v2 = vshrl.u32 %v6177_v8, 16  ;;  %v6375_v20 = vor.u32 %v6374_v54, %v6371_v58  ;;  %v6183_v58 = vld [vmem:[#allocation2 + $0x88] sm:$0xf] }
 0x520   : > { %v6351_v53 = vor.u32 %v6350_v30, %v6347_v51  ;;  %v6362_v44 = vrot.slane %v6361_v7, 4  ;;  %v6412_v52 = vshll.u32 %v6178_v48, 16  ;;  %v6366_v38 = vrot.slane %v6364_v3, 5 }
 0x521   : > { %v6025_v32 = vpop.permute.xlu2 %6024  ;;  %v11371_v47 = vrot.slane %v6402_v57, 5  ;;  %v6376_v60 = vrot.slane %v6375_v20, 4  ;;  %v6388_v22 = vshll.u32 %v6175_v13, 16  ;;  %v6399_v30 = vor.u32 %v6398_v23, %v6395_v21 }
 0x522   : > { %6594 = vrot.lane.b32.xlu0 %v6271_v5, %s8896_s22  ;;  %6120 = vst.msk [vmem:[#allocation3] sm:$0xf] %vm2135_vm2, %v6025_v32  ;;  %v6343_v5 = vsel %vm9032_vm10, %v6338_v15, %v6342_v46  ;;  %v6352_v41 = vrot.slane %v6351_v53, 4  ;;  %v6367_v14 = vsel %vm9032_vm10, %v6362_v44, %v6366_v38  ;;  %v6414_v45 = vrot.slane %v6412_v52, 5 }
 0x523   : > { %6590 = vrot.lane.b32.xlu1 %v6247_v61, %s8896_s22  ;;  %v6319_v61 = vsel %vm9032_vm10, %v6314_v17, %v6318_v27  ;;  %v6386_v46 = vrot.slane %v6385_v50, 4  ;;  %v6390_v51 = vrot.slane %v6388_v22, 5  ;;  %v6454_v20 = vshrl.u32 %v6183_v58, 16  ;;  %v6188_v50 = vld [vmem:[#allocation2 + $0x9c] sm:$0xf] }
 0x524   : > { %v5887_v62 = vpop.permute.xlu0 %5886  ;;  %v6465_v43 = vshrl.u32 %v6185_v37, 16 }
 0x525   : > { %5955 = vst.msk [vmem:[#allocation3 + $0x6c] sm:$0xf] %vm1942_vm1, %v5887_v62  ;;  %v5883_v0 = vpop.permute.xlu1 %5882  ;;  %v6328_v62 = vrot.slane %v6327_v18, 4  ;;  %v6391_v36 = vsel %vm9032_vm10, %v6386_v46, %v6390_v51  ;;  %v6456_v25 = vrot.slane %v6454_v20, 4 }
 0x526   : > { %5953 = vst.msk [vmem:[#allocation3 + $0x64] sm:$0xf] %vm1942_vm1, %v5883_v0  ;;  %v6467_v23 = vrot.slane %v6465_v43, 4 }
 0x527   : > { %6592 = vrot.lane.b32.xlu2 %v6261_v16, %s8896_s22  ;;  %v6408_v16 = vrot.slane %v6406_v2, 4  ;;  %v6333_v1 = vsel %vm9032_vm10, %v6328_v62, %v11344_v19  ;;  %v6357_v19 = vsel %vm9032_vm10, %v6352_v41, %v6356_v6  ;;  %v6432_v6 = vrot.slane %v6430_v40, 4  ;;  %v6192_v40 = vld [vmem:[#allocation2 + $0xac] sm:$0xf] }
 0x529   : > { %v6031_v56 = vpop.permute.xlu2 %6030  ;;  %v6409_v12 = vor.u32 %v6408_v16, %v11371_v47  ;;  %v6181_v16 = vld [vmem:[#allocation2 + $0x80] sm:$0x1] }
 0x52a   : > { %6600 = vrot.lane.b32.xlu0 %v6309_v33, %s8896_s22  ;;  %6123 = vst.msk [vmem:[#allocation3 + $0xc] sm:$0xf] %vm2135_vm2, %v6031_v56  ;;  %v6182_v33 = vld [vmem:[#allocation2 + $0x84] sm:$0xf]  ;;  %v6381_v56 = vsel %vm9032_vm10, %v6376_v60, %v6380_v55  ;;  %v6400_v55 = vrot.slane %v6399_v30, 4 }
 0x52b   : > { %6596 = vrot.lane.b32.xlu1 %v6285_v4, %s8896_s22  ;;  %v6179_v4 = vld [vmem:[#allocation2 + $0x78] sm:$0xf]  ;;  %v6441_v31 = vshrl.u32 %v6182_v33, 16  ;;  %v6410_v17 = vrot.slane %v6409_v12, 4  ;;  %v6436_v12 = vshll.u32 %v6181_v16, 16 }
 0x52c   : > { %v5893_v11 = vpop.permute.xlu0 %5892  ;;  %v6417_v24 = vshrl.u32 %v6179_v4, 16  ;;  %v6420_v8 = vshll.u32 %v6179_v4, 16  ;;  %v6187_v60 = vld [vmem:[#allocation2 + $0x98] sm:$0x1]  ;;  %v6405_v48 = vsel %vm9032_vm10, %v6400_v55, %v11371_v47  ;;  %v6191_v4 = vld [vmem:[#allocation2 + $0xa8] sm:$0xf] }
 0x52d   : > { %5958 = vst.msk [vmem:[#allocation3 + $0x78] sm:$0xf] %vm1942_vm1, %v5893_v11  ;;  %v5889_v29 = vpop.permute.xlu1 %5888  ;;  %v6444_v11 = vshll.u32 %v6182_v33, 16  ;;  %v6443_v54 = vrot.slane %v6441_v31, 4  ;;  %v6415_v10 = vsel %vm9032_vm10, %v6410_v17, %v6414_v45  ;;  %v6184_v33 = vld [vmem:[#allocation2 + $0x8c] sm:$0x1] }
 0x52e   : > { %5956 = vst.msk [vmem:[#allocation3 + $0x70] sm:$0xf] %vm1942_vm1, %v5889_v29  ;;  %v6186_v29 = vld [vmem:[#allocation2 + $0x94] sm:$0xf]  ;;  %v6484_v13 = vshll.u32 %v6187_v60, 16  ;;  %v6460_v21 = vshll.u32 %v6184_v33, 16 }
 0x52f   : > { %6598 = vrot.lane.b32.xlu2 %v6295_v59, %s8896_s22  ;;  %v6426_v59 = vshll.u32 %v6180_v39, 16  ;;  %v6446_v57 = vrot.slane %v6444_v11, 5  ;;  %v6474_v27 = vshll.u32 %v6186_v29, 16  ;;  %v6478_v18 = vshrl.u32 %v6186_v29, 16  ;;  %v6189_v31 = vld [vmem:[#allocation2 + $0xa0] sm:$0xf] }
 0x530   : > { %v6513_v38 = vshrl.u32 %v6191_v4, 16  ;;  %v6516_v22 = vshll.u32 %v6191_v4, 16  ;;  %v6486_v29 = vrot.slane %v6484_v13, 5  ;;  %v6492_v17 = vshll.u32 %v6188_v50, 16  ;;  %v6190_v16 = vld [vmem:[#allocation2 + $0xa4] sm:$0x1] }
 0x531   : > { %v6037_v32 = vpop.permute.xlu2 %6036  ;;  %v6428_v28 = vrot.slane %v6426_v59, 5  ;;  %v11399_v62 = vrot.slane %v6474_v27, 5  ;;  %v6480_v53 = vrot.slane %v6478_v18, 4  ;;  %v6502_v45 = vshrl.u32 %v6189_v31, 16  ;;  %v6197_v33 = vld [vmem:[#allocation2 + $0xc0] sm:$0xf] }
 0x532   : > { %6606 = vrot.lane.b32.xlu0 %v6343_v5, %s8896_s22  ;;  %6126 = vst.msk [vmem:[#allocation3 + $0x18] sm:$0xf] %vm2135_vm2, %v6037_v32  ;;  %v6419_v5 = vrot.slane %v6417_v24, 4  ;;  %v6422_v32 = vrot.slane %v6420_v8, 5  ;;  %v6438_v8 = vrot.slane %v6436_v12, 5  ;;  %v6515_v51 = vrot.slane %v6513_v38, 4 }
 0x533   : > { %6602 = vrot.lane.b32.xlu1 %v6319_v61, %s8896_s22  ;;  %v6450_v61 = vshll.u32 %v6183_v58, 16  ;;  %v6433_v26 = vor.u32 %v6432_v6, %v6428_v28  ;;  %v6481_v3 = vor.u32 %v6480_v53, %v11399_v62  ;;  %v6518_v30 = vrot.slane %v6516_v22, 5 }
 0x534   : > { %v6027_v63 = vpop.permute.xlu0 %6026  ;;  %v6423_v42 = vor.u32 %v6422_v32, %v6419_v5  ;;  %v6522_v5 = vshll.u32 %v6192_v40, 16  ;;  %v6526_v32 = vshrl.u32 %v6192_v40, 16  ;;  %v6504_v6 = vrot.slane %v6502_v45, 4 }
 0x535   : > { %6121 = vst.msk [vmem:[#allocation3 + $0x4] sm:$0xf] %vm2135_vm2, %v6027_v63  ;;  %v5895_v0 = vpop.permute.xlu1 %5894  ;;  %v6447_v63 = vor.u32 %v6446_v57, %v6443_v54  ;;  %v6452_v7 = vrot.slane %v6450_v61, 5  ;;  %v6434_v52 = vrot.slane %v6433_v26, 4  ;;  %v6482_v11 = vrot.slane %v6481_v3, 4 }
 0x536   : > { %5959 = vst.msk [vmem:[#allocation3 + $0x7c] sm:$0xf] %vm1942_vm1, %v5895_v0  ;;  %v6462_v54 = vrot.slane %v6460_v21, 5  ;;  %v6195_v57 = vld [vmem:[#allocation2 + $0xb8] sm:$0xf]  ;;  %v6519_v53 = vor.u32 %v6518_v30, %v6515_v51  ;;  %v6524_v55 = vrot.slane %v6522_v5, 5 }
 0x537   : > { %6604 = vrot.lane.b32.xlu2 %v6333_v1, %s8896_s22  ;;  %v6448_v41 = vrot.slane %v6447_v63, 4  ;;  %v6457_v39 = vor.u32 %v6456_v25, %v6452_v7  ;;  %v6439_v46 = vsel %vm9032_vm10, %v6434_v52, %v6438_v8  ;;  %v6487_v27 = vsel %vm9032_vm10, %v6482_v11, %v6486_v29  ;;  %v6194_v25 = vld [vmem:[#allocation2 + $0xb4] sm:$0xf]  ;;  %v6198_v11 = vld [vmem:[#allocation2 + $0xc4] sm:$0xf] }
 0x538   : > { %v6550_v20 = vshrl.u32 %v6195_v57, 16  ;;  %v6508_v3 = vshll.u32 %v6190_v16, 16  ;;  %v6537_v12 = vshrl.u32 %v6194_v25, 16  ;;  %v6540_v13 = vshll.u32 %v6194_v25, 16  ;;  %v6713_v30 = vld [vmem:[#allocation2 + $0x10] sm:$0xf] }
 0x539   : > { %v6043_v34 = vpop.permute.xlu2 %6042  ;;  %v6458_v58 = vrot.slane %v6457_v39, 4  ;;  %v6561_v39 = vshrl.u32 %v6197_v33, 16  ;;  %v6564_v21 = vshll.u32 %v6197_v33, 16  ;;  %v6574_v45 = vshrl.u32 %v6198_v11, 16 }
 0x53a   : > { %6612 = vrot.lane.b32.xlu0 %v6381_v56, %s8896_s22  ;;  %6129 = vst.msk [vmem:[#allocation3 + $0x24] sm:$0xf] %vm2135_vm2, %v6043_v34  ;;  %v6468_v56 = vshll.u32 %v6185_v37, 16  ;;  %v6424_v34 = vrot.slane %v6423_v42, 4  ;;  %v6539_v22 = vrot.slane %v6537_v12, 4 }
 0x53b   : > { %6608 = vrot.lane.b32.xlu1 %v6357_v19, %s8896_s22  ;;  %v6453_v19 = vsel %vm9032_vm10, %v6448_v41, %v6452_v7  ;;  %v6463_v63 = vsel %vm9032_vm10, %v6458_v58, %v6462_v54  ;;  %v6520_v41 = vrot.slane %v6519_v53, 4  ;;  %v6566_v40 = vrot.slane %v6564_v21, 5 }
 0x53c   : > { %v6033_v49 = vpop.permute.xlu0 %6032  ;;  %v6429_v47 = vsel %vm9032_vm10, %v6424_v34, %v6428_v28  ;;  %v6196_v34 = vld [vmem:[#allocation2 + $0xbc] sm:$0x1] }
 0x53d   : > { %6124 = vst.msk [vmem:[#allocation3 + $0x10] sm:$0xf] %vm2135_vm2, %v6033_v49  ;;  %v6029_v15 = vpop.permute.xlu1 %6028  ;;  %v6470_v49 = vrot.slane %v6468_v56, 5  ;;  %v6525_v4 = vsel %vm9032_vm10, %v6520_v41, %v6524_v55 }
 0x53e   : > { %6122 = vst.msk [vmem:[#allocation3 + $0x8] sm:$0xf] %vm2135_vm2, %v6029_v15  ;;  %v6489_v15 = vshrl.u32 %v6188_v50, 16  ;;  %v6193_v50 = vld [vmem:[#allocation2 + $0xb0] sm:$0x1] }
 0x53f   : > { %6610 = vrot.lane.b32.xlu2 %v6367_v14, %s8896_s22  ;;  %v6498_v14 = vshll.u32 %v6189_v31, 16  ;;  %v6471_v18 = vor.u32 %v6470_v49, %v6467_v23  ;;  %v6510_v23 = vrot.slane %v6508_v3, 5  ;;  %v6556_v31 = vshll.u32 %v6196_v34, 16 }
 0x540   : > { %v6532_v38 = vshll.u32 %v6193_v50, 16  ;;  %v6719_v50 = vld [vmem:[#allocation2 + $0x28] sm:$0xf] }
 0x541   : > { %v6049_v2 = vpop.permute.xlu2 %6048  ;;  %v6500_v28 = vrot.slane %v6498_v14, 5  ;;  %v6570_v14 = vshll.u32 %v6198_v11, 16 }
 0x542   : > { %6618 = vrot.lane.b32.xlu0 %v6415_v10, %s8896_s22  ;;  %6132 = vst.msk [vmem:[#allocation3 + $0x30] sm:$0xf] %vm2135_vm2, %v6049_v2  ;;  %v6491_v10 = vrot.slane %v6489_v15, 4  ;;  %v6494_v2 = vrot.slane %v6492_v17, 5  ;;  %v6534_v58 = vrot.slane %v6532_v38, 5 }
 0x543   : > { %6614 = vrot.lane.b32.xlu1 %v6391_v36, %s8896_s22  ;;  %v6546_v36 = vshll.u32 %v6195_v57, 16  ;;  %v6505_v26 = vor.u32 %v6504_v6, %v6500_v28  ;;  %v6725_v38 = vld [vmem:[#allocation2 + $0x40] sm:$0xf] }
 0x544   : > { %v6039_v0 = vpop.permute.xlu0 %6038  ;;  %v6495_v42 = vor.u32 %v6494_v2, %v6491_v10  ;;  %v6576_v10 = vrot.slane %v6574_v45, 4  ;;  %v6199_v2 = vld [vmem:[#allocation2 + $0xc8] sm:$0x1] }
 0x545   : > { %6127 = vst.msk [vmem:[#allocation3 + $0x1c] sm:$0xf] %vm2135_vm2, %v6039_v0  ;;  %v6035_v1 = vpop.permute.xlu1 %6034  ;;  %v6472_v0 = vrot.slane %v6471_v18, 4  ;;  %v11428_v60 = vrot.slane %v6546_v36, 5  ;;  %v6712_v18 = vld [vmem:[#allocation2 + $0xc] sm:$0xe] }
 0x546   : > { %6125 = vst.msk [vmem:[#allocation3 + $0x14] sm:$0xf] %vm2135_vm2, %v6035_v1  ;;  %v6528_v1 = vrot.slane %v6526_v32, 4  ;;  %v6496_v56 = vrot.slane %v6495_v42, 4  ;;  %v6572_v32 = vrot.slane %v6570_v14, 5  ;;  %v8657_v36 = vrot.slane %v6712_v18, 9 }
 0x547   : > { %6616 = vrot.lane.b32.xlu2 %v6405_v48, %s8896_s22  ;;  %v6552_v48 = vrot.slane %v6550_v20, 4  ;;  %v6477_v43 = vsel %vm9032_vm10, %v6472_v0, %v11399_v62  ;;  %v6810_v20 = vrot.slane %v6713_v30, 5  ;;  %v6580_v0 = vshll.u32 %v6199_v2, 16 }
 0x548   : > { %v6501_v62 = vsel %vm9032_vm10, %v6496_v56, %v6500_v28 }
 0x549   : > { %v6055_v44 = vpop.permute.xlu2 %6054  ;;  %v6553_v52 = vor.u32 %v6552_v48, %v11428_v60  ;;  %v6811_v42 = vsel %vm9505_vm14, %v8657_v36, %v6810_v20  ;;  %v6714_v48 = vld [vmem:[#allocation2 + $0x14] sm:$0x1]  ;;  %v6812_v56 = vrot.slane %v6810_v20, 4  ;;  %v6730_v20 = vld [vmem:[#allocation2 + $0x54] sm:$0xe] }
 0x54a   : > { %6624 = vrot.lane.b32.xlu0 %v6453_v19, %s8896_s22  ;;  %6135 = vst.msk [vmem:[#allocation3 + $0x3c] sm:$0xf] %vm2135_vm2, %v6055_v44  ;;  %v6506_v44 = vrot.slane %v6505_v26, 4  ;;  %v6813_v34 = vrot.slane %v6714_v48, 5 }
 0x54b   : > { %6620 = vrot.lane.b32.xlu1 %v6429_v47, %s8896_s22  ;;  %v6529_v47 = vor.u32 %v6528_v1, %v6524_v55  ;;  %v6554_v15 = vrot.slane %v6553_v52, 4  ;;  %v6716_v55 = vld [vmem:[#allocation2 + $0x1c] sm:$0xf]  ;;  %v6722_v52 = vld [vmem:[#allocation2 + $0x34] sm:$0xf] }
 0x54c   : > { %v6045_v24 = vpop.permute.xlu0 %6044  ;;  %v6511_v29 = vsel %vm9032_vm10, %v6506_v44, %v6510_v23  ;;  %v6817_v1 = vrot.slane %v6716_v55, 5  ;;  %v6814_v44 = vsel %vm9505_vm14, %v6812_v56, %v6813_v34  ;;  %v6831_v23 = vrot.slane %v6722_v52, 5 }
 0x54d   : > { %6130 = vst.msk [vmem:[#allocation3 + $0x28] sm:$0xf] %vm2135_vm2, %v6045_v24  ;;  %v6041_v59 = vpop.permute.xlu1 %6040  ;;  %v6542_v24 = vrot.slane %v6540_v13, 5  ;;  %v6530_v17 = vrot.slane %v6529_v47, 4 }
 0x54e   : > { %6128 = vst.msk [vmem:[#allocation3 + $0x20] sm:$0xf] %vm2135_vm2, %v6041_v59  ;;  %v6563_v59 = vrot.slane %v6561_v39, 4  ;;  %v6819_v3 = vrot.slane %v6817_v1, 4  ;;  %v6721_v39 = vld [vmem:[#allocation2 + $0x30] sm:$0xe] }
 0x54f   : > { %6622 = vrot.lane.b32.xlu2 %v6439_v46, %s8896_s22  ;;  %v6558_v46 = vrot.slane %v6556_v31, 5  ;;  %v6543_v54 = vor.u32 %v6542_v24, %v6539_v22  ;;  %v6535_v51 = vsel %vm9032_vm10, %v6530_v17, %v6534_v58  ;;  %v6718_v31 = vld [vmem:[#allocation2 + $0x24] sm:$0xe]  ;;  %v8660_v22 = vrot.slane %v6721_v39, 9  ;;  %v6740_v39 = vld [vmem:[#allocation2 + $0x7c] sm:$0xf] }
 0x550   : > { %v6567_v5 = vor.u32 %v6566_v40, %v6563_v59  ;;  %v8659_v24 = vrot.slane %v6718_v31, 9  ;;  %v6838_v17 = vrot.slane %v6725_v38, 5  ;;  %v6833_v18 = vrot.slane %v6831_v23, 4 }
 0x551   : > { %v6061_v61 = vpop.permute.xlu2 %6060  ;;  %v6559_v57 = vsel %vm9032_vm10, %v6554_v15, %v6558_v46  ;;  %v6544_v28 = vrot.slane %v6543_v54, 4  ;;  %v6720_v15 = vld [vmem:[#allocation2 + $0x2c] sm:$0x1]  ;;  %v6726_v46 = vld [vmem:[#allocation2 + $0x44] sm:$0x1]  ;;  %v6873_v38 = vrot.slane %v6740_v39, 5 }
 0x552   : > { %6630 = vrot.lane.b32.xlu0 %v6487_v27, %s8896_s22  ;;  %6138 = vst.msk [vmem:[#allocation3 + $0x48] sm:$0xf] %vm2135_vm2, %v6061_v61  ;;  %v6568_v53 = vrot.slane %v6567_v5, 4  ;;  %v6827_v45 = vrot.slane %v6720_v15, 5  ;;  %v6840_v54 = vrot.slane %v6838_v17, 4 }
 0x553   : > { %6626 = vrot.lane.b32.xlu1 %v6463_v63, %s8896_s22  ;;  %v6549_v63 = vsel %vm9032_vm10, %v6544_v28, %v11428_v60  ;;  %v6582_v60 = vrot.slane %v6580_v0, 5  ;;  %v6728_v28 = vld [vmem:[#allocation2 + $0x4c] sm:$0xf] }
 0x554   : > { %v6051_v37 = vpop.permute.xlu0 %6050  ;;  %v6845_v55 = vrot.slane %v6728_v28, 5  ;;  %v11569_v39 = vld [vmem:[#allocation2 + $0xac] sm:$0xf] }
 0x555   : > { %6133 = vst.msk [vmem:[#allocation3 + $0x34] sm:$0xf] %vm2135_vm2, %v6051_v37  ;;  %v6047_v7 = vpop.permute.xlu1 %6046  ;;  %v6577_v37 = vor.u32 %v6576_v10, %v6572_v32  ;;  %v6724_v10 = vld [vmem:[#allocation2 + $0x3c] sm:$0xe] }
 0x556   : > { %6131 = vst.msk [vmem:[#allocation3 + $0x2c] sm:$0xf] %vm2135_vm2, %v6047_v7  ;;  %v6573_v7 = vsel %vm9032_vm10, %v6568_v53, %v6572_v32  ;;  %v8661_v36 = vrot.slane %v6724_v10, 9 }
 0x557   : > { %6628 = vrot.lane.b32.xlu2 %v6477_v43, %s8896_s22  ;;  %v6578_v26 = vrot.slane %v6577_v37, 4  ;;  %v6717_v43 = vld [vmem:[#allocation2 + $0x20] sm:$0x1]  ;;  %v6727_v37 = vld [vmem:[#allocation2 + $0x48] sm:$0xe] }
 0x558   : > { %v6820_v12 = vrot.slane %v6717_v43, 5  ;;  %v6839_v0 = vsel %vm9505_vm14, %v8661_v36, %v6838_v17  ;;  %v6847_v43 = vrot.slane %v6845_v55, 4 }
 0x559   : > { %v6067_v19 = vpop.permute.xlu2 %6066  ;;  %v6583_v33 = vsel %vm9032_vm10, %v6578_v26, %v6582_v60  ;;  %v6729_v60 = vld [vmem:[#allocation2 + $0x50] sm:$0x1] }
 0x55a   : > { %6636 = vrot.lane.b32.xlu0 %v6525_v4, %s8896_s22  ;;  %6141 = vst.msk [vmem:[#allocation3 + $0x54] sm:$0xf] %vm2135_vm2, %v6067_v19  ;;  %v6821_v13 = vsel %vm9505_vm14, %v6819_v3, %v6820_v12  ;;  %v6715_v19 = vld [vmem:[#allocation2 + $0x18] sm:$0xe]  ;;  %v6848_v3 = vrot.slane %v6729_v60, 5 }
 0x55b   : > { %6632 = vrot.lane.b32.xlu1 %v6501_v62, %s8896_s22  ;;  %v8658_v62 = vrot.slane %v6715_v19, 9  ;;  %v6732_v12 = vld [vmem:[#allocation2 + $0x5c] sm:$0x1] }
 0x55c   : > { %v6057_v49 = vpop.permute.xlu0 %6056 }
 0x55d   : > { %6136 = vst.msk [vmem:[#allocation3 + $0x40] sm:$0xf] %vm2135_vm2, %v6057_v49  ;;  %v6053_v8 = vpop.permute.xlu1 %6052  ;;  %v6818_v11 = vsel %vm9505_vm14, %v8658_v62, %v6817_v1  ;;  %v6824_v49 = vrot.slane %v6719_v50, 5  ;;  %v8662_v1 = vrot.slane %v6727_v37, 9 }
 0x55e   : > { %6134 = vst.msk [vmem:[#allocation3 + $0x38] sm:$0xf] %vm2135_vm2, %v6053_v8  ;;  %v6832_v8 = vsel %vm9505_vm14, %v8660_v22, %v6831_v23  ;;  %v6736_v22 = vld [vmem:[#allocation2 + $0x6c] sm:$0xe] }
 0x55f   : > { %6634 = vrot.lane.b32.xlu2 %v6511_v29, %s8896_s22  ;;  %v6825_v59 = vsel %vm9505_vm14, %v8659_v24, %v6824_v49  ;;  %v6826_v40 = vrot.slane %v6824_v49, 4  ;;  %v8665_v17 = vrot.slane %v6736_v22, 9  ;;  %v6751_v22 = vld [vmem:[#allocation2 + $0xa8] sm:$0xe] }
 0x561   : > { %v6073_v27 = vpop.permute.xlu2 %6072 }
 0x562   : > { %6642 = vrot.lane.b32.xlu0 %v6559_v57, %s8896_s22  ;;  %6144 = vst.msk [vmem:[#allocation3 + $0x60] sm:$0xf] %vm2135_vm2, %v6073_v27  ;;  %v6723_v57 = vld [vmem:[#allocation2 + $0x38] sm:$0x1]  ;;  %v6828_v27 = vsel %vm9505_vm14, %v6826_v40, %v6827_v45 }
 0x563   : > { %6638 = vrot.lane.b32.xlu1 %v6535_v51, %s8896_s22  ;;  %v6841_v51 = vrot.slane %v6726_v46, 5  ;;  %v6834_v30 = vrot.slane %v6723_v57, 5 }
 0x564   : > { %v6063_v61 = vpop.permute.xlu0 %6062 }
 0x565   : > { %6139 = vst.msk [vmem:[#allocation3 + $0x4c] sm:$0xf] %vm2135_vm2, %v6063_v61  ;;  %v6059_v6 = vpop.permute.xlu1 %6058  ;;  %v6842_v5 = vsel %vm9505_vm14, %v6840_v54, %v6841_v51  ;;  %v6835_v2 = vsel %vm9505_vm14, %v6833_v18, %v6834_v30  ;;  %v6731_v61 = vld [vmem:[#allocation2 + $0x58] sm:$0xf]  ;;  %v6741_v30 = vld [vmem:[#allocation2 + $0x80] sm:$0x1] }
 0x566   : > { %6137 = vst.msk [vmem:[#allocation3 + $0x44] sm:$0xf] %vm2135_vm2, %v6059_v6  ;;  %v6852_v53 = vrot.slane %v6731_v61, 5 }
 0x567   : > { %6640 = vrot.lane.b32.xlu2 %v6549_v63, %s8896_s22 }
 0x569   : > { %v6079_v16 = vpop.permute.xlu2 %6078 }
 0x56a   : > { %6920 = vrot.lane.b32.xlu0 %v6811_v42, %s8897_s23  ;;  %6147 = vst.msk [vmem:[#allocation3 + $0x6c] sm:$0xf] %vm2135_vm2, %v6079_v16  ;;  %v6734_v42 = vld [vmem:[#allocation2 + $0x64] sm:$0xf]  ;;  %v8663_v16 = vrot.slane %v6730_v20, 9 }
 0x56b   : > { %6644 = vrot.lane.b32.xlu1 %v6573_v7, %s8896_s22  ;;  %v6859_v48 = vrot.slane %v6734_v42, 5  ;;  %v6749_v20 = vld [vmem:[#allocation2 + $0xa0] sm:$0xf] }
 0x56c   : > { %v6069_v25 = vpop.permute.xlu0 %6068  ;;  %v6853_v7 = vsel %vm9505_vm14, %v8663_v16, %v6852_v53  ;;  %v6894_v42 = vrot.slane %v6749_v20, 5  ;;  %v6745_v16 = vld [vmem:[#allocation2 + $0x90] sm:$0xe] }
 0x56d   : > { %6142 = vst.msk [vmem:[#allocation3 + $0x58] sm:$0xf] %vm2135_vm2, %v6069_v25  ;;  %v6065_v41 = vpop.permute.xlu1 %6064  ;;  %v6846_v25 = vsel %vm9505_vm14, %v8662_v1, %v6845_v55  ;;  %v6861_v34 = vrot.slane %v6859_v48, 4 }
 0x56e   : > { %6140 = vst.msk [vmem:[#allocation3 + $0x50] sm:$0xf] %vm2135_vm2, %v6065_v41 }
 0x56f   : > { %6646 = vrot.lane.b32.xlu2 %v6583_v33, %s8896_s22  ;;  %v6735_v33 = vld [vmem:[#allocation2 + $0x68] sm:$0x1] }
 0x570   : > { %v6862_v19 = vrot.slane %v6735_v33, 5 }
 0x571   : > { %v6085_v4 = vpop.permute.xlu2 %6084 }
 0x572   : > { %6926 = vrot.lane.b32.xlu0 %v6821_v13, %s8897_s23  ;;  %6150 = vst.msk [vmem:[#allocation3 + $0x78] sm:$0xf] %vm2135_vm2, %v6085_v4  ;;  %v6849_v13 = vsel %vm9505_vm14, %v6847_v43, %v6848_v3  ;;  %v6854_v4 = vrot.slane %v6852_v53, 4  ;;  %v6863_v52 = vsel %vm9505_vm14, %v6861_v34, %v6862_v19 }
 0x573   : > { %6922 = vrot.lane.b32.xlu1 %v6814_v44, %s8897_s23  ;;  %v6855_v44 = vrot.slane %v6732_v12, 5 }
 0x574   : > { %v6075_v47 = vpop.permute.xlu0 %6074 }
 0x575   : > { %6145 = vst.msk [vmem:[#allocation3 + $0x64] sm:$0xf] %vm2135_vm2, %v6075_v47  ;;  %v6071_v21 = vpop.permute.xlu1 %6070  ;;  %v6733_v47 = vld [vmem:[#allocation2 + $0x60] sm:$0xe]  ;;  %v6856_v62 = vsel %vm9505_vm14, %v6854_v4, %v6855_v44  ;;  %v7264_v4 = vld [vmem:[#allocation2 + $0x78] sm:$0xf] }
 0x576   : > { %6143 = vst.msk [vmem:[#allocation3 + $0x5c] sm:$0xf] %vm2135_vm2, %v6071_v21  ;;  %v6737_v21 = vld [vmem:[#allocation2 + $0x70] sm:$0xf]  ;;  %v8664_v31 = vrot.slane %v6733_v47, 9 }
 0x577   : > { %6924 = vrot.lane.b32.xlu2 %v6818_v11, %s8897_s23  ;;  %v6739_v11 = vld [vmem:[#allocation2 + $0x78] sm:$0xe]  ;;  %v6750_v44 = vld [vmem:[#allocation2 + $0xa4] sm:$0x1] }
 0x578   : > { %v6860_v24 = vsel %vm9505_vm14, %v8664_v31, %v6859_v48  ;;  %v8666_v15 = vrot.slane %v6739_v11, 9  ;;  %v8668_v48 = vrot.slane %v6745_v16, 9  ;;  %v7481_v31 = vshrl.u32 %v7264_v4, 16 }
 0x579   : > { %v6587_v29 = vpop.permute.xlu2 %6586  ;;  %v7484_v11 = vshll.u32 %v7264_v4, 16  ;;  %v7268_v4 = vld [vmem:[#allocation2 + $0x88] sm:$0xf] }
 0x57a   : > { %6932 = vrot.lane.b32.xlu0 %v6832_v8, %s8897_s23  ;;  %6681 = vst.msk [vmem:[#allocation3 + $0x4] sm:$0xf] %vm2696_vm4, %v6587_v29  ;;  %v6866_v8 = vrot.slane %v6737_v21, 5  ;;  %v6743_v29 = vld [vmem:[#allocation2 + $0x88] sm:$0xf]  ;;  %v6897_v21 = vrot.slane %v6750_v44, 5 }
 0x57b   : > { %6928 = vrot.lane.b32.xlu1 %v6825_v59, %s8897_s23  ;;  %v6874_v59 = vsel %vm9505_vm14, %v8666_v15, %v6873_v38  ;;  %v6880_v45 = vrot.slane %v6743_v29, 5  ;;  %v6901_v29 = vrot.slane %v11569_v39, 5 }
 0x57c   : > { %v6081_v14 = vpop.permute.xlu0 %6080  ;;  %v6867_v46 = vsel %vm9505_vm14, %v8665_v17, %v6866_v8 }
 0x57d   : > { %6148 = vst.msk [vmem:[#allocation3 + $0x70] sm:$0xf] %vm2135_vm2, %v6081_v14  ;;  %v6077_v58 = vpop.permute.xlu1 %6076  ;;  %v6738_v14 = vld [vmem:[#allocation2 + $0x74] sm:$0x1]  ;;  %v6882_v51 = vrot.slane %v6880_v45, 4 }
 0x57e   : > { %6146 = vst.msk [vmem:[#allocation3 + $0x68] sm:$0xf] %vm2135_vm2, %v6077_v58  ;;  %v6868_v58 = vrot.slane %v6866_v8, 4  ;;  %v6869_v57 = vrot.slane %v6738_v14, 5  ;;  %v7486_v14 = vrot.slane %v7484_v11, 5 }
 0x57f   : > { %6930 = vrot.lane.b32.xlu2 %v6828_v27, %s8897_s23  ;;  %v6744_v27 = vld [vmem:[#allocation2 + $0x8c] sm:$0x1] }
 0x580   : > { %v6883_v10 = vrot.slane %v6744_v27, 5 }
 0x581   : > { %v6593_v32 = vpop.permute.xlu2 %6592 }
 0x582   : > { %6938 = vrot.lane.b32.xlu0 %v6842_v5, %s8897_s23  ;;  %6684 = vst.msk [vmem:[#allocation3 + $0x10] sm:$0xf] %vm2696_vm4, %v6593_v32  ;;  %v6870_v5 = vsel %vm9505_vm14, %v6868_v58, %v6869_v57  ;;  %v6875_v32 = vrot.slane %v6873_v38, 4  ;;  %v6884_v61 = vsel %vm9505_vm14, %v6882_v51, %v6883_v10  ;;  %v7825_v10 = vld [vmem:[#allocation2 + $0x7c] sm:$0xf] }
 0x583   : > { %6934 = vrot.lane.b32.xlu1 %v6835_v2, %s8897_s23  ;;  %v6876_v2 = vrot.slane %v6741_v30, 5 }
 0x584   : > { %v6087_v6 = vpop.permute.xlu0 %6086 }
 0x585   : > { %6151 = vst.msk [vmem:[#allocation3 + $0x7c] sm:$0xf] %vm2135_vm2, %v6087_v6  ;;  %v6083_v63 = vpop.permute.xlu1 %6082  ;;  %v6742_v6 = vld [vmem:[#allocation2 + $0x84] sm:$0xe]  ;;  %v6877_v36 = vsel %vm9505_vm14, %v6875_v32, %v6876_v2  ;;  %v7065_v32 = vld [vmem:[#allocation2 + $0x7c] sm:$0xf] }
 0x586   : > { %6149 = vst.msk [vmem:[#allocation3 + $0x74] sm:$0xf] %vm2135_vm2, %v6083_v63  ;;  %v6746_v63 = vld [vmem:[#allocation2 + $0x94] sm:$0xf]  ;;  %v8667_v37 = vrot.slane %v6742_v6, 9 }
 0x587   : > { %6936 = vrot.lane.b32.xlu2 %v6839_v0, %s8897_s23  ;;  %v6748_v0 = vld [vmem:[#allocation2 + $0x9c] sm:$0xe] }
 0x588   : > { %v6881_v1 = vsel %vm9505_vm14, %v8667_v37, %v6880_v45  ;;  %v8669_v60 = vrot.slane %v6748_v0, 9  ;;  %v7954_v37 = vrot.slane %v7825_v10, 5 }
 0x589   : > { %v6599_v26 = vpop.permute.xlu2 %6598 }
 0x58a   : > { %6944 = vrot.lane.b32.xlu0 %v6853_v7, %s8897_s23  ;;  %6687 = vst.msk [vmem:[#allocation3 + $0x1c] sm:$0xf] %vm2696_vm4, %v6599_v26  ;;  %v6887_v7 = vrot.slane %v6746_v63, 5  ;;  %v7265_v26 = vld [vmem:[#allocation2 + $0x7c] sm:$0xf] }
 0x58b   : > { %6940 = vrot.lane.b32.xlu1 %v6846_v25, %s8897_s23  ;;  %v6895_v25 = vsel %vm9505_vm14, %v8669_v60, %v6894_v42  ;;  %v7490_v3 = vshll.u32 %v7265_v26, 16  ;;  %v7494_v33 = vshrl.u32 %v7265_v26, 16  ;;  %v7826_v26 = vld [vmem:[#allocation2 + $0x80] sm:$0x1] }
 0x58c   : > { %v6589_v41 = vpop.permute.xlu0 %6588  ;;  %v6889_v34 = vrot.slane %v6887_v7, 4 }
 0x58d   : > { %6682 = vst.msk [vmem:[#allocation3 + $0x8] sm:$0xf] %vm2696_vm4, %v6589_v41  ;;  %v6585_v56 = vpop.permute.xlu1 %6584  ;;  %v6747_v41 = vld [vmem:[#allocation2 + $0x98] sm:$0x1] }
 0x58e   : > { %6680 = vst.msk [vmem:[#allocation3] sm:$0xf] %vm2696_vm4, %v6585_v56  ;;  %v6888_v56 = vsel %vm9505_vm14, %v8668_v48, %v6887_v7 }
 0x58f   : > { %6942 = vrot.lane.b32.xlu2 %v6849_v13, %s8897_s23  ;;  %v6890_v13 = vrot.slane %v6747_v41, 5 }
 0x591   : > { %v6605_v50 = vpop.permute.xlu2 %6604  ;;  %v6891_v47 = vsel %vm9505_vm14, %v6889_v34, %v6890_v13 }
 0x592   : > { %6950 = vrot.lane.b32.xlu0 %v6863_v52, %s8897_s23  ;;  %6690 = vst.msk [vmem:[#allocation3 + $0x28] sm:$0xf] %vm2696_vm4, %v6605_v50  ;;  %v7492_v52 = vrot.slane %v7490_v3, 5  ;;  %v7496_v50 = vrot.slane %v7494_v33, 4  ;;  %v7957_v3 = vrot.slane %v7826_v26, 5 }
 0x593   : > { %6946 = vrot.lane.b32.xlu1 %v6856_v62, %s8897_s23  ;;  %v6896_v62 = vrot.slane %v6894_v42, 4 }
 0x594   : > { %v6595_v23 = vpop.permute.xlu0 %6594 }
 0x595   : > { %6685 = vst.msk [vmem:[#allocation3 + $0x14] sm:$0xf] %vm2696_vm4, %v6595_v23  ;;  %v6591_v49 = vpop.permute.xlu1 %6590  ;;  %v7266_v23 = vld [vmem:[#allocation2 + $0x80] sm:$0x1]  ;;  %v6898_v8 = vsel %vm9505_vm14, %v6896_v62, %v6897_v21  ;;  %v7518_v62 = vshrl.u32 %v7268_v4, 16 }
 0x596   : > { %6683 = vst.msk [vmem:[#allocation3 + $0xc] sm:$0xf] %vm2696_vm4, %v6591_v49  ;;  %v7064_v49 = vld [vmem:[#allocation2 + $0x78] sm:$0xf]  ;;  %v7500_v15 = vshll.u32 %v7266_v23, 16 }
 0x597   : > { %6948 = vrot.lane.b32.xlu2 %v6860_v24, %s8897_s23  ;;  %v7497_v24 = vor.u32 %v7496_v50, %v7492_v52  ;;  %v7049_v21 = vld [vmem:[#allocation2 + $0x1c] sm:$0xf] }
 0x598   : > { %v7502_v57 = vrot.slane %v7500_v15, 5  ;;  %v7801_v23 = vld [vmem:[#allocation2 + $0x1c] sm:$0xf] }
 0x599   : > { %v6611_v40 = vpop.permute.xlu2 %6610 }
 0x59a   : > { %6956 = vrot.lane.b32.xlu0 %v6874_v59, %s8897_s23  ;;  %6693 = vst.msk [vmem:[#allocation3 + $0x34] sm:$0xf] %vm2696_vm4, %v6611_v40  ;;  %v8670_v59 = vrot.slane %v6751_v22, 9  ;;  %v7483_v40 = vrot.slane %v7481_v31, 4 }
 0x59b   : > { %6952 = vrot.lane.b32.xlu1 %v6867_v46, %s8897_s23  ;;  %v7498_v46 = vrot.slane %v7497_v24, 4  ;;  %v7520_v24 = vrot.slane %v7518_v62, 4 }
 0x59c   : > { %v6601_v54 = vpop.permute.xlu0 %6600  ;;  %v6902_v58 = vsel %vm9505_vm14, %v8670_v59, %v6901_v29  ;;  %v7487_v27 = vor.u32 %v7486_v14, %v7483_v40  ;;  %v7269_v40 = vld [vmem:[#allocation2 + $0x8c] sm:$0x1] }
 0x59d   : > { %6688 = vst.msk [vmem:[#allocation3 + $0x20] sm:$0xf] %vm2696_vm4, %v6601_v54  ;;  %v6597_v18 = vpop.permute.xlu1 %6596  ;;  %v7241_v54 = vld [vmem:[#allocation2 + $0x1c] sm:$0xf] }
 0x59e   : > { %6686 = vst.msk [vmem:[#allocation3 + $0x18] sm:$0xf] %vm2696_vm4, %v6597_v18  ;;  %v7503_v18 = vsel %vm9032_vm10, %v7498_v46, %v7502_v57  ;;  %v7298_v30 = vshll.u32 %v7241_v54, 16  ;;  %v7066_v46 = vld [vmem:[#allocation2 + $0x84] sm:$0xf] }
 0x59f   : > { %6954 = vrot.lane.b32.xlu2 %v6870_v5, %s8897_s23  ;;  %v7302_v5 = vshrl.u32 %v7241_v54, 16  ;;  %v7802_v54 = vld [vmem:[#allocation2 + $0x20] sm:$0x1] }
 0x5a0   : > { %v7300_v20 = vrot.slane %v7298_v30, 5 }
 0x5a1   : > { %v6617_v28 = vpop.permute.xlu2 %6616  ;;  %v7304_v63 = vrot.slane %v7302_v5, 4  ;;  %v7901_v5 = vrot.slane %v7802_v54, 5 }
 0x5a2   : > { %6962 = vrot.lane.b32.xlu0 %v6884_v61, %s8897_s23  ;;  %6696 = vst.msk [vmem:[#allocation3 + $0x40] sm:$0xf] %vm2696_vm4, %v6617_v28  ;;  %v7488_v61 = vrot.slane %v7487_v27, 4  ;;  %v7240_v28 = vld [vmem:[#allocation2 + $0x18] sm:$0xf] }
 0x5a3   : > { %6958 = vrot.lane.b32.xlu1 %v6877_v36, %s8897_s23  ;;  %v7824_v36 = vld [vmem:[#allocation2 + $0x78] sm:$0xe]  ;;  %v7289_v42 = vshrl.u32 %v7240_v28, 16  ;;  %v7292_v16 = vshll.u32 %v7240_v28, 16  ;;  %v7305_v60 = vor.u32 %v7304_v63, %v7300_v20 }
 0x5a4   : > { %v6607_v53 = vpop.permute.xlu0 %6606  ;;  %v8681_v0 = vrot.slane %v7824_v36, 9 }
 0x5a5   : > { %6691 = vst.msk [vmem:[#allocation3 + $0x2c] sm:$0xf] %vm2696_vm4, %v6607_v53  ;;  %v6603_v55 = vpop.permute.xlu1 %6602  ;;  %v7493_v53 = vsel %vm9032_vm10, %v7488_v61, %v7492_v52  ;;  %v7291_v33 = vrot.slane %v7289_v42, 4  ;;  %v7828_v42 = vld [vmem:[#allocation2 + $0x88] sm:$0xf] }
 0x5a6   : > { %6689 = vst.msk [vmem:[#allocation3 + $0x24] sm:$0xf] %vm2696_vm4, %v6603_v55  ;;  %v7242_v55 = vld [vmem:[#allocation2 + $0x20] sm:$0x1]  ;;  %v7955_v48 = vsel %vm9505_vm14, %v8681_v0, %v7954_v37 }
 0x5a7   : > { %6960 = vrot.lane.b32.xlu2 %v6881_v1, %s8897_s23  ;;  %v7048_v1 = vld [vmem:[#allocation2 + $0x18] sm:$0xf] }
 0x5a9   : > { %v6623_v43 = vpop.permute.xlu2 %6622 }
 0x5aa   : > { %6968 = vrot.lane.b32.xlu0 %v6895_v25, %s8897_s23  ;;  %6699 = vst.msk [vmem:[#allocation3 + $0x4c] sm:$0xf] %vm2696_vm4, %v6623_v43  ;;  %v7956_v25 = vrot.slane %v7954_v37, 4  ;;  %v7308_v43 = vshll.u32 %v7242_v55, 16  ;;  %v7067_v55 = vld [vmem:[#allocation2 + $0x88] sm:$0xf] }
 0x5ab   : > { %6964 = vrot.lane.b32.xlu1 %v6888_v56, %s8897_s23  ;;  %v7294_v56 = vrot.slane %v7292_v16, 5 }
 0x5ac   : > { %v6613_v12 = vpop.permute.xlu0 %6612  ;;  %v7958_v13 = vsel %vm9505_vm14, %v7956_v25, %v7957_v3 }
 0x5ad   : > { %6694 = vst.msk [vmem:[#allocation3 + $0x38] sm:$0xf] %vm2696_vm4, %v6613_v12  ;;  %v6609_v19 = vpop.permute.xlu1 %6608  ;;  %v7306_v12 = vrot.slane %v7305_v60, 4  ;;  %v7295_v44 = vor.u32 %v7294_v56, %v7291_v33  ;;  %v7827_v60 = vld [vmem:[#allocation2 + $0x84] sm:$0xe] }
 0x5ae   : > { %6692 = vst.msk [vmem:[#allocation3 + $0x30] sm:$0xf] %vm2696_vm4, %v6609_v19  ;;  %v7310_v19 = vrot.slane %v7308_v43, 5  ;;  %v8682_v3 = vrot.slane %v7827_v60, 9  ;;  %v7245_v33 = vld [vmem:[#allocation2 + $0x2c] sm:$0x1] }
 0x5af   : > { %6966 = vrot.lane.b32.xlu2 %v6891_v47, %s8897_s23  ;;  %v7514_v47 = vshll.u32 %v7268_v4, 16  ;;  %v7296_v11 = vrot.slane %v7295_v44, 4  ;;  %v7829_v4 = vld [vmem:[#allocation2 + $0x8c] sm:$0x1] }
 0x5b0   : > { %v7311_v52 = vsel %vm9032_vm10, %v7306_v12, %v7310_v19  ;;  %v7050_v12 = vld [vmem:[#allocation2 + $0x24] sm:$0xf]  ;;  %v7964_v62 = vrot.slane %v7829_v4, 5 }
 0x5b1   : > { %v6629_v38 = vpop.permute.xlu2 %6628  ;;  %v7516_v22 = vrot.slane %v7514_v47, 5  ;;  %v7301_v15 = vsel %vm9032_vm10, %v7296_v11, %v7300_v20 }
 0x5b2   : > { %7144 = vrot.lane.b32.xlu0 %v7064_v49, %s8898_s26  ;;  %6702 = vst.msk [vmem:[#allocation3 + $0x58] sm:$0xf] %vm2696_vm4, %v6629_v38  ;;  %v7800_v49 = vld [vmem:[#allocation2 + $0x18] sm:$0xe] }
 0x5b3   : > { %6970 = vrot.lane.b32.xlu1 %v6898_v8, %s8897_s23  ;;  %v7267_v8 = vld [vmem:[#allocation2 + $0x84] sm:$0xf]  ;;  %v8673_v59 = vrot.slane %v7800_v49, 9  ;;  %v7521_v57 = vor.u32 %v7520_v24, %v7516_v22 }
 0x5b4   : > { %v6619_v17 = vpop.permute.xlu0 %6618  ;;  %v7505_v14 = vshrl.u32 %v7267_v8, 16 }
 0x5b5   : > { %6697 = vst.msk [vmem:[#allocation3 + $0x44] sm:$0xf] %vm2696_vm4, %v6619_v17  ;;  %v6615_v45 = vpop.permute.xlu1 %6614  ;;  %v7898_v17 = vrot.slane %v7801_v23, 5  ;;  %v7522_v61 = vrot.slane %v7521_v57, 4 }
 0x5b6   : > { %6695 = vst.msk [vmem:[#allocation3 + $0x3c] sm:$0xf] %vm2696_vm4, %v6615_v45  ;;  %v7508_v45 = vshll.u32 %v7267_v8, 16 }
 0x5b7   : > { %6972 = vrot.lane.b32.xlu2 %v6902_v58, %s8897_s23  ;;  %v7899_v27 = vsel %vm9505_vm14, %v8673_v59, %v7898_v17 }
 0x5b8   : > { %v7510_v10 = vrot.slane %v7508_v45, 5 }
 0x5b9   : > { %v6635_v51 = vpop.permute.xlu2 %6634 }
 0x5ba   : > { %7706 = vrot.lane.b32.xlu0 %v7503_v18, %s8899_s27  ;;  %6705 = vst.msk [vmem:[#allocation3 + $0x64] sm:$0xf] %vm2696_vm4, %v6635_v51  ;;  %v7900_v18 = vrot.slane %v7898_v17, 4  ;;  %v7524_v51 = vshll.u32 %v7269_v40, 16  ;;  %v7051_v40 = vld [vmem:[#allocation2 + $0x28] sm:$0xf] }
 0x5bb   : > { %7146 = vrot.lane.b32.xlu1 %v7065_v32, %s8898_s26  ;;  %v7507_v32 = vrot.slane %v7505_v14, 4  ;;  %v7804_v14 = vld [vmem:[#allocation2 + $0x28] sm:$0xf] }
 0x5bc   : > { %v6625_v2 = vpop.permute.xlu0 %6624  ;;  %v7902_v28 = vsel %vm9505_vm14, %v7900_v18, %v7901_v5  ;;  %v7526_v36 = vrot.slane %v7524_v51, 5  ;;  %v7270_v18 = vld [vmem:[#allocation2 + $0x90] sm:$0xf] }
 0x5bd   : > { %6700 = vst.msk [vmem:[#allocation3 + $0x50] sm:$0xf] %vm2696_vm4, %v6625_v2  ;;  %v6621_v6 = vpop.permute.xlu1 %6620  ;;  %v7511_v20 = vor.u32 %v7510_v10, %v7507_v32  ;;  %v7272_v32 = vld [vmem:[#allocation2 + $0x98] sm:$0x1]  ;;  %v7529_v10 = vshrl.u32 %v7270_v18, 16 }
 0x5be   : > { %6698 = vst.msk [vmem:[#allocation3 + $0x48] sm:$0xf] %vm2696_vm4, %v6621_v6  ;;  %v7244_v6 = vld [vmem:[#allocation2 + $0x28] sm:$0xf]  ;;  %v7527_v63 = vsel %vm9032_vm10, %v7522_v61, %v7526_v36  ;;  %v7068_v61 = vld [vmem:[#allocation2 + $0x90] sm:$0xf] }
 0x5bf   : > { %7704 = vrot.lane.b32.xlu2 %v7493_v53, %s8899_s27  ;;  %v7322_v37 = vshll.u32 %v7244_v6, 16  ;;  %v7326_v0 = vshrl.u32 %v7244_v6, 16  ;;  %v7805_v6 = vld [vmem:[#allocation2 + $0x2c] sm:$0x1] }
 0x5c1   : > { %v6641_v7 = vpop.permute.xlu2 %6640  ;;  %v7328_v25 = vrot.slane %v7326_v0, 4  ;;  %v7908_v0 = vrot.slane %v7805_v6, 5 }
 0x5c2   : > { %7112 = vrot.lane.b32.xlu0 %v7048_v1, %s8898_s26  ;;  %6708 = vst.msk [vmem:[#allocation3 + $0x70] sm:$0xf] %vm2696_vm4, %v6641_v7  ;;  %v7512_v1 = vrot.slane %v7511_v20, 4  ;;  %v7243_v7 = vld [vmem:[#allocation2 + $0x24] sm:$0xf] }
 0x5c3   : > { %8040 = vrot.lane.b32.xlu1 %v7955_v48, %s8900_s29  ;;  %v7324_v48 = vrot.slane %v7322_v37, 5  ;;  %v7313_v56 = vshrl.u32 %v7243_v7, 16 }
 0x5c4   : > { %v6631_v41 = vpop.permute.xlu0 %6630  ;;  %v7517_v43 = vsel %vm9032_vm10, %v7512_v1, %v7516_v22 }
 0x5c5   : > { %6703 = vst.msk [vmem:[#allocation3 + $0x5c] sm:$0xf] %vm2696_vm4, %v6631_v41  ;;  %v6627_v34 = vpop.permute.xlu1 %6626  ;;  %v7961_v41 = vrot.slane %v7828_v42, 5  ;;  %v7329_v19 = vor.u32 %v7328_v25, %v7324_v48 }
 0x5c6   : > { %6701 = vst.msk [vmem:[#allocation3 + $0x54] sm:$0xf] %vm2696_vm4, %v6627_v34  ;;  %v7316_v34 = vshll.u32 %v7243_v7, 16 }
 0x5c7   : > { %8042 = vrot.lane.b32.xlu2 %v7958_v13, %s8900_s29  ;;  %v7962_v44 = vsel %vm9505_vm14, %v8682_v3, %v7961_v41  ;;  %v7330_v11 = vrot.slane %v7329_v19, 4  ;;  %v7830_v19 = vld [vmem:[#allocation2 + $0x90] sm:$0xe] }
 0x5c8   : > { %v7318_v23 = vrot.slane %v7316_v34, 5 }
 0x5c9   : > { %v6647_v50 = vpop.permute.xlu2 %6646 }
 0x5ca   : > { %7674 = vrot.lane.b32.xlu0 %v7311_v52, %s8899_s27  ;;  %6711 = vst.msk [vmem:[#allocation3 + $0x7c] sm:$0xf] %vm2696_vm4, %v6647_v50  ;;  %v7963_v52 = vrot.slane %v7961_v41, 4  ;;  %v7332_v50 = vshll.u32 %v7245_v33, 16  ;;  %v7069_v33 = vld [vmem:[#allocation2 + $0x94] sm:$0xf] }
 0x5cb   : > { %7114 = vrot.lane.b32.xlu1 %v7049_v21, %s8898_s26  ;;  %v7315_v21 = vrot.slane %v7313_v56, 4  ;;  %v7831_v56 = vld [vmem:[#allocation2 + $0x94] sm:$0xf] }
 0x5cc   : > { %v6637_v31 = vpop.permute.xlu0 %6636  ;;  %v7965_v49 = vsel %vm9505_vm14, %v7963_v52, %v7964_v62  ;;  %v7334_v22 = vrot.slane %v7332_v50, 5  ;;  %v8683_v62 = vrot.slane %v7830_v19, 9  ;;  %v8172_v19 = vld [vmem:[%s12098_s2 + $0x10] sm:$0x3] }
 0x5cd   : > { %6706 = vst.msk [vmem:[#allocation3 + $0x68] sm:$0xf] %vm2696_vm4, %v6637_v31  ;;  %v6633_v38 = vpop.permute.xlu1 %6632  ;;  %v7319_v24 = vor.u32 %v7318_v23, %v7315_v21  ;;  %v7248_v21 = vld [vmem:[#allocation2 + $0x38] sm:$0x1] }
 0x5ce   : > { %6704 = vst.msk [vmem:[#allocation3 + $0x60] sm:$0xf] %vm2696_vm4, %v6633_v38  ;;  %v7271_v38 = vld [vmem:[#allocation2 + $0x94] sm:$0xf]  ;;  %v7335_v8 = vsel %vm9032_vm10, %v7330_v11, %v7334_v22  ;;  %v7052_v11 = vld [vmem:[#allocation2 + $0x30] sm:$0xf] }
 0x5cf   : > { %7672 = vrot.lane.b32.xlu2 %v7301_v15, %s8899_s27  ;;  %v7538_v17 = vshll.u32 %v7271_v38, 16  ;;  %v7542_v59 = vshrl.u32 %v7271_v38, 16  ;;  %v7832_v38 = vld [vmem:[#allocation2 + $0x98] sm:$0x1] }
 0x5d1   : > { %v6925_v58 = vpop.permute.xlu2 %6924  ;;  %v7540_v57 = vrot.slane %v7538_v17, 5 }
 0x5d2   : > { %7148 = vrot.lane.b32.xlu0 %v7066_v46, %s8898_s26  ;;  %7018 = vst.msk [vmem:[#allocation3 + $0x8] sm:$0xf] %vm3033_vm6, %v6925_v58  ;;  %v7320_v46 = vrot.slane %v7319_v24, 4  ;;  %v7803_v58 = vld [vmem:[#allocation2 + $0x24] sm:$0xe] }
 0x5d3   : > { %8008 = vrot.lane.b32.xlu1 %v7899_v27, %s8900_s29  ;;  %v7544_v27 = vrot.slane %v7542_v59, 4  ;;  %v8674_v5 = vrot.slane %v7803_v58, 9  ;;  %v7971_v59 = vrot.slane %v7832_v38, 5 }
 0x5d4   : > { %v6643_v30 = vpop.permute.xlu0 %6642  ;;  %v7325_v51 = vsel %vm9032_vm10, %v7320_v46, %v7324_v48 }
 0x5d5   : > { %6709 = vst.msk [vmem:[#allocation3 + $0x74] sm:$0xf] %vm2696_vm4, %v6643_v30  ;;  %v6639_v2 = vpop.permute.xlu1 %6638  ;;  %v7905_v30 = vrot.slane %v7804_v14, 5  ;;  %v7545_v36 = vor.u32 %v7544_v27, %v7540_v57 }
 0x5d6   : > { %6707 = vst.msk [vmem:[#allocation3 + $0x6c] sm:$0xf] %vm2696_vm4, %v6639_v2  ;;  %v7532_v2 = vshll.u32 %v7270_v18, 16 }
 0x5d7   : > { %8010 = vrot.lane.b32.xlu2 %v7902_v28, %s8900_s29  ;;  %v7906_v20 = vsel %vm9505_vm14, %v8674_v5, %v7905_v30  ;;  %v7546_v1 = vrot.slane %v7545_v36, 4 }
 0x5d8   : > { %v7534_v42 = vrot.slane %v7532_v2, 5 }
 0x5d9   : > { %v6931_v53 = vpop.permute.xlu2 %6930 }
 0x5da   : > { %7710 = vrot.lane.b32.xlu0 %v7527_v63, %s8899_s27  ;;  %7021 = vst.msk [vmem:[#allocation3 + $0x14] sm:$0xf] %vm3033_vm6, %v6931_v53  ;;  %v7907_v63 = vrot.slane %v7905_v30, 4  ;;  %v7548_v53 = vshll.u32 %v7272_v32, 16  ;;  %v7053_v32 = vld [vmem:[#allocation2 + $0x34] sm:$0xf] }
 0x5db   : > { %7150 = vrot.lane.b32.xlu1 %v7067_v55, %s8898_s26  ;;  %v7531_v55 = vrot.slane %v7529_v10, 4  ;;  %v7807_v10 = vld [vmem:[#allocation2 + $0x34] sm:$0xf] }
 0x5dc   : > { %v6921_v16 = vpop.permute.xlu0 %6920  ;;  %v7909_v7 = vsel %vm9505_vm14, %v7907_v63, %v7908_v0  ;;  %v7550_v60 = vrot.slane %v7548_v53, 5  ;;  %v7273_v63 = vld [vmem:[#allocation2 + $0x9c] sm:$0xf] }
 0x5dd   : > { %7016 = vst.msk [vmem:[#allocation3] sm:$0xf] %vm3033_vm6, %v6921_v16  ;;  %v6645_v26 = vpop.permute.xlu1 %6644  ;;  %v7535_v48 = vor.u32 %v7534_v42, %v7531_v55  ;;  %v7275_v55 = vld [vmem:[#allocation2 + $0xa4] sm:$0x1]  ;;  %v7553_v42 = vshrl.u32 %v7273_v63, 16 }
 0x5de   : > { %6710 = vst.msk [vmem:[#allocation3 + $0x78] sm:$0xf] %vm2696_vm4, %v6645_v26  ;;  %v7247_v26 = vld [vmem:[#allocation2 + $0x34] sm:$0xf]  ;;  %v7551_v25 = vsel %vm9032_vm10, %v7546_v1, %v7550_v60  ;;  %v7070_v1 = vld [vmem:[#allocation2 + $0x9c] sm:$0xf] }
 0x5df   : > { %7708 = vrot.lane.b32.xlu2 %v7517_v43, %s8899_s27  ;;  %v7346_v41 = vshll.u32 %v7247_v26, 16  ;;  %v7350_v3 = vshrl.u32 %v7247_v26, 16  ;;  %v7808_v26 = vld [vmem:[#allocation2 + $0x38] sm:$0x1] }
 0x5e1   : > { %v6937_v13 = vpop.permute.xlu2 %6936  ;;  %v7352_v52 = vrot.slane %v7350_v3, 4  ;;  %v7915_v3 = vrot.slane %v7808_v26, 5 }
 0x5e2   : > { %7116 = vrot.lane.b32.xlu0 %v7050_v12, %s8898_s26  ;;  %7024 = vst.msk [vmem:[#allocation3 + $0x20] sm:$0xf] %vm3033_vm6, %v6937_v13  ;;  %v7536_v12 = vrot.slane %v7535_v48, 4  ;;  %v7246_v13 = vld [vmem:[#allocation2 + $0x30] sm:$0xf] }
 0x5e3   : > { %8044 = vrot.lane.b32.xlu1 %v7962_v44, %s8900_s29  ;;  %v7348_v44 = vrot.slane %v7346_v41, 5  ;;  %v7337_v23 = vshrl.u32 %v7246_v13, 16 }
 0x5e4   : > { %v6927_v47 = vpop.permute.xlu0 %6926  ;;  %v7541_v50 = vsel %vm9032_vm10, %v7536_v12, %v7540_v57 }
 0x5e5   : > { %7019 = vst.msk [vmem:[#allocation3 + $0xc] sm:$0xf] %vm3033_vm6, %v6927_v47  ;;  %v6923_v31 = vpop.permute.xlu1 %6922  ;;  %v7968_v47 = vrot.slane %v7831_v56, 5  ;;  %v7353_v22 = vor.u32 %v7352_v52, %v7348_v44  ;;  %v8262_v52 = vunpack.c.l.b16 %v8172_v19  ;;  %v7278_v19 = vld [vmem:[#allocation2 + $0xb0] sm:$0x1] }
 0x5e6   : > { %7017 = vst.msk [vmem:[#allocation3 + $0x4] sm:$0xf] %vm3033_vm6, %v6923_v31  ;;  %v7340_v31 = vshll.u32 %v7246_v13, 16 }
 0x5e7   : > { %8046 = vrot.lane.b32.xlu2 %v7965_v49, %s8900_s29  ;;  %v7969_v24 = vsel %vm9505_vm14, %v8683_v62, %v7968_v47  ;;  %v7354_v46 = vrot.slane %v7353_v22, 4 }
 0x5e8   : > { %v7342_v14 = vrot.slane %v7340_v31, 5  ;;  %v8265_v31 = vpack.c.b16 %v8262_v52, %v8262_v52 }
 0x5e9   : > { %v6943_v15 = vpop.permute.xlu2 %6942 }
 0x5ea   : > { %7678 = vrot.lane.b32.xlu0 %v7335_v8, %s8899_s27  ;;  %7027 = vst.msk [vmem:[#allocation3 + $0x2c] sm:$0xf] %vm3033_vm6, %v6943_v15  ;;  %v7970_v8 = vrot.slane %v7968_v47, 4  ;;  %v7356_v15 = vshll.u32 %v7248_v21, 16  ;;  %v8317_v38 = vsel %vm4339_vm8, %v8265_v31, 0 }
 0x5eb   : > { %7118 = vrot.lane.b32.xlu1 %v7051_v40, %s8898_s26  ;;  %v7339_v40 = vrot.slane %v7337_v23, 4  ;;  %8820 = vmatpush.bf16.msra.mxu3 %v8317_v38 }
 0x5ec   : > { %v6933_v45 = vpop.permute.xlu0 %6932  ;;  %v7972_v58 = vsel %vm9505_vm14, %v7970_v8, %v7971_v59  ;;  %v7358_v57 = vrot.slane %v7356_v15, 5  ;;  %v7249_v8 = vld [vmem:[#allocation2 + $0x3c] sm:$0xf]  ;;  %v8816_v15 = vld [vmem:[%s12098_s2 + $0x8] sm:$0xff]  ;;  %8324 = vmatpush.bf16.msra.mxu1 %v8317_v38 }
 0x5ed   : > { %7022 = vst.msk [vmem:[#allocation3 + $0x18] sm:$0xf] %vm3033_vm6, %v6933_v45  ;;  %v6929_v54 = vpop.permute.xlu1 %6928  ;;  %v7343_v27 = vor.u32 %v7342_v14, %v7339_v40  ;;  %v7833_v59 = vld [vmem:[#allocation2 + $0x9c] sm:$0xe] }
 0x5ee   : > { %7020 = vst.msk [vmem:[#allocation3 + $0x10] sm:$0xf] %vm3033_vm6, %v6929_v54  ;;  %v7274_v54 = vld [vmem:[#allocation2 + $0xa0] sm:$0xf]  ;;  %v7359_v18 = vsel %vm9032_vm10, %v7354_v46, %v7358_v57  ;;  %v7361_v57 = vshrl.u32 %v7249_v8, 16 }
 0x5ef   : > { %7676 = vrot.lane.b32.xlu2 %v7325_v51, %s8899_s27  ;;  %v7562_v30 = vshll.u32 %v7274_v54, 16  ;;  %v7566_v5 = vshrl.u32 %v7274_v54, 16  ;;  %v7251_v54 = vld [vmem:[#allocation2 + $0x44] sm:$0x1]  ;;  %8821 = vmatpush.bf16.msra.mxu3 %v8816_v15 }
 0x5f0   : > { %8325 = vmatpush.bf16.msra.mxu1 %v8816_v15 }
 0x5f1   : > { %v6949_v28 = vpop.permute.xlu2 %6948  ;;  %v7564_v36 = vrot.slane %v7562_v30, 5 }
 0x5f2   : > { %7152 = vrot.lane.b32.xlu0 %v7068_v61, %s8898_s26  ;;  %7030 = vst.msk [vmem:[#allocation3 + $0x38] sm:$0xf] %vm3033_vm6, %v6949_v28  ;;  %v7344_v61 = vrot.slane %v7343_v27, 4  ;;  %v7806_v28 = vld [vmem:[#allocation2 + $0x30] sm:$0xe]  ;;  %v7364_v27 = vshll.u32 %v7249_v8, 16 }
 0x5f3   : > { %8012 = vrot.lane.b32.xlu1 %v7906_v20, %s8900_s29  ;;  %v7568_v20 = vrot.slane %v7566_v5, 4  ;;  %v8675_v0 = vrot.slane %v7806_v28, 9  ;;  %v7835_v5 = vld [vmem:[#allocation2 + $0xa4] sm:$0x1] }
 0x5f4   : > { %v6939_v37 = vpop.permute.xlu0 %6938  ;;  %v7349_v53 = vsel %vm9032_vm10, %v7344_v61, %v7348_v44  ;;  %v7380_v61 = vshll.u32 %v7251_v54, 16 }
 0x5f5   : > { %7025 = vst.msk [vmem:[#allocation3 + $0x24] sm:$0xf] %vm3033_vm6, %v6939_v37  ;;  %v6935_v16 = vpop.permute.xlu1 %6934  ;;  %v7912_v37 = vrot.slane %v7807_v10, 5  ;;  %v7569_v60 = vor.u32 %v7568_v20, %v7564_v36  ;;  %v7366_v20 = vrot.slane %v7364_v27, 5  ;;  %v7837_v27 = vld [vmem:[#allocation2 + $0xac] sm:$0xf] }
 0x5f6   : > { %7023 = vst.msk [vmem:[#allocation3 + $0x1c] sm:$0xf] %vm3033_vm6, %v6935_v16  ;;  %v7556_v16 = vshll.u32 %v7273_v63, 16 }
 0x5f7   : > { %8014 = vrot.lane.b32.xlu2 %v7909_v7, %s8900_s29  ;;  %v7913_v48 = vsel %vm9505_vm14, %v8675_v0, %v7912_v37  ;;  %v7570_v12 = vrot.slane %v7569_v60, 4  ;;  %v7277_v0 = vld [vmem:[#allocation2 + $0xac] sm:$0xf]  ;;  %v7055_v60 = vld [vmem:[#allocation2 + $0x40] sm:$0xf] }
 0x5f8   : > { %v7558_v56 = vrot.slane %v7556_v16, 5  ;;  %v7590_v26 = vshrl.u32 %v7277_v0, 16 }
 0x5f9   : > { %v6955_v43 = vpop.permute.xlu2 %6954 }
 0x5fa   : > { %7714 = vrot.lane.b32.xlu0 %v7551_v25, %s8899_s27  ;;  %7033 = vst.msk [vmem:[#allocation3 + $0x44] sm:$0xf] %vm3033_vm6, %v6955_v43  ;;  %v7914_v25 = vrot.slane %v7912_v37, 4  ;;  %v7572_v43 = vshll.u32 %v7275_v55, 16  ;;  %v7382_v55 = vrot.slane %v7380_v61, 5 }
 0x5fb   : > { %7154 = vrot.lane.b32.xlu1 %v7069_v33, %s8898_s26  ;;  %v7555_v33 = vrot.slane %v7553_v42, 4 }
 0x5fc   : > { %v6945_v34 = vpop.permute.xlu0 %6944  ;;  %v7916_v13 = vsel %vm9505_vm14, %v7914_v25, %v7915_v3  ;;  %v7574_v44 = vrot.slane %v7572_v43, 5 }
 0x5fd   : > { %7028 = vst.msk [vmem:[#allocation3 + $0x30] sm:$0xf] %vm3033_vm6, %v6945_v34  ;;  %v6941_v4 = vpop.permute.xlu1 %6940 }
 0x5fe   : > { %7026 = vst.msk [vmem:[#allocation3 + $0x28] sm:$0xf] %vm3033_vm6, %v6941_v4  ;;  %v7250_v4 = vld [vmem:[#allocation2 + $0x40] sm:$0xf]  ;;  %v7575_v47 = vsel %vm9032_vm10, %v7570_v12, %v7574_v44 }
 0x5ff   : > { %7712 = vrot.lane.b32.xlu2 %v7541_v50, %s8899_s27  ;;  %v7559_v50 = vor.u32 %v7558_v56, %v7555_v33  ;;  %v7370_v21 = vshll.u32 %v7250_v4, 16  ;;  %v7374_v23 = vshrl.u32 %v7250_v4, 16  ;;  %v7592_v56 = vrot.slane %v7590_v26, 4 }
 0x601   : > { %v6961_v49 = vpop.permute.xlu2 %6960  ;;  %v7372_v40 = vrot.slane %v7370_v21, 5  ;;  %v7376_v14 = vrot.slane %v7374_v23, 4 }
 0x602   : > { %7120 = vrot.lane.b32.xlu0 %v7052_v11, %s8898_s26  ;;  %7036 = vst.msk [vmem:[#allocation3 + $0x50] sm:$0xf] %vm3033_vm6, %v6961_v49  ;;  %v7071_v11 = vld [vmem:[#allocation2 + $0xa0] sm:$0xf] }
 0x603   : > { %8048 = vrot.lane.b32.xlu1 %v7969_v24, %s8900_s29  ;;  %v7834_v49 = vld [vmem:[#allocation2 + $0xa0] sm:$0xf]  ;;  %v7560_v24 = vrot.slane %v7559_v50, 4  ;;  %v7072_v50 = vld [vmem:[#allocation2 + $0xa8] sm:$0xf] }
 0x604   : > { %v6951_v17 = vpop.permute.xlu0 %6950  ;;  %v7975_v46 = vrot.slane %v7834_v49, 5 }
 0x605   : > { %7031 = vst.msk [vmem:[#allocation3 + $0x3c] sm:$0xf] %vm3033_vm6, %v6951_v17  ;;  %v6947_v45 = vpop.permute.xlu1 %6946 }
 0x606   : > { %7029 = vst.msk [vmem:[#allocation3 + $0x34] sm:$0xf] %vm3033_vm6, %v6947_v45  ;;  %v7565_v45 = vsel %vm9032_vm10, %v7560_v24, %v7564_v36  ;;  %v7363_v36 = vrot.slane %v7361_v57, 4  ;;  %v7073_v57 = vld [vmem:[#allocation2 + $0xac] sm:$0xf] }
 0x607   : > { %8050 = vrot.lane.b32.xlu2 %v7972_v58, %s8900_s29  ;;  %v8684_v58 = vrot.slane %v7833_v59, 9  ;;  %v7253_v59 = vld [vmem:[#allocation2 + $0x4c] sm:$0xf] }
 0x608   : > { %v7367_v42 = vor.u32 %v7366_v20, %v7363_v36  ;;  %v7398_v54 = vshrl.u32 %v7253_v59, 16 }
 0x609   : > { %v6967_v51 = vpop.permute.xlu2 %6966  ;;  %v7976_v10 = vsel %vm9505_vm14, %v8684_v58, %v7975_v46  ;;  %v7394_v58 = vshll.u32 %v7253_v59, 16  ;;  %v7814_v59 = vld [vmem:[#allocation2 + $0x50] sm:$0x1] }
 0x60a   : > { %7682 = vrot.lane.b32.xlu0 %v7359_v18, %s8899_s27  ;;  %7039 = vst.msk [vmem:[#allocation3 + $0x5c] sm:$0xf] %vm3033_vm6, %v6967_v51  ;;  %v8815_v18 = vld [vmem:[%s12098_s2] sm:$0xff]  ;;  %v7054_v51 = vld [vmem:[#allocation2 + $0x3c] sm:$0xf]  ;;  %v7368_v43 = vrot.slane %v7367_v42, 4 }
 0x60b   : > { %7122 = vrot.lane.b32.xlu1 %v7053_v32, %s8898_s26  ;;  %v7377_v32 = vor.u32 %v7376_v14, %v7372_v40  ;;  %8822 = vmatpush.bf16.msra.mxu3 %v8815_v18 }
 0x60c   : > { %v6957_v2 = vpop.permute.xlu0 %6956  ;;  %8326 = vmatpush.bf16.msra.mxu1 %v8815_v18  ;;  %v7373_v12 = vsel %vm9032_vm10, %v7368_v43, %v7372_v40 }
 0x60d   : > { %7034 = vst.msk [vmem:[#allocation3 + $0x48] sm:$0xf] %vm3033_vm6, %v6957_v2  ;;  %v6953_v6 = vpop.permute.xlu1 %6952  ;;  %v7977_v2 = vrot.slane %v7975_v46, 4 }
 0x60e   : > { %7032 = vst.msk [vmem:[#allocation3 + $0x40] sm:$0xf] %vm3033_vm6, %v6953_v6  ;;  %v7978_v6 = vrot.slane %v7835_v5, 5 }
 0x60f   : > { %7680 = vrot.lane.b32.xlu2 %v7349_v53, %s8899_s27  ;;  %v7378_v53 = vrot.slane %v7377_v32, 4  ;;  %v7836_v32 = vld [vmem:[#allocation2 + $0xa8] sm:$0xe] }
 0x610   : > { %v7979_v37 = vsel %vm9505_vm14, %v7977_v2, %v7978_v6  ;;  %v7400_v2 = vrot.slane %v7398_v54, 4  ;;  %v7982_v6 = vrot.slane %v7837_v27, 5  ;;  %v8685_v20 = vrot.slane %v7836_v32, 9 }
 0x611   : > { %v6973_v7 = vpop.permute.xlu2 %6972  ;;  %v7383_v16 = vsel %vm9032_vm10, %v7378_v53, %v7382_v55  ;;  %v7838_v55 = vld [vmem:[#allocation2 + $0xb0] sm:$0x1] }
 0x612   : > { %7156 = vrot.lane.b32.xlu0 %v7070_v1, %s8898_s26  ;;  %7042 = vst.msk [vmem:[#allocation3 + $0x68] sm:$0xf] %vm3033_vm6, %v6973_v7  ;;  %v7586_v7 = vshll.u32 %v7277_v0, 16 }
 0x613   : > { %8016 = vrot.lane.b32.xlu1 %v7913_v48, %s8900_s29  ;;  %v7810_v48 = vld [vmem:[#allocation2 + $0x40] sm:$0xf] }
 0x614   : > { %v6963_v41 = vpop.permute.xlu0 %6962  ;;  %v7588_v33 = vrot.slane %v7586_v7, 5 }
 0x615   : > { %7037 = vst.msk [vmem:[#allocation3 + $0x54] sm:$0xf] %vm3033_vm6, %v6963_v41  ;;  %v6959_v34 = vpop.permute.xlu1 %6958  ;;  %v7809_v41 = vld [vmem:[#allocation2 + $0x3c] sm:$0xe] }
 0x616   : > { %7035 = vst.msk [vmem:[#allocation3 + $0x4c] sm:$0xf] %vm3033_vm6, %v6959_v34  ;;  %v7276_v34 = vld [vmem:[#allocation2 + $0xa8] sm:$0xf]  ;;  %v8676_v4 = vrot.slane %v7809_v41, 9  ;;  %v7593_v21 = vor.u32 %v7592_v56, %v7588_v33 }
 0x617   : > { %8018 = vrot.lane.b32.xlu2 %v7916_v13, %s8900_s29  ;;  %v7919_v13 = vrot.slane %v7810_v48, 5  ;;  %v7577_v44 = vshrl.u32 %v7276_v34, 16  ;;  %v7580_v52 = vshll.u32 %v7276_v34, 16  ;;  %v7279_v34 = vld [vmem:[#allocation2 + $0xb4] sm:$0xf] }
 0x618   : > { %v7594_v15 = vrot.slane %v7593_v21, 4 }
 0x619   : > { %v7705_v62 = vpop.permute.xlu2 %7704  ;;  %v7920_v23 = vsel %vm9505_vm14, %v8676_v4, %v7919_v13  ;;  %v7921_v31 = vrot.slane %v7919_v13, 4  ;;  %v7582_v24 = vrot.slane %v7580_v52, 5  ;;  %v7057_v4 = vld [vmem:[#allocation2 + $0x4c] sm:$0xf]  ;;  %v7604_v52 = vshll.u32 %v7279_v34, 16 }
 0x61a   : > { %7718 = vrot.lane.b32.xlu0 %v7575_v47, %s8899_s27 }
 0x61b   : > { %7158 = vrot.lane.b32.xlu1 %v7071_v11, %s8898_s26  ;;  %v7596_v11 = vshll.u32 %v7278_v19, 16  ;;  %v7813_v19 = vld [vmem:[#allocation2 + $0x4c] sm:$0xf] }
 0x61c   : > { %v6969_v22 = vpop.permute.xlu0 %6968 }
 0x61d   : > { %7040 = vst.msk [vmem:[#allocation3 + $0x60] sm:$0xf] %vm3033_vm6, %v6969_v22  ;;  %v6965_v17 = vpop.permute.xlu1 %6964  ;;  %v7579_v22 = vrot.slane %v7577_v44, 4  ;;  %v7598_v40 = vrot.slane %v7596_v11, 5  ;;  %v7601_v44 = vshrl.u32 %v7279_v34, 16 }
 0x61e   : > { %7038 = vst.msk [vmem:[#allocation3 + $0x58] sm:$0xf] %vm3033_vm6, %v6965_v17 }
 0x61f   : > { %7716 = vrot.lane.b32.xlu2 %v7565_v45, %s8899_s27  ;;  %v7583_v14 = vor.u32 %v7582_v24, %v7579_v22  ;;  %v7599_v45 = vsel %vm9032_vm10, %v7594_v15, %v7598_v40  ;;  %v7280_v22 = vld [vmem:[#allocation2 + $0xb8] sm:$0xf]  ;;  %v7606_v15 = vrot.slane %v7604_v52, 5 }
 0x620   : > { %v7610_v40 = vshll.u32 %v7280_v22, 16 }
 0x621   : > { %v8043_v30 = vpop.permute.xlu2 %8042 }
 0x622   : > { %7124 = vrot.lane.b32.xlu0 %v7054_v51, %s8898_s26  ;;  %v7584_v51 = vrot.slane %v7583_v14, 4 }
 0x623   : > { %8052 = vrot.lane.b32.xlu1 %v7976_v10, %s8900_s29  ;;  %v7396_v10 = vrot.slane %v7394_v58, 5 }
 0x624   : > { %v7145_v28 = vpop.permute.xlu0 %7144  ;;  %v7589_v61 = vsel %vm9032_vm10, %v7584_v51, %v7588_v33 }
 0x625   : > { %7224 = vst.msk [vmem:[#allocation3 + $0x40] sm:$0xf] %vm3227_vm7, %v7145_v28  ;;  %v6971_v63 = vpop.permute.xlu1 %6970  ;;  %v7401_v42 = vor.u32 %v7400_v2, %v7396_v10 }
 0x626   : > { %7784 = vst.msk [vmem:[#allocation3 + $0x40] sm:$0xf] %vm3788_vm5, %v7705_v62  ;;  %v7811_v62 = vld [vmem:[#allocation2 + $0x44] sm:$0x1] }
 0x627   : > { %7041 = vst.msk [vmem:[#allocation3 + $0x64] sm:$0xf] %vm3033_vm6, %v6971_v63  ;;  %8054 = vrot.lane.b32.xlu2 %v7979_v37, %s8900_s29  ;;  %v7922_v38 = vrot.slane %v7811_v62, 5  ;;  %v7254_v63 = vld [vmem:[#allocation2 + $0x50] sm:$0x1]  ;;  %v7402_v41 = vrot.slane %v7401_v42, 4 }
 0x628   : > { %v7056_v37 = vld [vmem:[#allocation2 + $0x48] sm:$0xf]  ;;  %v7404_v7 = vshll.u32 %v7254_v63, 16  ;;  %v6753_v62 = vld [vmem:[#allocation2 + $0xb0] sm:$0x1] }
 0x629   : > { %v7673_v1 = vpop.permute.xlu2 %7672  ;;  %v7923_v17 = vsel %vm9505_vm14, %v7921_v31, %v7922_v38  ;;  %v7812_v31 = vld [vmem:[#allocation2 + $0x48] sm:$0xe]  ;;  %v7926_v38 = vrot.slane %v7813_v19, 5  ;;  %v6904_v24 = vrot.slane %v6753_v62, 5  ;;  %v7816_v62 = vld [vmem:[#allocation2 + $0x58] sm:$0xf] }
 0x62a   : > { %7686 = vrot.lane.b32.xlu0 %v7383_v16, %s8899_s27  ;;  %v7983_v16 = vsel %vm9505_vm14, %v8685_v20, %v7982_v6  ;;  %v7406_v33 = vrot.slane %v7404_v7, 5  ;;  %v8677_v39 = vrot.slane %v7812_v31, 9  ;;  %v7075_v7 = vld [vmem:[#allocation2 + $0xb8] sm:$0xf] }
 0x62b   : > { %7126 = vrot.lane.b32.xlu1 %v7055_v60, %s8898_s26  ;;  %v7985_v60 = vrot.slane %v7838_v55, 5 }
 0x62c   : > { %v7707_v25 = vpop.permute.xlu0 %7706  ;;  %v7927_v14 = vsel %vm9505_vm14, %v8677_v39, %v7926_v38 }
 0x62d   : > { %v7147_v3 = vpop.permute.xlu1 %7146 }
 0x62e   : > { %7225 = vst.msk [vmem:[#allocation3 + $0x44] sm:$0xf] %vm3227_vm7, %v7147_v3 }
 0x62f   : > { %7785 = vst.msk [vmem:[#allocation3 + $0x44] sm:$0xf] %vm3788_vm5, %v7707_v25  ;;  %7684 = vrot.lane.b32.xlu2 %v7373_v12, %s8899_s27  ;;  %v7407_v12 = vsel %vm9032_vm10, %v7402_v41, %v7406_v33 }
 0x630   : > { %8121 = vst.msk [vmem:[#allocation3 + $0x44] sm:$0xf] %vm4125_vm12, %v8043_v30  ;;  %v7252_v30 = vld [vmem:[#allocation2 + $0x48] sm:$0xf] }
 0x631   : > { %v8011_v47 = vpop.permute.xlu2 %8010  ;;  %v7385_v36 = vshrl.u32 %v7252_v30, 16  ;;  %v7388_v53 = vshll.u32 %v7252_v30, 16  ;;  %v7840_v30 = vld [vmem:[#allocation2 + $0xb8] sm:$0xf] }
 0x632   : > { %7160 = vrot.lane.b32.xlu0 %v7072_v50, %s8898_s26 }
 0x633   : > { %8020 = vrot.lane.b32.xlu1 %v7920_v23, %s8900_s29  ;;  %v7387_v48 = vrot.slane %v7385_v36, 4  ;;  %v7390_v25 = vrot.slane %v7388_v53, 5  ;;  %v6903_v23 = vrot.slane %v6901_v29, 4  ;;  %v7074_v36 = vld [vmem:[#allocation2 + $0xb4] sm:$0xf] }
 0x634   : > { %v7113_v49 = vpop.permute.xlu0 %7112 }
 0x635   : > { %7208 = vst.msk [vmem:[#allocation3] sm:$0xf] %vm3227_vm7, %v7113_v49  ;;  %v8041_v8 = vpop.permute.xlu1 %8040  ;;  %v7391_v56 = vor.u32 %v7390_v25, %v7387_v48  ;;  %v6905_v29 = vsel %vm9505_vm14, %v6903_v23, %v6904_v24 }
 0x636   : > { %7768 = vst.msk [vmem:[#allocation3] sm:$0xf] %vm3788_vm5, %v7673_v1  ;;  %v7984_v1 = vrot.slane %v7982_v6, 4  ;;  %v7281_v6 = vld [vmem:[#allocation2 + $0xbc] sm:$0x1] }
 0x637   : > { %8120 = vst.msk [vmem:[#allocation3 + $0x40] sm:$0xf] %vm4125_vm12, %v8041_v8  ;;  %8022 = vrot.lane.b32.xlu2 %v7923_v17, %s8900_s29  ;;  %v7603_v8 = vrot.slane %v7601_v44, 4  ;;  %v7620_v55 = vshll.u32 %v7281_v6, 16 }
 0x638   : > { %v7986_v3 = vsel %vm9505_vm14, %v7984_v1, %v7985_v60  ;;  %v7256_v1 = vld [vmem:[#allocation2 + $0x58] sm:$0xf] }
 0x639   : > { %v7709_v46 = vpop.permute.xlu2 %7708  ;;  %v7607_v58 = vor.u32 %v7606_v15, %v7603_v8  ;;  %v7622_v41 = vrot.slane %v7620_v55, 5  ;;  %v7418_v34 = vshll.u32 %v7256_v1, 16  ;;  %v7817_v15 = vld [vmem:[#allocation2 + $0x5c] sm:$0x1] }
 0x63a   : > { %7722 = vrot.lane.b32.xlu0 %v7599_v45, %s8899_s27  ;;  %v7928_v45 = vrot.slane %v7926_v38, 4  ;;  %v7257_v38 = vld [vmem:[#allocation2 + $0x5c] sm:$0x1] }
 0x63b   : > { %7162 = vrot.lane.b32.xlu1 %v7073_v57, %s8898_s26  ;;  %v7929_v57 = vrot.slane %v7814_v59, 5  ;;  %v7608_v32 = vrot.slane %v7607_v58, 4  ;;  %v7428_v39 = vshll.u32 %v7257_v38, 16 }
 0x63c   : > { %v7675_v18 = vpop.permute.xlu0 %7674 }
 0x63d   : > { %v7115_v5 = vpop.permute.xlu1 %7114  ;;  %v7930_v51 = vsel %vm9505_vm14, %v7928_v45, %v7929_v57  ;;  %v7283_v45 = vld [vmem:[#allocation2 + $0xc4] sm:$0xf]  ;;  %v7430_v58 = vrot.slane %v7428_v39, 5 }
 0x63e   : > { %7209 = vst.msk [vmem:[#allocation3 + $0x4] sm:$0xf] %vm3227_vm7, %v7115_v5  ;;  %v8807_v28 = vld [vmem:[#allocation3 + $0x40] sm:$0xff] }
 0x63f   : > { %7769 = vst.msk [vmem:[#allocation3 + $0x4] sm:$0xf] %vm3788_vm5, %v7675_v18  ;;  %7720 = vrot.lane.b32.xlu2 %v7589_v61, %s8899_s27  ;;  %8769 = vmatmul.msk.bf16.vlgmr.msra.gmra.mxu3 %vm4290_vm13, %v8807_v28  ;;  %v7612_v18 = vrot.slane %v7610_v40, 5  ;;  %v7989_v28 = vrot.slane %v7840_v30, 5 }
 0x640   : > { %8105 = vst.msk [vmem:[#allocation3 + $0x4] sm:$0xf] %vm4125_vm12, %v8011_v47  ;;  %v7392_v47 = vrot.slane %v7391_v56, 4  ;;  %v7839_v56 = vld [vmem:[#allocation2 + $0xb4] sm:$0xe] }
 0x641   : > { %v8047_v0 = vpop.permute.xlu2 %8046  ;;  %v7613_v2 = vsel %vm9032_vm10, %v7608_v32, %v7612_v18  ;;  %v8686_v44 = vrot.slane %v7839_v56, 9  ;;  %v7282_v32 = vld [vmem:[#allocation2 + $0xc0] sm:$0xf] }
 0x642   : > { %7128 = vrot.lane.b32.xlu0 %v7056_v37, %s8898_s26  ;;  %v7397_v11 = vsel %vm9032_vm10, %v7392_v47, %v7396_v10  ;;  %v7255_v10 = vld [vmem:[#allocation2 + $0x54] sm:$0xf] }
 0x643   : > { %8056 = vrot.lane.b32.xlu1 %v7983_v16, %s8900_s29  ;;  %v7409_v63 = vshrl.u32 %v7255_v10, 16  ;;  %v7412_v53 = vshll.u32 %v7255_v10, 16  ;;  %v7991_v16 = vrot.slane %v7989_v28, 4  ;;  %v7990_v47 = vsel %vm9505_vm14, %v8686_v44, %v7989_v28 }
 0x644   : > { %v7149_v26 = vpop.permute.xlu0 %7148 }
 0x645   : > { %7226 = vst.msk [vmem:[#allocation3 + $0x48] sm:$0xf] %vm3227_vm7, %v7149_v26  ;;  %v8009_v43 = vpop.permute.xlu1 %8008  ;;  %v7411_v25 = vrot.slane %v7409_v63, 4 }
 0x646   : > { %7786 = vst.msk [vmem:[#allocation3 + $0x48] sm:$0xf] %vm3788_vm5, %v7709_v46  ;;  %v7614_v46 = vshrl.u32 %v7280_v22, 16  ;;  %v7058_v22 = vld [vmem:[#allocation2 + $0x54] sm:$0xf] }
 0x647   : > { %8104 = vst.msk [vmem:[#allocation3] sm:$0xf] %vm4125_vm12, %v8009_v43  ;;  %8058 = vrot.lane.b32.xlu2 %v7986_v3, %s8900_s29  ;;  %v7414_v43 = vrot.slane %v7412_v53, 5  ;;  %v7284_v53 = vld [vmem:[#allocation2 + $0xc8] sm:$0x1] }
 0x648   : > { %v7616_v5 = vrot.slane %v7614_v46, 4  ;;  %v7936_v46 = vrot.slane %v7817_v15, 5 }
 0x649   : > { %v7677_v13 = vpop.permute.xlu2 %7676 }
 0x64a   : > { %7690 = vrot.lane.b32.xlu0 %v7407_v12, %s8899_s27  ;;  %v7617_v20 = vor.u32 %v7616_v5, %v7612_v18  ;;  %v7634_v18 = vshll.u32 %v7283_v45, 16  ;;  %v6755_v5 = vld [vmem:[#allocation2 + $0xb8] sm:$0xf] }
 0x64b   : > { %7130 = vrot.lane.b32.xlu1 %v7057_v4, %s8898_s26  ;;  %v7415_v4 = vor.u32 %v7414_v43, %v7411_v25  ;;  %v6908_v6 = vrot.slane %v6755_v5, 5 }
 0x64c   : > { %v7711_v50 = vpop.permute.xlu0 %7710  ;;  %v7618_v60 = vrot.slane %v7617_v20, 4 }
 0x64d   : > { %v7151_v21 = vpop.permute.xlu1 %7150  ;;  %v7416_v23 = vrot.slane %v7415_v4, 4 }
 0x64e   : > { %7227 = vst.msk [vmem:[#allocation3 + $0x4c] sm:$0xf] %vm3227_vm7, %v7151_v21  ;;  %v8799_v49 = vld [vmem:[#allocation3] sm:$0xff]  ;;  %v7623_v12 = vsel %vm9032_vm10, %v7618_v60, %v7622_v41 }
 0x64f   : > { %7787 = vst.msk [vmem:[#allocation3 + $0x4c] sm:$0xf] %vm3788_vm5, %v7711_v50  ;;  %7688 = vrot.lane.b32.xlu2 %v7397_v11, %s8899_s27  ;;  %8761 = vmatmul.msk.bf16.vlgmr.msra.gmra.mxu1 %vm4290_vm13, %v8799_v49  ;;  %v7420_v50 = vrot.slane %v7418_v34, 5  ;;  %v7933_v49 = vrot.slane %v7816_v62, 5  ;;  %v7077_v62 = vld [vmem:[#allocation2 + $0xc4] sm:$0xf] }
 0x650   : > { %8123 = vst.msk [vmem:[#allocation3 + $0x4c] sm:$0xf] %vm4125_vm12, %v8047_v0  ;;  %v7841_v0 = vld [vmem:[#allocation2 + $0xbc] sm:$0x1] }
 0x651   : > { %v8015_v17 = vpop.permute.xlu2 %8014  ;;  %v7992_v48 = vrot.slane %v7841_v0, 5  ;;  %v7421_v31 = vsel %vm9032_vm10, %v7416_v23, %v7420_v50  ;;  %v7935_v59 = vrot.slane %v7933_v49, 4  ;;  %v7628_v0 = vshll.u32 %v7282_v32, 16  ;;  %v7842_v23 = vld [vmem:[#allocation2 + $0xc0] sm:$0xe] }
 0x652   : > { %6974 = vrot.lane.b32.xlu0 %v6905_v29, %s8897_s23  ;;  %v8687_v15 = vrot.slane %v7842_v23, 9 }
 0x653   : > { %8024 = vrot.lane.b32.xlu1 %v7927_v14, %s8900_s29  ;;  %v7993_v3 = vsel %vm9505_vm14, %v7991_v16, %v7992_v48  ;;  %v6910_v48 = vrot.slane %v6908_v6, 4  ;;  %v7630_v43 = vrot.slane %v7628_v0, 5 }
 0x654   : > { %v7117_v54 = vpop.permute.xlu0 %7116 }
 0x655   : > { %7210 = vst.msk [vmem:[#allocation3 + $0x8] sm:$0xf] %vm3227_vm7, %v7117_v54  ;;  %v8045_v27 = vpop.permute.xlu1 %8044  ;;  %v7937_v54 = vsel %vm9505_vm14, %v7935_v59, %v7936_v46 }
 0x656   : > { %7770 = vst.msk [vmem:[#allocation3 + $0x8] sm:$0xf] %vm3788_vm5, %v7677_v13  ;;  %v7422_v13 = vshrl.u32 %v7256_v1, 16  ;;  %v6756_v1 = vld [vmem:[#allocation2 + $0xbc] sm:$0x1] }
 0x657   : > { %8122 = vst.msk [vmem:[#allocation3 + $0x48] sm:$0xf] %vm4125_vm12, %v8045_v27  ;;  %8026 = vrot.lane.b32.xlu2 %v7930_v51, %s8900_s29  ;;  %v7815_v27 = vld [vmem:[#allocation2 + $0x54] sm:$0xe]  ;;  %v7638_v51 = vshrl.u32 %v7283_v45, 16 }
 0x658   : > { %v7424_v21 = vrot.slane %v7422_v13, 4 }
 0x659   : > { %v7713_v61 = vpop.permute.xlu2 %7712  ;;  %v7640_v20 = vrot.slane %v7638_v51, 4 }
 0x65a   : > { %7724 = vrot.lane.b32.xlu0 %v7613_v2, %s8899_s27  ;;  %v7425_v24 = vor.u32 %v7424_v21, %v7420_v50  ;;  %v8678_v2 = vrot.slane %v7815_v27, 9 }
 0x65b   : > { %7164 = vrot.lane.b32.xlu1 %v7074_v36, %s8898_s26  ;;  %v7636_v36 = vrot.slane %v7634_v18, 5 }
 0x65c   : > { %v7679_v37 = vpop.permute.xlu0 %7678  ;;  %v7426_v14 = vrot.slane %v7425_v24, 4  ;;  %v7934_v63 = vsel %vm9505_vm14, %v8678_v2, %v7933_v49  ;;  %v7258_v24 = vld [vmem:[#allocation2 + $0x60] sm:$0xf] }
 0x65d   : > { %v7119_v42 = vpop.permute.xlu1 %7118  ;;  %v7433_v59 = vshrl.u32 %v7258_v24, 16 }
 0x65e   : > { %7211 = vst.msk [vmem:[#allocation3 + $0xc] sm:$0xf] %vm3227_vm7, %v7119_v42  ;;  %v8808_v26 = vld [vmem:[#allocation3 + $0x48] sm:$0xff]  ;;  %v7431_v30 = vsel %vm9032_vm10, %v7426_v14, %v7430_v58 }
 0x65f   : > { %7771 = vst.msk [vmem:[#allocation3 + $0xc] sm:$0xf] %vm3788_vm5, %v7679_v37  ;;  %7166 = vrot.lane.b32.xlu2 %v7075_v7, %s8898_s26  ;;  %8770 = vmatmul.msk.bf16.gmra.mxu3 %vm4290_vm13, %v8808_v26  ;;  %v7625_v37 = vshrl.u32 %v7282_v32, 16  ;;  %v7076_v42 = vld [vmem:[#allocation2 + $0xc0] sm:$0xf]  ;;  %v7641_v7 = vor.u32 %v7640_v20, %v7636_v36  ;;  %v7644_v26 = vshll.u32 %v7284_v53, 16 }
 0x660   : > { %8107 = vst.msk [vmem:[#allocation3 + $0xc] sm:$0xf] %vm4125_vm12, %v8015_v17  ;;  %v7059_v17 = vld [vmem:[#allocation2 + $0x58] sm:$0xf]  ;;  %v7060_v14 = vld [vmem:[#allocation2 + $0x60] sm:$0xf] }
 0x661   : > { %v8051_v33 = vpop.permute.xlu2 %8050  ;;  %v7627_v25 = vrot.slane %v7625_v37, 4  ;;  %v7642_v56 = vrot.slane %v7641_v7, 4  ;;  %v7646_v34 = vrot.slane %v7644_v26, 5  ;;  %v7435_v51 = vrot.slane %v7433_v59, 4  ;;  %v7061_v20 = vld [vmem:[#allocation2 + $0x64] sm:$0xf] }
 0x662   : > { %8062 = vrot.lane.b32.xlu0 %v7993_v3, %s8900_s29  ;;  %v6911_v3 = vrot.slane %v6756_v1, 5  ;;  %v6758_v53 = vld [vmem:[#allocation2 + $0xc4] sm:$0xf]  ;;  %v7285_v26 = vld [vmem:[#allocation2 + $0xcc] sm:$0xf] }
 0x663   : > { %7726 = vrot.lane.b32.xlu1 %v7623_v12, %s8899_s27  ;;  %v7631_v4 = vor.u32 %v7630_v43, %v7627_v25  ;;  %v7647_v44 = vsel %vm9032_vm10, %v7642_v56, %v7646_v34  ;;  %v7819_v37 = vld [vmem:[#allocation2 + $0x64] sm:$0xf]  ;;  %v6915_v7 = vrot.slane %v6758_v53, 5  ;;  %v7820_v43 = vld [vmem:[#allocation2 + $0x68] sm:$0x1] }
 0x664   : > { %v7153_v19 = vpop.permute.xlu0 %7152  ;;  %v6912_v12 = vsel %vm9505_vm14, %v6910_v48, %v6911_v3  ;;  %v7940_v48 = vrot.slane %v7819_v37, 5  ;;  %v7652_v3 = vshll.u32 %v7285_v26, 16  ;;  %v7286_v34 = vld [vmem:[#allocation2 + $0xd0] sm:$0xf] }
 0x665   : > { %7228 = vst.msk [vmem:[#allocation3 + $0x50] sm:$0xf] %vm3227_vm7, %v7153_v19  ;;  %v8013_v52 = vpop.permute.xlu1 %8012  ;;  %v7259_v19 = vld [vmem:[#allocation2 + $0x64] sm:$0xf]  ;;  %v7632_v21 = vrot.slane %v7631_v4, 4  ;;  %v7943_v4 = vrot.slane %v7820_v43, 5 }
 0x666   : > { %7788 = vst.msk [vmem:[#allocation3 + $0x50] sm:$0xf] %vm3788_vm5, %v7713_v61  ;;  %v6754_v61 = vld [vmem:[#allocation2 + $0xb4] sm:$0xe]  ;;  %v7442_v50 = vshll.u32 %v7259_v19, 16 }
 0x667   : > { %8106 = vst.msk [vmem:[#allocation3 + $0x8] sm:$0xf] %vm4125_vm12, %v8013_v52  ;;  %8060 = vrot.lane.b32.xlu2 %v7990_v47, %s8900_s29  ;;  %v8671_v55 = vrot.slane %v6754_v61, 9  ;;  %v7446_v47 = vshrl.u32 %v7259_v19, 16  ;;  %v6759_v19 = vld [vmem:[#allocation2 + $0xc8] sm:$0x1] }
 0x668   : > { %v7444_v38 = vrot.slane %v7442_v50, 5  ;;  %v7654_v50 = vrot.slane %v7652_v3, 5  ;;  %v7821_v3 = vld [vmem:[#allocation2 + $0x6c] sm:$0xe] }
 0x669   : > { %v7681_v11 = vpop.permute.xlu2 %7680  ;;  %v6909_v60 = vsel %vm9505_vm14, %v8671_v55, %v6908_v6 }
 0x66a   : > { %7692 = vrot.lane.b32.xlu0 %v7421_v31, %s8899_s27  ;;  %v7843_v31 = vld [vmem:[#allocation2 + $0xc4] sm:$0xf] }
 0x66b   : > { %7132 = vrot.lane.b32.xlu1 %v7058_v22, %s8898_s26  ;;  %v7448_v22 = vrot.slane %v7446_v47, 4  ;;  %v7996_v39 = vrot.slane %v7843_v31, 5  ;;  %v7658_v47 = vshll.u32 %v7286_v34, 16 }
 0x66c   : > { %v7715_v8 = vpop.permute.xlu0 %7714 }
 0x66d   : > { %v7155_v29 = vpop.permute.xlu1 %7154  ;;  %v7449_v46 = vor.u32 %v7448_v22, %v7444_v38  ;;  %v7997_v58 = vsel %vm9505_vm14, %v8687_v15, %v7996_v39  ;;  %v7845_v22 = vld [vmem:[#allocation2 + $0xcc] sm:$0xe]  ;;  %v7660_v15 = vrot.slane %v7658_v47, 5 }
 0x66e   : > { %7229 = vst.msk [vmem:[#allocation3 + $0x54] sm:$0xf] %vm3227_vm7, %v7155_v29  ;;  %v8800_v40 = vld [vmem:[#allocation3 + $0x8] sm:$0xff]  ;;  %v7844_v29 = vld [vmem:[#allocation2 + $0xc8] sm:$0x1] }
 0x66f   : > { %7789 = vst.msk [vmem:[#allocation3 + $0x54] sm:$0xf] %vm3788_vm5, %v7715_v8  ;;  %7134 = vrot.lane.b32.xlu2 %v7059_v17, %s8898_s26  ;;  %8762 = vmatmul.msk.bf16.gmra.mxu1 %vm4290_vm13, %v8800_v40  ;;  %v7637_v8 = vsel %vm9032_vm10, %v7632_v21, %v7636_v36  ;;  %v7260_v17 = vld [vmem:[#allocation2 + $0x68] sm:$0x1]  ;;  %v7436_v40 = vshll.u32 %v7258_v24, 16  ;;  %v7450_v32 = vrot.slane %v7449_v46, 4 }
 0x670   : > { %8125 = vst.msk [vmem:[#allocation3 + $0x54] sm:$0xf] %vm4125_vm12, %v8051_v33  ;;  %v7452_v27 = vshll.u32 %v7260_v17, 16  ;;  %v7846_v24 = vld [vmem:[#allocation2 + $0xd0] sm:$0xf] }
 0x671   : > { %v8019_v57 = vpop.permute.xlu2 %8018  ;;  %v7287_v17 = vld [vmem:[#allocation2 + $0xd4] sm:$0x1]  ;;  %v7078_v46 = vld [vmem:[#allocation2 + $0xcc] sm:$0xf] }
 0x672   : > { %8030 = vrot.lane.b32.xlu0 %v7937_v54, %s8900_s29  ;;  %v7998_v54 = vrot.slane %v7996_v39, 4  ;;  %v7454_v61 = vrot.slane %v7452_v27, 5 }
 0x673   : > { %7694 = vrot.lane.b32.xlu1 %v7431_v30, %s8899_s27  ;;  %v7438_v30 = vrot.slane %v7436_v40, 5  ;;  %v8688_v40 = vrot.slane %v7845_v22, 9 }
 0x674   : > { %v7121_v10 = vpop.permute.xlu0 %7120  ;;  %v7455_v6 = vsel %vm9032_vm10, %v7450_v32, %v7454_v61  ;;  %v7261_v32 = vld [vmem:[#allocation2 + $0x6c] sm:$0xf]  ;;  %v7262_v61 = vld [vmem:[#allocation2 + $0x70] sm:$0xf] }
 0x675   : > { %7212 = vst.msk [vmem:[#allocation3 + $0x10] sm:$0xf] %vm3227_vm7, %v7121_v10  ;;  %v8049_v28 = vpop.permute.xlu1 %8048  ;;  %v7460_v53 = vshll.u32 %v7261_v32, 16 }
 0x676   : > { %7772 = vst.msk [vmem:[#allocation3 + $0x10] sm:$0xf] %vm3788_vm5, %v7681_v11 }
 0x677   : > { %8124 = vst.msk [vmem:[#allocation3 + $0x50] sm:$0xf] %vm4125_vm12, %v8049_v28  ;;  %8028 = vrot.lane.b32.xlu2 %v7934_v63, %s8900_s29  ;;  %v7439_v28 = vor.u32 %v7438_v30, %v7435_v51  ;;  %v6757_v63 = vld [vmem:[#allocation2 + $0xc0] sm:$0xe] }
 0x678   : > { %v8672_v1 = vrot.slane %v6757_v63, 9 }
 0x679   : > { %v7717_v16 = vpop.permute.xlu2 %7716  ;;  %v7440_v55 = vrot.slane %v7439_v28, 4  ;;  %v7457_v28 = vshrl.u32 %v7261_v32, 16 }
 0x67a   : > { %7168 = vrot.lane.b32.xlu0 %v7076_v42, %s8898_s26  ;;  %v7818_v42 = vld [vmem:[#allocation2 + $0x60] sm:$0xe] }
 0x67b   : > { %6976 = vrot.lane.b32.xlu1 %v6909_v60, %s8897_s23  ;;  %v7445_v60 = vsel %vm9032_vm10, %v7440_v55, %v7444_v38  ;;  %v8679_v25 = vrot.slane %v7818_v42, 9  ;;  %v7079_v38 = vld [vmem:[#allocation2 + $0xd0] sm:$0xf]  ;;  %v7466_v55 = vshll.u32 %v7262_v61, 16  ;;  %v7470_v42 = vshrl.u32 %v7262_v61, 16 }
 0x67c   : > { %v7683_v41 = vpop.permute.xlu0 %7682 }
 0x67d   : > { %v7123_v33 = vpop.permute.xlu1 %7122  ;;  %v7472_v43 = vrot.slane %v7470_v42, 4 }
 0x67e   : > { %7213 = vst.msk [vmem:[#allocation3 + $0x14] sm:$0xf] %vm3227_vm7, %v7123_v33  ;;  %v8809_v13 = vld [vmem:[#allocation3 + $0x50] sm:$0xff]  ;;  %v6916_v33 = vsel %vm9505_vm14, %v8672_v1, %v6915_v7  ;;  %v7459_v1 = vrot.slane %v7457_v28, 4 }
 0x67f   : > { %7773 = vst.msk [vmem:[#allocation3 + $0x14] sm:$0xf] %vm3788_vm5, %v7683_v41  ;;  %6978 = vrot.lane.b32.xlu2 %v6912_v12, %s8897_s23  ;;  %8771 = vmatmul.msk.bf16.gmra.mxu3 %vm4290_vm13, %v8809_v13  ;;  %v7649_v41 = vshrl.u32 %v7285_v26, 16  ;;  %v7941_v12 = vsel %vm9505_vm14, %v8679_v25, %v7940_v48  ;;  %v7942_v13 = vrot.slane %v7940_v48, 4  ;;  %v7063_v26 = vld [vmem:[#allocation2 + $0x70] sm:$0xf] }
 0x680   : > { %8109 = vst.msk [vmem:[#allocation3 + $0x14] sm:$0xf] %vm4125_vm12, %v8019_v57  ;;  %v7999_v57 = vrot.slane %v7844_v29, 5  ;;  %v7822_v48 = vld [vmem:[#allocation2 + $0x70] sm:$0xf]  ;;  %v7468_v25 = vrot.slane %v7466_v55, 5 }
 0x681   : > { %v8055_v52 = vpop.permute.xlu2 %8054  ;;  %v7944_v23 = vsel %vm9505_vm14, %v7942_v13, %v7943_v4  ;;  %v7062_v13 = vld [vmem:[#allocation2 + $0x6c] sm:$0xf] }
 0x682   : > { %7730 = vrot.lane.b32.xlu0 %v7647_v44, %s8899_s27  ;;  %v8000_v10 = vsel %vm9505_vm14, %v7998_v54, %v7999_v57  ;;  %v7668_v57 = vshll.u32 %v7287_v17, 16  ;;  %v7473_v4 = vor.u32 %v7472_v43, %v7468_v25  ;;  %v8852_v17 = vld [vmem:[%s8987_s10 + $0x80] sm:$0xff]  ;;  %v8858_v43 = vld [vmem:[%s8987_s10 + $0x10] sm:$0xff] }
 0x683   : > { %7170 = vrot.lane.b32.xlu1 %v7077_v62, %s8898_s26  ;;  %v7662_v62 = vshrl.u32 %v7286_v34, 16  ;;  %v7947_v34 = vrot.slane %v7822_v48, 5 }
 0x684   : > { %v7157_v11 = vpop.permute.xlu0 %7156 }
 0x685   : > { %7230 = vst.msk [vmem:[#allocation3 + $0x58] sm:$0xf] %vm3227_vm7, %v7157_v11  ;;  %v8017_v49 = vpop.permute.xlu1 %8016  ;;  %v6917_v11 = vrot.slane %v6915_v7, 4  ;;  %v7664_v39 = vrot.slane %v7662_v62, 4  ;;  %v7462_v7 = vrot.slane %v7460_v53, 5 }
 0x686   : > { %7790 = vst.msk [vmem:[#allocation3 + $0x58] sm:$0xf] %vm3788_vm5, %v7717_v16 }
 0x687   : > { %8108 = vst.msk [vmem:[#allocation3 + $0x10] sm:$0xf] %vm4125_vm12, %v8017_v49  ;;  %7728 = vrot.lane.b32.xlu2 %v7637_v8, %s8899_s27  ;;  %v6918_v49 = vrot.slane %v6759_v19, 5  ;;  %v7665_v54 = vor.u32 %v7664_v39, %v7660_v15  ;;  %v8680_v19 = vrot.slane %v7821_v3, 9 }
 0x689   : > { %v7685_v45 = vpop.permute.xlu2 %7684  ;;  %v6919_v59 = vsel %vm9505_vm14, %v6917_v11, %v6918_v49  ;;  %v7666_v30 = vrot.slane %v7665_v54, 4  ;;  %v7823_v49 = vld [vmem:[#allocation2 + $0x74] sm:$0x1] }
 0x68a   : > { %7136 = vrot.lane.b32.xlu0 %v7060_v14, %s8898_s26  ;;  %v8003_v14 = vrot.slane %v7846_v24, 5  ;;  %v7949_v24 = vrot.slane %v7947_v34, 4 }
 0x68b   : > { %8064 = vrot.lane.b32.xlu1 %v7997_v58, %s8900_s29 }
 0x68c   : > { %v7719_v18 = vpop.permute.xlu0 %7718 }
 0x68d   : > { %v7159_v5 = vpop.permute.xlu1 %7158 }
 0x68e   : > { %7231 = vst.msk [vmem:[#allocation3 + $0x5c] sm:$0xf] %vm3227_vm7, %v7159_v5  ;;  %v8801_v2 = vld [vmem:[#allocation3 + $0x10] sm:$0xff]  ;;  %v7670_v5 = vrot.slane %v7668_v57, 5 }
 0x68f   : > { %7791 = vst.msk [vmem:[#allocation3 + $0x5c] sm:$0xf] %vm3788_vm5, %v7719_v18  ;;  %8066 = vrot.lane.b32.xlu2 %v8000_v10, %s8900_s29  ;;  %8763 = vmatmul.msk.bf16.gmra.mxu1 %vm4290_vm13, %v8801_v2  ;;  %v8004_v18 = vsel %vm9505_vm14, %v8688_v40, %v8003_v14  ;;  %v7847_v2 = vld [vmem:[#allocation2 + $0xd4] sm:$0x1] }
 0x690   : > { %8127 = vst.msk [vmem:[#allocation3 + $0x5c] sm:$0xf] %vm4125_vm12, %v8055_v52  ;;  %v7651_v52 = vrot.slane %v7649_v41, 4  ;;  %v8006_v63 = vrot.slane %v7847_v2, 5  ;;  %v8855_v2 = vld [vmem:[%s8987_s10 + $0x8] sm:$0xff] }
 0x691   : > { %v8023_v36 = vpop.permute.xlu2 %8022 }
 0x692   : > { %7698 = vrot.lane.b32.xlu0 %v7455_v6, %s8899_s27  ;;  %v7655_v8 = vor.u32 %v7654_v50, %v7651_v52  ;;  %v7948_v50 = vsel %vm9505_vm14, %v8680_v19, %v7947_v34 }
 0x693   : > { %7138 = vrot.lane.b32.xlu1 %v7061_v20, %s8898_s26  ;;  %v8005_v20 = vrot.slane %v8003_v14, 4 }
 0x694   : > { %v7125_v0 = vpop.permute.xlu0 %7124  ;;  %v7656_v58 = vrot.slane %v7655_v8, 4  ;;  %v7950_v8 = vrot.slane %v7823_v49, 5 }
 0x695   : > { %7214 = vst.msk [vmem:[#allocation3 + $0x18] sm:$0xf] %vm3227_vm7, %v7125_v0  ;;  %v8053_v16 = vpop.permute.xlu1 %8052 }
 0x696   : > { %7774 = vst.msk [vmem:[#allocation3 + $0x18] sm:$0xf] %vm3788_vm5, %v7685_v45  ;;  %v7661_v51 = vsel %vm9032_vm10, %v7656_v58, %v7660_v15  ;;  %v7951_v39 = vsel %vm9505_vm14, %v7949_v24, %v7950_v8  ;;  %v8861_v24 = vld [vmem:[%s8987_s10 + $0xa8] sm:$0xff] }
 0x697   : > { %8126 = vst.msk [vmem:[#allocation3 + $0x58] sm:$0xf] %vm4125_vm12, %v8053_v16  ;;  %7696 = vrot.lane.b32.xlu2 %v7445_v60, %s8899_s27  ;;  %v8007_v16 = vsel %vm9505_vm14, %v8005_v20, %v8006_v63 }
 0x699   : > { %v7721_v56 = vpop.permute.xlu2 %7720 }
 0x69a   : > { %6980 = vrot.lane.b32.xlu0 %v6916_v33, %s8897_s23  ;;  %v7463_v33 = vor.u32 %v7462_v7, %v7459_v1 }
 0x69b   : > { %8032 = vrot.lane.b32.xlu1 %v7941_v12, %s8900_s29  ;;  %v7263_v12 = vld [vmem:[#allocation2 + $0x74] sm:$0x1] }
 0x69c   : > { %v7687_v44 = vpop.permute.xlu0 %7686  ;;  %v7476_v52 = vshll.u32 %v7263_v12, 16 }
 0x69d   : > { %v7127_v21 = vpop.permute.xlu1 %7126 }
 0x69e   : > { %7215 = vst.msk [vmem:[#allocation3 + $0x1c] sm:$0xf] %vm3227_vm7, %v7127_v21  ;;  %v8810_v31 = vld [vmem:[#allocation3 + $0x58] sm:$0xff]  ;;  %v7474_v21 = vrot.slane %v7473_v4, 4 }
 0x69f   : > { %7775 = vst.msk [vmem:[#allocation3 + $0x1c] sm:$0xf] %vm3788_vm5, %v7687_v44  ;;  %8034 = vrot.lane.b32.xlu2 %v7944_v23, %s8900_s29  ;;  %8772 = vmatmul.msk.bf16.gmra.mxu3 %vm4290_vm13, %v8810_v31  ;;  %v7464_v44 = vrot.slane %v7463_v33, 4  ;;  %v7478_v31 = vrot.slane %v7476_v52, 5 }
 0x6a0   : > { %8111 = vst.msk [vmem:[#allocation3 + $0x1c] sm:$0xf] %vm4125_vm12, %v8023_v36  ;;  %v7671_v36 = vsel %vm9032_vm10, %v7666_v30, %v7670_v5 }
 0x6a1   : > { %v8059_v29 = vpop.permute.xlu2 %8058  ;;  %v7469_v62 = vsel %vm9032_vm10, %v7464_v44, %v7468_v25 }
 0x6a2   : > { %7174 = vrot.lane.b32.xlu0 %v7079_v38, %s8898_s26  ;;  %v7479_v38 = vsel %vm9032_vm10, %v7474_v21, %v7478_v31  ;;  %v8860_v21 = vld [vmem:[%s8987_s10 + $0xa0] sm:$0xff] }
 0x6a3   : > { %6982 = vrot.lane.b32.xlu1 %v6919_v59, %s8897_s23 }
 0x6a4   : > { %v7161_v45 = vpop.permute.xlu0 %7160 }
 0x6a5   : > { %7232 = vst.msk [vmem:[#allocation3 + $0x60] sm:$0xf] %vm3227_vm7, %v7161_v45  ;;  %v8021_v27 = vpop.permute.xlu1 %8020 }
 0x6a6   : > { %7792 = vst.msk [vmem:[#allocation3 + $0x60] sm:$0xf] %vm3788_vm5, %v7721_v56 }
 0x6a7   : > { %8110 = vst.msk [vmem:[#allocation3 + $0x18] sm:$0xf] %vm4125_vm12, %v8021_v27  ;;  %7172 = vrot.lane.b32.xlu2 %v7078_v46, %s8898_s26  ;;  %v8853_v46 = vld [vmem:[%s8987_s10 + $0x88] sm:$0xff]  ;;  %v8854_v27 = vld [vmem:[%s8987_s10] sm:$0xff] }
 0x6a9   : > { %v7689_v10 = vpop.permute.xlu2 %7688 }
 0x6aa   : > { %8068 = vrot.lane.b32.xlu0 %v8004_v18, %s8900_s29 }
 0x6ab   : > { %7732 = vrot.lane.b32.xlu1 %v7661_v51, %s8899_s27 }
 0x6ac   : > { %v7723_v6 = vpop.permute.xlu0 %7722 }
 0x6ad   : > { %v7163_v37 = vpop.permute.xlu1 %7162 }
 0x6ae   : > { %7233 = vst.msk [vmem:[#allocation3 + $0x64] sm:$0xf] %vm3227_vm7, %v7163_v37  ;;  %v8802_v0 = vld [vmem:[#allocation3 + $0x18] sm:$0xff] }
 0x6af   : > { %7793 = vst.msk [vmem:[#allocation3 + $0x64] sm:$0xf] %vm3788_vm5, %v7723_v6  ;;  %7734 = vrot.lane.b32.xlu2 %v7671_v36, %s8899_s27  ;;  %8764 = vmatmul.msk.bf16.gmra.mxu1 %vm4290_vm13, %v8802_v0  ;;  %v8856_v0 = vld [vmem:[%s8987_s10 + $0x90] sm:$0xff] }
 0x6b0   : > { %8129 = vst.msk [vmem:[#allocation3 + $0x64] sm:$0xf] %vm4125_vm12, %v8059_v29 }
 0x6b1   : > { %v8027_v60 = vpop.permute.xlu2 %8026 }
 0x6b2   : > { %7142 = vrot.lane.b32.xlu0 %v7063_v26, %s8898_s26  ;;  %v8857_v26 = vld [vmem:[%s8987_s10 + $0x98] sm:$0xff] }
 0x6b3   : > { %8070 = vrot.lane.b32.xlu1 %v8007_v16, %s8900_s29 }
 0x6b4   : > { %v7129_v41 = vpop.permute.xlu0 %7128 }
 0x6b5   : > { %7216 = vst.msk [vmem:[#allocation3 + $0x20] sm:$0xf] %vm3227_vm7, %v7129_v41  ;;  %v8057_v56 = vpop.permute.xlu1 %8056 }
 0x6b6   : > { %7776 = vst.msk [vmem:[#allocation3 + $0x20] sm:$0xf] %vm3788_vm5, %v7689_v10 }
 0x6b7   : > { %8128 = vst.msk [vmem:[#allocation3 + $0x60] sm:$0xf] %vm4125_vm12, %v8057_v56  ;;  %7140 = vrot.lane.b32.xlu2 %v7062_v13, %s8898_s26  ;;  %v8859_v13 = vld [vmem:[%s8987_s10 + $0x18] sm:$0xff] }
 0x6b9   : > { %v7167_v47 = vpop.permute.xlu2 %7166 }
 0x6ba   : > { %8036 = vrot.lane.b32.xlu0 %v7948_v50, %s8900_s29 }
 0x6bb   : > { %7700 = vrot.lane.b32.xlu1 %v7469_v62, %s8899_s27 }
 0x6bc   : > { %v7691_v23 = vpop.permute.xlu0 %7690 }
 0x6bd   : > { %v7131_v11 = vpop.permute.xlu1 %7130 }
 0x6be   : > { %7217 = vst.msk [vmem:[#allocation3 + $0x24] sm:$0xf] %vm3227_vm7, %v7131_v11  ;;  %v8811_v22 = vld [vmem:[#allocation3 + $0x60] sm:$0xff] }
 0x6bf   : > { %7777 = vst.msk [vmem:[#allocation3 + $0x24] sm:$0xf] %vm3788_vm5, %v7691_v23  ;;  %7702 = vrot.lane.b32.xlu2 %v7479_v38, %s8899_s27  ;;  %8773 = vmatmul.msk.bf16.gmra.mxu3 %vm4290_vm13, %v8811_v22 }
 0x6c0   : > { %8113 = vst.msk [vmem:[#allocation3 + $0x24] sm:$0xf] %vm4125_vm12, %v8027_v60 }
 0x6c1   : > { %v8061_v15 = vpop.permute.xlu2 %8060 }
 0x6c2   : > { %v8368_v9 = vpop.f32.mrf.mxu3 }
 0x6c3   : > { %8038 = vrot.lane.b32.xlu1 %v7951_v39, %s8900_s29  ;;  %v8369_v59 = vadd.f32 %v8852_v17, %v8368_v9  ;;  %v8862_v9 = vld [vmem:[%s8987_s10 + $0x20] sm:$0xff] }
 0x6c4   : > { %v6975_v29 = vpop.permute.xlu0 %6974 }
 0x6c5   : > { %7043 = vst.msk [vmem:[#allocation3 + $0x6c] sm:$0xf] %vm3033_vm6, %v6975_v29  ;;  %v8025_v35 = vpop.permute.xlu1 %8024 }
 0x6c6   : > { %7235 = vst.msk [vmem:[#allocation3 + $0x6c] sm:$0xf] %vm3227_vm7, %v7167_v47 }
 0x6c7   : > { %8425 = vst.msk [vmem:[%s11946_s20 + $0x80] sm:$0xff] %vm8408_vm0, %v8369_v59 }
 0x6c8   : > { %8112 = vst.msk [vmem:[#allocation3 + $0x20] sm:$0xf] %vm4125_vm12, %v8025_v35 }
 0x6c9   : > { %v7135_v40 = vpop.permute.xlu2 %7134 }
 0x6ca   : > { %7219 = vst.msk [vmem:[#allocation3 + $0x2c] sm:$0xf] %vm3227_vm7, %v7135_v40  ;;  %v8370_v14 = vpop.f32.mrf.mxu3 }
 0x6cb   : > { %v8371_v58 = vadd.f32 %v8853_v46, %v8370_v14  ;;  %v8863_v14 = vld [vmem:[%s8987_s10 + $0x28] sm:$0xff] }
 0x6cc   : > { %v7725_v45 = vpop.permute.xlu0 %7724  ;;  %v8328_v57 = vpop.f32.mrf.mxu1 }
 0x6cd   : > { %v7165_v54 = vpop.permute.xlu1 %7164  ;;  %8426 = vst.msk [vmem:[%s11946_s20 + $0x88] sm:$0xff] %vm8408_vm0, %v8371_v58  ;;  %v8329_v18 = vadd.f32 %v8854_v27, %v8328_v57 }
 0x6ce   : > { %7234 = vst.msk [vmem:[#allocation3 + $0x68] sm:$0xf] %vm3227_vm7, %v7165_v54 }
 0x6cf   : > { %v8803_v51 = vld [vmem:[#allocation3 + $0x20] sm:$0xff]  ;;  %7794 = vst.msk [vmem:[#allocation3 + $0x68] sm:$0xf] %vm3788_vm5, %v7725_v45 }
 0x6d0   : > { %8130 = vst.msk [vmem:[#allocation3 + $0x68] sm:$0xf] %vm4125_vm12, %v8061_v15  ;;  %8765 = vmatmul.msk.bf16.gmra.mxu1 %vm4290_vm13, %v8803_v51 }
 0x6d1   : > { %v8029_v30 = vpop.permute.xlu2 %8028  ;;  %8409 = vst.msk [vmem:[%s11946_s20] sm:$0xff] %vm8408_vm0, %v8329_v18  ;;  %v8864_v18 = vld [vmem:[%s8987_s10 + $0xb0] sm:$0xff] }
 0x6d4   : > { %v8063_v5 = vpop.permute.xlu0 %8062  ;;  %v8330_v10 = vpop.f32.mrf.mxu1 }
 0x6d5   : > { %v7727_v32 = vpop.permute.xlu1 %7726  ;;  %v8331_v61 = vadd.f32 %v8855_v2, %v8330_v10  ;;  %v8865_v10 = vld [vmem:[%s8987_s10 + $0xb8] sm:$0xff] }
 0x6d6   : > { %7795 = vst.msk [vmem:[#allocation3 + $0x6c] sm:$0xf] %vm3788_vm5, %v7727_v32 }
 0x6d7   : > { %8131 = vst.msk [vmem:[#allocation3 + $0x6c] sm:$0xf] %vm4125_vm12, %v8063_v5 }
 0x6d8   : > { %8410 = vst.msk [vmem:[%s11946_s20 + $0x8] sm:$0xff] %vm8408_vm0, %v8331_v61 }
 0x6d9   : > { %v6979_v28 = vpop.permute.xlu2 %6978 }
 0x6da   : > { %7045 = vst.msk [vmem:[#allocation3 + $0x74] sm:$0xf] %vm3033_vm6, %v6979_v28 }
 0x6dc   : > { %v7693_v6 = vpop.permute.xlu0 %7692 }
 0x6dd   : > { %v7133_v36 = vpop.permute.xlu1 %7132 }
 0x6de   : > { %7218 = vst.msk [vmem:[#allocation3 + $0x28] sm:$0xf] %vm3227_vm7, %v7133_v36  ;;  %v8812_v20 = vld [vmem:[#allocation3 + $0x68] sm:$0xff] }
 0x6df   : > { %7778 = vst.msk [vmem:[#allocation3 + $0x28] sm:$0xf] %vm3788_vm5, %v7693_v6  ;;  %8774 = vmatmul.msk.bf16.gmra.mxu3 %vm4290_vm13, %v8812_v20  ;;  %v8866_v6 = vld [vmem:[%s8987_s10 + $0x30] sm:$0xff] }
 0x6e0   : > { %8114 = vst.msk [vmem:[#allocation3 + $0x28] sm:$0xf] %vm4125_vm12, %v8029_v30 }
 0x6e1   : > { %v7729_v63 = vpop.permute.xlu2 %7728 }
 0x6e2   : > { %v8373_v53 = vpop.f32.mrf.mxu3 }
 0x6e3   : > { %v8374_v55 = vadd.f32 %v8856_v0, %v8373_v53  ;;  %v8867_v0 = vld [vmem:[%s8987_s10 + $0x38] sm:$0xff] }
 0x6e4   : > { %v8031_v37 = vpop.permute.xlu0 %8030 }
 0x6e5   : > { %v7695_v42 = vpop.permute.xlu1 %7694  ;;  %8427 = vst.msk [vmem:[%s11946_s20 + $0x90] sm:$0xff] %vm8408_vm0, %v8374_v55 }
 0x6e6   : > { %7779 = vst.msk [vmem:[#allocation3 + $0x2c] sm:$0xf] %vm3788_vm5, %v7695_v42 }
 0x6e7   : > { %8115 = vst.msk [vmem:[#allocation3 + $0x2c] sm:$0xf] %vm4125_vm12, %v8031_v37 }
 0x6e9   : > { %v8067_v16 = vpop.permute.xlu2 %8066 }
 0x6ea   : > { %v8375_v1 = vpop.f32.mrf.mxu3 }
 0x6eb   : > { %v8376_v60 = vadd.f32 %v8857_v26, %v8375_v1  ;;  %v8868_v1 = vld [vmem:[%s8987_s10 + $0xc0] sm:$0xff] }
 0x6ec   : > { %v7169_v7 = vpop.permute.xlu0 %7168  ;;  %v8333_v25 = vpop.f32.mrf.mxu1 }
 0x6ed   : > { %v6977_v48 = vpop.permute.xlu1 %6976  ;;  %8428 = vst.msk [vmem:[%s11946_s20 + $0x98] sm:$0xff] %vm8408_vm0, %v8376_v60  ;;  %v8334_v41 = vadd.f32 %v8858_v43, %v8333_v25  ;;  %v8869_v60 = vld [vmem:[%s8987_s10 + $0xc8] sm:$0xff]  ;;  %v8870_v43 = vld [vmem:[%s8987_s10 + $0x40] sm:$0xff] }
 0x6ee   : > { %7044 = vst.msk [vmem:[#allocation3 + $0x70] sm:$0xf] %vm3033_vm6, %v6977_v48  ;;  %v8804_v3 = vld [vmem:[#allocation3 + $0x28] sm:$0xff] }
 0x6ef   : > { %7236 = vst.msk [vmem:[#allocation3 + $0x70] sm:$0xf] %vm3227_vm7, %v7169_v7  ;;  %8766 = vmatmul.msk.bf16.gmra.mxu1 %vm4290_vm13, %v8804_v3 }
 0x6f0   : > { %7796 = vst.msk [vmem:[#allocation3 + $0x70] sm:$0xf] %vm3788_vm5, %v7729_v63 }
 0x6f1   : > { %v7697_v33 = vpop.permute.xlu2 %7696  ;;  %8411 = vst.msk [vmem:[%s11946_s20 + $0x10] sm:$0xff] %vm8408_vm0, %v8334_v41 }
 0x6f4   : > { %v7731_v56 = vpop.permute.xlu0 %7730  ;;  %v8335_v12 = vpop.f32.mrf.mxu1 }
 0x6f5   : > { %v7171_v34 = vpop.permute.xlu1 %7170  ;;  %v8336_v4 = vadd.f32 %v8859_v13, %v8335_v12  ;;  %v8872_v12 = vld [vmem:[%s8987_s10 + $0xd0] sm:$0xff] }
 0x6f6   : > { %7237 = vst.msk [vmem:[#allocation3 + $0x74] sm:$0xf] %vm3227_vm7, %v7171_v34 }
 0x6f7   : > { %7797 = vst.msk [vmem:[#allocation3 + $0x74] sm:$0xf] %vm3788_vm5, %v7731_v56 }
 0x6f8   : > { %8133 = vst.msk [vmem:[#allocation3 + $0x74] sm:$0xf] %vm4125_vm12, %v8067_v16 }
 0x6f9   : > { %8412 = vst.msk [vmem:[%s11946_s20 + $0x18] sm:$0xff] %vm8408_vm0, %v8336_v4  ;;  %v8035_v19 = vpop.permute.xlu2 %8034 }
 0x6fc   : > { %v7137_v44 = vpop.permute.xlu0 %7136 }
 0x6fd   : > { %7220 = vst.msk [vmem:[#allocation3 + $0x30] sm:$0xf] %vm3227_vm7, %v7137_v44  ;;  %v8065_v52 = vpop.permute.xlu1 %8064 }
 0x6fe   : > { %7780 = vst.msk [vmem:[#allocation3 + $0x30] sm:$0xf] %vm3788_vm5, %v7697_v33  ;;  %v8871_v33 = vld [vmem:[%s8987_s10 + $0x48] sm:$0xff] }
 0x6ff   : > { %8132 = vst.msk [vmem:[#allocation3 + $0x70] sm:$0xf] %vm4125_vm12, %v8065_v52 }
 0x701   : > { %v7173_v50 = vpop.permute.xlu2 %7172 }
 0x702   : > { %v8378_v47 = vpop.f32.mrf.mxu3 }
 0x703   : > { %v8379_v23 = vadd.f32 %v8860_v21, %v8378_v47  ;;  %v8875_v21 = vld [vmem:[%s8987_s10 + $0x58] sm:$0xff] }
 0x704   : > { %v7699_v62 = vpop.permute.xlu0 %7698 }
 0x705   : > { %v7139_v31 = vpop.permute.xlu1 %7138  ;;  %8429 = vst.msk [vmem:[%s11946_s20 + $0xa0] sm:$0xff] %vm8408_vm0, %v8379_v23 }
 0x706   : > { %v8813_v11 = vld [vmem:[#allocation3 + $0x70] sm:$0xff]  ;;  %7221 = vst.msk [vmem:[#allocation3 + $0x34] sm:$0xf] %vm3227_vm7, %v7139_v31 }
 0x707   : > { %7781 = vst.msk [vmem:[#allocation3 + $0x34] sm:$0xf] %vm3788_vm5, %v7699_v62  ;;  %8775 = vmatmul.msk.bf16.gmra.mxu3 %vm4290_vm13, %v8813_v11  ;;  %v8876_v11 = vld [vmem:[%s8987_s10 + $0xe0] sm:$0xff] }
 0x708   : > { %8117 = vst.msk [vmem:[#allocation3 + $0x34] sm:$0xf] %vm4125_vm12, %v8035_v19  ;;  %v8873_v19 = vld [vmem:[%s8987_s10 + $0xd8] sm:$0xff] }
 0x709   : > { %v7735_v49 = vpop.permute.xlu2 %7734 }
 0x70a   : > { %v8380_v38 = vpop.f32.mrf.mxu3 }
 0x70b   : > { %v8381_v8 = vadd.f32 %v8861_v24, %v8380_v38 }
 0x70c   : > { %v6981_v22 = vpop.permute.xlu0 %6980  ;;  %v8338_v39 = vpop.f32.mrf.mxu1 }
 0x70d   : > { %7046 = vst.msk [vmem:[#allocation3 + $0x78] sm:$0xf] %vm3033_vm6, %v6981_v22  ;;  %v8033_v15 = vpop.permute.xlu1 %8032  ;;  %v8339_v29 = vadd.f32 %v8862_v9, %v8338_v39  ;;  %v8877_v22 = vld [vmem:[%s8987_s10 + $0xe8] sm:$0xff] }
 0x70e   : > { %7238 = vst.msk [vmem:[#allocation3 + $0x78] sm:$0xf] %vm3227_vm7, %v7173_v50  ;;  %v8874_v50 = vld [vmem:[%s8987_s10 + $0x50] sm:$0xff] }
 0x70f   : > { %8430 = vst.msk [vmem:[%s11946_s20 + $0xa8] sm:$0xff] %vm8408_vm0, %v8381_v8 }
 0x710   : > { %8116 = vst.msk [vmem:[#allocation3 + $0x30] sm:$0xf] %vm4125_vm12, %v8033_v15  ;;  %v8878_v15 = vld [vmem:[%s8987_s10 + $0x60] sm:$0xff] }
 0x711   : > { %8413 = vst.msk [vmem:[%s11946_s20 + $0x20] sm:$0xff] %vm8408_vm0, %v8339_v29  ;;  %v7141_v17 = vpop.permute.xlu2 %7140  ;;  %v8879_v29 = vld [vmem:[%s8987_s10 + $0x68] sm:$0xff] }
 0x712   : > { %7222 = vst.msk [vmem:[#allocation3 + $0x38] sm:$0xf] %vm3227_vm7, %v7141_v17 }
 0x714   : > { %v7175_v59 = vpop.permute.xlu0 %7174  ;;  %v8340_v40 = vpop.f32.mrf.mxu1 }
 0x715   : > { %v6983_v35 = vpop.permute.xlu1 %6982  ;;  %v8341_v45 = vadd.f32 %v8863_v14, %v8340_v40 }
 0x716   : > { %7047 = vst.msk [vmem:[#allocation3 + $0x7c] sm:$0xf] %vm3033_vm6, %v6983_v35  ;;  %v8880_v35 = vld [vmem:[%s8987_s10 + $0xf0] sm:$0xff] }
 0x717   : > { %7239 = vst.msk [vmem:[#allocation3 + $0x7c] sm:$0xf] %vm3227_vm7, %v7175_v59  ;;  %v8805_v46 = vld [vmem:[#allocation3 + $0x30] sm:$0xff] }
 0x718   : > { %7799 = vst.msk [vmem:[#allocation3 + $0x7c] sm:$0xf] %vm3788_vm5, %v7735_v49  ;;  %8767 = vmatmul.msk.bf16.gmra.mxu1 %vm4290_vm13, %v8805_v46  ;;  %v8881_v46 = vld [vmem:[%s8987_s10 + $0xf8] sm:$0xff] }
 0x719   : > { %8414 = vst.msk [vmem:[%s11946_s20 + $0x28] sm:$0xff] %vm8408_vm0, %v8341_v45  ;;  %v7703_v30 = vpop.permute.xlu2 %7702 }
 0x71c   : > { %v8069_v58 = vpop.permute.xlu0 %8068 }
 0x71d   : > { %v7733_v54 = vpop.permute.xlu1 %7732 }
 0x71e   : > { %7798 = vst.msk [vmem:[#allocation3 + $0x78] sm:$0xf] %vm3788_vm5, %v7733_v54  ;;  %v8882_v54 = vld [vmem:[%s8987_s10 + $0x70] sm:$0xff] }
 0x71f   : > { %8134 = vst.msk [vmem:[#allocation3 + $0x78] sm:$0xf] %vm4125_vm12, %v8069_v58 }
 0x722   : > { %v8383_v57 = vpop.f32.mrf.mxu3 }
 0x723   : > { %v8384_v51 = vadd.f32 %v8864_v18, %v8383_v57  ;;  %v8883_v18 = vld [vmem:[%s8987_s10 + $0x78] sm:$0xff] }
 0x724   : > { %v7143_v27 = vpop.permute.xlu0 %7142 }
 0x725   : > { %7223 = vst.msk [vmem:[#allocation3 + $0x3c] sm:$0xf] %vm3227_vm7, %v7143_v27  ;;  %v8071_v5 = vpop.permute.xlu1 %8070 }
 0x726   : > { %7783 = vst.msk [vmem:[#allocation3 + $0x3c] sm:$0xf] %vm3788_vm5, %v7703_v30 }
 0x727   : > { %8431 = vst.msk [vmem:[%s11946_s20 + $0xb0] sm:$0xff] %vm8408_vm0, %v8384_v51 }
 0x728   : > { %8135 = vst.msk [vmem:[#allocation3 + $0x7c] sm:$0xf] %vm4125_vm12, %v8071_v5 }
 0x72a   : > { %v8385_v32 = vpop.f32.mrf.mxu3 }
 0x72b   : > { %v8386_v2 = vadd.f32 %v8865_v10, %v8385_v32 }
 0x72c   : > { %v8343_v28 = vpop.f32.mrf.mxu1  ;;  %v8037_v20 = vpop.permute.xlu0 %8036 }
 0x72d   : > { %v7701_v61 = vpop.permute.xlu1 %7700  ;;  %8432 = vst.msk [vmem:[%s11946_s20 + $0xb8] sm:$0xff] %vm8408_vm0, %v8386_v2  ;;  %v8344_v36 = vadd.f32 %v8866_v6, %v8343_v28 }
 0x72e   : > { %7782 = vst.msk [vmem:[#allocation3 + $0x38] sm:$0xf] %vm3788_vm5, %v7701_v61 }
 0x72f   : > { %v8814_v63 = vld [vmem:[#allocation3 + $0x78] sm:$0xff]  ;;  %8118 = vst.msk [vmem:[#allocation3 + $0x38] sm:$0xf] %vm4125_vm12, %v8037_v20 }
 0x730   : > { %8415 = vst.msk [vmem:[%s11946_s20 + $0x30] sm:$0xff] %vm8408_vm0, %v8344_v36  ;;  %8776 = vmatmul.msk.bf16.gmra.mxu3 %vm4290_vm13, %v8814_v63 }
 0x734   : > { %v8345_v37 = vpop.f32.mrf.mxu1 }
 0x735   : > { %v8039_v53 = vpop.permute.xlu1 %8038  ;;  %v8346_v55 = vadd.f32 %v8867_v0, %v8345_v37 }
 0x736   : > { %8119 = vst.msk [vmem:[#allocation3 + $0x3c] sm:$0xf] %vm4125_vm12, %v8039_v53 }
 0x737   : > { %8416 = vst.msk [vmem:[%s11946_s20 + $0x38] sm:$0xff] %vm8408_vm0, %v8346_v55 }
 0x73d   : > { %v8806_v42 = vld [vmem:[#allocation3 + $0x38] sm:$0xff] }
 0x73e   : > { %8768 = vmatmul.msk.bf16.gmra.mxu1 %vm4290_vm13, %v8806_v42 }
 0x742   : > { %v8388_v16 = vpop.f32.mrf.mxu3 }
 0x743   : > { %v8389_v7 = vadd.f32 %v8868_v1, %v8388_v16 }
 0x745   : > { %8433 = vst.msk [vmem:[%s11946_s20 + $0xc0] sm:$0xff] %vm8408_vm0, %v8389_v7 }
 0x74a   : > { %v8390_v26 = vpop.f32.mrf.mxu3 }
 0x74b   : > { %v8391_v48 = vadd.f32 %v8869_v60, %v8390_v26 }
 0x74d   : > { %8434 = vst.msk [vmem:[%s11946_s20 + $0xc8] sm:$0xff] %vm8408_vm0, %v8391_v48  ;;  %v8348_v25 = vpop.f32.mrf.mxu1 }
 0x74e   : > { %v8349_v41 = vadd.f32 %v8870_v43, %v8348_v25 }
 0x750   : > { %8417 = vst.msk [vmem:[%s11946_s20 + $0x40] sm:$0xff] %vm8408_vm0, %v8349_v41 }
 0x755   : > { %v8350_v3 = vpop.f32.mrf.mxu1 }
 0x756   : > { %v8351_v56 = vadd.f32 %v8871_v33, %v8350_v3 }
 0x758   : > { %8418 = vst.msk [vmem:[%s11946_s20 + $0x48] sm:$0xff] %vm8408_vm0, %v8351_v56 }
 0x762   : > { %v8393_v34 = vpop.f32.mrf.mxu3 }
 0x763   : > { %v8394_v13 = vadd.f32 %v8872_v12, %v8393_v34 }
 0x765   : > { %8435 = vst.msk [vmem:[%s11946_s20 + $0xd0] sm:$0xff] %vm8408_vm0, %v8394_v13 }
 0x76a   : > { %v8395_v4 = vpop.f32.mrf.mxu3 }
 0x76b   : > { %v8396_v44 = vadd.f32 %v8873_v19, %v8395_v4 }
 0x76c   : > { %v8353_v52 = vpop.f32.mrf.mxu1 }
 0x76d   : > { %8436 = vst.msk [vmem:[%s11946_s20 + $0xd8] sm:$0xff] %vm8408_vm0, %v8396_v44  ;;  %v8354_v47 = vadd.f32 %v8874_v50, %v8353_v52 }
 0x76f   : > { %8419 = vst.msk [vmem:[%s11946_s20 + $0x50] sm:$0xff] %vm8408_vm0, %v8354_v47 }
 0x774   : > { %v8355_v62 = vpop.f32.mrf.mxu1 }
 0x775   : > { %v8356_v23 = vadd.f32 %v8875_v21, %v8355_v62 }
 0x777   : > { %8420 = vst.msk [vmem:[%s11946_s20 + $0x58] sm:$0xff] %vm8408_vm0, %v8356_v23 }
 0x78a   : > { %v8398_v31 = vpop.f32.mrf.mxu3 }
 0x78b   : > { %v8399_v49 = vadd.f32 %v8876_v11, %v8398_v31 }
 0x78d   : > { %8437 = vst.msk [vmem:[%s11946_s20 + $0xe0] sm:$0xff] %vm8408_vm0, %v8399_v49 }
 0x792   : > { %v8400_v38 = vpop.f32.mrf.mxu3 }
 0x793   : > { %v8401_v24 = vadd.f32 %v8877_v22, %v8400_v38 }
 0x795   : > { %8438 = vst.msk [vmem:[%s11946_s20 + $0xe8] sm:$0xff] %vm8408_vm0, %v8401_v24  ;;  %v8358_v8 = vpop.f32.mrf.mxu1 }
 0x796   : > { %v8359_v39 = vadd.f32 %v8878_v15, %v8358_v8 }
 0x798   : > { %8421 = vst.msk [vmem:[%s11946_s20 + $0x60] sm:$0xff] %vm8408_vm0, %v8359_v39 }
 0x79d   : > { %v8360_v9 = vpop.f32.mrf.mxu1 }
 0x79e   : > { %v8361_v17 = vadd.f32 %v8879_v29, %v8360_v9 }
 0x7a0   : > { %8422 = vst.msk [vmem:[%s11946_s20 + $0x68] sm:$0xff] %vm8408_vm0, %v8361_v17 }
 0x7b3   : > { %v8403_v59 = vpop.f32.mrf.mxu3 }
 0x7b4   : > { %v8404_v40 = vadd.f32 %v8880_v35, %v8403_v59 }
 0x7b6   : > { %8439 = vst.msk [vmem:[%s11946_s20 + $0xf0] sm:$0xff] %vm8408_vm0, %v8404_v40 }
 0x7bb   : > { %v8405_v14 = vpop.f32.mrf.mxu3  ;;  %v8363_v45 = vpop.f32.mrf.mxu1 }
 0x7bc   : > { %v8406_v58 = vadd.f32 %v8881_v46, %v8405_v14  ;;  %v8364_v57 = vadd.f32 %v8882_v54, %v8363_v45 }
 0x7be   : > { %8440 = vst.msk [vmem:[%s11946_s20 + $0xf8] sm:$0xff] %vm8408_vm0, %v8406_v58 }
 0x7bf   : > { %8423 = vst.msk [vmem:[%s11946_s20 + $0x70] sm:$0xff] %vm8408_vm0, %v8364_v57 }
 0x7c3   : > { %v8365_v27 = vpop.f32.mrf.mxu1 }
 0x7c4   : > { %v8366_v51 = vadd.f32 %v8883_v18, %v8365_v27 }
 0x7c6   : > { %8424 = vst.msk [vmem:[%s11946_s20 + $0x78] sm:$0xff] %vm8408_vm0, %v8366_v51 }
 0x7c7 PF: > { %s17_s24 = sadd.s32 1, %s8890_s24  }
 0x7c8   : > { %p14_p4 = scmp.ge.s32.totalorder %s17_s24, 4  }
 0x7ca   :  { %16 = sbr.rel (!%p14_p4) target bundleno = 1 (0x1), region = 81 }

</bundles_post_ra>
